<compile_context>
chip_gen: v7x
topology: tpu7x:2x2x1
jax: 0.10.0
libtpu: 0.0.40
codegen_flags: <defaults>
</compile_context>

<pallas_src>
import functools

import jax
import jax.numpy as jnp
from jax.experimental import pallas as pl
from jax.experimental.pallas import tpu as pltpu


# ---------------------------------------------------------------------------
# Fused BasicBlock kernel (bt batch elements per grid step)
# ---------------------------------------------------------------------------
def _basic_block_kernel(x_ref, w1_ref, b1_ref, w2_ref, wsc_ref, b2sc_ref,
                        o_ref, xpad_ref, mid_ref,
                        *, stride, H, W, Ho, Wo, Cin, Cp, bt):
    f32 = jnp.float32
    bf16 = xpad_ref.dtype
    M = bt * Ho * Wo

    # --- stage 0: zero ONLY the 1-pixel halo borders (interiors are fully ----
    # --- rewritten every step) ------------------------------------------------
    xpad_ref[:, 0:1, :, :] = jnp.zeros((bt, 1, W + 2, Cin), bf16)
    xpad_ref[:, H + 1:H + 2, :, :] = jnp.zeros((bt, 1, W + 2, Cin), bf16)
    xpad_ref[:, :, 0:1, :] = jnp.zeros((bt, H + 2, 1, Cin), bf16)
    xpad_ref[:, :, W + 1:W + 2, :] = jnp.zeros((bt, H + 2, 1, Cin), bf16)
    mid_ref[:, 0:1, :, :] = jnp.zeros((bt, 1, Wo + 2, Cp), bf16)
    mid_ref[:, Ho + 1:Ho + 2, :, :] = jnp.zeros((bt, 1, Wo + 2, Cp), bf16)
    mid_ref[:, :, 0:1, :] = jnp.zeros((bt, Ho + 2, 1, Cp), bf16)
    mid_ref[:, :, Wo + 1:Wo + 2, :] = jnp.zeros((bt, Ho + 2, 1, Cp), bf16)

    # --- stage 1: haloed conv1 input in bf16 VMEM scratch (no HBM pad) -------
    xpad_ref[:, 1:H + 1, 1:W + 1, :] = x_ref[...]

    if stride == 1:
        def conv1_patch(kh, kw):
            return xpad_ref[:, kh:kh + Ho, kw:kw + Wo, :]
        xs = x_ref[...]                                 # (bt, Ho, Wo, Cin) bf16
    else:
        def conv1_patch(kh, kw):                        # strided VMEM loads
            return xpad_ref[:, pl.ds(kh, Ho, stride), pl.ds(kw, Wo, stride), :]
        xs = xpad_ref[:, pl.ds(1, Ho, stride), pl.ds(1, Wo, stride), :]

    # --- stage 2: conv1 (3x3, stride) — 9 MXU matmuls, bf16 in / f32 acc -----
    # BN1 scale is pre-folded into w1; first tap assigns the accumulator.
    # TODO(synk): for large Cin, K-fold conv1's taps like conv2 below.
    acc1 = None
    for kh in range(3):
        for kw in range(3):
            p = conv1_patch(kh, kw).reshape(M, Cin)
            d = jnp.dot(p, w1_ref[kh * 3 + kw], preferred_element_type=f32)
            acc1 = d if acc1 is None else acc1 + d
    out1 = jnp.maximum(acc1 + b1_ref[...], 0.0)         # BN1 bias + ReLU (f32)

    # --- stage 3: stash relu(bn1(conv1)) + halo in bf16 VMEM (never HBM) -----
    mid_ref[:, 1:Ho + 1, 1:Wo + 1, :] = out1.astype(bf16).reshape(bt, Ho, Wo, Cp)

    # --- stage 4: conv2 (3x3, stride 1) K-folded into ONE MXU matmul ---------
    # 9 tap slabs concatenated on the 128-aligned lane axis -> (M, 9*Cp), so
    # the whole tap/channel reduction happens inside the MXU accumulator.
    slabs = []
    for kh in range(3):
        for kw in range(3):
            slabs.append(mid_ref[:, kh:kh + Ho, kw:kw + Wo, :].reshape(M, Cp))
    col2 = jnp.concatenate(slabs, axis=-1)              # (M, 9*Cp) bf16
    acc2 = jnp.dot(col2, w2_ref[...], preferred_element_type=f32)

    # --- stage 5: shortcut (1x1 projection or lane-padded identity matmul) ---
    # Shortcut BN scale pre-folded into wsc, its bias into b2sc.
    sc = jnp.dot(xs.reshape(M, Cin), wsc_ref[...], preferred_element_type=f32)

    # --- stage 6: combined BN2/shortcut bias + residual add + ReLU, bf16 out -
    out2 = jnp.maximum(acc2 + sc + b2sc_ref[...], 0.0)
    o_ref[...] = out2.astype(o_ref.dtype).reshape(bt, Ho, Wo, Cp)


# ---------------------------------------------------------------------------
# Wrapper: layout plumbing (NCHW<->NHWC), BN folding, weight packing, pallas_call
# ---------------------------------------------------------------------------
def _round_up(x, m):
    return ((x + m - 1) // m) * m


def _fold_bn(gamma, beta, mean, var, eps=1e-5):
    scale = gamma / jnp.sqrt(var + eps)
    return scale, beta - mean * scale


def _pad_lanes(v, cp):
    """Zero-pad the last (output-channel / lane) dim of v up to cp."""
    pad = cp - v.shape[-1]
    if pad == 0:
        return v
    cfg = [(0, 0)] * (v.ndim - 1) + [(0, pad)]
    return jnp.pad(v, cfg)


def basic_block_forward(x_nchw, params, stride):
    N, Cin, H, W = x_nchw.shape
    planes = params["conv1_w"].shape[0]
    Cp = _round_up(planes, 128)                    # lane-dense channel width
    Ho = (H + 2 - 3) // stride + 1
    Wo = (W + 2 - 3) // stride + 1

    # Fold two images into the matmul M dimension when it keeps the grid >= 2.
    bt = 2 if (N % 2 == 0 and N >= 4) else 1

    # NCHW -> NHWC (channels on the 128-lane axis); bf16 activations.
    x = jnp.transpose(x_nchw, (0, 2, 3, 1)).astype(jnp.bfloat16)

    s1, b1 = _fold_bn(*params["bn1"])
    s2, b2 = _fold_bn(*params["bn2"])

    # conv1 3x3 weights: OIHW -> (9, Cin, planes); BN1 scale folded in,
    # output channels zero-padded to the lane width.
    w1 = jnp.transpose(params["conv1_w"], (2, 3, 1, 0)).reshape(9, Cin, planes)
    w1 = _pad_lanes(w1 * s1, Cp).astype(jnp.bfloat16)
    b1p = _pad_lanes(b1, Cp).reshape(1, Cp).astype(jnp.float32)

    # conv2 3x3 weights packed for the K-folded matmul: (9*Cp, Cp), BN2 scale
    # folded in, both input (K) and output (lane) channels zero-padded.
    w2 = jnp.transpose(params["conv2_w"], (2, 3, 1, 0)).reshape(9, planes, planes)
    w2 = jnp.pad(w2 * s2, ((0, 0), (0, Cp - planes), (0, Cp - planes)))
    w2 = w2.astype(jnp.bfloat16).reshape(9 * Cp, Cp)

    # shortcut: 1x1 projection + BN (scale folded into the weight, bias folded
    # into the combined residual bias), or a padded-identity matmul so the
    # kernel keeps a single code path (identity-through-bf16-matmul is exact).
    if "sc_w" in params:
        ssc, bsc = _fold_bn(*params["sc_bn"])
        wsc = jnp.transpose(params["sc_w"][:, :, 0, 0], (1, 0))      # (Cin, planes)
        wsc = _pad_lanes(wsc * ssc, Cp).astype(jnp.bfloat16)
        b2sc = _pad_lanes(b2 + bsc, Cp).reshape(1, Cp).astype(jnp.float32)
    else:
        wsc = jnp.eye(Cin, Cp, dtype=jnp.bfloat16)
        b2sc = _pad_lanes(b2, Cp).reshape(1, Cp).astype(jnp.float32)

    kernel = functools.partial(_basic_block_kernel, stride=stride, H=H, W=W,
                               Ho=Ho, Wo=Wo, Cin=Cin, Cp=Cp, bt=bt)

    # NOTE: on v7x the constant-index weight specs could use
    # pipeline_mode=pl.Buffered(1) to drop their second VMEM buffer.
    out = pl.pallas_call(
        kernel,
        out_shape=jax.ShapeDtypeStruct((N, Ho, Wo, Cp), jnp.bfloat16),
        grid=(N // bt,),
        in_specs=[
            pl.BlockSpec((bt, H, W, Cin), lambda n: (n, 0, 0, 0)),    # x (bf16)
            pl.BlockSpec((9, Cin, Cp), lambda n: (0, 0, 0)),          # w1 * s1
            pl.BlockSpec((1, Cp), lambda n: (0, 0)),                  # bn1 bias
            pl.BlockSpec((9 * Cp, Cp), lambda n: (0, 0)),             # packed w2 * s2
            pl.BlockSpec((Cin, Cp), lambda n: (0, 0)),                # shortcut w
            pl.BlockSpec((1, Cp), lambda n: (0, 0)),                  # bn2 + sc bias
        ],
        out_specs=pl.BlockSpec((bt, Ho, Wo, Cp), lambda n: (n, 0, 0, 0)),
        scratch_shapes=[
            pltpu.VMEM((bt, H + 2, W + 2, Cin), jnp.bfloat16),        # haloed input
            pltpu.VMEM((bt, Ho + 2, Wo + 2, Cp), jnp.bfloat16),       # haloed conv1 out
        ],
        compiler_params=pltpu.CompilerParams(
            dimension_semantics=("parallel",),
            vmem_limit_bytes=32 * 1024 * 1024),
    )(x, w1, b1p, w2, wsc, b2sc)

    # Drop lane padding, restore NCHW / f32 for the single-block interface.
    out = out[..., :planes].astype(jnp.float32)
    return jnp.transpose(out, (0, 3, 1, 2))


# ---------------------------------------------------------------------------
# Parameter init (deterministic, mirrors the PyTorch module's tensors)
# ---------------------------------------------------------------------------
def init_basic_block_params(key, in_planes, planes, stride):
    ks = jax.random.split(key, 12)

    def bn_stats(k0, k1, k2, k3, c):
        return (1.0 + 0.1 * jax.random.normal(k0, (c,), jnp.float32),   # gamma
                0.1 * jax.random.normal(k1, (c,), jnp.float32),         # beta
                0.05 * jax.random.normal(k2, (c,), jnp.float32),        # running_mean
                jax.random.uniform(k3, (c,), jnp.float32, 0.5, 1.5))    # running_var

    params = {
        "conv1_w": 0.1 * jax.random.normal(ks[0], (planes, in_planes, 3, 3), jnp.float32),
        "bn1": bn_stats(ks[1], ks[2], ks[3], ks[4], planes),
        "conv2_w": 0.1 * jax.random.normal(ks[5], (planes, planes, 3, 3), jnp.float32),
        "bn2": bn_stats(ks[6], ks[7], ks[8], ks[9], planes),
    }
    if stride != 1 or in_planes != planes:
        params["sc_w"] = 0.1 * jax.random.normal(ks[10], (planes, in_planes, 1, 1), jnp.float32)
        params["sc_bn"] = bn_stats(*jax.random.split(ks[11], 4), planes)
    return params


# ---------------------------------------------------------------------------
# Reference (bf16 conv operands / f32 accumulation; scales applied unfolded)
# ---------------------------------------------------------------------------
def reference_forward(x, params, stride, eps=1e-5):
    def conv(a, w, s, pad):
        return jax.lax.conv_general_dilated(
            a.astype(jnp.bfloat16), w.astype(jnp.bfloat16), (s, s),
            [(pad, pad), (pad, pad)],
            dimension_numbers=("NCHW", "OIHW", "NCHW"),
            preferred_element_type=jnp.float32)

    def bn(a, stats):
        scale, bias = _fold_bn(*stats, eps=eps)
        return a * scale[None, :, None, None] + bias[None, :, None, None]

    out = jax.nn.relu(bn(conv(x, params["conv1_w"], stride, 1), params["bn1"]))
    out = bn(conv(out, params["conv2_w"], 1, 1), params["bn2"])
    if "sc_w" in params:
        sc = bn(conv(x, params["sc_w"], stride, 0), params["sc_bn"])
    else:
        sc = x.astype(jnp.bfloat16).astype(jnp.float32)
    return jax.nn.relu(out + sc)


if __name__ == "__main__":
    key = jax.random.PRNGKey(0)
    configs = [
        # (N, in_planes, planes, H, W, stride)
        (2, 4, 8, 16, 16, 1),   # projection shortcut (channel change)
        (2, 8, 8, 16, 16, 1),   # identity shortcut
        (2, 4, 8, 16, 16, 2),   # projection shortcut + stride 2
    ]
    for i, (N, cin, planes, H, W, stride) in enumerate(configs):
        kx, kp, key = jax.random.split(key, 3)
        x = jax.random.normal(kx, (N, cin, H, W), jnp.float32)
        params = init_basic_block_params(kp, cin, planes, stride)

        out = jax.block_until_ready(basic_block_forward(x, params, stride))
        ref = reference_forward(x, params, stride)

        assert out.shape == ref.shape, (i, out.shape, ref.shape)
        if not bool(jnp.allclose(out, ref, rtol=1e-2, atol=1e-2)):
            max_err = float(jnp.max(jnp.abs(out - ref)))
            raise AssertionError(
                f"config {i} {(N, cin, planes, H, W, stride)}: mismatch vs "
                f"reference, max abs err {max_err}")

    print("KERNEL_OK")
</pallas_src>

<mosaic_0001>
module attributes {stable_mosaic.version = 11 : i64} {
  func.func @_basic_block_kernel(%arg0: i32, %arg1: memref<1x16x16x4xbf16, #tpu.memory_space<vmem>>, %arg2: memref<9x4x128xbf16, #tpu.memory_space<vmem>>, %arg3: memref<1x128xf32, #tpu.memory_space<vmem>>, %arg4: memref<1152x128xbf16, #tpu.memory_space<vmem>>, %arg5: memref<4x128xbf16, #tpu.memory_space<vmem>>, %arg6: memref<1x128xf32, #tpu.memory_space<vmem>>, %arg7: memref<1x16x16x128xbf16, #tpu.memory_space<vmem>>, %arg8: memref<1x18x18x4xbf16, #tpu.memory_space<vmem>>, %arg9: memref<1x18x18x128xbf16, #tpu.memory_space<vmem>>) attributes {dimension_semantics = [#tpu.dimension_semantics<parallel>], iteration_bounds = array<i64: 2>, scalar_prefetch = 0 : i64, scratch_operands = 2 : i64, tpu.core_type = #tpu.core_type<tc>, window_params = [{transform_indices = @transform_0, window_bounds = array<i64: 1, 16, 16, 4>}, {pipeline_mode = #tpu.pipeline_mode<synchronous>, transform_indices = @transform_1, window_bounds = array<i64: 9, 4, 128>}, {pipeline_mode = #tpu.pipeline_mode<synchronous>, transform_indices = @transform_2, window_bounds = array<i64: 1, 128>}, {pipeline_mode = #tpu.pipeline_mode<synchronous>, transform_indices = @transform_3, window_bounds = array<i64: 1152, 128>}, {pipeline_mode = #tpu.pipeline_mode<synchronous>, transform_indices = @transform_4, window_bounds = array<i64: 4, 128>}, {pipeline_mode = #tpu.pipeline_mode<synchronous>, transform_indices = @transform_5, window_bounds = array<i64: 1, 128>}, {transform_indices = @transform_6, window_bounds = array<i64: 1, 16, 16, 128>}]} {
    %cst = arith.constant 0.000000e+00 : bf16
    %0 = vector.broadcast %cst : bf16 to vector<1x1x18x4xbf16>
    %c0 = arith.constant 0 : index
    %c0_0 = arith.constant 0 : index
    %c0_1 = arith.constant 0 : index
    %c0_2 = arith.constant 0 : index
    %1 = vector.load %arg8[%c0, %c0_0, %c0_1, %c0_2] : memref<1x18x18x4xbf16, #tpu.memory_space<vmem>>, vector<1x1x18x4xbf16>
    tpu.vector_store %arg8[%c0, %c0_0, %c0_1, %c0_2], %0 {strides = array<i32>} : memref<1x18x18x4xbf16, #tpu.memory_space<vmem>>, vector<1x1x18x4xbf16>,
    %cst_3 = arith.constant 0.000000e+00 : bf16
    %2 = vector.broadcast %cst_3 : bf16 to vector<1x1x18x4xbf16>
    %c0_4 = arith.constant 0 : index
    %c17 = arith.constant 17 : index
    %c0_5 = arith.constant 0 : index
    %c0_6 = arith.constant 0 : index
    %3 = vector.load %arg8[%c0_4, %c17, %c0_5, %c0_6] : memref<1x18x18x4xbf16, #tpu.memory_space<vmem>>, vector<1x1x18x4xbf16>
    tpu.vector_store %arg8[%c0_4, %c17, %c0_5, %c0_6], %2 {strides = array<i32>} : memref<1x18x18x4xbf16, #tpu.memory_space<vmem>>, vector<1x1x18x4xbf16>,
    %cst_7 = arith.constant 0.000000e+00 : bf16
    %4 = vector.broadcast %cst_7 : bf16 to vector<1x18x1x4xbf16>
    %c0_8 = arith.constant 0 : index
    %c0_9 = arith.constant 0 : index
    %c0_10 = arith.constant 0 : index
    %c0_11 = arith.constant 0 : index
    %5 = vector.load %arg8[%c0_8, %c0_9, %c0_10, %c0_11] : memref<1x18x18x4xbf16, #tpu.memory_space<vmem>>, vector<1x18x1x4xbf16>
    tpu.vector_store %arg8[%c0_8, %c0_9, %c0_10, %c0_11], %4 {strides = array<i32>} : memref<1x18x18x4xbf16, #tpu.memory_space<vmem>>, vector<1x18x1x4xbf16>,
    %cst_12 = arith.constant 0.000000e+00 : bf16
    %6 = vector.broadcast %cst_12 : bf16 to vector<1x18x1x4xbf16>
    %c0_13 = arith.constant 0 : index
    %c0_14 = arith.constant 0 : index
    %c17_15 = arith.constant 17 : index
    %c0_16 = arith.constant 0 : index
    %7 = vector.load %arg8[%c0_13, %c0_14, %c17_15, %c0_16] : memref<1x18x18x4xbf16, #tpu.memory_space<vmem>>, vector<1x18x1x4xbf16>
    tpu.vector_store %arg8[%c0_13, %c0_14, %c17_15, %c0_16], %6 {strides = array<i32>} : memref<1x18x18x4xbf16, #tpu.memory_space<vmem>>, vector<1x18x1x4xbf16>,
    %cst_17 = arith.constant 0.000000e+00 : bf16
    %8 = vector.broadcast %cst_17 : bf16 to vector<1x1x18x128xbf16>
    %c0_18 = arith.constant 0 : index
    %c0_19 = arith.constant 0 : index
    %c0_20 = arith.constant 0 : index
    %c0_21 = arith.constant 0 : index
    %9 = vector.load %arg9[%c0_18, %c0_19, %c0_20, %c0_21] : memref<1x18x18x128xbf16, #tpu.memory_space<vmem>>, vector<1x1x18x128xbf16>
    tpu.vector_store %arg9[%c0_18, %c0_19, %c0_20, %c0_21], %8 {strides = array<i32>} : memref<1x18x18x128xbf16, #tpu.memory_space<vmem>>, vector<1x1x18x128xbf16>,
    %cst_22 = arith.constant 0.000000e+00 : bf16
    %10 = vector.broadcast %cst_22 : bf16 to vector<1x1x18x128xbf16>
    %c0_23 = arith.constant 0 : index
    %c17_24 = arith.constant 17 : index
    %c0_25 = arith.constant 0 : index
    %c0_26 = arith.constant 0 : index
    %11 = vector.load %arg9[%c0_23, %c17_24, %c0_25, %c0_26] : memref<1x18x18x128xbf16, #tpu.memory_space<vmem>>, vector<1x1x18x128xbf16>
    tpu.vector_store %arg9[%c0_23, %c17_24, %c0_25, %c0_26], %10 {strides = array<i32>} : memref<1x18x18x128xbf16, #tpu.memory_space<vmem>>, vector<1x1x18x128xbf16>,
    %cst_27 = arith.constant 0.000000e+00 : bf16
    %12 = vector.broadcast %cst_27 : bf16 to vector<1x18x1x128xbf16>
    %c0_28 = arith.constant 0 : index
    %c0_29 = arith.constant 0 : index
    %c0_30 = arith.constant 0 : index
    %c0_31 = arith.constant 0 : index
    %13 = vector.load %arg9[%c0_28, %c0_29, %c0_30, %c0_31] : memref<1x18x18x128xbf16, #tpu.memory_space<vmem>>, vector<1x18x1x128xbf16>
    tpu.vector_store %arg9[%c0_28, %c0_29, %c0_30, %c0_31], %12 {strides = array<i32>} : memref<1x18x18x128xbf16, #tpu.memory_space<vmem>>, vector<1x18x1x128xbf16>,
    %cst_32 = arith.constant 0.000000e+00 : bf16
    %14 = vector.broadcast %cst_32 : bf16 to vector<1x18x1x128xbf16>
    %c0_33 = arith.constant 0 : index
    %c0_34 = arith.constant 0 : index
    %c17_35 = arith.constant 17 : index
    %c0_36 = arith.constant 0 : index
    %15 = vector.load %arg9[%c0_33, %c0_34, %c17_35, %c0_36] : memref<1x18x18x128xbf16, #tpu.memory_space<vmem>>, vector<1x18x1x128xbf16>
    tpu.vector_store %arg9[%c0_33, %c0_34, %c17_35, %c0_36], %14 {strides = array<i32>} : memref<1x18x18x128xbf16, #tpu.memory_space<vmem>>, vector<1x18x1x128xbf16>,
    %c0_37 = arith.constant 0 : index
    %c0_38 = arith.constant 0 : index
    %c0_39 = arith.constant 0 : index
    %c0_40 = arith.constant 0 : index
    %16 = vector.load %arg1[%c0_37, %c0_38, %c0_39, %c0_40] : memref<1x16x16x4xbf16, #tpu.memory_space<vmem>>, vector<1x16x16x4xbf16>
    %c0_41 = arith.constant 0 : index
    %c1 = arith.constant 1 : index
    %c1_42 = arith.constant 1 : index
    %c0_43 = arith.constant 0 : index
    %17 = vector.load %arg8[%c0_41, %c1, %c1_42, %c0_43] : memref<1x18x18x4xbf16, #tpu.memory_space<vmem>>, vector<1x16x16x4xbf16>
    tpu.vector_store %arg8[%c0_41, %c1, %c1_42, %c0_43], %16 {strides = array<i32>} : memref<1x18x18x4xbf16, #tpu.memory_space<vmem>>, vector<1x16x16x4xbf16>,
    %c0_44 = arith.constant 0 : index
    %c0_45 = arith.constant 0 : index
    %c0_46 = arith.constant 0 : index
    %c0_47 = arith.constant 0 : index
    %18 = vector.load %arg1[%c0_44, %c0_45, %c0_46, %c0_47] : memref<1x16x16x4xbf16, #tpu.memory_space<vmem>>, vector<1x16x16x4xbf16>
    %c0_48 = arith.constant 0 : index
    %c0_49 = arith.constant 0 : index
    %c0_50 = arith.constant 0 : index
    %c0_51 = arith.constant 0 : index
    %19 = vector.load %arg8[%c0_48, %c0_49, %c0_50, %c0_51] : memref<1x18x18x4xbf16, #tpu.memory_space<vmem>>, vector<1x16x16x4xbf16>
    %20 = vector.shape_cast %19 : vector<1x16x16x4xbf16> to vector<256x4xbf16>
    %c0_52 = arith.constant 0 : index
    %c0_53 = arith.constant 0 : index
    %c0_54 = arith.constant 0 : index
    %21 = vector.load %arg2[%c0_52, %c0_53, %c0_54] : memref<9x4x128xbf16, #tpu.memory_space<vmem>>, vector<1x4x128xbf16>
    %22 = vector.shape_cast %21 : vector<1x4x128xbf16> to vector<4x128xbf16>
    %cst_55 = arith.constant dense<0.000000e+00> : vector<256x128xf32>
    %23 = tpu.matmul %20, %22, %cst_55 {dimension_numbers = #tpu.dot_dimension_numbers<[1], [0], [0], [1], [0, 0, 1, 1], [], []>} : vector<256x4xbf16>, vector<4x128xbf16>, vector<256x128xf32> -> vector<256x128xf32>
    %c0_56 = arith.constant 0 : index
    %c0_57 = arith.constant 0 : index
    %c1_58 = arith.constant 1 : index
    %c0_59 = arith.constant 0 : index
    %24 = vector.load %arg8[%c0_56, %c0_57, %c1_58, %c0_59] : memref<1x18x18x4xbf16, #tpu.memory_space<vmem>>, vector<1x16x16x4xbf16>
    %25 = vector.shape_cast %24 : vector<1x16x16x4xbf16> to vector<256x4xbf16>
    %c1_60 = arith.constant 1 : index
    %c0_61 = arith.constant 0 : index
    %c0_62 = arith.constant 0 : index
    %26 = vector.load %arg2[%c1_60, %c0_61, %c0_62] : memref<9x4x128xbf16, #tpu.memory_space<vmem>>, vector<1x4x128xbf16>
    %27 = vector.shape_cast %26 : vector<1x4x128xbf16> to vector<4x128xbf16>
    %cst_63 = arith.constant dense<0.000000e+00> : vector<256x128xf32>
    %28 = tpu.matmul %25, %27, %cst_63 {dimension_numbers = #tpu.dot_dimension_numbers<[1], [0], [0], [1], [0, 0, 1, 1], [], []>} : vector<256x4xbf16>, vector<4x128xbf16>, vector<256x128xf32> -> vector<256x128xf32>
    %29 = arith.addf %23, %28 : vector<256x128xf32>
    %c0_64 = arith.constant 0 : index
    %c0_65 = arith.constant 0 : index
    %c2 = arith.constant 2 : index
    %c0_66 = arith.constant 0 : index
    %30 = vector.load %arg8[%c0_64, %c0_65, %c2, %c0_66] : memref<1x18x18x4xbf16, #tpu.memory_space<vmem>>, vector<1x16x16x4xbf16>
    %31 = vector.shape_cast %30 : vector<1x16x16x4xbf16> to vector<256x4xbf16>
    %c2_67 = arith.constant 2 : index
    %c0_68 = arith.constant 0 : index
    %c0_69 = arith.constant 0 : index
    %32 = vector.load %arg2[%c2_67, %c0_68, %c0_69] : memref<9x4x128xbf16, #tpu.memory_space<vmem>>, vector<1x4x128xbf16>
    %33 = vector.shape_cast %32 : vector<1x4x128xbf16> to vector<4x128xbf16>
    %cst_70 = arith.constant dense<0.000000e+00> : vector<256x128xf32>
    %34 = tpu.matmul %31, %33, %cst_70 {dimension_numbers = #tpu.dot_dimension_numbers<[1], [0], [0], [1], [0, 0, 1, 1], [], []>} : vector<256x4xbf16>, vector<4x128xbf16>, vector<256x128xf32> -> vector<256x128xf32>
    %35 = arith.addf %29, %34 : vector<256x128xf32>
    %c0_71 = arith.constant 0 : index
    %c1_72 = arith.constant 1 : index
    %c0_73 = arith.constant 0 : index
    %c0_74 = arith.constant 0 : index
    %36 = vector.load %arg8[%c0_71, %c1_72, %c0_73, %c0_74] : memref<1x18x18x4xbf16, #tpu.memory_space<vmem>>, vector<1x16x16x4xbf16>
    %37 = vector.shape_cast %36 : vector<1x16x16x4xbf16> to vector<256x4xbf16>
    %c3 = arith.constant 3 : index
    %c0_75 = arith.constant 0 : index
    %c0_76 = arith.constant 0 : index
    %38 = vector.load %arg2[%c3, %c0_75, %c0_76] : memref<9x4x128xbf16, #tpu.memory_space<vmem>>, vector<1x4x128xbf16>
    %39 = vector.shape_cast %38 : vector<1x4x128xbf16> to vector<4x128xbf16>
    %cst_77 = arith.constant dense<0.000000e+00> : vector<256x128xf32>
    %40 = tpu.matmul %37, %39, %cst_77 {dimension_numbers = #tpu.dot_dimension_numbers<[1], [0], [0], [1], [0, 0, 1, 1], [], []>} : vector<256x4xbf16>, vector<4x128xbf16>, vector<256x128xf32> -> vector<256x128xf32>
    %41 = arith.addf %35, %40 : vector<256x128xf32>
    %c0_78 = arith.constant 0 : index
    %c1_79 = arith.constant 1 : index
    %c1_80 = arith.constant 1 : index
    %c0_81 = arith.constant 0 : index
    %42 = vector.load %arg8[%c0_78, %c1_79, %c1_80, %c0_81] : memref<1x18x18x4xbf16, #tpu.memory_space<vmem>>, vector<1x16x16x4xbf16>
    %43 = vector.shape_cast %42 : vector<1x16x16x4xbf16> to vector<256x4xbf16>
    %c4 = arith.constant 4 : index
    %c0_82 = arith.constant 0 : index
    %c0_83 = arith.constant 0 : index
    %44 = vector.load %arg2[%c4, %c0_82, %c0_83] : memref<9x4x128xbf16, #tpu.memory_space<vmem>>, vector<1x4x128xbf16>
    %45 = vector.shape_cast %44 : vector<1x4x128xbf16> to vector<4x128xbf16>
    %cst_84 = arith.constant dense<0.000000e+00> : vector<256x128xf32>
    %46 = tpu.matmul %43, %45, %cst_84 {dimension_numbers = #tpu.dot_dimension_numbers<[1], [0], [0], [1], [0, 0, 1, 1], [], []>} : vector<256x4xbf16>, vector<4x128xbf16>, vector<256x128xf32> -> vector<256x128xf32>
    %47 = arith.addf %41, %46 : vector<256x128xf32>
    %c0_85 = arith.constant 0 : index
    %c1_86 = arith.constant 1 : index
    %c2_87 = arith.constant 2 : index
    %c0_88 = arith.constant 0 : index
    %48 = vector.load %arg8[%c0_85, %c1_86, %c2_87, %c0_88] : memref<1x18x18x4xbf16, #tpu.memory_space<vmem>>, vector<1x16x16x4xbf16>
    %49 = vector.shape_cast %48 : vector<1x16x16x4xbf16> to vector<256x4xbf16>
    %c5 = arith.constant 5 : index
    %c0_89 = arith.constant 0 : index
    %c0_90 = arith.constant 0 : index
    %50 = vector.load %arg2[%c5, %c0_89, %c0_90] : memref<9x4x128xbf16, #tpu.memory_space<vmem>>, vector<1x4x128xbf16>
    %51 = vector.shape_cast %50 : vector<1x4x128xbf16> to vector<4x128xbf16>
    %cst_91 = arith.constant dense<0.000000e+00> : vector<256x128xf32>
    %52 = tpu.matmul %49, %51, %cst_91 {dimension_numbers = #tpu.dot_dimension_numbers<[1], [0], [0], [1], [0, 0, 1, 1], [], []>} : vector<256x4xbf16>, vector<4x128xbf16>, vector<256x128xf32> -> vector<256x128xf32>
    %53 = arith.addf %47, %52 : vector<256x128xf32>
    %c0_92 = arith.constant 0 : index
    %c2_93 = arith.constant 2 : index
    %c0_94 = arith.constant 0 : index
    %c0_95 = arith.constant 0 : index
    %54 = vector.load %arg8[%c0_92, %c2_93, %c0_94, %c0_95] : memref<1x18x18x4xbf16, #tpu.memory_space<vmem>>, vector<1x16x16x4xbf16>
    %55 = vector.shape_cast %54 : vector<1x16x16x4xbf16> to vector<256x4xbf16>
    %c6 = arith.constant 6 : index
    %c0_96 = arith.constant 0 : index
    %c0_97 = arith.constant 0 : index
    %56 = vector.load %arg2[%c6, %c0_96, %c0_97] : memref<9x4x128xbf16, #tpu.memory_space<vmem>>, vector<1x4x128xbf16>
    %57 = vector.shape_cast %56 : vector<1x4x128xbf16> to vector<4x128xbf16>
    %cst_98 = arith.constant dense<0.000000e+00> : vector<256x128xf32>
    %58 = tpu.matmul %55, %57, %cst_98 {dimension_numbers = #tpu.dot_dimension_numbers<[1], [0], [0], [1], [0, 0, 1, 1], [], []>} : vector<256x4xbf16>, vector<4x128xbf16>, vector<256x128xf32> -> vector<256x128xf32>
    %59 = arith.addf %53, %58 : vector<256x128xf32>
    %c0_99 = arith.constant 0 : index
    %c2_100 = arith.constant 2 : index
    %c1_101 = arith.constant 1 : index
    %c0_102 = arith.constant 0 : index
    %60 = vector.load %arg8[%c0_99, %c2_100, %c1_101, %c0_102] : memref<1x18x18x4xbf16, #tpu.memory_space<vmem>>, vector<1x16x16x4xbf16>
    %61 = vector.shape_cast %60 : vector<1x16x16x4xbf16> to vector<256x4xbf16>
    %c7 = arith.constant 7 : index
    %c0_103 = arith.constant 0 : index
    %c0_104 = arith.constant 0 : index
    %62 = vector.load %arg2[%c7, %c0_103, %c0_104] : memref<9x4x128xbf16, #tpu.memory_space<vmem>>, vector<1x4x128xbf16>
    %63 = vector.shape_cast %62 : vector<1x4x128xbf16> to vector<4x128xbf16>
    %cst_105 = arith.constant dense<0.000000e+00> : vector<256x128xf32>
    %64 = tpu.matmul %61, %63, %cst_105 {dimension_numbers = #tpu.dot_dimension_numbers<[1], [0], [0], [1], [0, 0, 1, 1], [], []>} : vector<256x4xbf16>, vector<4x128xbf16>, vector<256x128xf32> -> vector<256x128xf32>
    %65 = arith.addf %59, %64 : vector<256x128xf32>
    %c0_106 = arith.constant 0 : index
    %c2_107 = arith.constant 2 : index
    %c2_108 = arith.constant 2 : index
    %c0_109 = arith.constant 0 : index
    %66 = vector.load %arg8[%c0_106, %c2_107, %c2_108, %c0_109] : memref<1x18x18x4xbf16, #tpu.memory_space<vmem>>, vector<1x16x16x4xbf16>
    %67 = vector.shape_cast %66 : vector<1x16x16x4xbf16> to vector<256x4xbf16>
    %c8 = arith.constant 8 : index
    %c0_110 = arith.constant 0 : index
    %c0_111 = arith.constant 0 : index
    %68 = vector.load %arg2[%c8, %c0_110, %c0_111] : memref<9x4x128xbf16, #tpu.memory_space<vmem>>, vector<1x4x128xbf16>
    %69 = vector.shape_cast %68 : vector<1x4x128xbf16> to vector<4x128xbf16>
    %cst_112 = arith.constant dense<0.000000e+00> : vector<256x128xf32>
    %70 = tpu.matmul %67, %69, %cst_112 {dimension_numbers = #tpu.dot_dimension_numbers<[1], [0], [0], [1], [0, 0, 1, 1], [], []>} : vector<256x4xbf16>, vector<4x128xbf16>, vector<256x128xf32> -> vector<256x128xf32>
    %71 = arith.addf %65, %70 : vector<256x128xf32>
    %c0_113 = arith.constant 0 : index
    %c0_114 = arith.constant 0 : index
    %72 = vector.load %arg3[%c0_113, %c0_114] : memref<1x128xf32, #tpu.memory_space<vmem>>, vector<1x128xf32>
    %73 = vector.broadcast %72 : vector<1x128xf32> to vector<256x128xf32>
    %74 = arith.addf %71, %73 : vector<256x128xf32>
    %cst_115 = arith.constant 0.000000e+00 : f32
    %75 = vector.broadcast %cst_115 : f32 to vector<256x128xf32>
    %76 = arith.maximumf %74, %75 : vector<256x128xf32>
    %77 = arith.truncf %76 : vector<256x128xf32> to vector<256x128xbf16>
    %78 = vector.shape_cast %77 : vector<256x128xbf16> to vector<1x16x16x128xbf16>
    %c0_116 = arith.constant 0 : index
    %c1_117 = arith.constant 1 : index
    %c1_118 = arith.constant 1 : index
    %c0_119 = arith.constant 0 : index
    %79 = vector.load %arg9[%c0_116, %c1_117, %c1_118, %c0_119] : memref<1x18x18x128xbf16, #tpu.memory_space<vmem>>, vector<1x16x16x128xbf16>
    tpu.vector_store %arg9[%c0_116, %c1_117, %c1_118, %c0_119], %78 {strides = array<i32>} : memref<1x18x18x128xbf16, #tpu.memory_space<vmem>>, vector<1x16x16x128xbf16>,
    %c0_120 = arith.constant 0 : index
    %c0_121 = arith.constant 0 : index
    %c0_122 = arith.constant 0 : index
    %c0_123 = arith.constant 0 : index
    %80 = vector.load %arg9[%c0_120, %c0_121, %c0_122, %c0_123] : memref<1x18x18x128xbf16, #tpu.memory_space<vmem>>, vector<1x16x16x128xbf16>
    %81 = vector.shape_cast %80 : vector<1x16x16x128xbf16> to vector<256x128xbf16>
    %c0_124 = arith.constant 0 : index
    %c0_125 = arith.constant 0 : index
    %c1_126 = arith.constant 1 : index
    %c0_127 = arith.constant 0 : index
    %82 = vector.load %arg9[%c0_124, %c0_125, %c1_126, %c0_127] : memref<1x18x18x128xbf16, #tpu.memory_space<vmem>>, vector<1x16x16x128xbf16>
    %83 = vector.shape_cast %82 : vector<1x16x16x128xbf16> to vector<256x128xbf16>
    %c0_128 = arith.constant 0 : index
    %c0_129 = arith.constant 0 : index
    %c2_130 = arith.constant 2 : index
    %c0_131 = arith.constant 0 : index
    %84 = vector.load %arg9[%c0_128, %c0_129, %c2_130, %c0_131] : memref<1x18x18x128xbf16, #tpu.memory_space<vmem>>, vector<1x16x16x128xbf16>
    %85 = vector.shape_cast %84 : vector<1x16x16x128xbf16> to vector<256x128xbf16>
    %c0_132 = arith.constant 0 : index
    %c1_133 = arith.constant 1 : index
    %c0_134 = arith.constant 0 : index
    %c0_135 = arith.constant 0 : index
    %86 = vector.load %arg9[%c0_132, %c1_133, %c0_134, %c0_135] : memref<1x18x18x128xbf16, #tpu.memory_space<vmem>>, vector<1x16x16x128xbf16>
    %87 = vector.shape_cast %86 : vector<1x16x16x128xbf16> to vector<256x128xbf16>
    %c0_136 = arith.constant 0 : index
    %c1_137 = arith.constant 1 : index
    %c1_138 = arith.constant 1 : index
    %c0_139 = arith.constant 0 : index
    %88 = vector.load %arg9[%c0_136, %c1_137, %c1_138, %c0_139] : memref<1x18x18x128xbf16, #tpu.memory_space<vmem>>, vector<1x16x16x128xbf16>
    %89 = vector.shape_cast %88 : vector<1x16x16x128xbf16> to vector<256x128xbf16>
    %c0_140 = arith.constant 0 : index
    %c1_141 = arith.constant 1 : index
    %c2_142 = arith.constant 2 : index
    %c0_143 = arith.constant 0 : index
    %90 = vector.load %arg9[%c0_140, %c1_141, %c2_142, %c0_143] : memref<1x18x18x128xbf16, #tpu.memory_space<vmem>>, vector<1x16x16x128xbf16>
    %91 = vector.shape_cast %90 : vector<1x16x16x128xbf16> to vector<256x128xbf16>
    %c0_144 = arith.constant 0 : index
    %c2_145 = arith.constant 2 : index
    %c0_146 = arith.constant 0 : index
    %c0_147 = arith.constant 0 : index
    %92 = vector.load %arg9[%c0_144, %c2_145, %c0_146, %c0_147] : memref<1x18x18x128xbf16, #tpu.memory_space<vmem>>, vector<1x16x16x128xbf16>
    %93 = vector.shape_cast %92 : vector<1x16x16x128xbf16> to vector<256x128xbf16>
    %c0_148 = arith.constant 0 : index
    %c2_149 = arith.constant 2 : index
    %c1_150 = arith.constant 1 : index
    %c0_151 = arith.constant 0 : index
    %94 = vector.load %arg9[%c0_148, %c2_149, %c1_150, %c0_151] : memref<1x18x18x128xbf16, #tpu.memory_space<vmem>>, vector<1x16x16x128xbf16>
    %95 = vector.shape_cast %94 : vector<1x16x16x128xbf16> to vector<256x128xbf16>
    %c0_152 = arith.constant 0 : index
    %c2_153 = arith.constant 2 : index
    %c2_154 = arith.constant 2 : index
    %c0_155 = arith.constant 0 : index
    %96 = vector.load %arg9[%c0_152, %c2_153, %c2_154, %c0_155] : memref<1x18x18x128xbf16, #tpu.memory_space<vmem>>, vector<1x16x16x128xbf16>
    %97 = vector.shape_cast %96 : vector<1x16x16x128xbf16> to vector<256x128xbf16>
    %98 = tpu.concatenate %81, %83, %85, %87, %89, %91, %93, %95, %97 in 1 : vector<256x128xbf16>, vector<256x128xbf16>, vector<256x128xbf16>, vector<256x128xbf16>, vector<256x128xbf16>, vector<256x128xbf16>, vector<256x128xbf16>, vector<256x128xbf16>, vector<256x128xbf16> -> vector<256x1152xbf16>
    %c0_156 = arith.constant 0 : index
    %c0_157 = arith.constant 0 : index
    %99 = vector.load %arg4[%c0_156, %c0_157] : memref<1152x128xbf16, #tpu.memory_space<vmem>>, vector<1152x128xbf16>
    %cst_158 = arith.constant dense<0.000000e+00> : vector<256x128xf32>
    %100 = tpu.matmul %98, %99, %cst_158 {dimension_numbers = #tpu.dot_dimension_numbers<[1], [0], [0], [1], [0, 0, 1, 1], [], []>} : vector<256x1152xbf16>, vector<1152x128xbf16>, vector<256x128xf32> -> vector<256x128xf32>
    %101 = vector.shape_cast %18 : vector<1x16x16x4xbf16> to vector<256x4xbf16>
    %c0_159 = arith.constant 0 : index
    %c0_160 = arith.constant 0 : index
    %102 = vector.load %arg5[%c0_159, %c0_160] : memref<4x128xbf16, #tpu.memory_space<vmem>>, vector<4x128xbf16>
    %cst_161 = arith.constant dense<0.000000e+00> : vector<256x128xf32>
    %103 = tpu.matmul %101, %102, %cst_161 {dimension_numbers = #tpu.dot_dimension_numbers<[1], [0], [0], [1], [0, 0, 1, 1], [], []>} : vector<256x4xbf16>, vector<4x128xbf16>, vector<256x128xf32> -> vector<256x128xf32>
    %104 = arith.addf %100, %103 : vector<256x128xf32>
    %c0_162 = arith.constant 0 : index
    %c0_163 = arith.constant 0 : index
    %105 = vector.load %arg6[%c0_162, %c0_163] : memref<1x128xf32, #tpu.memory_space<vmem>>, vector<1x128xf32>
    %106 = vector.broadcast %105 : vector<1x128xf32> to vector<256x128xf32>
    %107 = arith.addf %104, %106 : vector<256x128xf32>
    %cst_164 = arith.constant 0.000000e+00 : f32
    %108 = vector.broadcast %cst_164 : f32 to vector<256x128xf32>
    %109 = arith.maximumf %107, %108 : vector<256x128xf32>
    %110 = arith.truncf %109 : vector<256x128xf32> to vector<256x128xbf16>
    %111 = vector.shape_cast %110 : vector<256x128xbf16> to vector<1x16x16x128xbf16>
    %c0_165 = arith.constant 0 : index
    %c0_166 = arith.constant 0 : index
    %c0_167 = arith.constant 0 : index
    %c0_168 = arith.constant 0 : index
    %112 = vector.load %arg7[%c0_165, %c0_166, %c0_167, %c0_168] : memref<1x16x16x128xbf16, #tpu.memory_space<vmem>>, vector<1x16x16x128xbf16>
    tpu.vector_store %arg7[%c0_165, %c0_166, %c0_167, %c0_168], %111 {strides = array<i32>} : memref<1x16x16x128xbf16, #tpu.memory_space<vmem>>, vector<1x16x16x128xbf16>,
    return
  }
  func.func @transform_0(%arg0: i32) -> (i32, i32, i32, i32) {
    %c0_i32 = arith.constant 0 : i32
    %c0_i32_0 = arith.constant 0 : i32
    %c0_i32_1 = arith.constant 0 : i32
    %c0_i32_2 = arith.constant 0 : i32
    return %arg0, %c0_i32, %c0_i32_0, %c0_i32_1 : i32, i32, i32, i32
  }
  func.func @transform_1(%arg0: i32) -> (i32, i32, i32) {
    %c0_i32 = arith.constant 0 : i32
    %c0_i32_0 = arith.constant 0 : i32
    %c0_i32_1 = arith.constant 0 : i32
    %c0_i32_2 = arith.constant 0 : i32
    return %c0_i32, %c0_i32_0, %c0_i32_1 : i32, i32, i32
  }
  func.func @transform_2(%arg0: i32) -> (i32, i32) {
    %c0_i32 = arith.constant 0 : i32
    %c0_i32_0 = arith.constant 0 : i32
    %c0_i32_1 = arith.constant 0 : i32
    return %c0_i32, %c0_i32_0 : i32, i32
  }
  func.func @transform_3(%arg0: i32) -> (i32, i32) {
    %c0_i32 = arith.constant 0 : i32
    %c0_i32_0 = arith.constant 0 : i32
    %c0_i32_1 = arith.constant 0 : i32
    return %c0_i32, %c0_i32_0 : i32, i32
  }
  func.func @transform_4(%arg0: i32) -> (i32, i32) {
    %c0_i32 = arith.constant 0 : i32
    %c0_i32_0 = arith.constant 0 : i32
    %c0_i32_1 = arith.constant 0 : i32
    return %c0_i32, %c0_i32_0 : i32, i32
  }
  func.func @transform_5(%arg0: i32) -> (i32, i32) {
    %c0_i32 = arith.constant 0 : i32
    %c0_i32_0 = arith.constant 0 : i32
    %c0_i32_1 = arith.constant 0 : i32
    return %c0_i32, %c0_i32_0 : i32, i32
  }
  func.func @transform_6(%arg0: i32) -> (i32, i32, i32, i32) {
    %c0_i32 = arith.constant 0 : i32
    %c0_i32_0 = arith.constant 0 : i32
    %c0_i32_1 = arith.constant 0 : i32
    %c0_i32_2 = arith.constant 0 : i32
    return %arg0, %c0_i32, %c0_i32_0, %c0_i32_1 : i32, i32, i32, i32
  }
}

</mosaic_0001>

<bundles_post_ra>
// kernel: tpu_custom_call.1
= control target key start
LH: loop header
LB: loop body
LE: loop exit
PB: predicated region body
PF: predicated region fallthrough
CT: control target
= control target key end

     0   :  { %11 = vsyncpa [#allocation5], 0  ;;  %s17438_s0 = inlined_call_operand.vmem [shape: bf16[2,16,16,4], index: 0, kind: input, shape index: {}]   ;;  %s17439_s1 = inlined_call_operand.vmem [shape: bf16[9,4,128], index: 1, kind: input, shape index: {}]   ;;  %s17440_s2 = inlined_call_operand.vmem [shape: f32[1,128], index: 2, kind: input, shape index: {}]   ;;  %s17441_s3 = inlined_call_operand.hbm [shape: bf16[1152,128], index: 3, kind: input, shape index: {}]   ;;  %s17442_s4 = inlined_call_operand.vmem [shape: bf16[4,128], index: 4, kind: input, shape index: {}]   ;;  %s17443_s5 = inlined_call_operand.vmem [shape: f32[1,128], index: 5, kind: input, shape index: {}]   ;;  %s17444_s6 = inlined_call_operand.hbm [shape: bf16[2,16,16,128], index: 6, kind: output, shape index: {}]  }
   0x1   :  { %12 = vsyncpa [#allocation6], 0 }
   0x2   :  { %14 = vsyncpa [#allocation6 + $0x1], 0  ;;  %s13384_s21 = smov 0   ;;  %s13386_s22 = smov 0  }
   0x3   :  { %s13388_s23 = smov 0   ;;  %s13390_s24 = smov 0  }
   0x4 LB: > { %s13405_s25 = sadd.s32 4294967295, %s13340_s24   ;;  %s10609_s26 = sadd.s32 4294967294, %s13340_s24   ;;  %s13340_s24 = sphi %s13390_s24, %s17803_s24   ;;  %s13336_s23 = sphi %s13388_s23, %s17802_s23   ;;  %s13332_s22 = sphi %s13386_s22, %s17801_s22   ;;  %s13328_s21 = sphi %s13384_s21, %s17800_s21  }
   0x5   : > { %s13409_s27 = sadd.s32 1, %s13340_s24   ;;  %s158_s28 = sadd.s32 1, %s13336_s23 }
   0x6   : > { %s155_s29 = ssub.s32 %s13340_s24, %s13409_s27  ;;  %p168_p0 = scmp.ne.s32.totalorder %s13336_s23, %s13332_s22 }
   0x7   : > { %p156_p1 = scmp.eq.s32.totalorder %s155_s29, 0  ;;  %p169_p2 = scmp.eq.s32.totalorder %s13405_s25, 1 }
   0x8   : > { %p174_p3 = scmp.ne.s32.totalorder %s13332_s22, %s13328_s21  ;;  %p175_p4 = scmp.eq.s32.totalorder %s10609_s26, 1 }
   0x9   : > { %s13420_s30 = scalar_select %p156_p1, %s13336_s23, %s158_s28  }
   0xa   : > { %p13422_p5 = por %p169_p2, %p168_p0  ;;  %p13426_p6 = por %p175_p4, %p174_p3 }
   0xb   : > { %p10610_p7 = scmp.ge.s32.totalorder %s13340_s24, 1  ;;  %p182_p8 = scmp.lt.s32.totalorder %s13340_s24, 3 }
   0xc   : > { %s17517_s7 = scalar_select %p13422_p5, 1, 0 }
   0xd   : > { %s17518_s8 = scalar_select %p13426_p6, 1, 0 }
   0xe   : > { %p17445_p9 = scmp.eq.s32.totalorder %s13405_s25, 0  ;;  %p13433_p10 = pnand %p10610_p7, %p182_p8 }
   0xf   : > { %s13342_s10 = smov [#allocation4]   ;;  %s13246_s15 = scalar_lea.hbm %s17441_s3, 9216 }
  0x10   : > { %s17519_s9 = scalar_select %p13433_p10, 1, 0 }
  0x11   : > { %s200_s11 = sshll.u32 %s13342_s10, 4  ;;  %p12955_p11 = pneg %p13433_p10  ;;  %s201_s11 = int_to_ptr.vmem [resolvable:$true] %s200_s11 }
  0x12   : > { %p13247_p13 = scmp.ne.s32.totalorder %s17441_s3, %s13246_s15  ;;  %p13253_p3 = scmp.lt.u32.totalorder %s13246_s15, %s17441_s3 }
  0x13   : > { %p13441_p12 = pnand %p17445_p9, %p12955_p11 }
  0x15   : > { %p13248_p0 = pneg %p13441_p12 }
  0x17   : > { %p13249_p1 = pnand %p13248_p0, %p13247_p13 }
  0x19   : > { %p13250_p2 = pneg %p13249_p1 }
  0x1b   : > { %p13255_p4 = pnand %p13253_p3, %p13250_p2 }
  0x1d   : > { %13258 = shalt.err (!%p13255_p4)
}
  0x1e   : > { %s13259_s20 = scalar_lea.vmem %s201_s11, 9216  ;;  %p13267_p9 = scmp.lt.s32.totalorder %s201_s11, %s201_s11 }
  0x1f   : > { %p13260_p7 = scmp.ne.s32.totalorder %s201_s11, %s13259_s20  ;;  %p13268_p6 = scmp.lt.s32.totalorder %s13259_s20, %s13259_s20 }
  0x21   : > { %p13262_p8 = pnand %p13260_p7, %p13248_p0  ;;  %p13269_p5 = por %p13268_p6, %p13267_p9 }
  0x23   : > { %p13263_p11 = pneg %p13262_p8 }
  0x25   : > { %p13270_p10 = pnand %p13269_p5, %p13263_p11 }
  0x27   : > { %13273 = shalt.err (!%p13270_p10)
}
  0x28   : > { %s13343_s26 = smov 64   ;;  %s13344_s28 = smov 4  }
  0x29   : > { %12958 = dma.hbm_to_vmem [thread:$0]  (!%p13441_p12), %s17441_s3, 9216, %s201_s11, [#allocation5], %s13343_s26, %s13343_s26, %s13344_s28  }
  0x2a   : > { %p17521_p13 = scmp.ne.s32.totalorder %s17519_s9, 0 }
  0x2c   : > { %230 = sbr.rel (%p17521_p13) target bundleno = 1761 (0x6e1), region = 44 }
  0x33   : > { %p17522_p1 = scmp.eq.s32.totalorder %s13405_s25, 0 }
  0x35   : > { %13319 = dma.done.wait (%p17522_p1), [#allocation5], 9216   ;;  %p17523_p0 = pmov %p17522_p1 }
  0x36   : > { %vm266_vm0 = vcmask 27648   ;;  %vm269_vm1 = vcmask 24576   ;;  %v13345_v0 = vmov 0   ;;  %p260_p5 = scmp.lt.s32.totalorder %s13405_s25, 1  ;;  %vm276_vm2 = vsmask.f32 256 }
  0x37   : > { %13321 = vsyncadd (%p17523_p0), [#allocation5], 4294958080  ;;  %267 = vst.msk [vmem:[#allocation2] sm:$0xf] %vm266_vm0, %v13345_v0  ;;  %vm1542_vm3 = vcmask 1041408   ;;  %v17526_v6 = vmov 0 }
  0x38   : > { %268 = vst.msk [vmem:[#allocation2 + $0x4] sm:$0xf] %vm266_vm0, %v13345_v0  ;;  %272 = vst.msk [vmem:[#allocation2 + $0xcc] sm:$0xf] %vm266_vm0, %v13345_v0  ;;  %s261_s9 = scalar_select %p260_p5, %s13405_s25, 1  ;;  %v17531_v39 = vmov 0 }
  0x39   : > { %270 = vst.msk [vmem:[#allocation2 + $0x8] sm:$0x1] %vm269_vm1, %v13345_v0  ;;  %274 = vst.msk [vmem:[#allocation2 + $0xd4] sm:$0x1] %vm269_vm1, %v13345_v0  ;;  %vm332_vm4 = vsmask.f32 7938 }
  0x3a   : > { %273 = vst.msk [vmem:[#allocation2 + $0xd0] sm:$0xf] %vm266_vm0, %v13345_v0  ;;  %388 = vst [vmem:[#allocation3] sm:$0xf] %v13345_v0  ;;  %s11329_s11 = sshll.u32 %s261_s9, 7  ;;  %vm1493_vm13 = vcmask 31744  }
  0x3b   : > { %389 = vst [vmem:[#allocation3 + $0x4] sm:$0xf] %v13345_v0  ;;  %390 = vst [vmem:[#allocation3 + $0x8] sm:$0x1] %v13345_v0  ;;  %v10618_v1 = vld [vmem:[%s17439_s1 + $0x2] sm:$0x3]  ;;  %s13500_s18 = scalar_lea.vmem %s17438_s0, %s11329_s11 }
  0x3c   : > { %392 = vst [vmem:[#allocation3 + $0xcc] sm:$0xf] %v13345_v0  ;;  %393 = vst [vmem:[#allocation3 + $0xd0] sm:$0xf] %v13345_v0  ;;  %v13487_v3 = vld [vmem:[%s17439_s1] sm:$0x3]  ;;  %12938 = vmatprep.subr.msk.bf16.mxu0 %vm1542_vm3, %v10618_v1 }
  0x3d   : > { %394 = vst [vmem:[#allocation3 + $0xd4] sm:$0x1] %v13345_v0  ;;  %vm13480_vm5 = vmand %vm269_vm1, %vm276_vm2  ;;  %vm538_vm6 = vsmask.f32 4368  ;;  %v1544_v4 = vsel %vm1542_vm3, %v10618_v1, 0  ;;  %vm2047_vm14 = vcmask 1042432  }
  0x3e   : > { %v278_v5 = vld [vmem:[#allocation2] sm:$0x1]  ;;  %vm13493_vm7 = vmand %vm269_vm1, %vm332_vm4  ;;  %12133 = vmatpush3.bf16.msra.mxu0 %v1544_v4  ;;  %v281_v11 = vld [vmem:[#allocation2 + $0xc] sm:$0x1]  ;;  %vm1056_vm8 = vsmask.f32 3328 }
  0x3f   : > { %v17527_v6 = vsel %vm13493_vm7, 4294967295, %v17526_v6  ;;  %v279_v8 = vsel %vm13480_vm5, 0, %v278_v5  ;;  %v1008_v10 = vld [vmem:[#allocation2 + $0x4] sm:$0xf]  ;;  %vm1057_vm9 = vsmask.f32 7440  ;;  %12939 = vmatprep.subr.msk.bf16.mxu0 %vm1542_vm3, %v13487_v3  ;;  %vm13525_vm10 = vmand %vm266_vm0, %vm332_vm4 }
  0x40   : > { %17528 = vst [vmem:[#allocation10_spill] sm:$0xff] %v17527_v6  ;;  %v334_v7 = vld [vmem:[#allocation2 + $0x8] sm:$0x1]  ;;  %280 = vst [vmem:[#allocation2] sm:$0x1] %v279_v8  ;;  %v1069_v12 = vshll.u32 %v1008_v10, 16 }
  0x41   : > { %v335_v9 = vsel %vm13493_vm7, 0, %v334_v7  ;;  %v1073_v13 = vshrl.u32 %v1008_v10, 16  ;;  %v282_v14 = vsel %vm13480_vm5, 0, %v281_v11  ;;  %v337_v15 = vld [vmem:[#allocation2 + $0x14] sm:$0x1]  ;;  %vm13533_vm11 = vmor %vm276_vm2, %vm538_vm6  ;;  %vm2048_vm15 = vcmask 1046532  }
  0x42   : > { %336 = vst [vmem:[#allocation2 + $0x8] sm:$0x1] %v335_v9  ;;  %283 = vst [vmem:[#allocation2 + $0xc] sm:$0x1] %v282_v14  ;;  %v338_v16 = vsel %vm13493_vm7, 0, %v337_v15  ;;  %v13514_v19 = vrot.slane %v1069_v12, 5 }
  0x43   : > { %v506_v17 = vld [vmem:[%s13500_s18] sm:$0xf]  ;;  %v507_v18 = vld [vmem:[%s13500_s18 + $0x4] sm:$0xf]  ;;  %v1075_v20 = vrot.slane %v1073_v13, 4  ;;  %v17532_v39 = vsel %vm13533_vm11, 4294967295, %v17531_v39  ;;  %vm13548_vm12 = vmor %vm1056_vm8, %vm1057_vm9 }
  0x44   : > { %339 = vst [vmem:[#allocation2 + $0x14] sm:$0x1] %v338_v16  ;;  %v541_v21 = vshrl.u32 %v506_v17, 16  ;;  %v544_v22 = vshll.u32 %v506_v17, 16  ;;  %v284_v23 = vld [vmem:[#allocation2 + $0x18] sm:$0x1]  ;;  %vm13933_vm1 = vmor %vm2047_vm14, %vm2048_vm15 }
  0x45   : > { %v549_v24 = vshrl.u32 %v507_v18, 16  ;;  %v552_v25 = vshll.u32 %v507_v18, 16  ;;  %v285_v26 = vsel %vm13480_vm5, 0, %v284_v23  ;;  %v340_v27 = vld [vmem:[#allocation2 + $0x20] sm:$0x1]  ;;  %v1076_v28 = vor.u32 %v1075_v20, %v13514_v19  ;;  %17533 = vst [vmem:[#allocation11_spill] sm:$0xff] %v17532_v39 }
  0x46   : > { %v543_v29 = vrot.slane %v541_v21, 7  ;;  %286 = vst [vmem:[#allocation2 + $0x18] sm:$0x1] %v285_v26  ;;  %v341_v30 = vsel %vm13493_vm7, 0, %v340_v27  ;;  %v508_v31 = vld [vmem:[%s13500_s18 + $0x8] sm:$0xf] }
  0x47   : > { %v509_v32 = vld [vmem:[%s13500_s18 + $0xc] sm:$0xf]  ;;  %v551_v34 = vrot.slane %v549_v24, 7  ;;  %342 = vst [vmem:[#allocation2 + $0x20] sm:$0x1] %v341_v30  ;;  %v558_v35 = vshrl.u32 %v508_v31, 16 }
  0x48   : > { %v561_v36 = vshll.u32 %v508_v31, 16  ;;  %v566_v37 = vshrl.u32 %v509_v32, 16  ;;  %v13529_v38 = vrot.slane %v1076_v28, 4  ;;  %v546_v40 = vor.u32 %v544_v22, %v543_v29  ;;  %v287_v42 = vld [vmem:[#allocation2 + $0x24] sm:$0x1]  ;;  %s257_s10 = sand.u32 1, %s13332_s22  }
  0x49   : > { %v547_v41 = vrot.slane %v543_v29, 4  ;;  %v343_v43 = vld [vmem:[#allocation2 + $0x2c] sm:$0x1]  ;;  %v1007_v44 = vld [vmem:[#allocation2] sm:$0xf]  ;;  %v554_v46 = vor.u32 %v552_v25, %v551_v34  ;;  %v556_v47 = vrot.slane %v551_v34, 4 }
  0x4a   : > { %v1040_v45 = vld [vmem:[#allocation2 + $0x8] sm:$0x1]  ;;  %v560_v48 = vrot.slane %v558_v35, 7  ;;  %v1060_v49 = vshrl.u32 %v1007_v44, 16  ;;  %v1063_v50 = vshll.u32 %v1007_v44, 16  ;;  %v569_v53 = vshll.u32 %v509_v32, 16 }
  0x4b   : > { %v1079_v51 = vshll.u32 %v1040_v45, 16  ;;  %v863_v52 = vld [vmem:[#allocation2 + $0xc] sm:$0xf]  ;;  %v555_v54 = vsel %vm13533_vm11, %v547_v41, %v554_v46  ;;  %v867_v56 = vld [vmem:[#allocation2 + $0x14] sm:$0x1]  ;;  %v568_v4 = vrot.slane %v566_v37, 7 }
  0x4c   : > { %v864_v55 = vsel %vm13525_vm10, %v546_v40, %v863_v52  ;;  %v563_v57 = vor.u32 %v561_v36, %v560_v48  ;;  %v564_v58 = vrot.slane %v560_v48, 4  ;;  %v510_v59 = vld [vmem:[%s13500_s18 + $0x10] sm:$0xf]  ;;  %v1062_v60 = vrot.slane %v1060_v49, 4  ;;  %866 = vst.msk [vmem:[#allocation2 + $0x10] sm:$0xf] %vm266_vm0, %v555_v54 }
  0x4d   : > { %v1065_v61 = vrot.slane %v1063_v50, 5  ;;  %v1081_v62 = vrot.slane %v1079_v51, 5  ;;  %865 = vst [vmem:[#allocation2 + $0xc] sm:$0xf] %v864_v55  ;;  %v868_v63 = vsel %vm13480_vm5, %v556_v47, %v867_v56  ;;  %v511_v0 = vld [vmem:[%s13500_s18 + $0x14] sm:$0xf]  ;;  %v571_v15 = vor.u32 %v569_v53, %v568_v4 }
  0x4e   : > { %869 = vst [vmem:[#allocation2 + $0x14] sm:$0x1] %v868_v63  ;;  %v870_v5 = vld [vmem:[#allocation2 + $0x18] sm:$0xf]  ;;  %v288_v7 = vsel %vm13480_vm5, 0, %v287_v42  ;;  %v344_v8 = vsel %vm13493_vm7, 0, %v343_v43 }
  0x4f   : > { %v575_v9 = vshrl.u32 %v510_v59, 16  ;;  %v1066_v10 = vor.u32 %v1065_v61, %v1062_v60  ;;  %v871_v11 = vsel %vm13525_vm10, %v563_v57, %v870_v5  ;;  %v874_v12 = vld [vmem:[#allocation2 + $0x20] sm:$0x1]  ;;  %289 = vst [vmem:[#allocation2 + $0x24] sm:$0x1] %v288_v7  ;;  %v578_v13 = vshll.u32 %v510_v59, 16 }
  0x50   : > { %345 = vst [vmem:[#allocation2 + $0x2c] sm:$0x1] %v344_v8  ;;  %v290_v14 = vld [vmem:[#allocation2 + $0x30] sm:$0x1]  ;;  %v573_v16 = vrot.slane %v568_v4, 4  ;;  %v583_v18 = vshrl.u32 %v511_v0, 16  ;;  %v1082_v22 = vsel %vm13548_vm12, %v13529_v38, %v1081_v62  ;;  %v572_v26 = vsel %vm13533_vm11, %v564_v58, %v571_v15 }
  0x51   : > { %872 = vst [vmem:[#allocation2 + $0x18] sm:$0xf] %v871_v11  ;;  %v577_v17 = vrot.slane %v575_v9, 7  ;;  %v346_v20 = vld [vmem:[#allocation2 + $0x38] sm:$0x1]  ;;  %v1067_v21 = vrot.slane %v1066_v10, 4 }
  0x52   : > { %v291_v23 = vsel %vm13480_vm5, 0, %v290_v14  ;;  %v347_v24 = vsel %vm13493_vm7, 0, %v346_v20  ;;  %v13566_v25 = vld [vmem:[%s13500_s18 + $0x18] sm:$0xf]  ;;  %v875_v27 = vsel %vm13480_vm5, %v573_v16, %v874_v12  ;;  %v586_v28 = vshll.u32 %v511_v0, 16  ;;  %s10615_s9 = sshll.u32 %s257_s10, 7 }
  0x53   : > { %292 = vst [vmem:[#allocation2 + $0x30] sm:$0x1] %v291_v23  ;;  %348 = vst [vmem:[#allocation2 + $0x38] sm:$0x1] %v347_v24  ;;  %v1072_v29 = vsel %vm13548_vm12, %v1067_v21, %v13514_v19  ;;  %v13577_v30 = vsel %vm1542_vm3, %v13487_v3, 0  ;;  %v581_v31 = vrot.slane %v577_v17, 4  ;;  %v580_v38 = vor.u32 %v578_v13, %v577_v17 }
  0x54   : > { %873 = vst.msk [vmem:[#allocation2 + $0x1c] sm:$0xf] %vm266_vm0, %v572_v26  ;;  %876 = vst [vmem:[#allocation2 + $0x20] sm:$0x1] %v875_v27  ;;  %v585_v32 = vrot.slane %v583_v18, 7  ;;  %v10619_v35 = vcombine.low %v1072_v29, %v1082_v22  ;;  %v592_v40 = vshrl.u32 %v13566_v25, 16 }
  0x55   : > { %v13581_v34 = vld [vmem:[%s13500_s18 + $0x1c] sm:$0xf]  ;;  %v13583_v36 = vld [vmem:[#allocation2 + $0xc] sm:$0xf]  ;;  %v13585_v37 = vld [vmem:[#allocation2 + $0x10] sm:$0xf] }
  0x56   : > { %v595_v19 = vshll.u32 %v13566_v25, 16  ;;  %v1041_v41 = vld [vmem:[#allocation2 + $0x14] sm:$0x1]  ;;  %v1084_v3 = vshrl.u32 %v13583_v36, 16  ;;  %v1087_v42 = vshll.u32 %v13583_v36, 16  ;;  %v1093_v43 = vshll.u32 %v13585_v37, 16  ;;  %12134 = vmatprep.mubr.msk.bf16.mxu0 %vm1493_vm13, %v10619_v35 }
  0x57   : > { %v1097_v44 = vshrl.u32 %v13585_v37, 16  ;;  %v1103_v45 = vshll.u32 %v1041_v41, 16  ;;  %v588_v46 = vor.u32 %v586_v28, %v585_v32  ;;  %v877_v47 = vld [vmem:[#allocation2 + $0x24] sm:$0xf]  ;;  %v600_v48 = vshrl.u32 %v13581_v34, 16  ;;  %s17314_s11 = scalar_lea.vmem [#allocation7], %s10615_s9 }
  0x58   : > { %v603_v49 = vshll.u32 %v13581_v34, 16  ;;  %v1086_v50 = vrot.slane %v1084_v3, 4  ;;  %v1089_v51 = vrot.slane %v1087_v42, 5  ;;  %v1095_v52 = vrot.slane %v1093_v43, 5  ;;  %v1011_v54 = vld [vmem:[#allocation2 + $0x18] sm:$0xf] }
  0x59   : > { %v1099_v53 = vrot.slane %v1097_v44, 4  ;;  %v1105_v55 = vrot.slane %v1103_v45, 5  ;;  %v1108_v56 = vshrl.u32 %v1011_v54, 16  ;;  %v1111_v57 = vshll.u32 %v1011_v54, 16  ;;  %v881_v63 = vld [vmem:[#allocation2 + $0x2c] sm:$0x1] }
  0x5a   : > { %v589_v58 = vsel %vm13533_vm11, %v581_v31, %v588_v46  ;;  %v1090_v59 = vor.u32 %v1089_v51, %v1086_v50  ;;  %v590_v61 = vrot.slane %v585_v32, 4  ;;  %v878_v62 = vsel %vm13525_vm10, %v580_v38, %v877_v47  ;;  %v293_v17 = vld [vmem:[#allocation2 + $0x3c] sm:$0x1]  ;;  %v349_v18 = vld [vmem:[#allocation2 + $0x44] sm:$0x1]  ;;  %s11394_s12 = sshll.u32 %s13405_s25, 11 }
  0x5b   : > { %v1100_v60 = vor.u32 %v1099_v53, %v1095_v52  ;;  %880 = vst.msk [vmem:[#allocation2 + $0x28] sm:$0xf] %vm266_vm0, %v589_v58  ;;  %v1012_v0 = vld [vmem:[#allocation2 + $0x1c] sm:$0xf]  ;;  %v1042_v4 = vld [vmem:[#allocation2 + $0x20] sm:$0x1]  ;;  %v10652_v8 = vcombine.low %v13583_v36, %v13585_v37  ;;  %s17389_s16 = scalar_lea.hbm %s17444_s6, %s11394_s12 }
  0x5c   : > { %v1110_v5 = vrot.slane %v1108_v56, 4  ;;  %v1113_v7 = vrot.slane %v1111_v57, 5  ;;  %879 = vst [vmem:[#allocation2 + $0x24] sm:$0xf] %v878_v62  ;;  %v1091_v9 = vrot.slane %v1090_v59, 4  ;;  %v1117_v11 = vshll.u32 %v1012_v0, 16 }
  0x5d   : > { %v1101_v10 = vrot.slane %v1100_v60, 4  ;;  %v1121_v12 = vshrl.u32 %v1012_v0, 16  ;;  %v1127_v14 = vshll.u32 %v1042_v4, 16  ;;  %v882_v15 = vsel %vm13480_vm5, %v590_v61, %v881_v63  ;;  %v884_v24 = vld [vmem:[#allocation2 + $0x30] sm:$0xf]  ;;  %s10535_s13 = sshll.u32 %s17314_s11, 4  ;;  %s17391_s13 = int_to_ptr.vmem [resolvable:$true] %s10535_s13 }
  0x5e   : > { %v1114_v13 = vor.u32 %v1113_v7, %v1110_v5  ;;  %v594_v16 = vrot.slane %v592_v40, 7  ;;  %v1096_v20 = vsel %vm13548_vm12, %v1091_v9, %v1095_v52  ;;  %v1119_v22 = vrot.slane %v1117_v11, 5  ;;  %883 = vst [vmem:[#allocation2 + $0x2c] sm:$0x1] %v882_v15  ;;  %v514_v25 = vld [vmem:[%s13500_s18 + $0x20] sm:$0xf] }
  0x5f   : > { %v1106_v21 = vsel %vm13548_vm12, %v1101_v10, %v1105_v55  ;;  %v1123_v23 = vrot.slane %v1121_v12, 4  ;;  %v1129_v28 = vrot.slane %v1127_v14, 5  ;;  %v602_v34 = vrot.slane %v600_v48, 7  ;;  %v888_v3 = vld [vmem:[#allocation2 + $0x38] sm:$0x1]  ;;  %s17397_s25 = scalar_lea.sflag [#allocation6], %s257_s10 }
  0x60   : > { %v10620_v26 = vcombine.low %v1096_v20, %v1106_v21  ;;  %v1115_v27 = vrot.slane %v1114_v13, 4  ;;  %v597_v29 = vor.u32 %v595_v19, %v594_v16  ;;  %v598_v32 = vrot.slane %v594_v16, 4  ;;  %v515_v56 = vld [vmem:[%s13500_s18 + $0x24] sm:$0xf]  ;;  %v296_v57 = vld [vmem:[#allocation2 + $0x48] sm:$0x1] }
  0x61   : > { %v1124_v31 = vor.u32 %v1123_v23, %v1119_v22  ;;  %v294_v35 = vsel %vm13480_vm5, 0, %v293_v17  ;;  %v350_v19 = vsel %vm13493_vm7, 0, %v349_v18  ;;  %v609_v42 = vshrl.u32 %v514_v25, 16  ;;  %v352_v62 = vld [vmem:[#allocation2 + $0x50] sm:$0x1]  ;;  %s13274_s17 = scalar_lea.vmem %s17391_s13, 2048 }
  0x62   : > { %12135 = vmatmul.mubr.msk.bf16.vlgmr.msra.gmra.mrb[0].mxu0 %vm1493_vm13, %v10620_v26  ;;  %v1120_v38 = vsel %vm13548_vm12, %v1115_v27, %v1119_v22  ;;  %v1014_v40 = vld [vmem:[#allocation2 + $0x28] sm:$0xf]  ;;  %v885_v41 = vsel %vm13525_vm10, %v597_v29, %v884_v24  ;;  %295 = vst [vmem:[#allocation2 + $0x3c] sm:$0x1] %v294_v35  ;;  %v605_v47 = vor.u32 %v603_v49, %v602_v34  ;;  %351 = vst [vmem:[#allocation2 + $0x44] sm:$0x1] %v350_v19  ;;  %p13275_p6 = scmp.ne.s32.totalorder %s17391_s13, %s13274_s17 }
  0x63   : > { %12167 = vmatpush3.bf16.msra.mxu0 %v13577_v30  ;;  %v1125_v43 = vrot.slane %v1124_v31, 4  ;;  %v1013_v44 = vld [vmem:[#allocation2 + $0x24] sm:$0xf]  ;;  %v1141_v45 = vshll.u32 %v1014_v40, 16  ;;  %v1145_v46 = vshrl.u32 %v1014_v40, 16  ;;  %v607_v51 = vrot.slane %v602_v34, 4 }
  0x64   : > { %886 = vst [vmem:[#allocation2 + $0x30] sm:$0xf] %v885_v41  ;;  %v1132_v48 = vshrl.u32 %v1013_v44, 16  ;;  %v1135_v50 = vshll.u32 %v1013_v44, 16  ;;  %v611_v52 = vrot.slane %v609_v42, 7  ;;  %v606_v30 = vsel %vm13533_vm11, %v598_v32, %v605_v47  ;;  %p17798_p9 = scmp.ne.s32.totalorder %s17517_s7, 0 }
  0x65   : > { %v1130_v53 = vsel %vm13548_vm12, %v1125_v43, %v1129_v28  ;;  %v1143_v54 = vrot.slane %v1141_v45, 5  ;;  %v1147_v55 = vrot.slane %v1145_v46, 4  ;;  %v1043_v59 = vld [vmem:[#allocation2 + $0x2c] sm:$0x1]  ;;  %887 = vst.msk [vmem:[#allocation2 + $0x34] sm:$0xf] %vm266_vm0, %v606_v30  ;;  %v889_v61 = vsel %vm13480_vm5, %v607_v51, %v888_v3 }
  0x66   : > { %v10621_v58 = vcombine.low %v1120_v38, %v1130_v53  ;;  %v1134_v49 = vrot.slane %v1132_v48, 4  ;;  %v1137_v60 = vrot.slane %v1135_v50, 5  ;;  %v1151_v0 = vshll.u32 %v1043_v59, 16  ;;  %890 = vst [vmem:[#allocation2 + $0x38] sm:$0x1] %v889_v61  ;;  %p13276_p10 = pnand %p13275_p6, %p17798_p9  ;;  %s13346_s19 = smov [#allocation7]  }
  0x67   : > { %v1148_v63 = vor.u32 %v1147_v55, %v1143_v54  ;;  %v612_v4 = vshll.u32 %v514_v25, 16  ;;  %v617_v7 = vshrl.u32 %v515_v56, 16  ;;  %v620_v9 = vshll.u32 %v515_v56, 16  ;;  %v516_v11 = vld [vmem:[%s13500_s18 + $0x28] sm:$0xf]  ;;  %s13278_s20 = sshll.u32 %s13346_s19, 4  ;;  %s13279_s20 = int_to_ptr.vmem [resolvable:$false] %s13278_s20 }
  0x68   : > { %12138 = vmatprep.mubr.msk.bf16.mxu0 %vm1493_vm13, %v10621_v58  ;;  %v1138_v5 = vor.u32 %v1137_v60, %v1134_v49  ;;  %v297_v10 = vsel %vm13480_vm5, 0, %v296_v57  ;;  %v1153_v13 = vrot.slane %v1151_v0, 5  ;;  %v353_v16 = vsel %vm13493_vm7, 0, %v352_v62  ;;  %v517_v31 = vld [vmem:[%s13500_s18 + $0x2c] sm:$0xf]  ;;  %p13277_p12 = pneg %p13276_p10  ;;  %s13280_s26 = scalar_lea.vmem %s13279_s20, 4096 }
  0x69   : > { %v1149_v12 = vrot.slane %v1148_v63, 4  ;;  %v614_v14 = vor.u32 %v612_v4, %v611_v52  ;;  %v891_v15 = vld [vmem:[#allocation2 + $0x3c] sm:$0xf]  ;;  %298 = vst [vmem:[#allocation2 + $0x48] sm:$0x1] %v297_v10  ;;  %v615_v20 = vrot.slane %v611_v52, 4  ;;  %p13281_p2 = scmp.lt.s32.totalorder %s17391_s13, %s13279_s20  ;;  %p13282_p3 = scmp.lt.s32.totalorder %s13280_s26, %s13274_s17 }
  0x6a   : > { %v1139_v17 = vrot.slane %v1138_v5, 4  ;;  %v619_v21 = vrot.slane %v617_v7, 7  ;;  %354 = vst [vmem:[#allocation2 + $0x50] sm:$0x1] %v353_v16  ;;  %v895_v26 = vld [vmem:[#allocation2 + $0x44] sm:$0x1] }
  0x6b   : > { %v1015_v18 = vld [vmem:[#allocation2 + $0x30] sm:$0xf]  ;;  %v1154_v22 = vsel %vm13548_vm12, %v1149_v12, %v1153_v13  ;;  %v892_v25 = vsel %vm13525_vm10, %v614_v14, %v891_v15  ;;  %v626_v32 = vshrl.u32 %v516_v11, 16  ;;  %v299_v34 = vld [vmem:[#allocation2 + $0x54] sm:$0x1]  ;;  %v629_v3 = vshll.u32 %v516_v11, 16  ;;  %p13283_p4 = por %p13282_p3, %p13281_p2 }
  0x6c   : > { %v1156_v23 = vshrl.u32 %v1015_v18, 16  ;;  %v1159_v24 = vshll.u32 %v1015_v18, 16  ;;  %v1144_v27 = vsel %vm13548_vm12, %v1139_v17, %v1143_v54  ;;  %v622_v28 = vor.u32 %v620_v9, %v619_v21  ;;  %893 = vst [vmem:[#allocation2 + $0x3c] sm:$0xf] %v892_v25  ;;  %v1016_v38 = vld [vmem:[#allocation2 + $0x34] sm:$0xf] }
  0x6d   : > { %v624_v29 = vrot.slane %v619_v21, 4  ;;  %v10622_v35 = vcombine.low %v1144_v27, %v1154_v22  ;;  %v355_v19 = vld [vmem:[#allocation2 + $0x5c] sm:$0x1]  ;;  %v1044_v42 = vld [vmem:[#allocation2 + $0x38] sm:$0x1]  ;;  %v1165_v43 = vshll.u32 %v1016_v38, 16  ;;  %p13284_p7 = pnand %p13283_p4, %p13277_p12 }
  0x6e   : > { %v1158_v40 = vrot.slane %v1156_v23, 4  ;;  %v1161_v41 = vrot.slane %v1159_v24, 5  ;;  %v1169_v44 = vshrl.u32 %v1016_v38, 16  ;;  %v623_v45 = vsel %vm13533_vm11, %v615_v20, %v622_v28  ;;  %v518_v47 = vld [vmem:[%s13500_s18 + $0x30] sm:$0xf] }
  0x6f   : > { %v896_v46 = vsel %vm13480_vm5, %v624_v29, %v895_v26  ;;  %12139 = vmatmul.mubr.msk.bf16.gmra.mrb[4].mxu0 %vm1493_vm13, %v10622_v35  ;;  %v1175_v50 = vshll.u32 %v1044_v42, 16  ;;  %894 = vst.msk [vmem:[#allocation2 + $0x40] sm:$0xf] %vm266_vm0, %v623_v45  ;;  %v628_v51 = vrot.slane %v626_v32, 7  ;;  %v634_v52 = vshrl.u32 %v517_v31, 16 }
  0x70   : > { %v1162_v48 = vor.u32 %v1161_v41, %v1158_v40  ;;  %897 = vst [vmem:[#allocation2 + $0x44] sm:$0x1] %v896_v46  ;;  %v519_v53 = vld [vmem:[%s13500_s18 + $0x34] sm:$0xf]  ;;  %v1167_v54 = vrot.slane %v1165_v43, 5  ;;  %v1171_v55 = vrot.slane %v1169_v44, 4 }
  0x71   : > { %v637_v30 = vshll.u32 %v517_v31, 16  ;;  %v898_v56 = vld [vmem:[#allocation2 + $0x48] sm:$0xf]  ;;  %v300_v57 = vsel %vm13480_vm5, 0, %v299_v34  ;;  %v1177_v59 = vrot.slane %v1175_v50, 5  ;;  %v631_v49 = vor.u32 %v629_v3, %v628_v51 }
  0x72   : > { %v1163_v58 = vrot.slane %v1162_v48, 4  ;;  %v632_v60 = vrot.slane %v628_v51, 4  ;;  %301 = vst [vmem:[#allocation2 + $0x54] sm:$0x1] %v300_v57  ;;  %v1172_v61 = vor.u32 %v1171_v55, %v1167_v54  ;;  %v636_v62 = vrot.slane %v634_v52, 7 }
  0x73   : > { %v356_v63 = vsel %vm13493_vm7, 0, %v355_v19  ;;  %v643_v0 = vshrl.u32 %v518_v47, 16  ;;  %v1017_v5 = vld [vmem:[#allocation2 + $0x3c] sm:$0xf]  ;;  %v899_v7 = vsel %vm13525_vm10, %v631_v49, %v898_v56  ;;  %v646_v9 = vshll.u32 %v518_v47, 16 }
  0x74   : > { %v1168_v4 = vsel %vm13548_vm12, %v1163_v58, %v1167_v54  ;;  %357 = vst [vmem:[#allocation2 + $0x5c] sm:$0x1] %v356_v63  ;;  %v651_v10 = vshrl.u32 %v519_v53, 16  ;;  %v1173_v11 = vrot.slane %v1172_v61, 4  ;;  %v1180_v12 = vshrl.u32 %v1017_v5, 16 }
  0x75   : > { %v1183_v13 = vshll.u32 %v1017_v5, 16  ;;  %v639_v14 = vor.u32 %v637_v30, %v636_v62  ;;  %900 = vst [vmem:[#allocation2 + $0x48] sm:$0xf] %v899_v7  ;;  %v641_v15 = vrot.slane %v636_v62, 4  ;;  %v902_v16 = vld [vmem:[#allocation2 + $0x50] sm:$0x1] }
  0x76   : > { %v645_v17 = vrot.slane %v643_v0, 7  ;;  %v653_v18 = vrot.slane %v651_v10, 7  ;;  %v654_v20 = vshll.u32 %v519_v53, 16  ;;  %v302_v21 = vld [vmem:[#allocation2 + $0x60] sm:$0x1]  ;;  %v1178_v22 = vsel %vm13548_vm12, %v1173_v11, %v1177_v59 }
  0x77   : > { %v1018_v23 = vld [vmem:[#allocation2 + $0x40] sm:$0xf]  ;;  %v1045_v24 = vld [vmem:[#allocation2 + $0x44] sm:$0x1]  ;;  %v1182_v25 = vrot.slane %v1180_v12, 4  ;;  %v1185_v26 = vrot.slane %v1183_v13, 5  ;;  %v640_v27 = vsel %vm13533_vm11, %v632_v60, %v639_v14  ;;  %v10623_v28 = vcombine.low %v1168_v4, %v1178_v22 }
  0x78   : > { %v1189_v29 = vshll.u32 %v1018_v23, 16  ;;  %v1193_v31 = vshrl.u32 %v1018_v23, 16  ;;  %v1199_v32 = vshll.u32 %v1045_v24, 16  ;;  %901 = vst.msk [vmem:[#allocation2 + $0x4c] sm:$0xf] %vm266_vm0, %v640_v27  ;;  %v903_v38 = vsel %vm13480_vm5, %v641_v15, %v902_v16 }
  0x79   : > { %v358_v34 = vld [vmem:[#allocation2 + $0x68] sm:$0x1]  ;;  %v1186_v35 = vor.u32 %v1185_v26, %v1182_v25  ;;  %v648_v40 = vor.u32 %v646_v9, %v645_v17  ;;  %v649_v41 = vrot.slane %v645_v17, 4  ;;  %v905_v3 = vld [vmem:[#allocation2 + $0x54] sm:$0xf]  ;;  %12142 = vmatprep.mubr.msk.bf16.mxu0 %vm1493_vm13, %v10623_v28  ;;  %v656_v45 = vor.u32 %v654_v20, %v653_v18 }
  0x7a   : > { %v520_v19 = vld [vmem:[%s13500_s18 + $0x38] sm:$0xf]  ;;  %v1191_v42 = vrot.slane %v1189_v29, 5  ;;  %v1195_v43 = vrot.slane %v1193_v31, 4  ;;  %v1201_v44 = vrot.slane %v1199_v32, 5  ;;  %v658_v48 = vrot.slane %v653_v18, 4 }
  0x7b   : > { %904 = vst [vmem:[#allocation2 + $0x50] sm:$0x1] %v903_v38  ;;  %v521_v46 = vld [vmem:[%s13500_s18 + $0x3c] sm:$0xf]  ;;  %v1187_v47 = vrot.slane %v1186_v35, 4  ;;  %v906_v50 = vsel %vm13525_vm10, %v648_v40, %v905_v3  ;;  %v303_v52 = vsel %vm13480_vm5, 0, %v302_v21  ;;  %v657_v55 = vsel %vm13533_vm11, %v649_v41, %v656_v45 }
  0x7c   : > { %v909_v51 = vld [vmem:[#allocation2 + $0x5c] sm:$0x1]  ;;  %v1196_v53 = vor.u32 %v1195_v43, %v1191_v42  ;;  %v1019_v54 = vld [vmem:[#allocation2 + $0x48] sm:$0xf]  ;;  %907 = vst [vmem:[#allocation2 + $0x54] sm:$0xf] %v906_v50 }
  0x7d   : > { %304 = vst [vmem:[#allocation2 + $0x60] sm:$0x1] %v303_v52  ;;  %v359_v30 = vsel %vm13493_vm7, 0, %v358_v34  ;;  %v660_v56 = vshrl.u32 %v520_v19, 16  ;;  %v305_v57 = vld [vmem:[#allocation2 + $0x6c] sm:$0x1]  ;;  %v1192_v58 = vsel %vm13548_vm12, %v1187_v47, %v1191_v42  ;;  %v910_v60 = vsel %vm13480_vm5, %v658_v48, %v909_v51 }
  0x7e   : > { %v1204_v59 = vshrl.u32 %v1019_v54, 16  ;;  %v1207_v49 = vshll.u32 %v1019_v54, 16  ;;  %908 = vst.msk [vmem:[#allocation2 + $0x58] sm:$0xf] %vm266_vm0, %v657_v55  ;;  %360 = vst [vmem:[#allocation2 + $0x68] sm:$0x1] %v359_v30 }
  0x7f   : > { %v1197_v61 = vrot.slane %v1196_v53, 4  ;;  %911 = vst [vmem:[#allocation2 + $0x5c] sm:$0x1] %v910_v60  ;;  %v662_v62 = vrot.slane %v660_v56, 7  ;;  %v663_v63 = vshll.u32 %v520_v19, 16  ;;  %v668_v0 = vshrl.u32 %v521_v46, 16 }
  0x80   : > { %v361_v4 = vld [vmem:[#allocation2 + $0x74] sm:$0x1]  ;;  %v1020_v5 = vld [vmem:[#allocation2 + $0x4c] sm:$0xf]  ;;  %v1206_v7 = vrot.slane %v1204_v59, 4  ;;  %v1209_v9 = vrot.slane %v1207_v49, 5 }
  0x81   : > { %v671_v10 = vshll.u32 %v521_v46, 16  ;;  %v306_v11 = vsel %vm13480_vm5, 0, %v305_v57  ;;  %v1202_v12 = vsel %vm13548_vm12, %v1197_v61, %v1201_v44  ;;  %v1213_v13 = vshll.u32 %v1020_v5, 16  ;;  %v522_v32 = vld [vmem:[%s13500_s18 + $0x40] sm:$0xf] }
  0x82   : > { %v1217_v14 = vshrl.u32 %v1020_v5, 16  ;;  %307 = vst [vmem:[#allocation2 + $0x6c] sm:$0x1] %v306_v11  ;;  %v10624_v15 = vcombine.low %v1192_v58, %v1202_v12  ;;  %v1046_v16 = vld [vmem:[#allocation2 + $0x50] sm:$0x1]  ;;  %v1210_v17 = vor.u32 %v1209_v9, %v1206_v7  ;;  %v666_v18 = vrot.slane %v662_v62, 4 }
  0x83   : > { %v670_v20 = vrot.slane %v668_v0, 7  ;;  %v1215_v21 = vrot.slane %v1213_v13, 5  ;;  %v1223_v23 = vshll.u32 %v1046_v16, 16  ;;  %v362_v24 = vsel %vm13493_vm7, 0, %v361_v4  ;;  %v1021_v26 = vld [vmem:[#allocation2 + $0x54] sm:$0xf] }
  0x84   : > { %v1219_v22 = vrot.slane %v1217_v14, 4  ;;  %12143 = vmatmul.mubr.msk.bf16.gmra.mrb[8].mxu0 %vm1493_vm13, %v10624_v15  ;;  %v1211_v25 = vrot.slane %v1210_v17, 4  ;;  %v665_v27 = vor.u32 %v663_v63, %v662_v62  ;;  %v912_v31 = vld [vmem:[#allocation2 + $0x60] sm:$0xf]  ;;  %363 = vst [vmem:[#allocation2 + $0x74] sm:$0x1] %v362_v24 }
  0x85   : > { %v673_v28 = vor.u32 %v671_v10, %v670_v20  ;;  %v675_v29 = vrot.slane %v670_v20, 4  ;;  %v1225_v35 = vrot.slane %v1223_v23, 5  ;;  %v1022_v38 = vld [vmem:[#allocation2 + $0x58] sm:$0xf]  ;;  %v1228_v40 = vshrl.u32 %v1021_v26, 16 }
  0x86   : > { %v1220_v34 = vor.u32 %v1219_v22, %v1215_v21  ;;  %v1231_v41 = vshll.u32 %v1021_v26, 16  ;;  %v1216_v3 = vsel %vm13548_vm12, %v1211_v25, %v1215_v21  ;;  %v1047_v19 = vld [vmem:[#allocation2 + $0x5c] sm:$0x1]  ;;  %v1237_v42 = vshll.u32 %v1022_v38, 16  ;;  %v916_v45 = vld [vmem:[#allocation2 + $0x68] sm:$0x1] }
  0x87   : > { %v1241_v43 = vshrl.u32 %v1022_v38, 16  ;;  %v674_v44 = vsel %vm13533_vm11, %v666_v18, %v673_v28  ;;  %v1230_v47 = vrot.slane %v1228_v40, 4  ;;  %v1247_v50 = vshll.u32 %v1047_v19, 16  ;;  %v523_v51 = vld [vmem:[%s13500_s18 + $0x44] sm:$0xf] }
  0x88   : > { %v1221_v46 = vrot.slane %v1220_v34, 4  ;;  %v1233_v48 = vrot.slane %v1231_v41, 5  ;;  %915 = vst.msk [vmem:[#allocation2 + $0x64] sm:$0xf] %vm266_vm0, %v674_v44  ;;  %v1239_v52 = vrot.slane %v1237_v42, 5  ;;  %v913_v54 = vsel %vm13525_vm10, %v665_v27, %v912_v31 }
  0x89   : > { %v1243_v53 = vrot.slane %v1241_v43, 4  ;;  %v917_v55 = vsel %vm13480_vm5, %v675_v29, %v916_v45  ;;  %v308_v30 = vld [vmem:[#allocation2 + $0x78] sm:$0x1]  ;;  %v1249_v58 = vrot.slane %v1247_v50, 5  ;;  %914 = vst [vmem:[#allocation2 + $0x60] sm:$0xf] %v913_v54 }
  0x8a   : > { %v1226_v56 = vsel %vm13548_vm12, %v1221_v46, %v1225_v35  ;;  %v1234_v57 = vor.u32 %v1233_v48, %v1230_v47  ;;  %918 = vst [vmem:[#allocation2 + $0x68] sm:$0x1] %v917_v55  ;;  %v677_v59 = vshrl.u32 %v522_v32, 16  ;;  %v364_v49 = vld [vmem:[#allocation2 + $0x80] sm:$0x1]  ;;  %v680_v63 = vshll.u32 %v522_v32, 16 }
  0x8b   : > { %v524_v60 = vld [vmem:[%s13500_s18 + $0x48] sm:$0xf]  ;;  %v10625_v61 = vcombine.low %v1216_v3, %v1226_v56  ;;  %v1244_v62 = vor.u32 %v1243_v53, %v1239_v52  ;;  %v685_v0 = vshrl.u32 %v523_v51, 16  ;;  %v919_v4 = vld [vmem:[#allocation2 + $0x6c] sm:$0xf]  ;;  %v688_v9 = vshll.u32 %v523_v51, 16 }
  0x8c   : > { %v1235_v5 = vrot.slane %v1234_v57, 4  ;;  %v679_v7 = vrot.slane %v677_v59, 7  ;;  %v923_v10 = vld [vmem:[#allocation2 + $0x74] sm:$0x1]  ;;  %v309_v11 = vsel %vm13480_vm5, 0, %v308_v30  ;;  %v365_v14 = vsel %vm13493_vm7, 0, %v364_v49 }
  0x8d   : > { %12146 = vmatprep.mubr.msk.bf16.mxu0 %vm1493_vm13, %v10625_v61  ;;  %v1245_v12 = vrot.slane %v1244_v62, 4  ;;  %v687_v13 = vrot.slane %v685_v0, 7  ;;  %310 = vst [vmem:[#allocation2 + $0x78] sm:$0x1] %v309_v11  ;;  %v694_v15 = vshrl.u32 %v524_v60, 16  ;;  %v697_v22 = vshll.u32 %v524_v60, 16 }
  0x8e   : > { %v13709_v16 = vld [vmem:[%s17439_s1 + $0x4] sm:$0x3]  ;;  %v1240_v17 = vsel %vm13548_vm12, %v1235_v5, %v1239_v52  ;;  %v682_v18 = vor.u32 %v680_v63, %v679_v7  ;;  %v683_v20 = vrot.slane %v679_v7, 4  ;;  %366 = vst [vmem:[#allocation2 + $0x80] sm:$0x1] %v365_v14 }
  0x8f   : > { %v525_v21 = vld [vmem:[%s13500_s18 + $0x4c] sm:$0xf]  ;;  %v311_v23 = vld [vmem:[#allocation2 + $0x84] sm:$0x1]  ;;  %12940 = vmatprep.subr.msk.bf16.mxu0 %vm1542_vm3, %v13709_v16  ;;  %v1250_v24 = vsel %vm13548_vm12, %v1245_v12, %v1249_v58  ;;  %v690_v26 = vor.u32 %v688_v9, %v687_v13  ;;  %v692_v27 = vrot.slane %v687_v13, 4  ;;  %v696_v28 = vrot.slane %v694_v15, 7 }
  0x90   : > { %v1024_v25 = vld [vmem:[#allocation2 + $0x64] sm:$0xf]  ;;  %v367_v29 = vld [vmem:[#allocation2 + $0x8c] sm:$0x1]  ;;  %v10626_v31 = vcombine.low %v1240_v17, %v1250_v24  ;;  %v920_v35 = vsel %vm13525_vm10, %v682_v18, %v919_v4  ;;  %v13721_v38 = vld [vmem:[%s13500_s18 + $0x50] sm:$0xf] }
  0x91   : > { %v1261_v32 = vshll.u32 %v1024_v25, 16  ;;  %v1265_v34 = vshrl.u32 %v1024_v25, 16  ;;  %v13723_v40 = vld [vmem:[#allocation2 + $0x60] sm:$0xf]  ;;  %v1048_v41 = vld [vmem:[#allocation2 + $0x68] sm:$0x1]  ;;  %v691_v3 = vsel %vm13533_vm11, %v683_v20, %v690_v26  ;;  %v924_v19 = vsel %vm13480_vm5, %v692_v27, %v923_v10 }
  0x92   : > { %921 = vst [vmem:[#allocation2 + $0x6c] sm:$0xf] %v920_v35  ;;  %v699_v42 = vor.u32 %v697_v22, %v696_v28  ;;  %v700_v43 = vrot.slane %v696_v28, 4  ;;  %v13730_v44 = vld [vmem:[%s13500_s18 + $0x54] sm:$0xf]  ;;  %12147 = vmatmul.mubr.msk.bf16.gmra.mrb[12].mxu0 %vm1493_vm13, %v10626_v31  ;;  %v1252_v45 = vshrl.u32 %v13723_v40, 16 }
  0x93   : > { %v1255_v46 = vshll.u32 %v13723_v40, 16  ;;  %v1263_v47 = vrot.slane %v1261_v32, 5  ;;  %v1267_v48 = vrot.slane %v1265_v34, 4  ;;  %922 = vst.msk [vmem:[#allocation2 + $0x70] sm:$0xf] %vm266_vm0, %v691_v3  ;;  %v1271_v50 = vshll.u32 %v1048_v41, 16 }
  0x94   : > { %925 = vst [vmem:[#allocation2 + $0x74] sm:$0x1] %v924_v19  ;;  %v702_v51 = vshrl.u32 %v525_v21, 16  ;;  %v705_v52 = vshll.u32 %v525_v21, 16  ;;  %v312_v53 = vsel %vm13480_vm5, 0, %v311_v23  ;;  %v1254_v54 = vrot.slane %v1252_v45, 4 }
  0x95   : > { %v1257_v55 = vrot.slane %v1255_v46, 5  ;;  %v1268_v30 = vor.u32 %v1267_v48, %v1263_v47  ;;  %v926_v56 = vld [vmem:[#allocation2 + $0x78] sm:$0xf]  ;;  %313 = vst [vmem:[#allocation2 + $0x84] sm:$0x1] %v312_v53  ;;  %v368_v57 = vsel %vm13493_vm7, 0, %v367_v29 }
  0x96   : > { %v1273_v58 = vrot.slane %v1271_v50, 5  ;;  %v704_v59 = vrot.slane %v702_v51, 7  ;;  %v927_v49 = vsel %vm13525_vm10, %v699_v42, %v926_v56  ;;  %369 = vst [vmem:[#allocation2 + $0x8c] sm:$0x1] %v368_v57  ;;  %v711_v60 = vshrl.u32 %v13721_v38, 16 }
  0x97   : > { %v314_v61 = vld [vmem:[#allocation2 + $0x90] sm:$0x1]  ;;  %v1258_v62 = vor.u32 %v1257_v55, %v1254_v54  ;;  %v1269_v63 = vrot.slane %v1268_v30, 4  ;;  %928 = vst [vmem:[#allocation2 + $0x78] sm:$0xf] %v927_v49  ;;  %v714_v4 = vshll.u32 %v13721_v38, 16 }
  0x98   : > { %v930_v0 = vld [vmem:[#allocation2 + $0x80] sm:$0x1]  ;;  %v719_v5 = vshrl.u32 %v13730_v44, 16  ;;  %v707_v7 = vor.u32 %v705_v52, %v704_v59  ;;  %v709_v9 = vrot.slane %v704_v59, 4  ;;  %v713_v10 = vrot.slane %v711_v60, 7 }
  0x99   : > { %v722_v11 = vshll.u32 %v13730_v44, 16  ;;  %v1259_v12 = vrot.slane %v1258_v62, 4  ;;  %v1274_v13 = vsel %vm13548_vm12, %v1269_v63, %v1273_v58  ;;  %v13748_v14 = vld [vmem:[#allocation2 + $0x6c] sm:$0xf]  ;;  %v315_v17 = vsel %vm13480_vm5, 0, %v314_v61 }
  0x9a   : > { %v721_v15 = vrot.slane %v719_v5, 7  ;;  %v13752_v18 = vld [vmem:[#allocation2 + $0x70] sm:$0xf]  ;;  %v1276_v21 = vshrl.u32 %v13748_v14, 16  ;;  %v1279_v22 = vshll.u32 %v13748_v14, 16  ;;  %v708_v23 = vsel %vm13533_vm11, %v700_v43, %v707_v7 }
  0x9b   : > { %v13754_v20 = vld [vmem:[#allocation2 + $0x74] sm:$0x1]  ;;  %v931_v24 = vsel %vm13480_vm5, %v709_v9, %v930_v0  ;;  %316 = vst [vmem:[#allocation2 + $0x90] sm:$0x1] %v315_v17  ;;  %v370_v25 = vld [vmem:[#allocation2 + $0x98] sm:$0x1]  ;;  %v1264_v26 = vsel %vm13548_vm12, %v1259_v12, %v1263_v47  ;;  %v716_v38 = vor.u32 %v714_v4, %v713_v10 }
  0x9c   : > { %v1285_v27 = vshll.u32 %v13752_v18, 16  ;;  %v1289_v28 = vshrl.u32 %v13752_v18, 16  ;;  %v1295_v29 = vshll.u32 %v13754_v20, 16  ;;  %929 = vst.msk [vmem:[#allocation2 + $0x7c] sm:$0xf] %vm266_vm0, %v708_v23  ;;  %v10627_v32 = vcombine.low %v1264_v26, %v1274_v13 }
  0x9d   : > { %932 = vst [vmem:[#allocation2 + $0x80] sm:$0x1] %v931_v24  ;;  %v528_v31 = vld [vmem:[%s13500_s18 + $0x58] sm:$0xf]  ;;  %v1278_v34 = vrot.slane %v1276_v21, 4  ;;  %v1281_v35 = vrot.slane %v1279_v22, 5  ;;  %v724_v47 = vor.u32 %v722_v11, %v721_v15 }
  0x9e   : > { %v933_v41 = vld [vmem:[#allocation2 + $0x84] sm:$0xf]  ;;  %v1287_v3 = vrot.slane %v1285_v27, 5  ;;  %v1291_v19 = vrot.slane %v1289_v28, 4  ;;  %v1297_v42 = vrot.slane %v1295_v29, 5  ;;  %v717_v43 = vrot.slane %v713_v10, 4  ;;  %12150 = vmatprep.mubr.msk.bf16.mxu0 %vm1493_vm13, %v10627_v32 }
  0x9f   : > { %v937_v44 = vld [vmem:[#allocation2 + $0x8c] sm:$0x1]  ;;  %v1282_v45 = vor.u32 %v1281_v35, %v1278_v34  ;;  %v13770_v46 = vld [vmem:[#allocation2 + $0x78] sm:$0xf]  ;;  %v726_v48 = vrot.slane %v721_v15, 4  ;;  %v934_v50 = vsel %vm13525_vm10, %v716_v38, %v933_v41  ;;  %v371_v54 = vsel %vm13493_vm7, 0, %v370_v25 }
  0xa0   : > { %v1292_v51 = vor.u32 %v1291_v19, %v1287_v3  ;;  %v1300_v52 = vshrl.u32 %v13770_v46, 16  ;;  %v1303_v53 = vshll.u32 %v13770_v46, 16  ;;  %935 = vst [vmem:[#allocation2 + $0x84] sm:$0xf] %v934_v50  ;;  %v529_v55 = vld [vmem:[%s13500_s18 + $0x5c] sm:$0xf]  ;;  %v725_v56 = vsel %vm13533_vm11, %v717_v43, %v724_v47 }
  0xa1   : > { %v1283_v30 = vrot.slane %v1282_v45, 4  ;;  %v938_v57 = vsel %vm13480_vm5, %v726_v48, %v937_v44  ;;  %372 = vst [vmem:[#allocation2 + $0x98] sm:$0x1] %v371_v54  ;;  %v728_v58 = vshrl.u32 %v528_v31, 16  ;;  %936 = vst.msk [vmem:[#allocation2 + $0x88] sm:$0xf] %vm266_vm0, %v725_v56 }
  0xa2   : > { %v1293_v59 = vrot.slane %v1292_v51, 4  ;;  %v1302_v49 = vrot.slane %v1300_v52, 4  ;;  %v1305_v60 = vrot.slane %v1303_v53, 5  ;;  %939 = vst [vmem:[#allocation2 + $0x8c] sm:$0x1] %v938_v57  ;;  %v731_v61 = vshll.u32 %v528_v31, 16 }
  0xa3   : > { %v940_v62 = vld [vmem:[#allocation2 + $0x90] sm:$0xf]  ;;  %v317_v63 = vld [vmem:[#allocation2 + $0x9c] sm:$0x1]  ;;  %v1288_v0 = vsel %vm13548_vm12, %v1283_v30, %v1287_v3  ;;  %v730_v7 = vrot.slane %v728_v58, 7  ;;  %v736_v9 = vshrl.u32 %v529_v55, 16 }
  0xa4   : > { %v13786_v4 = vld [vmem:[#allocation2 + $0x7c] sm:$0xf]  ;;  %v13788_v5 = vld [vmem:[#allocation2 + $0x80] sm:$0x1]  ;;  %v1298_v10 = vsel %vm13548_vm12, %v1293_v59, %v1297_v42  ;;  %v1306_v11 = vor.u32 %v1305_v60, %v1302_v49  ;;  %v373_v26 = vld [vmem:[#allocation2 + $0xa4] sm:$0x1] }
  0xa5   : > { %v1309_v12 = vshll.u32 %v13786_v4, 16  ;;  %v1313_v13 = vshrl.u32 %v13786_v4, 16  ;;  %v10628_v15 = vcombine.low %v1288_v0, %v1298_v10  ;;  %v1319_v17 = vshll.u32 %v13788_v5, 16  ;;  %v530_v34 = vld [vmem:[%s13500_s18 + $0x60] sm:$0xf] }
  0xa6   : > { %v733_v21 = vor.u32 %v731_v61, %v730_v7  ;;  %v1307_v22 = vrot.slane %v1306_v11, 4  ;;  %v738_v25 = vrot.slane %v736_v9, 7  ;;  %v734_v28 = vrot.slane %v730_v7, 4  ;;  %v531_v50 = vld [vmem:[%s13500_s18 + $0x64] sm:$0xf] }
  0xa7   : > { %v1311_v23 = vrot.slane %v1309_v12, 5  ;;  %v1315_v24 = vrot.slane %v1313_v13, 4  ;;  %12151 = vmatmul.mubr.msk.bf16.gmra.mrb[16].mxu0 %vm1493_vm13, %v10628_v15  ;;  %v13796_v27 = vld [vmem:[#allocation2 + $0x84] sm:$0xf]  ;;  %v739_v29 = vshll.u32 %v529_v55, 16  ;;  %v318_v32 = vsel %vm13480_vm5, 0, %v317_v63 }
  0xa8   : > { %v941_v31 = vsel %vm13525_vm10, %v733_v21, %v940_v62  ;;  %v1321_v38 = vrot.slane %v1319_v17, 5  ;;  %v1324_v41 = vshrl.u32 %v13796_v27, 16  ;;  %v1327_v3 = vshll.u32 %v13796_v27, 16  ;;  %v944_v19 = vld [vmem:[#allocation2 + $0x98] sm:$0x1] }
  0xa9   : > { %v1316_v35 = vor.u32 %v1315_v24, %v1311_v23  ;;  %942 = vst [vmem:[#allocation2 + $0x90] sm:$0xf] %v941_v31  ;;  %319 = vst [vmem:[#allocation2 + $0x9c] sm:$0x1] %v318_v32  ;;  %v1312_v42 = vsel %vm13548_vm12, %v1307_v22, %v1311_v23  ;;  %v13807_v43 = vld [vmem:[#allocation2 + $0x88] sm:$0xf]  ;;  %v741_v45 = vor.u32 %v739_v29, %v738_v25 }
  0xaa   : > { %v13809_v44 = vld [vmem:[#allocation2 + $0x8c] sm:$0x1]  ;;  %v743_v47 = vrot.slane %v738_v25, 4  ;;  %v374_v48 = vsel %vm13493_vm7, 0, %v373_v26  ;;  %v1326_v52 = vrot.slane %v1324_v41, 4  ;;  %v1329_v53 = vrot.slane %v1327_v3, 5 }
  0xab   : > { %v1317_v51 = vrot.slane %v1316_v35, 4  ;;  %v1333_v54 = vshll.u32 %v13807_v43, 16  ;;  %375 = vst [vmem:[#allocation2 + $0xa4] sm:$0x1] %v374_v48  ;;  %v320_v55 = vld [vmem:[#allocation2 + $0xa8] sm:$0x1]  ;;  %v742_v58 = vsel %vm13533_vm11, %v734_v28, %v741_v45 }
  0xac   : > { %v376_v30 = vld [vmem:[#allocation2 + $0xb0] sm:$0x1]  ;;  %v1337_v56 = vshrl.u32 %v13807_v43, 16  ;;  %v1343_v57 = vshll.u32 %v13809_v44, 16  ;;  %v945_v59 = vsel %vm13480_vm5, %v743_v47, %v944_v19  ;;  %v1330_v60 = vor.u32 %v1329_v53, %v1326_v52  ;;  %943 = vst.msk [vmem:[#allocation2 + $0x94] sm:$0xf] %vm266_vm0, %v742_v58 }
  0xad   : > { %v1322_v49 = vsel %vm13548_vm12, %v1317_v51, %v1321_v38  ;;  %v1335_v61 = vrot.slane %v1333_v54, 5  ;;  %946 = vst [vmem:[#allocation2 + $0x98] sm:$0x1] %v945_v59  ;;  %v745_v62 = vshrl.u32 %v530_v34, 16  ;;  %v748_v9 = vshll.u32 %v530_v34, 16 }
  0xae   : > { %v10629_v63 = vcombine.low %v1312_v42, %v1322_v49  ;;  %v1339_v0 = vrot.slane %v1337_v56, 4  ;;  %v1345_v7 = vrot.slane %v1343_v57, 5  ;;  %v1331_v10 = vrot.slane %v1330_v60, 4  ;;  %v532_v15 = vld [vmem:[%s13500_s18 + $0x68] sm:$0xf] }
  0xaf   : > { %v747_v11 = vrot.slane %v745_v62, 7  ;;  %v753_v12 = vshrl.u32 %v531_v50, 16  ;;  %v756_v13 = vshll.u32 %v531_v50, 16  ;;  %v321_v23 = vsel %vm13480_vm5, 0, %v320_v55  ;;  %v533_v42 = vld [vmem:[%s13500_s18 + $0x6c] sm:$0xf] }
  0xb0   : > { %12154 = vmatprep.mubr.msk.bf16.mxu0 %vm1493_vm13, %v10629_v63  ;;  %v1340_v17 = vor.u32 %v1339_v0, %v1335_v61  ;;  %v13826_v21 = vld [vmem:[#allocation2 + $0x90] sm:$0xf]  ;;  %v947_v22 = vld [vmem:[#allocation2 + $0x9c] sm:$0xf]  ;;  %v377_v24 = vsel %vm13493_vm7, 0, %v376_v30  ;;  %v1336_v25 = vsel %vm13548_vm12, %v1331_v10, %v1335_v61  ;;  %v762_v38 = vshrl.u32 %v532_v15, 16 }
  0xb1   : > { %v1348_v26 = vshrl.u32 %v13826_v21, 16  ;;  %v1351_v28 = vshll.u32 %v13826_v21, 16  ;;  %v750_v29 = vor.u32 %v748_v9, %v747_v11  ;;  %322 = vst [vmem:[#allocation2 + $0xa8] sm:$0x1] %v321_v23  ;;  %378 = vst [vmem:[#allocation2 + $0xb0] sm:$0x1] %v377_v24 }
  0xb2   : > { %v1341_v31 = vrot.slane %v1340_v17, 4  ;;  %v751_v32 = vrot.slane %v747_v11, 4  ;;  %v755_v34 = vrot.slane %v753_v12, 7  ;;  %v951_v35 = vld [vmem:[#allocation2 + $0xa4] sm:$0x1]  ;;  %v765_v45 = vshll.u32 %v532_v15, 16 }
  0xb3   : > { %v1350_v41 = vrot.slane %v1348_v26, 4  ;;  %v1353_v3 = vrot.slane %v1351_v28, 5  ;;  %v948_v19 = vsel %vm13525_vm10, %v750_v29, %v947_v22  ;;  %v323_v47 = vld [vmem:[#allocation2 + $0xb4] sm:$0x1]  ;;  %v764_v54 = vrot.slane %v762_v38, 7 }
  0xb4   : > { %v1346_v48 = vsel %vm13548_vm12, %v1341_v31, %v1345_v7  ;;  %v13841_v50 = vld [vmem:[#allocation2 + $0x94] sm:$0xf]  ;;  %v13843_v51 = vld [vmem:[#allocation2 + $0x98] sm:$0x1]  ;;  %v758_v52 = vor.u32 %v756_v13, %v755_v34  ;;  %v760_v53 = vrot.slane %v755_v34, 4  ;;  %v770_v10 = vshrl.u32 %v533_v42, 16 }
  0xb5   : > { %949 = vst [vmem:[#allocation2 + $0x9c] sm:$0xf] %v948_v19  ;;  %v379_v55 = vld [vmem:[#allocation2 + $0xbc] sm:$0x1]  ;;  %v10630_v30 = vcombine.low %v1336_v25, %v1346_v48  ;;  %v1354_v56 = vor.u32 %v1353_v3, %v1350_v41  ;;  %v1357_v57 = vshll.u32 %v13841_v50, 16  ;;  %v1361_v58 = vshrl.u32 %v13841_v50, 16 }
  0xb6   : > { %v534_v59 = vld [vmem:[%s13500_s18 + $0x70] sm:$0xf]  ;;  %v1367_v49 = vshll.u32 %v13843_v51, 16  ;;  %v759_v60 = vsel %vm13533_vm11, %v751_v32, %v758_v52  ;;  %v952_v61 = vsel %vm13480_vm5, %v760_v53, %v951_v35  ;;  %v767_v62 = vor.u32 %v765_v45, %v764_v54  ;;  %v535_v9 = vld [vmem:[%s13500_s18 + $0x74] sm:$0xf] }
  0xb7   : > { %12155 = vmatmul.mubr.msk.bf16.gmra.mrb[20].mxu0 %vm1493_vm13, %v10630_v30  ;;  %v1355_v63 = vrot.slane %v1354_v56, 4  ;;  %v1359_v0 = vrot.slane %v1357_v57, 5  ;;  %v1363_v7 = vrot.slane %v1361_v58, 4  ;;  %950 = vst.msk [vmem:[#allocation2 + $0xa0] sm:$0xf] %vm266_vm0, %v759_v60  ;;  %v773_v11 = vshll.u32 %v533_v42, 16 }
  0xb8   : > { %953 = vst [vmem:[#allocation2 + $0xa4] sm:$0x1] %v952_v61  ;;  %v954_v12 = vld [vmem:[#allocation2 + $0xa8] sm:$0xf]  ;;  %v324_v13 = vsel %vm13480_vm5, 0, %v323_v47  ;;  %v1369_v17 = vrot.slane %v1367_v49, 5  ;;  %v10660_v52 = vcombine.low %v13748_v14, %v13752_v18 }
  0xb9   : > { %v1364_v15 = vor.u32 %v1363_v7, %v1359_v0  ;;  %v955_v22 = vsel %vm13525_vm10, %v767_v62, %v954_v12  ;;  %325 = vst [vmem:[#allocation2 + $0xb4] sm:$0x1] %v324_v13  ;;  %v380_v23 = vsel %vm13493_vm7, 0, %v379_v55  ;;  %v768_v24 = vrot.slane %v764_v54, 4  ;;  %v958_v26 = vld [vmem:[#allocation2 + $0xb0] sm:$0x1] }
  0xba   : > { %v772_v25 = vrot.slane %v770_v10, 7  ;;  %956 = vst [vmem:[#allocation2 + $0xa8] sm:$0xf] %v955_v22  ;;  %381 = vst [vmem:[#allocation2 + $0xbc] sm:$0x1] %v380_v23  ;;  %v779_v28 = vshrl.u32 %v534_v59, 16  ;;  %v1360_v31 = vsel %vm13548_vm12, %v1355_v63, %v1359_v0 }
  0xbb   : > { %v787_v29 = vshrl.u32 %v535_v9, 16  ;;  %v1365_v32 = vrot.slane %v1364_v15, 4  ;;  %v782_v35 = vshll.u32 %v534_v59, 16  ;;  %v790_v38 = vshll.u32 %v535_v9, 16 }
  0xbc   : > { %v13864_v34 = vld [vmem:[#allocation2 + $0x9c] sm:$0xf]  ;;  %v775_v19 = vor.u32 %v773_v11, %v772_v25  ;;  %v777_v42 = vrot.slane %v772_v25, 4  ;;  %v781_v47 = vrot.slane %v779_v28, 7 }
  0xbd   : > { %v1372_v41 = vshrl.u32 %v13864_v34, 16  ;;  %v1375_v3 = vshll.u32 %v13864_v34, 16  ;;  %v1370_v45 = vsel %vm13548_vm12, %v1365_v32, %v1369_v17  ;;  %v789_v48 = vrot.slane %v787_v29, 7 }
  0xbe   : > { %v10631_v53 = vcombine.low %v1360_v31, %v1370_v45  ;;  %v13872_v54 = vld [vmem:[#allocation2 + $0xa0] sm:$0xf]  ;;  %v776_v57 = vsel %vm13533_vm11, %v768_v24, %v775_v19  ;;  %v959_v60 = vsel %vm13480_vm5, %v777_v42, %v958_v26  ;;  %v784_v62 = vor.u32 %v782_v35, %v781_v47  ;;  %v13173_v42 = vld [vmem:[#allocation2 + $0x10] sm:$0xf] }
  0xbf   : > { %v13874_v55 = vld [vmem:[#allocation2 + $0xa4] sm:$0x1]  ;;  %v1374_v30 = vrot.slane %v1372_v41, 4  ;;  %v1377_v56 = vrot.slane %v1375_v3, 5  ;;  %v1381_v58 = vshll.u32 %v13872_v54, 16  ;;  %v1385_v59 = vshrl.u32 %v13872_v54, 16 }
  0xc0   : > { %v1391_v49 = vshll.u32 %v13874_v55, 16  ;;  %957 = vst.msk [vmem:[#allocation2 + $0xac] sm:$0xf] %vm266_vm0, %v776_v57  ;;  %12158 = vmatprep.mubr.msk.bf16.mxu0 %vm1493_vm13, %v10631_v53  ;;  %960 = vst [vmem:[#allocation2 + $0xb0] sm:$0x1] %v959_v60  ;;  %v785_v63 = vrot.slane %v781_v47, 4  ;;  %v792_v0 = vor.u32 %v790_v38, %v789_v48  ;;  %v10661_v29 = vcombine.low %v13770_v46, %v13786_v4 }
  0xc1   : > { %v1378_v61 = vor.u32 %v1377_v56, %v1374_v30  ;;  %v961_v7 = vld [vmem:[#allocation2 + $0xb4] sm:$0xf]  ;;  %v1383_v9 = vrot.slane %v1381_v58, 5  ;;  %v1387_v10 = vrot.slane %v1385_v59, 4  ;;  %v13885_v12 = vld [vmem:[#allocation2 + $0xa8] sm:$0xf]  ;;  %v10662_v35 = vcombine.low %v13796_v27, %v13807_v43 }
  0xc2   : > { %v1393_v11 = vrot.slane %v1391_v49, 5  ;;  %v794_v13 = vrot.slane %v789_v48, 4  ;;  %v1396_v17 = vshrl.u32 %v13885_v12, 16  ;;  %v1399_v22 = vshll.u32 %v13885_v12, 16  ;;  %v965_v24 = vld [vmem:[#allocation2 + $0xbc] sm:$0x1] }
  0xc3   : > { %v1379_v15 = vrot.slane %v1378_v61, 4  ;;  %v793_v23 = vsel %vm13533_vm11, %v785_v63, %v792_v0  ;;  %v1388_v25 = vor.u32 %v1387_v10, %v1383_v9  ;;  %v962_v26 = vsel %vm13525_vm10, %v784_v62, %v961_v7  ;;  %v2000_v59 = vld [vmem:[#allocation2 + $0xc] sm:$0xe]  ;;  %v13174_v0 = vld [vmem:[#allocation2 + $0x14] sm:$0x1] }
  0xc4   : > { %964 = vst.msk [vmem:[#allocation2 + $0xb8] sm:$0xf] %vm266_vm0, %v793_v23  ;;  %v966_v28 = vsel %vm13480_vm5, %v794_v13, %v965_v24  ;;  %v1398_v31 = vrot.slane %v1396_v17, 4  ;;  %v1401_v32 = vrot.slane %v1399_v22, 5  ;;  %963 = vst [vmem:[#allocation2 + $0xb4] sm:$0xf] %v962_v26  ;;  %v10663_v3 = vcombine.low %v13826_v21, %v13841_v50 }
  0xc5   : > { %967 = vst [vmem:[#allocation2 + $0xbc] sm:$0x1] %v966_v28  ;;  %v1384_v38 = vsel %vm13548_vm12, %v1379_v15, %v1383_v9  ;;  %v1389_v41 = vrot.slane %v1388_v25, 4  ;;  %v10664_v19 = vcombine.low %v13864_v34, %v13872_v54  ;;  %v2059_v45 = vrot.slane %v13173_v42, 5  ;;  %v13190_v46 = vld [vmem:[#allocation2 + $0x8] sm:$0x1] }
  0xc6   : > { %v1402_v48 = vor.u32 %v1401_v32, %v1398_v31  ;;  %v2062_v7 = vrot.slane %v13174_v0, 5  ;;  %v13191_v34 = vld [vmem:[#allocation2 + $0x20] sm:$0x1] }
  0xc7   : > { %v13906_v47 = vld [vmem:[#allocation2 + $0xac] sm:$0xf]  ;;  %v1394_v53 = vsel %vm13548_vm12, %v1389_v41, %v1393_v11  ;;  %v13910_v30 = vld [vmem:[#allocation2 + $0xb0] sm:$0x1]  ;;  %v10684_v11 = vrot.slane %v2000_v59, 9  ;;  %v2061_v13 = vrot.slane %v2059_v45, 4 }
  0xc8   : > { %v1405_v56 = vshll.u32 %v13906_v47, 16  ;;  %v1409_v57 = vshrl.u32 %v13906_v47, 16  ;;  %v10665_v58 = vcombine.low %v13885_v12, %v13906_v47  ;;  %v10632_v49 = vcombine.low %v1384_v38, %v1394_v53  ;;  %v2002_v12 = vld [vmem:[#allocation2 + $0x24] sm:$0xe]  ;;  %v13018_v6 = vld [vmem:[#allocation2 + $0xa8] sm:$0xff]  }
  0xc9   : > { %v1415_v60 = vshll.u32 %v13910_v30, 16  ;;  %v1403_v61 = vrot.slane %v1402_v48, 4 }
  0xca   : > { %v1407_v62 = vrot.slane %v1405_v56, 5  ;;  %v1411_v63 = vrot.slane %v1409_v57, 4  ;;  %12159 = vmatmul.mubr.msk.bf16.gmra.mrb[24].mxu0 %vm1493_vm13, %v10632_v49 }
  0xcb   : > { %v1417_v9 = vrot.slane %v1415_v60, 5  ;;  %v13918_v10 = vld [vmem:[#allocation2 + $0xb8] sm:$0xf]  ;;  %v13920_v17 = vld [vmem:[#allocation2 + $0xb4] sm:$0xf]  ;;  %v13943_v60 = vsel %vm13933_vm1, %v10684_v11, %v2059_v45 }
  0xcc   : > { %v1412_v15 = vor.u32 %v1411_v63, %v1407_v62  ;;  %v13922_v22 = vld [vmem:[#allocation2 + $0xbc] sm:$0x1]  ;;  %v1429_v23 = vshll.u32 %v13918_v10, 16  ;;  %v1433_v24 = vshrl.u32 %v13918_v10, 16  ;;  %v1420_v25 = vshrl.u32 %v13920_v17, 16 }
  0xcd   : > { %v1423_v26 = vshll.u32 %v13920_v17, 16  ;;  %v1439_v28 = vshll.u32 %v13922_v22, 16  ;;  %v10666_v31 = vcombine.low %v13920_v17, %v13918_v10  ;;  %v1408_v38 = vsel %vm13548_vm12, %v1403_v61, %v1407_v62  ;;  %v13956_v11 = vld [vmem:[#allocation2 + $0x4] sm:$0xf] }
  0xce   : > { %v1413_v41 = vrot.slane %v1412_v15, 4  ;;  %v1431_v42 = vrot.slane %v1429_v23, 5  ;;  %v1435_v48 = vrot.slane %v1433_v24, 4  ;;  %v1422_v53 = vrot.slane %v1420_v25, 4  ;;  %v13176_v24 = vld [vmem:[#allocation2] sm:$0xf] }
  0xcf   : > { %v1425_v56 = vrot.slane %v1423_v26, 5  ;;  %v1441_v57 = vrot.slane %v1439_v28, 5  ;;  %v13947_v63 = vsel %vm13933_vm1, %v2061_v13, %v2062_v7  ;;  %v10651_v7 = vcombine.low %v13176_v24, %v13956_v11  ;;  %v2008_v25 = vld [vmem:[#allocation2 + $0x6c] sm:$0xe]  ;;  %v2009_v26 = vld [vmem:[#allocation2 + $0x78] sm:$0xe] }
  0xd0   : > { %v1418_v59 = vsel %vm13548_vm12, %v1413_v41, %v1417_v9  ;;  %v1436_v49 = vor.u32 %v1435_v48, %v1431_v42  ;;  %v10701_v62 = vcombine.low %v13943_v60, %v13947_v63  ;;  %v2010_v28 = vld [vmem:[#allocation2 + $0x84] sm:$0xe]  ;;  %v13961_v41 = vld [vmem:[#allocation2 + $0x1c] sm:$0xf]  ;;  %v2052_v14 = vrot.slane %v13956_v11, 5 }
  0xd1   : > { %v10633_v0 = vcombine.low %v1408_v38, %v1418_v59  ;;  %v1426_v61 = vor.u32 %v1425_v56, %v1422_v53  ;;  %v13177_v38 = vld [vmem:[#allocation2 + $0x18] sm:$0xf]  ;;  %v2011_v53 = vld [vmem:[#allocation2 + $0x90] sm:$0xe]  ;;  %v2261_v56 = vsel %vm1542_vm3, %v13709_v16, 0  ;;  %v2115_v59 = vrot.slane %v13752_v18, 5 }
  0xd2   : > { %v1437_v15 = vrot.slane %v1436_v49, 4  ;;  %v10653_v48 = vcombine.low %v13177_v38, %v13961_v41  ;;  %v2118_v49 = vrot.slane %v13754_v20, 5  ;;  %v13981_v16 = vld [vmem:[#allocation2 + $0x34] sm:$0xf]  ;;  %v2013_v38 = vld [vmem:[#allocation2 + $0xa8] sm:$0xe] }
  0xd3   : > { %12162 = vmatprep.mubr.msk.bf16.mxu0 %vm1493_vm13, %v10633_v0  ;;  %v1427_v23 = vrot.slane %v1426_v61, 4  ;;  %v13973_v0 = vld [vmem:[#allocation2 + $0x28] sm:$0xf]  ;;  %v13180_v61 = vld [vmem:[#allocation2 + $0x24] sm:$0xf]  ;;  %v2054_v27 = vrot.slane %v2052_v14, 4 }
  0xd4   : > { %v1442_v9 = vsel %vm13548_vm12, %v1437_v15, %v1441_v57  ;;  %v10692_v57 = vrot.slane %v2008_v25, 9  ;;  %v10654_v15 = vcombine.low %v13180_v61, %v13973_v0  ;;  %v2012_v25 = vld [vmem:[#allocation2 + $0x9c] sm:$0xe]  ;;  %v2005_v63 = vld [vmem:[#allocation2 + $0x48] sm:$0xe] }
  0xd5   : > { %v1432_v45 = vsel %vm13548_vm12, %v1427_v23, %v1431_v42  ;;  %v13967_v42 = vld [vmem:[%s17439_s1 + $0x6] sm:$0x3]  ;;  %v10693_v23 = vrot.slane %v2009_v26, 9  ;;  %v2129_v26 = vrot.slane %v13807_v43, 5 }
  0xd6   : > { %v10634_v13 = vcombine.low %v1432_v45, %v1442_v9  ;;  %v2122_v9 = vrot.slane %v13786_v4, 5  ;;  %v13181_v45 = vld [vmem:[#allocation2 + $0x30] sm:$0xf]  ;;  %v13986_v20 = vsel %vm13933_vm1, %v10692_v57, %v2115_v59  ;;  %v2055_v4 = vrot.slane %v13190_v46, 5 }
  0xd7   : > { %v10655_v24 = vcombine.low %v13181_v45, %v13981_v16  ;;  %v2139_v45 = vrot.slane %v13843_v51, 5 }
  0xd8   : > { %12163 = vmatmul.mubr.msk.bf16.gmra.mrb[28].mxu0 %vm1493_vm13, %v10634_v13  ;;  %v2125_v13 = vrot.slane %v13788_v5, 5  ;;  %v13992_v36 = vsel %vm13933_vm1, %v10693_v23, %v2122_v9  ;;  %v2124_v37 = vrot.slane %v2122_v9, 4  ;;  %v2132_v5 = vrot.slane %v13809_v44, 5  ;;  %v2014_v9 = vld [vmem:[#allocation2 + $0xb4] sm:$0xe] }
  0xd9   : > { %12168 = vmatprep.mubr.msk.bf16.mxu0 %vm1493_vm13, %v10651_v7  ;;  %v2117_v7 = vrot.slane %v2115_v59, 4  ;;  %v2131_v23 = vrot.slane %v2129_v26, 4 }
  0xdb   : > { %v13999_v57 = vsel %vm13933_vm1, %v2117_v7, %v2118_v49  ;;  %v14022_v7 = vsel %vm13933_vm1, %v2131_v23, %v2132_v5 }
  0xdc   : > { %v10709_v59 = vcombine.low %v13986_v20, %v13999_v57  ;;  %v382_v20 = vld [vmem:[#allocation2 + $0xc8] sm:$0x1] }
  0xdd   : > { %v383_v57 = vsel %vm13493_vm7, 0, %v382_v20 }
  0xde   : > { %384 = vst [vmem:[#allocation2 + $0xc8] sm:$0x1] %v383_v57 }
  0xe0   : > { %12169 = vmatmul.mubr.msk.bf16.vlgmr.msra.gmra.mrb[0].mxu0 %vm1493_vm13, %v10652_v8  ;;  %v10694_v8 = vrot.slane %v2010_v28, 9  ;;  %v14007_v28 = vsel %vm13933_vm1, %v2124_v37, %v2125_v13  ;;  %v10696_v13 = vrot.slane %v2012_v25, 9  ;;  %v2143_v37 = vrot.slane %v13872_v54, 5 }
  0xe1   : > { %12201 = vmatpush3.bf16.msra.mxu0 %v2261_v56  ;;  %12172 = vmatprep.mubr.msk.bf16.mxu0 %vm1493_vm13, %v10653_v48  ;;  %v10695_v56 = vrot.slane %v2011_v53, 9  ;;  %v2136_v48 = vrot.slane %v13841_v50, 5  ;;  %v2001_v50 = vld [vmem:[#allocation2 + $0x18] sm:$0xe]  ;;  %v2069_v54 = vrot.slane %v13191_v34, 5 }
  0xe2   : > { %12941 = vmatprep.subr.msk.bf16.mxu0 %vm1542_vm3, %v13967_v42  ;;  %v14011_v61 = vsel %vm13933_vm1, %v10694_v8, %v2129_v26  ;;  %v2146_v8 = vrot.slane %v13874_v55, 5  ;;  %v14037_v25 = vsel %vm13933_vm1, %v10696_v13, %v2143_v37  ;;  %v2145_v5 = vrot.slane %v2143_v37, 4 }
  0xe3   : > { %v14017_v44 = vsel %vm13933_vm1, %v10695_v56, %v2136_v48  ;;  %v2138_v53 = vrot.slane %v2136_v48, 4  ;;  %v10711_v26 = vcombine.low %v14011_v61, %v14022_v7  ;;  %v10697_v56 = vrot.slane %v2013_v38, 9 }
  0xe4   : > { %v2150_v48 = vrot.slane %v13906_v47, 5  ;;  %v2153_v55 = vrot.slane %v13910_v30, 5  ;;  %v10698_v38 = vrot.slane %v2014_v9, 9  ;;  %v14049_v51 = vsel %vm13933_vm1, %v2145_v5, %v2146_v8  ;;  %v14064_v8 = vld [vmem:[#allocation2 + $0x40] sm:$0xf] }
  0xe5   : > { %v14030_v49 = vsel %vm13933_vm1, %v2138_v53, %v2139_v45  ;;  %v2157_v45 = vrot.slane %v13918_v10, 5  ;;  %v2160_v13 = vrot.slane %v13922_v22, 5  ;;  %v10713_v30 = vcombine.low %v14037_v25, %v14049_v51  ;;  %v13185_v5 = vld [vmem:[#allocation2 + $0x48] sm:$0xf] }
  0xe6   : > { %v14043_v23 = vsel %vm13933_vm1, %v10697_v56, %v2150_v48  ;;  %v2152_v53 = vrot.slane %v2150_v48, 4  ;;  %v13183_v56 = vld [vmem:[#allocation2 + $0x3c] sm:$0xf]  ;;  %v10686_v10 = vrot.slane %v2002_v12, 9  ;;  %v13007_v51 = vld [vmem:[#allocation2 + $0x24] sm:$0xff]  }
  0xe7   : > { %v14060_v9 = vsel %vm13933_vm1, %v10698_v38, %v2157_v45  ;;  %v2159_v37 = vrot.slane %v2157_v45, 4  ;;  %v10656_v22 = vcombine.low %v13183_v56, %v14064_v8  ;;  %v13187_v45 = vld [vmem:[#allocation2 + $0x54] sm:$0xf]  ;;  %v14078_v56 = vld [vmem:[#allocation2 + $0x58] sm:$0xf] }
  0xe8   : > { %12173 = vmatmul.mubr.msk.bf16.gmra.mrb[4].mxu0 %vm1493_vm13, %v10654_v15  ;;  %v14056_v15 = vsel %vm13933_vm1, %v2152_v53, %v2153_v55  ;;  %v14071_v55 = vld [vmem:[#allocation2 + $0x4c] sm:$0xf]  ;;  %v2101_v34 = vrot.slane %v14078_v56, 5  ;;  %v14227_v25 = vld [vmem:[%s17439_s1 + $0xa] sm:$0x3] }
  0xe9   : > { %12176 = vmatprep.mubr.msk.bf16.mxu0 %vm1493_vm13, %v10655_v24  ;;  %v14069_v48 = vsel %vm13933_vm1, %v2159_v37, %v2160_v13  ;;  %v10657_v53 = vcombine.low %v13185_v5, %v14071_v55  ;;  %v10658_v13 = vcombine.low %v13187_v45, %v14078_v56  ;;  %v14081_v37 = vld [vmem:[#allocation2 + $0x64] sm:$0xf]  ;;  %v326_v5 = vld [vmem:[#allocation2 + $0xc0] sm:$0x1]  ;;  %v537_v45 = vld [vmem:[%s13500_s18 + $0x7c] sm:$0xf] }
  0xea   : > { %v10659_v24 = vcombine.low %v13723_v40, %v14081_v37  ;;  %v536_v40 = vld [vmem:[%s13500_s18 + $0x78] sm:$0xf] }
  0xeb   : > { %v796_v18 = vshrl.u32 %v536_v40, 16 }
  0xf0   : > { %12177 = vmatmul.mubr.msk.bf16.gmra.mrb[8].mxu0 %vm1493_vm13, %v10656_v22  ;;  %v1999_v22 = vld [vmem:[#allocation2] sm:$0xe] }
  0xf1   : > { %12180 = vmatprep.mubr.msk.bf16.mxu0 %vm1493_vm13, %v10657_v53  ;;  %v327_v53 = vsel %vm13480_vm5, 0, %v326_v5 }
  0xf2   : > { %328 = vst [vmem:[#allocation2 + $0xc0] sm:$0x1] %v327_v53  ;;  %v807_v53 = vshll.u32 %v537_v45, 16 }
  0xf8   : > { %12181 = vmatmul.mubr.msk.bf16.gmra.mrb[12].mxu0 %vm1493_vm13, %v10658_v13  ;;  %v799_v13 = vshll.u32 %v536_v40, 16  ;;  %v10685_v40 = vrot.slane %v2001_v50, 9 }
  0xf9   : > { %12184 = vmatprep.mubr.msk.bf16.mxu0 %vm1493_vm13, %v10659_v24  ;;  %v798_v24 = vrot.slane %v796_v18, 7  ;;  %v968_v38 = vld [vmem:[#allocation2 + $0xc0] sm:$0xf]  ;;  %v2619_v18 = vsel %vm1542_vm3, %v13967_v42, 0  ;;  %v2004_v42 = vld [vmem:[#allocation2 + $0x3c] sm:$0xe] }
  0xfb   : > { %v801_v43 = vor.u32 %v799_v13, %v798_v24 }
  0xfd   : > { %v969_v21 = vsel %vm13525_vm10, %v801_v43, %v968_v38  ;;  %v2056_v38 = vsel %vm13933_vm1, %v2054_v27, %v2055_v4  ;;  %v2087_v43 = vrot.slane %v14064_v8, 5 }
  0xfe   : > { %970 = vst [vmem:[#allocation2 + $0xc0] sm:$0xf] %v969_v21 }
  0xff   : > { %v2089_v50 = vrot.slane %v2087_v43, 4 }
 0x100   : > { %12185 = vmatmul.mubr.msk.bf16.gmra.mrb[16].mxu0 %vm1493_vm13, %v10660_v52  ;;  %v804_v52 = vshrl.u32 %v537_v45, 16 }
 0x101   : > { %12188 = vmatprep.mubr.msk.bf16.mxu0 %vm1493_vm13, %v10661_v29  ;;  %v10683_v29 = vrot.slane %v1999_v22, 9 }
 0x102   : > { %v14108_v5 = vrot.slane %v804_v52, 7  ;;  %v13192_v52 = vld [vmem:[#allocation2 + $0x2c] sm:$0x1] }
 0x103   : > { %v2053_v33 = vsel %vm13933_vm1, %v10683_v29, %v2052_v14  ;;  %v2080_v14 = vrot.slane %v13981_v16, 5  ;;  %v2076_v4 = vrot.slane %v13192_v52, 5 }
 0x104   : > { %v809_v11 = vor.u32 %v807_v53, %v14108_v5  ;;  %v10700_v22 = vcombine.low %v2053_v33, %v2056_v38  ;;  %v14145_v53 = vld [vmem:[%s17439_s1 + $0x8] sm:$0x3]  ;;  %v10689_v38 = vrot.slane %v2005_v63, 9  ;;  %v811_v61 = vrot.slane %v14108_v5, 4  ;;  %v13009_v63 = vld [vmem:[#allocation2 + $0x3c] sm:$0xff]  }
 0x108   : > { %12189 = vmatmul.mubr.msk.bf16.gmra.mrb[20].mxu0 %vm1493_vm13, %v10662_v35  ;;  %v802_v35 = vrot.slane %v798_v24, 4  ;;  %v2082_v24 = vrot.slane %v2080_v14, 4 }
 0x109   : > { %12192 = vmatprep.mubr.msk.bf16.mxu0 %vm1493_vm13, %v10663_v3  ;;  %v2066_v3 = vrot.slane %v13961_v41, 5  ;;  %v2003_v41 = vld [vmem:[#allocation2 + $0x30] sm:$0xe] }
 0x10a   : > { %v810_v46 = vsel %vm13533_vm11, %v802_v35, %v809_v11  ;;  %v10687_v29 = vrot.slane %v2003_v41, 9 }
 0x10b   : > { %971 = vst.msk [vmem:[#allocation2 + $0xc4] sm:$0xf] %vm266_vm0, %v810_v46  ;;  %v2068_v45 = vrot.slane %v2066_v3, 4  ;;  %v2067_v47 = vsel %vm13933_vm1, %v10685_v40, %v2066_v3  ;;  %v10688_v46 = vrot.slane %v2004_v42, 9  ;;  %v13194_v3 = vld [vmem:[#allocation2 + $0x44] sm:$0x1] }
 0x10c   : > { %v2081_v35 = vsel %vm13933_vm1, %v10687_v29, %v2080_v14  ;;  %v2090_v33 = vrot.slane %v13194_v3, 5  ;;  %v13197_v29 = vld [vmem:[#allocation2 + $0x68] sm:$0x1]  ;;  %vm395_vm0 = vcmask 1040384  }
 0x10d   : > { %v2111_v56 = vrot.slane %v13197_v29, 5  ;;  %v2817_v29 = vld [vmem:[#allocation2 + $0x18] sm:$0xf] }
 0x10e   : > { %v2890_v57 = vshll.u32 %v2817_v29, 16 }
 0x110   : > { %12193 = vmatmul.mubr.msk.bf16.gmra.mrb[24].mxu0 %vm1493_vm13, %v10664_v19  ;;  %v2073_v19 = vrot.slane %v13973_v0, 5  ;;  %v13193_v0 = vld [vmem:[#allocation2 + $0x38] sm:$0x1] }
 0x111   : > { %12196 = vmatprep.mubr.msk.bf16.mxu0 %vm1493_vm13, %v10665_v58  ;;  %v2070_v58 = vsel %vm13933_vm1, %v2068_v45, %v2069_v54  ;;  %v2083_v13 = vrot.slane %v13193_v0, 5  ;;  %v2091_v45 = vsel %vm13933_vm1, %v2089_v50, %v2090_v33  ;;  %v3545_v50 = vld [vmem:[#allocation2 + $0x48] sm:$0xe] }
 0x112   : > { %v10702_v17 = vcombine.low %v2067_v47, %v2070_v58  ;;  %v2074_v16 = vsel %vm13933_vm1, %v10686_v10, %v2073_v19  ;;  %v2108_v47 = vrot.slane %v14081_v37, 5  ;;  %v2007_v58 = vld [vmem:[#allocation2 + $0x60] sm:$0xe]  ;;  %v2103_v10 = vrot.slane %v2101_v34, 4 }
 0x113   : > { %v2084_v60 = vsel %vm13933_vm1, %v2082_v24, %v2083_v13  ;;  %v10691_v52 = vrot.slane %v2007_v58, 9 }
 0x114   : > { %v10704_v21 = vcombine.low %v2081_v35, %v2084_v60  ;;  %v13008_v35 = vld [vmem:[#allocation2 + $0x30] sm:$0xff]  }
 0x115   : > { %v2109_v0 = vsel %vm13933_vm1, %v10691_v52, %v2108_v47 }
 0x118   : > { %12197 = vmatmul.mubr.msk.bf16.gmra.mrb[28].mxu0 %vm1493_vm13, %v10666_v31  ;;  %v2075_v31 = vrot.slane %v2073_v19, 4  ;;  %v2006_v19 = vld [vmem:[#allocation2 + $0x54] sm:$0xe] }
 0x119   : > { %12202 = vmatprep.mubr.msk.bf16.mxu0 %vm1493_vm13, %v10700_v22  ;;  %v13195_v22 = vld [vmem:[#allocation2 + $0x50] sm:$0x1] }
 0x11a   : > { %v2077_v27 = vsel %vm13933_vm1, %v2075_v31, %v2076_v4  ;;  %v2097_v40 = vrot.slane %v13195_v22, 5  ;;  %v2110_v4 = vrot.slane %v2108_v47, 4  ;;  %v13010_v22 = vld [vmem:[#allocation2 + $0x48] sm:$0xff]  }
 0x11b   : > { %v10703_v11 = vcombine.low %v2074_v16, %v2077_v27  ;;  %v17538_v27 = vcombine.low %v13992_v36, %v14007_v28  ;;  %v17540_v36 = vcombine.low %v14043_v23, %v14056_v15  ;;  %v17541_v28 = vcombine.low %v14060_v9, %v14069_v48  ;;  %v14230_v23 = vld [vmem:[#allocation2 + $0x34] sm:$0xf]  ;;  %v3543_v15 = vld [vmem:[#allocation2 + $0x30] sm:$0xe] }
 0x11c   : > { %v2112_v13 = vsel %vm13933_vm1, %v2110_v4, %v2111_v56  ;;  %v3627_v9 = vrot.slane %v14230_v23, 5  ;;  %v10801_v48 = vrot.slane %v3543_v15, 9  ;;  %v14279_v56 = vld [vmem:[#allocation2 + $0x1c] sm:$0xf] }
 0x11d   : > { %v10708_v16 = vcombine.low %v2109_v0, %v2112_v13  ;;  %v14281_v0 = vld [vmem:[#allocation2 + $0x14] sm:$0x1]  ;;  %v14302_v15 = vld [vmem:[#allocation2 + $0x7c] sm:$0xf] }
 0x11e   : > { %v14241_v60 = vsel %vm13933_vm1, %v10801_v48, %v3627_v9  ;;  %v3549_v48 = vld [vmem:[#allocation2 + $0x78] sm:$0xe] }
 0x11f   : > { %17542 = vst [vmem:[#allocation12_spill] sm:$0xff] %v14241_v60 }
 0x120   : > { %12203 = vmatmul.mubr.msk.bf16.vlgmr.msra.gmra.mrb[0].mxu0 %vm1493_vm13, %v10701_v62  ;;  %v2094_v62 = vrot.slane %v14071_v55, 5  ;;  %v2088_v55 = vsel %vm13933_vm1, %v10688_v46, %v2087_v43  ;;  %v17539_v43 = vcombine.low %v14017_v44, %v14030_v49  ;;  %v972_v49 = vld [vmem:[#allocation2 + $0xc8] sm:$0x1]  ;;  %v13006_v44 = vld [vmem:[#allocation2 + $0x18] sm:$0xff]   ;;  %v14250_v46 = vld [vmem:[#allocation2 + $0x4c] sm:$0xf] }
 0x121   : > { %12235 = vmatpush3.bf16.msra.mxu0 %v2619_v18  ;;  %12206 = vmatprep.mubr.msk.bf16.mxu0 %vm1493_vm13, %v10702_v17  ;;  %v10705_v41 = vcombine.low %v2088_v55, %v2091_v45  ;;  %v10690_v18 = vrot.slane %v2006_v19, 9  ;;  %v13196_v17 = vld [vmem:[#allocation2 + $0x5c] sm:$0x1]  ;;  %v973_v7 = vsel %vm13480_vm5, %v811_v61, %v972_v49  ;;  %v3641_v3 = vrot.slane %v14250_v46, 5  ;;  %v13011_v45 = vld [vmem:[#allocation2 + $0x54] sm:$0xff]  }
 0x122   : > { %12942 = vmatprep.subr.msk.bf16.mxu0 %vm1542_vm3, %v14145_v53  ;;  %v2096_v8 = vrot.slane %v2094_v62, 4  ;;  %v2095_v54 = vsel %vm13933_vm1, %v10689_v38, %v2094_v62  ;;  %v2104_v31 = vrot.slane %v13196_v17, 5  ;;  %974 = vst [vmem:[#allocation2 + $0xc8] sm:$0x1] %v973_v7  ;;  %v10803_v38 = vrot.slane %v3545_v50, 9 }
 0x123   : > { %v2102_v24 = vsel %vm13933_vm1, %v10690_v18, %v2101_v34  ;;  %v14261_v34 = vld [vmem:[#allocation2 + $0x10] sm:$0xf]  ;;  %v14274_v18 = vld [vmem:[#allocation2 + $0x68] sm:$0x1]  ;;  %v14296_v61 = vld [vmem:[#allocation2 + $0x20] sm:$0x1] }
 0x124   : > { %v2098_v12 = vsel %vm13933_vm1, %v2096_v8, %v2097_v40  ;;  %v2105_v37 = vsel %vm13933_vm1, %v2103_v10, %v2104_v31  ;;  %v3643_v8 = vrot.slane %v3641_v3, 4  ;;  %v2814_v40 = vld [vmem:[#allocation2 + $0xc] sm:$0xf]  ;;  %v14259_v55 = vsel %vm13933_vm1, %v10803_v38, %v3641_v3  ;;  %v3547_v10 = vld [vmem:[#allocation2 + $0x60] sm:$0xe] }
 0x125   : > { %v10706_v14 = vcombine.low %v2095_v54, %v2098_v12  ;;  %v10707_v42 = vcombine.low %v2102_v24, %v2105_v37  ;;  %17544 = vst [vmem:[#allocation14_spill] sm:$0xff] %v14259_v55  ;;  %v2863_v19 = vshrl.u32 %v2814_v40, 16  ;;  %v2866_v47 = vshll.u32 %v2814_v40, 16  ;;  %v13012_v37 = vld [vmem:[#allocation2 + $0x60] sm:$0xff]   ;;  %v14309_v50 = vld [vmem:[#allocation2 + $0x28] sm:$0xf] }
 0x126   : > { %v2872_v58 = vshll.u32 %v14261_v34, 16  ;;  %v3658_v31 = vrot.slane %v14274_v18, 5  ;;  %v10805_v52 = vrot.slane %v3547_v10, 9  ;;  %v2896_v49 = vshll.u32 %v14279_v56, 16  ;;  %v2823_v40 = vld [vmem:[#allocation2 + $0x30] sm:$0xf] }
 0x127   : > { %v2865_v4 = vrot.slane %v2863_v19, 4  ;;  %v2868_v13 = vrot.slane %v2866_v47, 5  ;;  %v13014_v19 = vld [vmem:[#allocation2 + $0x78] sm:$0xff]   ;;  %v2948_v12 = vshrl.u32 %v14230_v23, 16 }
 0x128   : > { %12207 = vmatmul.mubr.msk.bf16.gmra.mrb[4].mxu0 %vm1493_vm13, %v10703_v11 }
 0x129   : > { %12210 = vmatprep.mubr.msk.bf16.mxu0 %vm1493_vm13, %v10704_v21  ;;  %v14252_v21 = vld [vmem:[#allocation2 + $0x50] sm:$0x1]  ;;  %v2869_v7 = vor.u32 %v2868_v13, %v2865_v4  ;;  %v2924_v4 = vshrl.u32 %v14309_v50, 16  ;;  %v2938_v13 = vshll.u32 %v2823_v40, 16 }
 0x12a   : > { %v3644_v33 = vrot.slane %v14252_v21, 5 }
 0x12b   : > { %v14316_v47 = vrot.slane %v2869_v7, 4 }
 0x12c   : > { %v14265_v54 = vsel %vm13933_vm1, %v3643_v8, %v3644_v33  ;;  %v10807_v33 = vrot.slane %v3549_v48, 9  ;;  %v14313_v8 = vrot.slane %v2896_v49, 5  ;;  %v14343_v49 = vld [vmem:[#allocation2 + $0x98] sm:$0x1] }
 0x12d   : > { %17545 = vst [vmem:[#allocation15_spill] sm:$0xff] %v14265_v54 }
 0x130   : > { %12211 = vmatmul.mubr.msk.bf16.gmra.mrb[8].mxu0 %vm1493_vm13, %v10705_v41  ;;  %v2876_v41 = vshrl.u32 %v14261_v34, 16 }
 0x131   : > { %12214 = vmatprep.mubr.msk.bf16.mxu0 %vm1493_vm13, %v10706_v14  ;;  %v14272_v14 = vld [vmem:[#allocation2 + $0x64] sm:$0xf] }
 0x132   : > { %v3655_v17 = vrot.slane %v14272_v14, 5 }
 0x134   : > { %v3657_v24 = vrot.slane %v3655_v17, 4 }
 0x136   : > { %v14291_v20 = vsel %vm13933_vm1, %v3657_v24, %v3658_v31 }
 0x137   : > { %17547 = vst [vmem:[#allocation17_spill] sm:$0xff] %v14291_v20  ;;  %v14435_v20 = vld [vmem:[#allocation2 + $0xb8] sm:$0xf] }
 0x138   : > { %12215 = vmatmul.mubr.msk.bf16.gmra.mrb[12].mxu0 %vm1493_vm13, %v10707_v42  ;;  %v14283_v42 = vrot.slane %v2872_v58, 5 }
 0x139   : > { %12218 = vmatprep.mubr.msk.bf16.mxu0 %vm1493_vm13, %v10708_v16  ;;  %v2878_v16 = vrot.slane %v2876_v41, 4 }
 0x140   : > { %12219 = vmatmul.mubr.msk.bf16.gmra.mrb[16].mxu0 %vm1493_vm13, %v10709_v59  ;;  %v13005_v59 = vld [vmem:[#allocation2 + $0xc] sm:$0xff]  }
 0x141   : > { %12222 = vmatprep.mubr.msk.bf16.mxu0 %vm1493_vm13, %v17538_v27  ;;  %v14287_v27 = vsel %vm13933_vm1, %v10805_v52, %v3655_v17  ;;  %v13015_v17 = vld [vmem:[#allocation2 + $0x84] sm:$0xff]   ;;  %v2920_v52 = vshll.u32 %v14309_v50, 16 }
 0x142   : > { %17546 = vst [vmem:[#allocation16_spill] sm:$0xff] %v14287_v27 }
 0x148   : > { %12223 = vmatmul.mubr.msk.bf16.gmra.mrb[20].mxu0 %vm1493_vm13, %v10711_v26  ;;  %v3345_v26 = vsel %vm1542_vm3, %v14145_v53, 0  ;;  %v3629_v53 = vrot.slane %v3627_v9, 4  ;;  %v14304_v9 = vld [vmem:[#allocation2 + $0x80] sm:$0x1] }
 0x149   : > { %12226 = vmatprep.mubr.msk.bf16.mxu0 %vm1493_vm13, %v17539_v43  ;;  %v13013_v43 = vld [vmem:[#allocation2 + $0x6c] sm:$0xff]  }
 0x150   : > { %12227 = vmatmul.mubr.msk.bf16.gmra.mrb[24].mxu0 %vm1493_vm13, %v10713_v30  ;;  %v14233_v30 = vld [vmem:[#allocation2 + $0x38] sm:$0x1] }
 0x151   : > { %12230 = vmatprep.mubr.msk.bf16.mxu0 %vm1493_vm13, %v17540_v36  ;;  %v3630_v5 = vrot.slane %v14233_v30, 5  ;;  %v2887_v36 = vshrl.u32 %v2817_v29, 16 }
 0x153   : > { %v14245_v62 = vsel %vm13933_vm1, %v3629_v53, %v3630_v5  ;;  %v3669_v5 = vrot.slane %v14302_v15, 5  ;;  %v3672_v53 = vrot.slane %v14304_v9, 5 }
 0x154   : > { %17543 = vst [vmem:[#allocation13_spill] sm:$0xff] %v14245_v62  ;;  %v14454_v62 = vld [vmem:[#allocation2 + $0x58] sm:$0xf] }
 0x155   : > { %v14324_v10 = vsel %vm13933_vm1, %v10807_v33, %v3669_v5  ;;  %v14350_v33 = vrot.slane %v2920_v52, 5 }
 0x156   : > { %17548 = vst [vmem:[#allocation18_spill] sm:$0xff] %v14324_v10 }
 0x158   : > { %12231 = vmatmul.mubr.msk.bf16.gmra.mrb[28].mxu0 %vm1493_vm13, %v17541_v28  ;;  %v2882_v28 = vshll.u32 %v14281_v0, 16 }
 0x159   : > { %12236 = vmatprep.mubr.msk.bf16.mxu0 %vm1493_vm13, %v13005_v59 }
 0x15a   : > { %v14311_v38 = vrot.slane %v2882_v28, 5 }
 0x160   : > { %12237 = vmatmul.mubr.msk.bf16.vlgmr.msra.gmra.mrb[0].mxu0 %vm1493_vm13, %v13006_v44  ;;  %v2820_v44 = vld [vmem:[#allocation2 + $0x24] sm:$0xf] }
 0x161   : > { %12269 = vmatpush3.bf16.msra.mxu0 %v3345_v26  ;;  %12240 = vmatprep.mubr.msk.bf16.mxu0 %vm1493_vm13, %v13007_v51  ;;  %v2879_v26 = vor.u32 %v2878_v16, %v14283_v42  ;;  %v2900_v51 = vshrl.u32 %v14279_v56, 16  ;;  %v2911_v3 = vshrl.u32 %v2820_v44, 16  ;;  %v2914_v31 = vshll.u32 %v2820_v44, 16  ;;  %v3550_v44 = vld [vmem:[#allocation2 + $0x84] sm:$0xe] }
 0x162   : > { %12943 = vmatprep.subr.msk.bf16.mxu0 %vm1542_vm3, %v14227_v25  ;;  %v10808_v48 = vrot.slane %v3550_v44, 9  ;;  %v2944_v44 = vshll.u32 %v14230_v23, 16  ;;  %v2875_v23 = vsel %vm13548_vm12, %v14316_v47, %v14283_v42 }
 0x163   : > { %v14318_v58 = vrot.slane %v2879_v26, 4  ;;  %v14320_v41 = vrot.slane %v2900_v51, 4  ;;  %v14332_v24 = vrot.slane %v2911_v3, 4  ;;  %v2916_v51 = vrot.slane %v2914_v31, 5  ;;  %v14356_v31 = vld [vmem:[#allocation2 + $0x2c] sm:$0x1] }
 0x164   : > { %v3686_v3 = vrot.slane %v14343_v49, 5 }
 0x165   : > { %v2885_v42 = vsel %vm13548_vm12, %v14318_v58, %v14311_v38 }
 0x168   : > { %12241 = vmatmul.mubr.msk.bf16.gmra.mrb[4].mxu0 %vm1493_vm13, %v13008_v35  ;;  %v2889_v35 = vrot.slane %v2887_v36, 4  ;;  %v14338_v36 = vld [vmem:[#allocation2 + $0x8c] sm:$0x1] }
 0x169   : > { %12244 = vmatprep.mubr.msk.bf16.mxu0 %vm1493_vm13, %v13009_v63  ;;  %v2892_v63 = vrot.slane %v2890_v57, 5  ;;  %v14340_v57 = vld [vmem:[#allocation2 + $0x94] sm:$0xf]  ;;  %v3679_v26 = vrot.slane %v14338_v36, 5 }
 0x16b   : > { %v2893_v28 = vor.u32 %v2892_v63, %v2889_v35 }
 0x170   : > { %12245 = vmatmul.mubr.msk.bf16.gmra.mrb[8].mxu0 %vm1493_vm13, %v13010_v22  ;;  %v2906_v22 = vshll.u32 %v14296_v61, 16 }
 0x171   : > { %12248 = vmatprep.mubr.msk.bf16.mxu0 %vm1493_vm13, %v13011_v45  ;;  %v3671_v45 = vrot.slane %v3669_v5, 4  ;;  %v3551_v5 = vld [vmem:[#allocation2 + $0x90] sm:$0xe] }
 0x172   : > { %v10809_v63 = vrot.slane %v3551_v5, 9  ;;  %v2903_v5 = vor.u32 %v14320_v41, %v14313_v8  ;;  %v14397_v41 = vrot.slane %v2944_v44, 5 }
 0x173   : > { %v14330_v29 = vsel %vm13933_vm1, %v3671_v45, %v3672_v53  ;;  %v3683_v53 = vrot.slane %v14340_v57, 5 }
 0x174   : > { %17549 = vst [vmem:[#allocation19_spill] sm:$0xff] %v14330_v29  ;;  %v14406_v39 = vrot.slane %v2903_v5, 4 }
 0x175   : > { %v3685_v59 = vrot.slane %v3683_v53, 4 }
 0x178   : > { %12249 = vmatmul.mubr.msk.bf16.gmra.mrb[12].mxu0 %vm1493_vm13, %v13012_v37  ;;  %v2935_v37 = vshrl.u32 %v2823_v40, 16  ;;  %v2926_v40 = vrot.slane %v2924_v4, 4  ;;  %v14366_v4 = vsel %vm13933_vm1, %v10809_v63, %v3683_v53  ;;  %v2826_v53 = vld [vmem:[#allocation2 + $0x3c] sm:$0xf] }
 0x179   : > { %12252 = vmatprep.mubr.msk.bf16.mxu0 %vm1493_vm13, %v13013_v43  ;;  %v14336_v43 = vld [vmem:[#allocation2 + $0x88] sm:$0xf]  ;;  %17552 = vst [vmem:[#allocation22_spill] sm:$0xff] %v14366_v4 }
 0x17a   : > { %v3676_v7 = vrot.slane %v14336_v43, 5  ;;  %v2937_v45 = vrot.slane %v2935_v37, 4  ;;  %v13017_v37 = vld [vmem:[#allocation2 + $0x9c] sm:$0xff]   ;;  %v2927_v63 = vor.u32 %v2926_v40, %v14350_v33  ;;  %v2962_v40 = vshll.u32 %v2826_v53, 16 }
 0x17c   : > { %v3678_v35 = vrot.slane %v3676_v7, 4  ;;  %v14354_v16 = vsel %vm13933_vm1, %v10808_v48, %v3676_v7  ;;  %v14374_v48 = vsel %vm13933_vm1, %v3685_v59, %v3686_v3  ;;  %v2930_v59 = vshll.u32 %v14356_v31, 16  ;;  %v14390_v7 = vld [vmem:[#allocation2 + $0x40] sm:$0xf] }
 0x17d   : > { %17550 = vst [vmem:[#allocation20_spill] sm:$0xff] %v14354_v16  ;;  %17553 = vst [vmem:[#allocation23_spill] sm:$0xff] %v14374_v48  ;;  %v2954_v3 = vshll.u32 %v14233_v30, 16  ;;  %v2959_v30 = vshrl.u32 %v2826_v53, 16  ;;  %v2968_v38 = vshll.u32 %v14390_v7, 16  ;;  %v2972_v58 = vshrl.u32 %v14390_v7, 16 }
 0x17e   : > { %v14362_v52 = vsel %vm13933_vm1, %v3678_v35, %v3679_v26  ;;  %v14380_v26 = vrot.slane %v2893_v28, 4  ;;  %v2917_v35 = vor.u32 %v2916_v51, %v14332_v24  ;;  %17554 = vst [vmem:[#allocation24_spill] sm:$0xff] %v14390_v7  ;;  %v2950_v28 = vrot.slane %v2948_v12, 4  ;;  %v14399_v24 = vld [vmem:[#allocation2 + $0xac] sm:$0xf]  ;;  %v13019_v16 = vld [vmem:[#allocation2 + $0xb4] sm:$0xff]  }
 0x17f   : > { %17551 = vst [vmem:[#allocation21_spill] sm:$0xff] %v14362_v52  ;;  %v14401_v51 = vld [vmem:[#allocation2 + $0xb0] sm:$0x1]  ;;  %v2829_v12 = vld [vmem:[#allocation2 + $0x48] sm:$0xf]  ;;  %v14412_v44 = vrot.slane %v2927_v63, 4 }
 0x180   : > { %12253 = vmatmul.mubr.msk.bf16.gmra.mrb[16].mxu0 %vm1493_vm13, %v13014_v19  ;;  %v2940_v19 = vrot.slane %v2938_v13, 5  ;;  %v14368_v13 = vrot.slane %v2906_v22, 5  ;;  %v3553_v22 = vld [vmem:[#allocation2 + $0xa8] sm:$0xe]  ;;  %v3700_v11 = vrot.slane %v14401_v51, 5  ;;  %v2951_v4 = vor.u32 %v2950_v28, %v14397_v41 }
 0x181   : > { %12256 = vmatprep.mubr.msk.bf16.mxu0 %vm1493_vm13, %v13015_v17  ;;  %v13016_v17 = vld [vmem:[#allocation2 + $0x90] sm:$0xff]   ;;  %v14419_v5 = vrot.slane %v2954_v3, 5  ;;  %v2983_v29 = vshrl.u32 %v2829_v12, 16  ;;  %v2974_v10 = vrot.slane %v2972_v58, 4  ;;  %v2986_v28 = vshll.u32 %v2829_v12, 16 }
 0x182   : > { %v2941_v47 = vor.u32 %v2940_v19, %v2937_v45  ;;  %v10811_v45 = vrot.slane %v3553_v22, 9  ;;  %v14410_v19 = vrot.slane %v2917_v35, 4  ;;  %v2961_v22 = vrot.slane %v2959_v30, 4  ;;  %v14439_v30 = vld [vmem:[#allocation2 + $0xc4] sm:$0xf] }
 0x183   : > { %v2964_v35 = vrot.slane %v2962_v40, 5  ;;  %v10766_v40 = vcombine.low %v2875_v23, %v2885_v42  ;;  %v3554_v58 = vld [vmem:[#allocation2 + $0xb4] sm:$0xe]  ;;  %v3704_v12 = vrot.slane %v14435_v20, 5  ;;  %v2985_v54 = vrot.slane %v2983_v29, 4 }
 0x184   : > { %v14416_v48 = vrot.slane %v2941_v47, 4  ;;  %v14431_v47 = vrot.slane %v2968_v38, 5  ;;  %v14446_v38 = vld [vmem:[#allocation2 + $0xc8] sm:$0x1]  ;;  %v10812_v3 = vrot.slane %v3554_v58, 9  ;;  %v2988_v55 = vrot.slane %v2986_v28, 5 }
 0x185   : > { %v3714_v23 = vrot.slane %v14446_v38, 5  ;;  %v2965_v42 = vor.u32 %v2964_v35, %v2961_v22  ;;  %v13020_v58 = vld [vmem:[#allocation2 + $0xc0] sm:$0xff]   ;;  %v2992_v7 = vshll.u32 %v14250_v46, 16  ;;  %v2996_v35 = vshrl.u32 %v14250_v46, 16 }
 0x186   : > { %v2975_v60 = vor.u32 %v2974_v10, %v14431_v47  ;;  %v2909_v46 = vsel %vm13548_vm12, %v14406_v39, %v14368_v13 }
 0x187   : > { %v2966_v13 = vrot.slane %v2965_v42, 4 }
 0x188   : > { %12257 = vmatmul.mubr.msk.bf16.gmra.mrb[20].mxu0 %vm1493_vm13, %v13016_v17  ;;  %v3697_v17 = vrot.slane %v14399_v24, 5 }
 0x189   : > { %12260 = vmatprep.mubr.msk.bf16.mxu0 %vm1493_vm13, %v13017_v37  ;;  %v14414_v37 = vrot.slane %v2930_v59, 5  ;;  %v14429_v59 = vld [vmem:[#allocation2 + $0x44] sm:$0x1] }
 0x18a   : > { %v3699_v53 = vrot.slane %v3697_v17, 4  ;;  %v14423_v52 = vsel %vm13933_vm1, %v10811_v45, %v3697_v17  ;;  %v14437_v17 = vld [vmem:[#allocation2 + $0xbc] sm:$0x1] }
 0x18b   : > { %17555 = vst [vmem:[#allocation25_spill] sm:$0xff] %v14423_v52  ;;  %v3707_v45 = vrot.slane %v14437_v17, 5  ;;  %v2978_v52 = vshll.u32 %v14429_v59, 16 }
 0x18c   : > { %v14427_v63 = vsel %vm13933_vm1, %v3699_v53, %v3700_v11  ;;  %v2899_v11 = vsel %vm13548_vm12, %v14380_v26, %v14313_v8  ;;  %v2952_v53 = vrot.slane %v2951_v4, 4  ;;  %v2832_v8 = vld [vmem:[#allocation2 + $0x54] sm:$0xf]  ;;  %v3706_v26 = vrot.slane %v3704_v12, 4 }
 0x18d   : > { %17556 = vst [vmem:[#allocation26_spill] sm:$0xff] %v14427_v63  ;;  %v3555_v63 = vld [vmem:[#allocation2 + $0xc0] sm:$0xe]  ;;  %v3010_v10 = vshll.u32 %v2832_v8, 16 }
 0x18e   : > { %v10813_v27 = vrot.slane %v3555_v63, 9  ;;  %v14464_v22 = vsel %vm13933_vm1, %v3706_v26, %v3707_v45  ;;  %v3007_v63 = vshrl.u32 %v2832_v8, 16  ;;  %v3020_v45 = vshrl.u32 %v14454_v62, 16 }
 0x18f   : > { %v2957_v39 = vsel %vm13548_vm12, %v2952_v53, %v14419_v5  ;;  %v2980_v8 = vrot.slane %v2978_v52, 5  ;;  %v14502_v26 = vrot.slane %v2992_v7, 5  ;;  %v10767_v52 = vcombine.low %v2899_v11, %v2909_v46  ;;  %v2841_v46 = vld [vmem:[#allocation2 + $0x78] sm:$0xf] }
 0x190   : > { %12261 = vmatmul.mubr.msk.bf16.gmra.mrb[24].mxu0 %vm1493_vm13, %v13018_v6  ;;  %v3711_v6 = vrot.slane %v14439_v30, 5  ;;  %v3009_v28 = vrot.slane %v3007_v63, 4 }
 0x191   : > { %12264 = vmatprep.mubr.msk.bf16.mxu0 %vm1493_vm13, %v13019_v16  ;;  %v14458_v16 = vsel %vm13933_vm1, %v10812_v3, %v3704_v12  ;;  %v3016_v12 = vshll.u32 %v14454_v62, 16 }
 0x192   : > { %v3713_v4 = vrot.slane %v3711_v6, 4  ;;  %v14468_v29 = vsel %vm13933_vm1, %v10813_v27, %v3711_v6  ;;  %v2923_v27 = vsel %vm13548_vm12, %v14410_v19, %v14350_v33  ;;  %v2933_v6 = vsel %vm13548_vm12, %v14412_v44, %v14414_v37  ;;  %v2835_v33 = vld [vmem:[#allocation2 + $0x60] sm:$0xf] }
 0x193   : > { %v2976_v19 = vrot.slane %v2975_v60, 4  ;;  %v2998_v44 = vrot.slane %v2996_v35, 4  ;;  %v3002_v37 = vshll.u32 %v14252_v21, 16  ;;  %v3031_v5 = vshrl.u32 %v2835_v33, 16 }
 0x194   : > { %v14475_v3 = vsel %vm13933_vm1, %v3713_v4, %v3714_v23  ;;  %v2947_v23 = vsel %vm13548_vm12, %v14416_v48, %v14397_v41  ;;  %v2989_v4 = vor.u32 %v2988_v55, %v2985_v54  ;;  %v3012_v48 = vrot.slane %v3010_v10, 5  ;;  %v2838_v10 = vld [vmem:[#allocation2 + $0x6c] sm:$0xf] }
 0x195   : > { %17557 = vst [vmem:[#allocation27_spill] sm:$0xff] %v14475_v3  ;;  %v14505_v41 = vrot.slane %v3016_v12, 5  ;;  %v14507_v3 = vld [vmem:[#allocation2 + $0x5c] sm:$0x1]  ;;  %v3034_v53 = vshll.u32 %v2835_v33, 16  ;;  %v3040_v55 = vshll.u32 %v14272_v14, 16  ;;  %v10768_v7 = vcombine.low %v2923_v27, %v2933_v6 }
 0x196   : > { %v3044_v54 = vshrl.u32 %v14272_v14, 16  ;;  %v3815_v60 = vsel %vm1542_vm3, %v14227_v25, 0  ;;  %v2971_v21 = vsel %vm13548_vm12, %v2966_v13, %v14431_v47  ;;  %v14516_v42 = vrot.slane %v2989_v4, 4  ;;  %v14521_v12 = vld [vmem:[#allocation2 + $0x70] sm:$0xf] }
 0x197   : > { %v2999_v35 = vor.u32 %v2998_v44, %v14502_v26  ;;  %v14519_v63 = vrot.slane %v3002_v37, 5  ;;  %v2981_v14 = vsel %vm13548_vm12, %v2976_v19, %v2980_v8  ;;  %v3013_v11 = vor.u32 %v3012_v48, %v3009_v28 }
 0x198   : > { %12265 = vmatmul.mubr.msk.bf16.gmra.mrb[28].mxu0 %vm1493_vm13, %v13020_v58  ;;  %v3022_v58 = vrot.slane %v3020_v45, 4  ;;  %v3026_v45 = vshll.u32 %v14507_v3, 16  ;;  %v3033_v27 = vrot.slane %v3031_v5, 4  ;;  %v3036_v47 = vrot.slane %v3034_v53, 5 }
 0x199   : > { %12270 = vmatprep.mubr.msk.bf16.mxu0 %vm1493_vm13, %v10766_v40  ;;  %v10769_v40 = vcombine.low %v2947_v23, %v2957_v39  ;;  %v14527_v6 = vrot.slane %v3040_v55, 5  ;;  %v3046_v23 = vrot.slane %v3044_v54, 4  ;;  %v14532_v39 = vld [vmem:[%s17439_s1 + $0xc] sm:$0x3]  ;;  %v3055_v13 = vshrl.u32 %v2838_v10, 16 }
 0x19a   : > { %v3023_v25 = vor.u32 %v3022_v58, %v14505_v41  ;;  %v3058_v8 = vshll.u32 %v2838_v10, 16  ;;  %v3064_v28 = vshll.u32 %v14521_v12, 16  ;;  %v3068_v4 = vshrl.u32 %v14521_v12, 16 }
 0x19b   : > { %v10770_v33 = vcombine.low %v2971_v21, %v2981_v14  ;;  %v3000_v19 = vrot.slane %v2999_v35, 4  ;;  %v3079_v44 = vshrl.u32 %v2841_v46, 16  ;;  %v3082_v37 = vshll.u32 %v2841_v46, 16 }
 0x19c   : > { %v3014_v48 = vrot.slane %v3013_v11, 4  ;;  %v3028_v58 = vrot.slane %v3026_v45, 5  ;;  %v3088_v5 = vshll.u32 %v14302_v15, 16  ;;  %v3092_v53 = vshrl.u32 %v14302_v15, 16 }
 0x19d   : > { %v3024_v55 = vrot.slane %v3023_v25, 4  ;;  %v3037_v54 = vor.u32 %v3036_v47, %v3033_v27  ;;  %v3057_v21 = vrot.slane %v3055_v13, 4  ;;  %v3060_v35 = vrot.slane %v3058_v8, 5  ;;  %v14553_v25 = vld [vmem:[#allocation2 + $0x74] sm:$0x1] }
 0x19e   : > { %v14544_v10 = vrot.slane %v3064_v28, 5  ;;  %v3070_v14 = vrot.slane %v3068_v4, 4  ;;  %v2995_v15 = vsel %vm13548_vm12, %v14516_v42, %v14502_v26  ;;  %v3005_v11 = vsel %vm13548_vm12, %v3000_v19, %v14519_v63 }
 0x19f   : > { %v3081_v45 = vrot.slane %v3079_v44, 4  ;;  %v3084_v46 = vrot.slane %v3082_v37, 5  ;;  %v3094_v27 = vrot.slane %v3092_v53, 4  ;;  %v3019_v13 = vsel %vm13548_vm12, %v3014_v48, %v14505_v41 }
 0x1a0   : > { %12271 = vmatmul.mubr.msk.bf16.vlgmr.msra.gmra.mrb[0].mxu0 %vm1493_vm13, %v10767_v52  ;;  %v3047_v52 = vor.u32 %v3046_v23, %v14527_v6  ;;  %v3029_v26 = vsel %vm13548_vm12, %v3024_v55, %v3028_v58  ;;  %v3038_v42 = vrot.slane %v3037_v54, 4  ;;  %v3061_v28 = vor.u32 %v3060_v35, %v3057_v21  ;;  %v2850_v21 = vld [vmem:[#allocation2 + $0x9c] sm:$0xf] }
 0x1a1   : > { %12303 = vmatpush3.bf16.msra.mxu0 %v3815_v60  ;;  %12274 = vmatprep.mubr.msk.bf16.mxu0 %vm1493_vm13, %v10768_v7  ;;  %v3050_v60 = vshll.u32 %v14274_v18, 16  ;;  %v2844_v7 = vld [vmem:[#allocation2 + $0x84] sm:$0xf]  ;;  %v14555_v18 = vrot.slane %v3088_v5, 5  ;;  %v3071_v4 = vor.u32 %v3070_v14, %v14544_v10  ;;  %v3074_v19 = vshll.u32 %v14553_v25, 16 }
 0x1a2   : > { %12944 = vmatprep.subr.msk.bf16.mxu0 %vm1542_vm3, %v14532_v39  ;;  %v3103_v47 = vshrl.u32 %v2844_v7, 16  ;;  %v3106_v23 = vshll.u32 %v2844_v7, 16  ;;  %v3048_v63 = vrot.slane %v3047_v52, 4  ;;  %v3098_v44 = vshll.u32 %v14304_v9, 16 }
 0x1a3   : > { %v3052_v8 = vrot.slane %v3050_v60, 5  ;;  %v3112_v37 = vshll.u32 %v14336_v43, 16  ;;  %v3116_v41 = vshrl.u32 %v14336_v43, 16  ;;  %v3085_v48 = vor.u32 %v3084_v46, %v3081_v45  ;;  %v14577_v46 = vld [vmem:[#allocation2 + $0xa0] sm:$0xf] }
 0x1a4   : > { %v3095_v58 = vor.u32 %v3094_v27, %v14555_v18  ;;  %v3105_v5 = vrot.slane %v3103_v47, 4  ;;  %v3108_v53 = vrot.slane %v3106_v23, 5  ;;  %v10771_v55 = vcombine.low %v2995_v15, %v3005_v11 }
 0x1a5   : > { %v10772_v54 = vcombine.low %v3019_v13, %v3029_v26  ;;  %v3043_v52 = vsel %vm13548_vm12, %v3038_v42, %v14527_v6  ;;  %v3062_v9 = vrot.slane %v3061_v28, 4  ;;  %v3072_v60 = vrot.slane %v3071_v4, 4 }
 0x1a6   : > { %v3076_v7 = vrot.slane %v3074_v19, 5  ;;  %v14575_v43 = vrot.slane %v3112_v37, 5  ;;  %v3118_v35 = vrot.slane %v3116_v41, 4  ;;  %v3086_v15 = vrot.slane %v3085_v48, 4 }
 0x1a7   : > { %v3096_v11 = vrot.slane %v3095_v58, 4  ;;  %v3100_v27 = vrot.slane %v3098_v44, 5  ;;  %v3109_v47 = vor.u32 %v3108_v53, %v3105_v5  ;;  %v3136_v6 = vshll.u32 %v14340_v57, 16 }
 0x1a8   : > { %12275 = vmatmul.mubr.msk.bf16.gmra.mrb[4].mxu0 %vm1493_vm13, %v10769_v40  ;;  %v2847_v40 = vld [vmem:[#allocation2 + $0x90] sm:$0xf]  ;;  %v3140_v23 = vshrl.u32 %v14340_v57, 16  ;;  %v3151_v13 = vshrl.u32 %v2850_v21, 16  ;;  %v3154_v26 = vshll.u32 %v2850_v21, 16  ;;  %v3067_v42 = vsel %vm13548_vm12, %v3062_v9, %v14544_v10 }
 0x1a9   : > { %12278 = vmatprep.mubr.msk.bf16.mxu0 %vm1493_vm13, %v10770_v33  ;;  %v3053_v33 = vsel %vm13548_vm12, %v3048_v63, %v3052_v8  ;;  %v3127_v14 = vshrl.u32 %v2847_v40, 16  ;;  %v3130_v45 = vshll.u32 %v2847_v40, 16  ;;  %v3077_v8 = vsel %vm13548_vm12, %v3072_v60, %v3076_v7  ;;  %v2853_v60 = vld [vmem:[#allocation2 + $0xa8] sm:$0xf] }
 0x1aa   : > { %v3160_v63 = vshll.u32 %v14577_v46, 16  ;;  %v3164_v28 = vshrl.u32 %v14577_v46, 16  ;;  %v3119_v4 = vor.u32 %v3118_v35, %v14575_v43  ;;  %v3122_v57 = vshll.u32 %v14338_v36, 16 }
 0x1ab   : > { %v3129_v19 = vrot.slane %v3127_v14, 4  ;;  %v3132_v44 = vrot.slane %v3130_v45, 5  ;;  %v3091_v37 = vsel %vm13548_vm12, %v3086_v15, %v14555_v18  ;;  %v3101_v10 = vsel %vm13548_vm12, %v3096_v11, %v3100_v27 }
 0x1ac   : > { %v3110_v41 = vrot.slane %v3109_v47, 4  ;;  %v14597_v48 = vrot.slane %v3136_v6, 5  ;;  %v3142_v58 = vrot.slane %v3140_v23, 4  ;;  %v3153_v5 = vrot.slane %v3151_v13, 4  ;;  %v2856_v47 = vld [vmem:[#allocation2 + $0xb4] sm:$0xf] }
 0x1ad   : > { %v3156_v53 = vrot.slane %v3154_v26, 5  ;;  %v10773_v40 = vcombine.low %v3043_v52, %v3053_v33  ;;  %v3162_v36 = vrot.slane %v3160_v63, 5  ;;  %v3166_v9 = vrot.slane %v3164_v28, 4 }
 0x1ae   : > { %v3120_v7 = vrot.slane %v3119_v4, 4  ;;  %v3124_v21 = vrot.slane %v3122_v57, 5  ;;  %v3133_v35 = vor.u32 %v3132_v44, %v3129_v19  ;;  %v3146_v18 = vshll.u32 %v14343_v49, 16 }
 0x1af   : > { %v10775_v14 = vcombine.low %v3091_v37, %v3101_v10  ;;  %v3143_v45 = vor.u32 %v3142_v58, %v14597_v48  ;;  %v3157_v15 = vor.u32 %v3156_v53, %v3153_v5  ;;  %v3175_v27 = vshrl.u32 %v2853_v60, 16 }
 0x1b0   : > { %12279 = vmatmul.mubr.msk.bf16.gmra.mrb[8].mxu0 %vm1493_vm13, %v10771_v55  ;;  %v10774_v55 = vcombine.low %v3067_v42, %v3077_v8  ;;  %v3167_v52 = vor.u32 %v3166_v9, %v3162_v36  ;;  %v3178_v33 = vshll.u32 %v2853_v60, 16  ;;  %v3184_v6 = vshll.u32 %v14399_v24, 16  ;;  %v2859_v9 = vld [vmem:[#allocation2 + $0xc0] sm:$0xf] }
 0x1b1   : > { %12282 = vmatprep.mubr.msk.bf16.mxu0 %vm1493_vm13, %v10772_v54  ;;  %v14599_v54 = vld [vmem:[#allocation2 + $0xa4] sm:$0x1]  ;;  %v3188_v23 = vshrl.u32 %v14399_v24, 16  ;;  %v3115_v49 = vsel %vm13548_vm12, %v3110_v41, %v14575_v43  ;;  %v3125_v13 = vsel %vm13548_vm12, %v3120_v7, %v3124_v21  ;;  %v3134_v26 = vrot.slane %v3133_v35, 4 }
 0x1b2   : > { %v3170_v11 = vshll.u32 %v14599_v54, 16  ;;  %v3148_v42 = vrot.slane %v3146_v18, 5  ;;  %v3199_v8 = vshrl.u32 %v2856_v47, 16  ;;  %v3202_v63 = vshll.u32 %v2856_v47, 16 }
 0x1b3   : > { %v3208_v28 = vshll.u32 %v14435_v20, 16  ;;  %v3212_v4 = vshrl.u32 %v14435_v20, 16  ;;  %v3144_v57 = vrot.slane %v3143_v45, 4  ;;  %v3158_v19 = vrot.slane %v3157_v15, 4 }
 0x1b4   : > { %v3172_v24 = vrot.slane %v3170_v11, 5  ;;  %v3177_v44 = vrot.slane %v3175_v27, 4  ;;  %v3168_v37 = vrot.slane %v3167_v52, 4  ;;  %v3180_v10 = vrot.slane %v3178_v33, 5 }
 0x1b5   : > { %v3186_v58 = vrot.slane %v3184_v6, 5  ;;  %v3190_v5 = vrot.slane %v3188_v23, 4  ;;  %v10776_v43 = vcombine.low %v3115_v49, %v3125_v13  ;;  %v3201_v41 = vrot.slane %v3199_v8, 4 }
 0x1b6   : > { %v3204_v53 = vrot.slane %v3202_v63, 5  ;;  %v3139_v60 = vsel %vm13548_vm12, %v3134_v26, %v14597_v48  ;;  %v3149_v20 = vsel %vm13548_vm12, %v3144_v57, %v3148_v42  ;;  %v3194_v7 = vshll.u32 %v14401_v51, 16 }
 0x1b7   : > { %v3163_v21 = vsel %vm13548_vm12, %v3158_v19, %v3162_v36  ;;  %v3173_v35 = vsel %vm13548_vm12, %v3168_v37, %v3172_v24  ;;  %v3181_v18 = vor.u32 %v3180_v10, %v3177_v44  ;;  %v3191_v45 = vor.u32 %v3190_v5, %v3186_v58  ;;  %v3540_v10 = vld [vmem:[#allocation2 + $0xc] sm:$0xe] }
 0x1b8   : > { %12283 = vmatmul.mubr.msk.bf16.gmra.mrb[12].mxu0 %vm1493_vm13, %v10773_v40  ;;  %v3210_v40 = vrot.slane %v3208_v28, 5  ;;  %v3223_v15 = vshrl.u32 %v2859_v9, 16  ;;  %v3226_v11 = vshll.u32 %v2859_v9, 16  ;;  %v3232_v48 = vshll.u32 %v14439_v30, 16 }
 0x1b9   : > { %12286 = vmatprep.mubr.msk.bf16.mxu0 %vm1493_vm13, %v10774_v55  ;;  %v3214_v55 = vrot.slane %v3212_v4, 4  ;;  %v3236_v27 = vshrl.u32 %v14439_v30, 16  ;;  %v3205_v47 = vor.u32 %v3204_v53, %v3201_v41  ;;  %v10777_v52 = vcombine.low %v3139_v60, %v3149_v20 }
 0x1ba   : > { %v10778_v33 = vcombine.low %v3163_v21, %v3173_v35  ;;  %v3182_v36 = vrot.slane %v3181_v18, 4  ;;  %v3192_v6 = vrot.slane %v3191_v45, 4  ;;  %v3196_v23 = vrot.slane %v3194_v7, 5  ;;  %v3542_v18 = vld [vmem:[#allocation2 + $0x24] sm:$0xe] }
 0x1bb   : > { %v3215_v51 = vor.u32 %v3214_v55, %v3210_v40  ;;  %v3225_v49 = vrot.slane %v3223_v15, 4  ;;  %v3228_v13 = vrot.slane %v3226_v11, 5  ;;  %v3234_v26 = vrot.slane %v3232_v48, 5  ;;  %v329_v55 = vld [vmem:[#allocation2 + $0xcc] sm:$0x1] }
 0x1bc   : > { %v3238_v42 = vrot.slane %v3236_v27, 4  ;;  %v3206_v8 = vrot.slane %v3205_v47, 4  ;;  %v3187_v30 = vsel %vm13548_vm12, %v3182_v36, %v3186_v58  ;;  %v3242_v19 = vshll.u32 %v14446_v38, 16 }
 0x1bd   : > { %v3216_v63 = vrot.slane %v3215_v51, 4  ;;  %v3229_v4 = vor.u32 %v3228_v13, %v3225_v49  ;;  %v3606_v37 = vrot.slane %v14261_v34, 5  ;;  %v10798_v9 = vrot.slane %v3540_v10, 9 }
 0x1be   : > { %v3239_v57 = vor.u32 %v3238_v42, %v3234_v26  ;;  %v3211_v24 = vsel %vm13548_vm12, %v3206_v8, %v3210_v40  ;;  %v3244_v53 = vrot.slane %v3242_v19, 5  ;;  %v3609_v20 = vrot.slane %v14281_v0, 5  ;;  %v3541_v0 = vld [vmem:[#allocation2 + $0x18] sm:$0xe]  ;;  %v10880_v8 = vld [vmem:[%s17439_s1 + $0xe] sm:$0x3] }
 0x1bf   : > { %v3608_v60 = vrot.slane %v3606_v37, 4  ;;  %v330_v38 = vsel %vm13480_vm5, 0, %v329_v55  ;;  %v3613_v7 = vrot.slane %v14279_v56, 5  ;;  %v3607_v21 = vsel %vm13933_vm1, %v10798_v9, %v3606_v37  ;;  %v17559_v19 = vld [vmem:[#allocation12_spill] sm:$0xff]  ;;  %v17563_v55 = vld [vmem:[#allocation15_spill] sm:$0xff]  ;;  %vm15004_vm5 = vmand %vm395_vm0, %vm276_vm2 }
 0x1c0   : > { %12287 = vmatmul.mubr.msk.bf16.gmra.mrb[16].mxu0 %vm1493_vm13, %v10775_v14  ;;  %v3218_v14 = vshll.u32 %v14437_v17, 16  ;;  %v3197_v17 = vsel %vm13548_vm12, %v3192_v6, %v3196_v23  ;;  %v3240_v41 = vrot.slane %v3239_v57, 4  ;;  %331 = vst [vmem:[#allocation2 + $0xcc] sm:$0x1] %v330_v38  ;;  %v3620_v35 = vrot.slane %v14309_v50, 5  ;;  %v17565_v38 = vld [vmem:[#allocation16_spill] sm:$0xff]  ;;  %vm15260_vm2 = vmand %vm395_vm0, %vm332_vm4 }
 0x1c1   : > { %12290 = vmatprep.mubr.msk.bf16.mxu0 %vm1493_vm13, %v10776_v43  ;;  %v10779_v5 = vcombine.low %v3187_v30, %v3197_v17  ;;  %v3230_v43 = vrot.slane %v3229_v4, 4  ;;  %v3610_v2 = vsel %vm13933_vm1, %v3608_v60, %v3609_v20  ;;  %v10799_v11 = vrot.slane %v3541_v0, 9  ;;  %v3544_v6 = vld [vmem:[#allocation2 + $0x3c] sm:$0xe] }
 0x1c2   : > { %v3220_v28 = vrot.slane %v3218_v14, 5  ;;  %v3245_v40 = vsel %vm13548_vm12, %v3240_v41, %v3244_v53  ;;  %v10815_v15 = vcombine.low %v3607_v21, %v3610_v2  ;;  %v3615_v48 = vrot.slane %v3613_v7, 4  ;;  %v17562_v53 = vld [vmem:[#allocation14_spill] sm:$0xff] }
 0x1c3   : > { %v3235_v34 = vsel %vm13548_vm12, %v3230_v43, %v3234_v26  ;;  %v3616_v27 = vrot.slane %v14296_v61, 5  ;;  %v10800_v47 = vrot.slane %v3542_v18, 9  ;;  %v3622_v51 = vrot.slane %v3620_v35, 4  ;;  %v17569_v18 = vld [vmem:[#allocation19_spill] sm:$0xff] }
 0x1c4   : > { %v3221_v44 = vsel %vm13548_vm12, %v3216_v63, %v3220_v28  ;;  %v10781_v45 = vcombine.low %v3235_v34, %v3245_v40  ;;  %v3623_v56 = vrot.slane %v14356_v31, 5  ;;  %v3614_v14 = vsel %vm13933_vm1, %v10799_v11, %v3613_v7  ;;  %v17566_v34 = vld [vmem:[#allocation17_spill] sm:$0xff]  ;;  %v3552_v7 = vld [vmem:[#allocation2 + $0x9c] sm:$0xe] }
 0x1c5   : > { %v10780_v58 = vcombine.low %v3211_v24, %v3221_v44  ;;  %v3617_v50 = vsel %vm13933_vm1, %v3615_v48, %v3616_v27  ;;  %v4174_v49 = vsel %vm1542_vm3, %v14532_v39, 0  ;;  %v10802_v13 = vrot.slane %v3544_v6, 9  ;;  %v17560_v24 = vld [vmem:[#allocation13_spill] sm:$0xff] }
 0x1c6   : > { %v3624_v61 = vsel %vm13933_vm1, %v3622_v51, %v3623_v56  ;;  %v10816_v31 = vcombine.low %v3614_v14, %v3617_v50  ;;  %v3637_v42 = vrot.slane %v14429_v59, 5  ;;  %v3648_v39 = vrot.slane %v14454_v62, 5  ;;  %v3546_v59 = vld [vmem:[#allocation2 + $0x54] sm:$0xe]  ;;  %v17572_v11 = vld [vmem:[#allocation21_spill] sm:$0xff]  ;;  %v17575_v56 = vld [vmem:[#allocation23_spill] sm:$0xff] }
 0x1c7   : > { %v10804_v17 = vrot.slane %v3546_v59, 9  ;;  %v3651_v57 = vrot.slane %v14507_v3, 5  ;;  %v17561_v44 = vcombine.low %v17559_v19, %v17560_v24  ;;  %v3662_v10 = vrot.slane %v14521_v12, 5  ;;  %v17574_v51 = vld [vmem:[#allocation22_spill] sm:$0xff]  ;;  %v17577_v14 = vld [vmem:[#allocation25_spill] sm:$0xff] }
 0x1c8   : > { %12291 = vmatmul.mubr.msk.bf16.gmra.mrb[20].mxu0 %vm1493_vm13, %v10777_v52  ;;  %v3621_v52 = vsel %vm13933_vm1, %v10800_v47, %v3620_v35  ;;  %v3650_v4 = vrot.slane %v3648_v39, 4  ;;  %v3665_v3 = vrot.slane %v14553_v25, 5  ;;  %v17564_v9 = vcombine.low %v17562_v53, %v17563_v55  ;;  %v17568_v35 = vld [vmem:[#allocation18_spill] sm:$0xff]  ;;  %v14771_v24 = vld [vmem:[#allocation2 + $0x58] sm:$0xf]  ;;  %v13035_v55 = vld [vmem:[#allocation2 + $0xc0] sm:$0xff]  }
 0x1c9   : > { %12294 = vmatprep.mubr.msk.bf16.mxu0 %vm1493_vm13, %v10778_v33  ;;  %v17558_v33 = vld [vmem:[#allocation24_spill] sm:$0xff]  ;;  %v10817_v23 = vcombine.low %v3621_v52, %v3624_v61  ;;  %v3649_v37 = vsel %vm13933_vm1, %v10804_v17, %v3648_v39  ;;  %v3664_v41 = vrot.slane %v3662_v10, 4  ;;  %v17567_v40 = vcombine.low %v17565_v38, %v17566_v34  ;;  %v17578_v50 = vld [vmem:[#allocation26_spill] sm:$0xff] }
 0x1ca   : > { %v3634_v36 = vrot.slane %v17558_v33, 5  ;;  %v3652_v62 = vsel %vm13933_vm1, %v3650_v4, %v3651_v57  ;;  %v3690_v25 = vrot.slane %v14577_v46, 5  ;;  %v10810_v21 = vrot.slane %v3552_v7, 9  ;;  %v385_v61 = vld [vmem:[#allocation2 + $0xd4] sm:$0x1]  ;;  %v13025_v4 = vld [vmem:[#allocation2 + $0x48] sm:$0xff]  }
 0x1cb   : > { %v3666_v20 = vsel %vm13933_vm1, %v3664_v41, %v3665_v3  ;;  %v3693_v0 = vrot.slane %v14599_v54, 5  ;;  %v17576_v54 = vcombine.low %v17574_v51, %v17575_v56  ;;  %v17579_v52 = vcombine.low %v17577_v14, %v17578_v50  ;;  %v13027_v3 = vld [vmem:[#allocation2 + $0x60] sm:$0xff]   ;;  %v4369_v7 = vld [vmem:[#allocation2 + $0x18] sm:$0xf]  ;;  %v14811_v51 = vld [vmem:[#allocation2 + $0x88] sm:$0xf] }
 0x1cc   : > { %v3636_v26 = vrot.slane %v3634_v36, 4  ;;  %v3635_v63 = vsel %vm13933_vm1, %v10802_v13, %v3634_v36  ;;  %v3692_v2 = vrot.slane %v3690_v25, 4  ;;  %v3691_v27 = vsel %vm13933_vm1, %v10810_v21, %v3690_v25  ;;  %v13022_v13 = vld [vmem:[#allocation2 + $0x24] sm:$0xff]   ;;  %v13028_v25 = vld [vmem:[#allocation2 + $0x6c] sm:$0xff]   ;;  %v14796_v21 = vld [vmem:[#allocation2 + $0x1c] sm:$0xf] }
 0x1cd   : > { %v17580_v33 = vcombine.low %v14458_v16, %v14464_v22  ;;  %v386_v6 = vsel %vm13493_vm7, 0, %v385_v61  ;;  %v14748_v16 = vld [vmem:[%s17439_s1 + $0x10] sm:$0x3]  ;;  %v14751_v22 = vld [vmem:[#allocation2 + $0x40] sm:$0xf]  ;;  %v5224_v14 = vrot.slane %v14811_v51, 5 }
 0x1ce   : > { %v3638_v28 = vsel %vm13933_vm1, %v3636_v26, %v3637_v42  ;;  %v3694_v46 = vsel %vm13933_vm1, %v3692_v2, %v3693_v0  ;;  %387 = vst [vmem:[#allocation2 + $0xd4] sm:$0x1] %v386_v6  ;;  %v13023_v26 = vld [vmem:[#allocation2 + $0x30] sm:$0xff]   ;;  %v4900_v42 = vsel %vm1542_vm3, %v10880_v8, 0  ;;  %v13029_v0 = vld [vmem:[#allocation2 + $0x78] sm:$0xff]  }
 0x1cf   : > { %v10819_v30 = vcombine.low %v3635_v63, %v3638_v28  ;;  %v10827_v47 = vcombine.low %v3691_v27, %v3694_v46  ;;  %v14753_v63 = vld [vmem:[#allocation2 + $0x44] sm:$0x1]  ;;  %v5182_v28 = vrot.slane %v14751_v22, 5  ;;  %v4431_v27 = vshrl.u32 %v14796_v21, 16  ;;  %v14813_v56 = vld [vmem:[#allocation2 + $0x8c] sm:$0x1] }
 0x1d0   : > { %12295 = vmatmul.mubr.msk.bf16.gmra.mrb[24].mxu0 %vm1493_vm13, %v10779_v5  ;;  %v3548_v5 = vld [vmem:[#allocation2 + $0x6c] sm:$0xe]  ;;  %v5185_v39 = vrot.slane %v14753_v63, 5  ;;  %v5227_v50 = vrot.slane %v14813_v56, 5 }
 0x1d1   : > { %12298 = vmatprep.mubr.msk.bf16.mxu0 %vm1493_vm13, %v10780_v58  ;;  %v10821_v58 = vcombine.low %v3649_v37, %v3652_v62  ;;  %v10806_v43 = vrot.slane %v3548_v5, 9  ;;  %v5184_v59 = vrot.slane %v5182_v28, 4  ;;  %v5100_v37 = vld [vmem:[#allocation2 + $0x54] sm:$0xe]  ;;  %v5196_v62 = vrot.slane %v14771_v24, 5 }
 0x1d2   : > { %v10918_v5 = vrot.slane %v5100_v37, 9 }
 0x1d3   : > { %v3663_v60 = vsel %vm13933_vm1, %v10806_v43, %v3662_v10  ;;  %v14766_v57 = vsel %vm13933_vm1, %v5184_v59, %v5185_v39  ;;  %v13026_v43 = vld [vmem:[#allocation2 + $0x54] sm:$0xff]   ;;  %v4375_v59 = vld [vmem:[#allocation2 + $0x30] sm:$0xf] }
 0x1d4   : > { %v10823_v12 = vcombine.low %v3663_v60, %v3666_v20  ;;  %v14780_v41 = vsel %vm13933_vm1, %v10918_v5, %v5196_v62  ;;  %v14791_v60 = vld [vmem:[#allocation2 + $0x74] sm:$0x1]  ;;  %v5102_v20 = vld [vmem:[#allocation2 + $0x6c] sm:$0xe] }
 0x1d5   : > { %17584 = vst [vmem:[#allocation24_spill] sm:$0xff] %v14780_v41  ;;  %v5213_v38 = vrot.slane %v14791_v60, 5  ;;  %v10920_v34 = vrot.slane %v5102_v20, 9  ;;  %v14839_v5 = vld [vmem:[#allocation2 + $0x34] sm:$0xf]  ;;  %v4469_v20 = vshll.u32 %v4375_v59, 16 }
 0x1d6   : > { %v14934_v19 = vld [vmem:[#allocation2 + $0xd4] sm:$0x1] }
 0x1d8   : > { %12299 = vmatmul.mubr.msk.bf16.gmra.mrb[28].mxu0 %vm1493_vm13, %v10781_v45  ;;  %v17570_v45 = vcombine.low %v17568_v35, %v17569_v18  ;;  %v4372_v35 = vld [vmem:[#allocation2 + $0x24] sm:$0xf] }
 0x1d9   : > { %12304 = vmatprep.mubr.msk.bf16.mxu0 %vm1493_vm13, %v10815_v15  ;;  %v17571_v15 = vld [vmem:[#allocation20_spill] sm:$0xff]  ;;  %v4442_v46 = vshrl.u32 %v4372_v35, 16 }
 0x1da   : > { %v17573_v48 = vcombine.low %v17571_v15, %v17572_v11  ;;  %v4418_v15 = vshrl.u32 %v4369_v7, 16  ;;  %v4421_v11 = vshll.u32 %v4369_v7, 16 }
 0x1dc   : > { %v4423_v36 = vrot.slane %v4421_v11, 5 }
 0x1e0   : > { %12305 = vmatmul.mubr.msk.bf16.vlgmr.msra.gmra.mrb[0].mxu0 %vm1493_vm13, %v10816_v31  ;;  %v13021_v31 = vld [vmem:[#allocation2 + $0x18] sm:$0xff]  }
 0x1e1   : > { %12337 = vmatpush3.bf16.msra.mxu0 %v4174_v49  ;;  %12308 = vmatprep.mubr.msk.bf16.mxu0 %vm1493_vm13, %v10817_v23  ;;  %v17582_v23 = vld [vmem:[#allocation27_spill] sm:$0xff] }
 0x1e2   : > { %12945 = vmatprep.subr.msk.bf16.mxu0 %vm1542_vm3, %v10880_v8  ;;  %v17583_v49 = vcombine.low %v14468_v29, %v17582_v23  ;;  %v5098_v29 = vld [vmem:[#allocation2 + $0x3c] sm:$0xe]  ;;  %v13030_v23 = vld [vmem:[#allocation2 + $0x84] sm:$0xff]  }
 0x1e3   : > { %v10916_v8 = vrot.slane %v5098_v29, 9 }
 0x1e5   : > { %v14762_v17 = vsel %vm13933_vm1, %v10916_v8, %v5182_v28  ;;  %v13031_v28 = vld [vmem:[#allocation2 + $0x90] sm:$0xff]  }
 0x1e8   : > { %12309 = vmatmul.mubr.msk.bf16.gmra.mrb[4].mxu0 %vm1493_vm13, %v17561_v44  ;;  %v14773_v44 = vld [vmem:[#allocation2 + $0x5c] sm:$0x1] }
 0x1e9   : > { %12312 = vmatprep.mubr.msk.bf16.mxu0 %vm1493_vm13, %v10819_v30  ;;  %v13024_v30 = vld [vmem:[#allocation2 + $0x3c] sm:$0xff]   ;;  %v5199_v10 = vrot.slane %v14773_v44, 5 }
 0x1f0   : > { %12313 = vmatmul.mubr.msk.bf16.gmra.mrb[8].mxu0 %vm1493_vm13, %v17564_v9  ;;  %v14789_v9 = vld [vmem:[#allocation2 + $0x70] sm:$0xf] }
 0x1f1   : > { %12316 = vmatprep.mubr.msk.bf16.mxu0 %vm1493_vm13, %v10821_v58  ;;  %v5198_v58 = vrot.slane %v5196_v62, 4 }
 0x1f3   : > { %v14784_v53 = vsel %vm13933_vm1, %v5198_v58, %v5199_v10  ;;  %v14837_v10 = vld [vmem:[#allocation2 + $0x2c] sm:$0x1] }
 0x1f4   : > { %17585 = vst [vmem:[#allocation12_spill] sm:$0xff] %v14784_v53  ;;  %v4595_v53 = vshll.u32 %v14789_v9, 16 }
 0x1f8   : > { %12317 = vmatmul.mubr.msk.bf16.gmra.mrb[12].mxu0 %vm1493_vm13, %v17567_v40 }
 0x1f9   : > { %12320 = vmatprep.mubr.msk.bf16.mxu0 %vm1493_vm13, %v10823_v12  ;;  %v5210_v12 = vrot.slane %v14789_v9, 5 }
 0x1fb   : > { %v5212_v40 = vrot.slane %v5210_v12, 4  ;;  %v14800_v2 = vsel %vm13933_vm1, %v10920_v34, %v5210_v12  ;;  %v14843_v12 = vld [vmem:[#allocation2 + $0xa0] sm:$0xf] }
 0x1fc   : > { %17586 = vst [vmem:[#allocation13_spill] sm:$0xff] %v14800_v2  ;;  %v5238_v7 = vrot.slane %v14843_v12, 5 }
 0x1fd   : > { %v14804_v18 = vsel %vm13933_vm1, %v5212_v40, %v5213_v38  ;;  %v14845_v38 = vld [vmem:[#allocation2 + $0xa4] sm:$0x1] }
 0x1fe   : > { %17587 = vst [vmem:[#allocation14_spill] sm:$0xff] %v14804_v18 }
 0x200   : > { %12321 = vmatmul.mubr.msk.bf16.gmra.mrb[16].mxu0 %vm1493_vm13, %v17570_v45 }
 0x201   : > { %12324 = vmatprep.mubr.msk.bf16.mxu0 %vm1493_vm13, %v17573_v48  ;;  %v4427_v48 = vshll.u32 %v14796_v21, 16 }
 0x203   : > { %v14820_v6 = vrot.slane %v4427_v48, 5 }
 0x208   : > { %12325 = vmatmul.mubr.msk.bf16.gmra.mrb[20].mxu0 %vm1493_vm13, %v17576_v54  ;;  %v5104_v54 = vld [vmem:[#allocation2 + $0x84] sm:$0xe] }
 0x209   : > { %12328 = vmatprep.mubr.msk.bf16.mxu0 %vm1493_vm13, %v10827_v47  ;;  %v4445_v47 = vshll.u32 %v4372_v35, 16  ;;  %v10922_v61 = vrot.slane %v5104_v54, 9  ;;  %v4475_v35 = vshll.u32 %v14839_v5, 16  ;;  %v5240_v54 = vrot.slane %v5238_v7, 4 }
 0x20b   : > { %v14826_v29 = vsel %vm13933_vm1, %v10922_v61, %v5224_v14 }
 0x20c   : > { %17588 = vst [vmem:[#allocation15_spill] sm:$0xff] %v14826_v29  ;;  %v14952_v29 = vld [vmem:[#allocation2 + $0x64] sm:$0xf] }
 0x210   : > { %12329 = vmatmul.mubr.msk.bf16.gmra.mrb[24].mxu0 %vm1493_vm13, %v17579_v52  ;;  %v14818_v52 = vld [vmem:[#allocation2 + $0x28] sm:$0xf] }
 0x211   : > { %12332 = vmatprep.mubr.msk.bf16.mxu0 %vm1493_vm13, %v17580_v33  ;;  %v4420_v33 = vrot.slane %v4418_v15, 4  ;;  %v4451_v39 = vshll.u32 %v14818_v52, 16  ;;  %v4455_v8 = vshrl.u32 %v14818_v52, 16  ;;  %v4479_v15 = vshrl.u32 %v14839_v5, 16 }
 0x213   : > { %v4424_v37 = vor.u32 %v4423_v36, %v4420_v33  ;;  %v14848_v34 = vrot.slane %v4451_v39, 5  ;;  %v4457_v40 = vrot.slane %v4455_v8, 4  ;;  %v4471_v33 = vrot.slane %v4469_v20, 5 }
 0x214   : > { %v4481_v39 = vrot.slane %v4479_v15, 4  ;;  %v5108_v15 = vld [vmem:[#allocation2 + $0xb4] sm:$0xe] }
 0x215   : > { %v4425_v48 = vrot.slane %v4424_v37, 4 }
 0x218   : > { %12333 = vmatmul.mubr.msk.bf16.gmra.mrb[28].mxu0 %vm1493_vm13, %v17583_v49  ;;  %v14822_v49 = vld [vmem:[#allocation2 + $0x20] sm:$0x1] }
 0x219   : > { %12338 = vmatprep.mubr.msk.bf16.mxu0 %vm1493_vm13, %v13021_v31  ;;  %v5226_v31 = vrot.slane %v5224_v14, 4  ;;  %v4437_v62 = vshll.u32 %v14822_v49, 16  ;;  %v13032_v14 = vld [vmem:[#allocation2 + $0x9c] sm:$0xff]  }
 0x220   : > { %12339 = vmatmul.mubr.msk.bf16.vlgmr.msra.gmra.mrb[0].mxu0 %vm1493_vm13, %v13022_v13  ;;  %v4433_v13 = vrot.slane %v4431_v27, 4  ;;  %v4439_v27 = vrot.slane %v4437_v62, 5 }
 0x221   : > { %12371 = vmatpush3.bf16.msra.mxu0 %v4900_v42  ;;  %12342 = vmatprep.mubr.msk.bf16.mxu0 %vm1493_vm13, %v13023_v26  ;;  %v4444_v26 = vrot.slane %v4442_v46, 4  ;;  %v4447_v42 = vrot.slane %v4445_v47, 5  ;;  %v4461_v46 = vshll.u32 %v14837_v10, 16  ;;  %v4378_v47 = vld [vmem:[#allocation2 + $0x3c] sm:$0xf] }
 0x222   : > { %12946 = vmatprep.subr.msk.bf16.mxu0 %vm1542_vm3, %v14748_v16  ;;  %v4434_v58 = vor.u32 %v4433_v13, %v14820_v6  ;;  %v4458_v13 = vor.u32 %v4457_v40, %v14848_v34  ;;  %v4490_v8 = vshrl.u32 %v4378_v47, 16  ;;  %v4493_v62 = vshll.u32 %v4378_v47, 16 }
 0x223   : > { %v14872_v37 = vrot.slane %v4461_v46, 5  ;;  %v10926_v47 = vrot.slane %v5108_v15, 9  ;;  %v14915_v15 = vld [vmem:[#allocation2 + $0x50] sm:$0x1] }
 0x224   : > { %v4492_v46 = vrot.slane %v4490_v8, 4 }
 0x228   : > { %12343 = vmatmul.mubr.msk.bf16.gmra.mrb[4].mxu0 %vm1493_vm13, %v13024_v30  ;;  %v14832_v30 = vsel %vm13933_vm1, %v5226_v31, %v5227_v50  ;;  %v4435_v50 = vrot.slane %v4434_v58, 4  ;;  %v13033_v31 = vld [vmem:[#allocation2 + $0xa8] sm:$0xff]   ;;  %v4499_v58 = vshll.u32 %v14751_v22, 16 }
 0x229   : > { %12346 = vmatprep.mubr.msk.bf16.mxu0 %vm1493_vm13, %v13025_v4  ;;  %17589 = vst [vmem:[#allocation16_spill] sm:$0xff] %v14832_v30  ;;  %v4551_v30 = vshrl.u32 %v14771_v24, 16 }
 0x22a   : > { %v4440_v20 = vsel %vm13548_vm12, %v4435_v50, %v4439_v27 }
 0x230   : > { %12347 = vmatmul.mubr.msk.bf16.gmra.mrb[8].mxu0 %vm1493_vm13, %v13026_v43  ;;  %v4448_v43 = vor.u32 %v4447_v42, %v4444_v26  ;;  %v14866_v42 = vld [vmem:[#allocation2 + $0x38] sm:$0x1] }
 0x231   : > { %12350 = vmatprep.mubr.msk.bf16.mxu0 %vm1493_vm13, %v13027_v3  ;;  %v4466_v3 = vshrl.u32 %v4375_v59, 16  ;;  %v14901_v59 = vrot.slane %v4499_v58, 5 }
 0x233   : > { %v4468_v61 = vrot.slane %v4466_v3, 4  ;;  %v4430_v3 = vsel %vm13548_vm12, %v4425_v48, %v14820_v6 }
 0x235   : > { %v4472_v40 = vor.u32 %v4471_v33, %v4468_v61 }
 0x238   : > { %12351 = vmatmul.mubr.msk.bf16.gmra.mrb[12].mxu0 %vm1493_vm13, %v13028_v25  ;;  %v5106_v25 = vld [vmem:[#allocation2 + $0x9c] sm:$0xe] }
 0x239   : > { %12354 = vmatprep.mubr.msk.bf16.mxu0 %vm1493_vm13, %v13029_v0  ;;  %v5241_v0 = vrot.slane %v14845_v38, 5  ;;  %v10924_v11 = vrot.slane %v5106_v25, 9  ;;  %v4381_v25 = vld [vmem:[#allocation2 + $0x48] sm:$0xf] }
 0x23a   : > { %v4514_v50 = vshrl.u32 %v4381_v25, 16  ;;  %v4517_v61 = vshll.u32 %v4381_v25, 16  ;;  %v4384_v25 = vld [vmem:[#allocation2 + $0x54] sm:$0xf] }
 0x23b   : > { %v14857_v36 = vsel %vm13933_vm1, %v10924_v11, %v5238_v7  ;;  %v14864_v26 = vsel %vm13933_vm1, %v5240_v54, %v5241_v0  ;;  %v14882_v7 = vld [vmem:[#allocation2 + $0xb8] sm:$0xf]  ;;  %v14884_v0 = vld [vmem:[#allocation2 + $0xbc] sm:$0x1]  ;;  %v4495_v54 = vrot.slane %v4493_v62, 5 }
 0x23c   : > { %17590 = vst [vmem:[#allocation17_spill] sm:$0xff] %v14857_v36  ;;  %17591 = vst [vmem:[#allocation18_spill] sm:$0xff] %v14864_v26  ;;  %v5252_v11 = vrot.slane %v14882_v7, 5  ;;  %v5255_v6 = vrot.slane %v14884_v0, 5 }
 0x23e   : > { %v5254_v33 = vrot.slane %v5252_v11, 4  ;;  %v14905_v45 = vsel %vm13933_vm1, %v10926_v47, %v5252_v11  ;;  %v4509_v47 = vshll.u32 %v14753_v63, 16 }
 0x23f   : > { %17592 = vst [vmem:[#allocation19_spill] sm:$0xff] %v14905_v45 }
 0x240   : > { %12355 = vmatmul.mubr.msk.bf16.gmra.mrb[16].mxu0 %vm1493_vm13, %v13030_v23  ;;  %v14859_v23 = vrot.slane %v4448_v43, 4  ;;  %v4503_v43 = vshrl.u32 %v14751_v22, 16  ;;  %v4485_v22 = vshll.u32 %v14866_v42, 16  ;;  %v14949_v36 = vrot.slane %v4509_v47, 5 }
 0x241   : > { %12358 = vmatprep.mubr.msk.bf16.mxu0 %vm1493_vm13, %v13031_v28  ;;  %v14868_v28 = vrot.slane %v4475_v35, 5  ;;  %v14887_v35 = vrot.slane %v4458_v13, 4  ;;  %v14899_v13 = vrot.slane %v4472_v40, 4  ;;  %v14913_v40 = vsel %vm13933_vm1, %v5254_v33, %v5255_v6 }
 0x242   : > { %v4505_v4 = vrot.slane %v4503_v43, 4  ;;  %v4487_v62 = vrot.slane %v4485_v22, 5  ;;  %17593 = vst [vmem:[#allocation20_spill] sm:$0xff] %v14913_v40  ;;  %v4519_v22 = vrot.slane %v4517_v61, 5  ;;  %v4538_v33 = vshrl.u32 %v4384_v25, 16 }
 0x243   : > { %v4482_v27 = vor.u32 %v4481_v39, %v14868_v28  ;;  %v10881_v39 = vcombine.low %v4430_v3, %v4440_v20  ;;  %v4464_v8 = vsel %vm13548_vm12, %v14887_v35, %v14872_v37  ;;  %v14923_v37 = vsel %vm1542_vm3, %v14748_v16, 0  ;;  %v14932_v3 = vld [vmem:[#allocation2 + $0xd0] sm:$0xf]  ;;  %v4387_v40 = vld [vmem:[#allocation2 + $0x60] sm:$0xf] }
 0x244   : > { %v4496_v20 = vor.u32 %v4495_v54, %v4492_v46  ;;  %v4516_v35 = vrot.slane %v4514_v50, 4  ;;  %v4478_v6 = vsel %vm13548_vm12, %v14899_v13, %v14868_v28  ;;  %v4533_v16 = vshll.u32 %v14915_v15, 16  ;;  %v5110_v54 = vld [vmem:[#allocation2 + $0xcc] sm:$0xe] }
 0x245   : > { %v4483_v58 = vrot.slane %v4482_v27, 4  ;;  %v4506_v27 = vor.u32 %v4505_v4, %v14901_v59  ;;  %v4541_v46 = vshll.u32 %v4384_v25, 16  ;;  %v5266_v50 = vrot.slane %v14932_v3, 5  ;;  %v13036_v25 = vld [vmem:[#allocation2 + $0xcc] sm:$0xff]  }
 0x246   : > { %v5269_v61 = vrot.slane %v14934_v19, 5  ;;  %v14944_v13 = vrot.slane %v4496_v20, 4  ;;  %v4520_v48 = vor.u32 %v4519_v22, %v4516_v35  ;;  %v4562_v22 = vshrl.u32 %v4387_v40, 16 }
 0x247   : > { %v4488_v4 = vsel %vm13548_vm12, %v4483_v58, %v4487_v62  ;;  %v5268_v45 = vrot.slane %v5266_v50, 4  ;;  %v14947_v26 = vrot.slane %v4506_v27, 4  ;;  %v14958_v58 = vrot.slane %v4533_v16, 5 }
 0x248   : > { %12359 = vmatmul.mubr.msk.bf16.gmra.mrb[20].mxu0 %vm1493_vm13, %v13032_v14  ;;  %v14897_v14 = vld [vmem:[#allocation2 + $0x4c] sm:$0xf]  ;;  %v4565_v27 = vshll.u32 %v4387_v40, 16  ;;  %v14967_v47 = vrot.slane %v4520_v48, 4  ;;  %v4571_v16 = vshll.u32 %v14952_v29, 16 }
 0x249   : > { %12362 = vmatprep.mubr.msk.bf16.mxu0 %vm1493_vm13, %v13033_v31  ;;  %v13034_v31 = vld [vmem:[#allocation2 + $0xb4] sm:$0xff]   ;;  %v4523_v43 = vshll.u32 %v14897_v14, 16  ;;  %v4527_v11 = vshrl.u32 %v14897_v14, 16  ;;  %v14962_v20 = vsel %vm13933_vm1, %v5268_v45, %v5269_v61  ;;  %v17596_v45 = vsel %vm13548_vm12, %v14859_v23, %v14848_v34  ;;  %v14979_v61 = vld [vmem:[#allocation2 + $0x68] sm:$0x1] }
 0x24a   : > { %17595 = vst [vmem:[#allocation22_spill] sm:$0xff] %v14962_v20  ;;  %v10882_v40 = vcombine.low %v17596_v45, %v4464_v8  ;;  %v14984_v48 = vld [vmem:[%s17442_s4] sm:$0x3]  ;;  %v4557_v34 = vshll.u32 %v14773_v44, 16  ;;  %v4393_v23 = vld [vmem:[#allocation2 + $0x78] sm:$0xf] }
 0x24b   : > { %v14942_v28 = vrot.slane %v4523_v43, 5  ;;  %v4529_v63 = vrot.slane %v4527_v11, 4  ;;  %v4540_v43 = vrot.slane %v4538_v33, 4  ;;  %v4543_v11 = vrot.slane %v4541_v46, 5  ;;  %v4390_v46 = vld [vmem:[#allocation2 + $0x6c] sm:$0xf]  ;;  %12948 = vmatprep.subr.msk.bf16.mxu1 %vm1542_vm3, %v14984_v48 }
 0x24c   : > { %v4575_v33 = vshrl.u32 %v14952_v29, 16  ;;  %v13038_v8 = vld [vmem:[%s13500_s18 + $0x48] sm:$0xff]   ;;  %v17597_v44 = vmov 0  ;;  %v4586_v18 = vshrl.u32 %v4390_v46, 16  ;;  %v4589_v2 = vshll.u32 %v4390_v46, 16 }
 0x24d   : > { %v4530_v35 = vor.u32 %v4529_v63, %v14942_v28  ;;  %v13037_v63 = vld [vmem:[%s13500_s18 + $0x40] sm:$0xff]   ;;  %v17598_v44 = vsel %vm15004_vm5, 4294967295, %v17597_v44 }
 0x24e   : > { %12456 = vmatprep.mubr.msk.bf16.mxu1 %vm1493_vm13, %v13037_v63  ;;  %17599 = vst [vmem:[#allocation23_spill] sm:$0xff] %v17598_v44  ;;  %v4396_v44 = vld [vmem:[#allocation2 + $0x84] sm:$0xf]  ;;  %v4591_v41 = vrot.slane %v4589_v2, 5 }
 0x24f   : > { %v4531_v45 = vrot.slane %v4530_v35, 4  ;;  %v4512_v35 = vsel %vm13548_vm12, %v14947_v26, %v14949_v36  ;;  %v4599_v36 = vshrl.u32 %v14789_v9, 16  ;;  %v4610_v26 = vshrl.u32 %v4393_v23, 16 }
 0x250   : > { %12363 = vmatmul.mubr.msk.bf16.gmra.mrb[24].mxu0 %vm1493_vm13, %v13034_v31  ;;  %v10928_v31 = vrot.slane %v5110_v54, 9 }
 0x251   : > { %12366 = vmatprep.mubr.msk.bf16.mxu0 %vm1493_vm13, %v13035_v55  ;;  %v4547_v55 = vshll.u32 %v14771_v24, 16  ;;  %v13040_v24 = vld [vmem:[#allocation4] sm:$0xff]   ;;  %v4536_v9 = vsel %vm13548_vm12, %v4531_v45, %v14958_v58  ;;  %v4612_v58 = vrot.slane %v4610_v26, 4 }
 0x252   : > { %v14956_v62 = vsel %vm13933_vm1, %v10928_v31, %v5266_v50  ;;  %v4553_v50 = vrot.slane %v4551_v30, 4  ;;  %v10883_v31 = vcombine.low %v4478_v6, %v4488_v4  ;;  %v14997_v30 = vsel %vm1542_vm3, %v14984_v48, 0 }
 0x253   : > { %17594 = vst [vmem:[#allocation21_spill] sm:$0xff] %v14956_v62  ;;  %v14969_v54 = vrot.slane %v4547_v55, 5  ;;  %v4564_v6 = vrot.slane %v4562_v22, 4  ;;  %v4567_v4 = vrot.slane %v4565_v27, 5  ;;  %12521 = vmatpush3.bf16.msra.mxu1 %v14997_v30  ;;  %v403_v55 = vld [vmem:[#allocation3 + $0x18] sm:$0x1] }
 0x254   : > { %v15014_v22 = vld [vmem:[#allocation2 + $0x7c] sm:$0xf]  ;;  %v404_v63 = vsel %vm15004_vm5, 0, %v403_v55  ;;  %v4581_v62 = vshll.u32 %v14979_v61, 16 }
 0x255   : > { %17600 = vst [vmem:[#allocation25_spill] sm:$0xff] %v15014_v22  ;;  %v13041_v27 = vld [vmem:[#allocation4 + $0x48] sm:$0xff]   ;;  %v4554_v20 = vor.u32 %v4553_v50, %v14969_v54  ;;  %405 = vst [vmem:[#allocation3 + $0x18] sm:$0x1] %v404_v63  ;;  %v4619_v50 = vshll.u32 %v15014_v22, 16  ;;  %v4623_v46 = vshrl.u32 %v15014_v22, 16  ;;  %v4568_v63 = vor.u32 %v4567_v4, %v4564_v6 }
 0x256   : > { %12457 = vmatmul.mubr.msk.bf16.vlgmr.msra.gmra.mrb[0].mxu1 %vm1493_vm13, %v13038_v8  ;;  %v4601_v22 = vrot.slane %v4599_v36, 4  ;;  %v4634_v4 = vshrl.u32 %v4396_v44, 16 }
 0x257   : > { %v15040_v45 = vrot.slane %v4619_v50, 5  ;;  %v4625_v6 = vrot.slane %v4623_v46, 4  ;;  %v15061_v50 = vld [vmem:[#allocation2 + $0x94] sm:$0xf] }
 0x258   : > { %12367 = vmatmul.mubr.msk.bf16.gmra.mrb[28].mxu0 %vm1493_vm13, %v13036_v25  ;;  %v13039_v25 = vld [vmem:[#allocation4 + $0x40] sm:$0xff]  }
 0x259   : > { %12372 = vmatprep.mubr.msk.bf16.mxu0 %vm1493_vm13, %v10881_v39  ;;  %v4544_v39 = vor.u32 %v4543_v11, %v4540_v43  ;;  %v15012_v43 = vrot.slane %v4571_v16, 5  ;;  %v4577_v11 = vrot.slane %v4575_v33, 4  ;;  %11660 = vmatprep.subr.bf16.mxu1 %v13039_v25  ;;  %v4613_v16 = vshll.u32 %v4393_v23, 16  ;;  %v13042_v25 = vld [vmem:[#allocation4 + $0x8] sm:$0xff]  }
 0x25a   : > { %v4526_v33 = vsel %vm13548_vm12, %v14967_v47, %v14942_v28  ;;  %11661 = vmatpush3.bf16.msra.mxu1 %v13040_v24  ;;  %v4559_v23 = vrot.slane %v4557_v34, 5  ;;  %v4555_v28 = vrot.slane %v4554_v20, 4  ;;  %v4583_v47 = vrot.slane %v4581_v62, 5  ;;  %v15044_v62 = vld [vmem:[#allocation2 + $0x80] sm:$0x1] }
 0x25b   : > { %v15027_v55 = vrot.slane %v4544_v39, 4  ;;  %v4578_v8 = vor.u32 %v4577_v11, %v15012_v43  ;;  %11662 = vmatprep.subr.bf16.mxu1 %v13041_v27  ;;  %v4588_v39 = vrot.slane %v4586_v18, 4  ;;  %v15038_v24 = vrot.slane %v4595_v53, 5 }
 0x25c   : > { %v4615_v34 = vrot.slane %v4613_v16, 5  ;;  %v4637_v11 = vshll.u32 %v4396_v44, 16  ;;  %v4569_v18 = vrot.slane %v4568_v63, 4  ;;  %v4647_v53 = vshrl.u32 %v14811_v51, 16  ;;  %v4399_v16 = vld [vmem:[#allocation2 + $0x90] sm:$0xf] }
 0x25d   : > { %v4579_v2 = vrot.slane %v4578_v8, 4  ;;  %v17601_v20 = vsel %vm13548_vm12, %v14944_v13, %v14901_v59  ;;  %v4560_v44 = vsel %vm13548_vm12, %v4555_v28, %v4559_v23  ;;  %v4592_v27 = vor.u32 %v4591_v41, %v4588_v39 }
 0x25e   : > { %11663 = vmatpush3.bf16.msra.mxu1 %v13042_v25  ;;  %v4602_v36 = vor.u32 %v4601_v22, %v15038_v24  ;;  %v4616_v26 = vor.u32 %v4615_v34, %v4612_v58  ;;  %v4626_v59 = vor.u32 %v4625_v6, %v15040_v45  ;;  %v4629_v13 = vshll.u32 %v15044_v62, 16  ;;  %v4402_v34 = vld [vmem:[#allocation2 + $0x9c] sm:$0xf] }
 0x25f   : > { %v4584_v41 = vsel %vm13548_vm12, %v4579_v2, %v4583_v47  ;;  %v4661_v46 = vshll.u32 %v4399_v16, 16  ;;  %v4667_v25 = vshll.u32 %v15061_v50, 16  ;;  %v4593_v23 = vrot.slane %v4592_v27, 4 }
 0x260   : > { %12373 = vmatmul.mubr.msk.bf16.vlgmr.msra.gmra.mrb[0].mxu0 %vm1493_vm13, %v10882_v40  ;;  %v10884_v40 = vcombine.low %v17601_v20, %v4512_v35  ;;  %v4636_v35 = vrot.slane %v4634_v4, 4  ;;  %v4603_v63 = vrot.slane %v4602_v36, 4  ;;  %v4627_v28 = vrot.slane %v4626_v59, 4 }
 0x261   : > { %12405 = vmatpush3.bf16.msra.mxu0 %v14923_v37  ;;  %12376 = vmatprep.mubr.msk.bf16.mxu0 %vm1493_vm13, %v10883_v31  ;;  %v4643_v37 = vshll.u32 %v14811_v51, 16  ;;  %v10885_v31 = vcombine.low %v4526_v33, %v4536_v9  ;;  %v4605_v51 = vshll.u32 %v14791_v60, 16  ;;  %v4639_v33 = vrot.slane %v4637_v11, 5 }
 0x262   : > { %12947 = vmatprep.subr.msk.bf16.mxu0 %vm1542_vm3, %v14984_v48  ;;  %v4550_v48 = vsel %vm13548_vm12, %v15027_v55, %v14969_v54  ;;  %v4574_v54 = vsel %vm13548_vm12, %v4569_v18, %v15012_v43  ;;  %v4649_v60 = vrot.slane %v4647_v53, 4  ;;  %v4658_v55 = vshrl.u32 %v4399_v16, 16  ;;  %v15078_v18 = vld [vmem:[#allocation2 + $0x98] sm:$0x1] }
 0x263   : > { %v15070_v22 = vrot.slane %v4643_v37, 5  ;;  %v4671_v9 = vshrl.u32 %v15061_v50, 16  ;;  %v4607_v8 = vrot.slane %v4605_v51, 5  ;;  %v4617_v43 = vrot.slane %v4616_v26, 4 }
 0x264   : > { %v4631_v39 = vrot.slane %v4629_v13, 5  ;;  %v4640_v47 = vor.u32 %v4639_v33, %v4636_v35  ;;  %v4653_v58 = vshll.u32 %v14813_v56, 16  ;;  %v10886_v6 = vcombine.low %v4550_v48, %v4560_v44  ;;  %v4405_v48 = vld [vmem:[#allocation2 + $0xa8] sm:$0xf]  ;;  %v15087_v44 = vld [vmem:[#allocation2 + $0xac] sm:$0xf] }
 0x265   : > { %v10887_v4 = vcombine.low %v4574_v54, %v4584_v41  ;;  %v4650_v11 = vor.u32 %v4649_v60, %v15070_v22  ;;  %v4660_v2 = vrot.slane %v4658_v55, 4  ;;  %v4663_v37 = vrot.slane %v4661_v46, 5 }
 0x266   : > { %v15080_v53 = vrot.slane %v4667_v25, 5  ;;  %v4673_v20 = vrot.slane %v4671_v9, 4  ;;  %v4682_v56 = vshrl.u32 %v4402_v34, 16  ;;  %v4685_v27 = vshll.u32 %v4402_v34, 16 }
 0x267   : > { %v4622_v36 = vsel %vm13548_vm12, %v4617_v43, %v15040_v45  ;;  %v4632_v51 = vsel %vm13548_vm12, %v4627_v28, %v4631_v39  ;;  %v4641_v26 = vrot.slane %v4640_v47, 4  ;;  %v4655_v16 = vrot.slane %v4653_v58, 5  ;;  %v15109_v39 = vld [vmem:[#allocation2 + $0xb0] sm:$0x1] }
 0x268   : > { %12377 = vmatmul.mubr.msk.bf16.gmra.mrb[4].mxu0 %vm1493_vm13, %v10884_v40  ;;  %v4598_v40 = vsel %vm13548_vm12, %v4593_v23, %v15038_v24  ;;  %v4651_v59 = vrot.slane %v4650_v11, 4  ;;  %v4677_v24 = vshll.u32 %v15078_v18, 16  ;;  %v4691_v13 = vshll.u32 %v14843_v12, 16 }
 0x269   : > { %12380 = vmatprep.mubr.msk.bf16.mxu0 %vm1493_vm13, %v10885_v31  ;;  %v4608_v31 = vsel %vm13548_vm12, %v4603_v63, %v4607_v8  ;;  %v4695_v35 = vshrl.u32 %v14843_v12, 16  ;;  %v4706_v33 = vshrl.u32 %v4405_v48, 16  ;;  %v4709_v54 = vshll.u32 %v4405_v48, 16  ;;  %v4411_v48 = vld [vmem:[#allocation2 + $0xc0] sm:$0xf] }
 0x26a   : > { %v4715_v41 = vshll.u32 %v15087_v44, 16  ;;  %v4719_v45 = vshrl.u32 %v15087_v44, 16  ;;  %v4664_v60 = vor.u32 %v4663_v37, %v4660_v2  ;;  %v4674_v55 = vor.u32 %v4673_v20, %v15080_v53 }
 0x26b   : > { %v4684_v46 = vrot.slane %v4682_v56, 4  ;;  %v4687_v25 = vrot.slane %v4685_v27, 5  ;;  %v10888_v9 = vcombine.low %v4598_v40, %v4608_v31  ;;  %v10889_v23 = vcombine.low %v4622_v36, %v4632_v51  ;;  %v15114_v36 = vld [vmem:[#allocation2 + $0xc4] sm:$0xf] }
 0x26c   : > { %v4646_v12 = vsel %vm13548_vm12, %v4641_v26, %v15070_v22  ;;  %v4656_v63 = vsel %vm13548_vm12, %v4651_v59, %v4655_v16  ;;  %v4679_v8 = vrot.slane %v4677_v24, 5  ;;  %v15107_v43 = vrot.slane %v4691_v13, 5 }
 0x26d   : > { %v4697_v28 = vrot.slane %v4695_v35, 4  ;;  %v4708_v47 = vrot.slane %v4706_v33, 4  ;;  %v4711_v58 = vrot.slane %v4709_v54, 5  ;;  %v4717_v34 = vrot.slane %v4715_v41, 5 }
 0x26e   : > { %v4665_v11 = vrot.slane %v4664_v60, 4  ;;  %v4675_v2 = vrot.slane %v4674_v55, 4  ;;  %v4688_v37 = vor.u32 %v4687_v25, %v4684_v46  ;;  %v4701_v20 = vshll.u32 %v14845_v38, 16 }
 0x26f   : > { %v4725_v22 = vshll.u32 %v15109_v39, 16  ;;  %v10890_v40 = vcombine.low %v4646_v12, %v4656_v63  ;;  %v4698_v31 = vor.u32 %v4697_v28, %v15107_v43  ;;  %v4712_v51 = vor.u32 %v4711_v58, %v4708_v47  ;;  %v4414_v58 = vld [vmem:[#allocation2 + $0xcc] sm:$0xf] }
 0x270   : > { %12381 = vmatmul.mubr.msk.bf16.gmra.mrb[8].mxu0 %vm1493_vm13, %v10886_v6  ;;  %v4721_v6 = vrot.slane %v4719_v45, 4  ;;  %v4739_v16 = vshll.u32 %v14882_v7, 16  ;;  %v4743_v59 = vshrl.u32 %v14882_v7, 16  ;;  %v4670_v38 = vsel %vm13548_vm12, %v4665_v11, %v15080_v53 }
 0x271   : > { %12384 = vmatprep.mubr.msk.bf16.mxu0 %vm1493_vm13, %v10887_v4  ;;  %v4408_v4 = vld [vmem:[#allocation2 + $0xb4] sm:$0xf]  ;;  %v4680_v24 = vsel %vm13548_vm12, %v4675_v2, %v4679_v8  ;;  %v4689_v13 = vrot.slane %v4688_v37, 4  ;;  %v4703_v35 = vrot.slane %v4701_v20, 5  ;;  %v4754_v33 = vshrl.u32 %v4411_v48, 16 }
 0x272   : > { %v4730_v56 = vshrl.u32 %v4408_v4, 16  ;;  %v4733_v27 = vshll.u32 %v4408_v4, 16  ;;  %v4722_v26 = vor.u32 %v4721_v6, %v4717_v34  ;;  %v4757_v54 = vshll.u32 %v4411_v48, 16  ;;  %v15132_v2 = vld [vmem:[#allocation2 + $0xc8] sm:$0x1] }
 0x273   : > { %v4763_v41 = vshll.u32 %v15114_v36, 16  ;;  %v4767_v45 = vshrl.u32 %v15114_v36, 16  ;;  %v4699_v60 = vrot.slane %v4698_v31, 4  ;;  %v4727_v55 = vrot.slane %v4725_v22, 5 }
 0x274   : > { %v4732_v7 = vrot.slane %v4730_v56, 4  ;;  %v4735_v46 = vrot.slane %v4733_v27, 5  ;;  %v4713_v25 = vrot.slane %v4712_v51, 4  ;;  %v4745_v12 = vrot.slane %v4743_v59, 4 }
 0x275   : > { %v10891_v53 = vcombine.low %v4670_v38, %v4680_v24  ;;  %v4756_v63 = vrot.slane %v4754_v33, 4  ;;  %v4759_v28 = vrot.slane %v4757_v54, 5  ;;  %v4765_v8 = vrot.slane %v4763_v41, 5 }
 0x276   : > { %v4769_v47 = vrot.slane %v4767_v45, 4  ;;  %v4694_v6 = vsel %vm13548_vm12, %v4689_v13, %v15107_v43  ;;  %v4704_v4 = vsel %vm13548_vm12, %v4699_v60, %v4703_v35  ;;  %v4736_v11 = vor.u32 %v4735_v46, %v4732_v7 }
 0x277   : > { %v4718_v37 = vsel %vm13548_vm12, %v4713_v25, %v4717_v34  ;;  %v4749_v31 = vshll.u32 %v14884_v0, 16  ;;  %v4778_v43 = vshrl.u32 %v4414_v58, 16  ;;  %v4781_v56 = vshll.u32 %v4414_v58, 16 }
 0x278   : > { %12385 = vmatmul.mubr.msk.bf16.gmra.mrb[12].mxu0 %vm1493_vm13, %v10888_v9  ;;  %v4723_v9 = vrot.slane %v4722_v26, 4  ;;  %v4787_v27 = vshll.u32 %v14932_v3, 16  ;;  %v4791_v48 = vshrl.u32 %v14932_v3, 16  ;;  %v4760_v51 = vor.u32 %v4759_v28, %v4756_v63 }
 0x279   : > { %12388 = vmatprep.mubr.msk.bf16.mxu0 %vm1493_vm13, %v10889_v23  ;;  %v4741_v23 = vrot.slane %v4739_v16, 5  ;;  %v4770_v26 = vor.u32 %v4769_v47, %v4765_v8  ;;  %v10892_v16 = vcombine.low %v4694_v6, %v4704_v4  ;;  %v4737_v59 = vrot.slane %v4736_v11, 4 }
 0x27a   : > { %v4728_v20 = vsel %vm13548_vm12, %v4723_v9, %v4727_v55  ;;  %v4751_v24 = vrot.slane %v4749_v31, 5  ;;  %v4780_v13 = vrot.slane %v4778_v43, 4  ;;  %v4783_v35 = vrot.slane %v4781_v56, 5  ;;  %v5097_v31 = vld [vmem:[#allocation2 + $0x30] sm:$0xe] }
 0x27b   : > { %v4746_v22 = vor.u32 %v4745_v12, %v4741_v23  ;;  %v10893_v34 = vcombine.low %v4718_v37, %v4728_v20  ;;  %v4789_v0 = vrot.slane %v4787_v27, 5  ;;  %v4793_v33 = vrot.slane %v4791_v48, 4 }
 0x27c   : > { %v4761_v54 = vrot.slane %v4760_v51, 4  ;;  %v4771_v41 = vrot.slane %v4770_v26, 4  ;;  %v4742_v3 = vsel %vm13548_vm12, %v4737_v59, %v4741_v23  ;;  %v4784_v55 = vor.u32 %v4783_v35, %v4780_v13 }
 0x27d   : > { %v4747_v38 = vrot.slane %v4746_v22, 4  ;;  %v4794_v7 = vor.u32 %v4793_v33, %v4789_v0  ;;  %v4797_v46 = vshll.u32 %v14934_v19, 16  ;;  %v5161_v12 = vrot.slane %v14796_v21, 5  ;;  %v5096_v22 = vld [vmem:[#allocation2 + $0x24] sm:$0xe] }
 0x27e   : > { %v4766_v25 = vsel %vm13548_vm12, %v4761_v54, %v4765_v8  ;;  %v4785_v28 = vrot.slane %v4784_v55, 4  ;;  %v5164_v11 = vrot.slane %v14822_v49, 5  ;;  %v5168_v8 = vrot.slane %v14818_v52, 5 }
 0x27f   : > { %v4752_v60 = vsel %vm13548_vm12, %v4747_v38, %v4751_v24  ;;  %v4795_v47 = vrot.slane %v4794_v7, 4  ;;  %v4799_v58 = vrot.slane %v4797_v46, 5  ;;  %v5163_v4 = vrot.slane %v5161_v12, 4  ;;  %v5099_v38 = vld [vmem:[#allocation2 + $0x48] sm:$0xe] }
 0x280   : > { %12389 = vmatmul.mubr.msk.bf16.gmra.mrb[16].mxu0 %vm1493_vm13, %v10890_v40  ;;  %v4773_v40 = vshll.u32 %v15132_v2, 16  ;;  %v10894_v63 = vcombine.low %v4742_v3, %v4752_v60  ;;  %v4790_v19 = vsel %vm13548_vm12, %v4785_v28, %v4789_v0  ;;  %v5175_v49 = vrot.slane %v14839_v5, 5 }
 0x281   : > { %12392 = vmatprep.mubr.msk.bf16.mxu0 %vm1493_vm13, %v10891_v53  ;;  %v5095_v53 = vld [vmem:[#allocation2 + $0x18] sm:$0xe]  ;;  %v4800_v21 = vsel %vm13548_vm12, %v4795_v47, %v4799_v58  ;;  %v5165_v20 = vsel %vm13933_vm1, %v5163_v4, %v5164_v11  ;;  %v10914_v27 = vrot.slane %v5096_v22, 9  ;;  %v5170_v48 = vrot.slane %v5168_v8, 4  ;;  %v5105_v58 = vld [vmem:[#allocation2 + $0x90] sm:$0xe] }
 0x282   : > { %v4775_v45 = vrot.slane %v4773_v40, 5  ;;  %v10913_v6 = vrot.slane %v5095_v53, 9  ;;  %v10896_v43 = vcombine.low %v4790_v19, %v4800_v21  ;;  %v5171_v51 = vrot.slane %v14837_v10, 5  ;;  %v17607_v19 = vld [vmem:[#allocation13_spill] sm:$0xff]  ;;  %v17608_v21 = vld [vmem:[#allocation14_spill] sm:$0xff] }
 0x283   : > { %v10915_v26 = vrot.slane %v5097_v31, 9  ;;  %v5177_v40 = vrot.slane %v5175_v49, 4  ;;  %v5178_v52 = vrot.slane %v14866_v42, 5  ;;  %v5189_v59 = vrot.slane %v14897_v14, 5  ;;  %v5107_v22 = vld [vmem:[#allocation2 + $0xa8] sm:$0xe] }
 0x284   : > { %v4776_v9 = vsel %vm13548_vm12, %v4771_v41, %v4775_v45  ;;  %v5162_v37 = vsel %vm13933_vm1, %v10913_v6, %v5161_v12  ;;  %v5172_v5 = vsel %vm13933_vm1, %v5170_v48, %v5171_v51  ;;  %v10917_v13 = vrot.slane %v5099_v38, 9  ;;  %v5101_v41 = vld [vmem:[#allocation2 + $0x60] sm:$0xe] }
 0x285   : > { %v10895_v23 = vcombine.low %v4766_v25, %v4776_v9  ;;  %v10930_v56 = vcombine.low %v5162_v37, %v5165_v20  ;;  %v5179_v10 = vsel %vm13933_vm1, %v5177_v40, %v5178_v52  ;;  %v5191_v35 = vrot.slane %v5189_v59, 4  ;;  %v5103_v25 = vld [vmem:[#allocation2 + $0x78] sm:$0xe]  ;;  %v5109_v40 = vld [vmem:[#allocation2 + $0xc0] sm:$0xe] }
 0x286   : > { %v5192_v0 = vrot.slane %v14915_v15, 5  ;;  %v5190_v33 = vsel %vm13933_vm1, %v10917_v13, %v5189_v59  ;;  %v5203_v14 = vrot.slane %v14952_v29, 5  ;;  %v10919_v3 = vrot.slane %v5101_v41, 9  ;;  %v17603_v29 = vld [vmem:[#allocation25_spill] sm:$0xff]  ;;  %v17617_v13 = vld [vmem:[#allocation20_spill] sm:$0xff] }
 0x287   : > { %v5206_v15 = vrot.slane %v14979_v61, 5  ;;  %v17602_v55 = vcombine.low %v14762_v17, %v14766_v57  ;;  %v5217_v46 = vrot.slane %v17603_v29, 5  ;;  %v10921_v12 = vrot.slane %v5103_v25, 9  ;;  %v17605_v17 = vld [vmem:[#allocation12_spill] sm:$0xff]  ;;  %v13048_v29 = vld [vmem:[#allocation4 + $0x18] sm:$0xff]  }
 0x288   : > { %12393 = vmatmul.mubr.msk.bf16.gmra.mrb[20].mxu0 %vm1493_vm13, %v10892_v16  ;;  %v5169_v16 = vsel %vm13933_vm1, %v10914_v27, %v5168_v8  ;;  %v5193_v54 = vsel %vm13933_vm1, %v5191_v35, %v5192_v0  ;;  %v5205_v60 = vrot.slane %v5203_v14, 4  ;;  %v5220_v61 = vrot.slane %v15044_v62, 5  ;;  %v17611_v27 = vld [vmem:[#allocation16_spill] sm:$0xff]  ;;  %v17620_v0 = vld [vmem:[#allocation22_spill] sm:$0xff]  ;;  %v455_v25 = vld [vmem:[#allocation3 + $0x14] sm:$0x1] }
 0x289   : > { %12396 = vmatprep.mubr.msk.bf16.mxu0 %vm1493_vm13, %v10893_v34  ;;  %v5176_v34 = vsel %vm13933_vm1, %v10915_v26, %v5175_v49  ;;  %v10931_v42 = vcombine.low %v5169_v16, %v5172_v5  ;;  %v10934_v45 = vcombine.low %v5190_v33, %v5193_v54  ;;  %v5219_v53 = vrot.slane %v5217_v46, 4  ;;  %v13043_v54 = vld [vmem:[%s13500_s18 + $0x50] sm:$0xff]   ;;  %v13045_v41 = vld [vmem:[#allocation4 + $0x50] sm:$0xff]  }
 0x28a   : > { %v10932_v24 = vcombine.low %v5176_v34, %v5179_v10  ;;  %v5207_v7 = vsel %vm13933_vm1, %v5205_v60, %v5206_v15  ;;  %v5231_v47 = vrot.slane %v15061_v50, 5  ;;  %v10923_v4 = vrot.slane %v5105_v58, 9  ;;  %v17613_v34 = vld [vmem:[#allocation17_spill] sm:$0xff]  ;;  %v17614_v10 = vld [vmem:[#allocation18_spill] sm:$0xff]  ;;  %12460 = vmatprep.mubr.msk.bf16.mxu1 %vm1493_vm13, %v13043_v54  ;;  %11664 = vmatprep.subr.bf16.mxu1 %v13045_v41  ;;  %v400_v60 = vld [vmem:[#allocation3 + $0xc] sm:$0x1] }
 0x28b   : > { %v5221_v28 = vsel %vm13933_vm1, %v5219_v53, %v5220_v61  ;;  %v5234_v62 = vrot.slane %v15078_v18, 5  ;;  %v17609_v8 = vcombine.low %v17607_v19, %v17608_v21  ;;  %v5245_v50 = vrot.slane %v15087_v44, 5  ;;  %v13047_v15 = vld [vmem:[#allocation4 + $0x58] sm:$0xff]   ;;  %v397_v61 = vld [vmem:[#allocation3] sm:$0x1] }
 0x28c   : > { %v5233_v11 = vrot.slane %v5231_v47, 4  ;;  %v5232_v37 = vsel %vm13933_vm1, %v10923_v4, %v5231_v47  ;;  %v10925_v31 = vrot.slane %v5107_v22, 9  ;;  %v5248_v18 = vrot.slane %v15109_v39, 5  ;;  %v409_v53 = vld [vmem:[#allocation3 + $0x30] sm:$0x1]  ;;  %v13052_v4 = vld [vmem:[#allocation4 + $0x20] sm:$0xff]  }
 0x28d   : > { %v5259_v26 = vrot.slane %v15114_v36, 5  ;;  %v10927_v39 = vrot.slane %v5109_v40, 9  ;;  %v5262_v5 = vrot.slane %v15132_v2, 5  ;;  %v17615_v59 = vcombine.low %v17613_v34, %v17614_v10  ;;  %v17619_v2 = vld [vmem:[#allocation21_spill] sm:$0xff]  ;;  %v13053_v19 = vld [vmem:[#allocation4 + $0x68] sm:$0xff]  }
 0x28e   : > { %v5235_v20 = vsel %vm13933_vm1, %v5233_v11, %v5234_v62  ;;  %v5246_v51 = vsel %vm13933_vm1, %v10925_v31, %v5245_v50  ;;  %v17621_v33 = vcombine.low %v17619_v2, %v17620_v0  ;;  %v13050_v58 = vld [vmem:[%s13500_s18 + $0x68] sm:$0xff]   ;;  %v452_v11 = vld [vmem:[#allocation3 + $0x8] sm:$0x1]  ;;  %v13054_v21 = vld [vmem:[#allocation4 + $0x28] sm:$0xff]   ;;  %vm6053_vm3 = vcmask 1043456  }
 0x28f   : > { %v10940_v49 = vcombine.low %v5232_v37, %v5235_v20  ;;  %v5261_v16 = vrot.slane %v5259_v26, 4  ;;  %v5260_v38 = vsel %vm13933_vm1, %v10927_v39, %v5259_v26  ;;  %v453_v62 = vsel %vm15260_vm2, 0, %v452_v11  ;;  %v6168_v22 = vld [vmem:[#allocation3 + $0x4] sm:$0xf]  ;;  %v412_v34 = vld [vmem:[#allocation3 + $0x3c] sm:$0x1]  ;;  %vm15370_vm6 = vmand %vm6053_vm3, %vm332_vm4 }
 0x290   : > { %12397 = vmatmul.mubr.msk.bf16.gmra.mrb[24].mxu0 %vm1493_vm13, %v10894_v63  ;;  %v17604_v63 = vld [vmem:[#allocation24_spill] sm:$0xff]  ;;  %454 = vst [vmem:[#allocation3 + $0x8] sm:$0x1] %v453_v62  ;;  %v467_v0 = vld [vmem:[#allocation3 + $0x44] sm:$0x1] }
 0x291   : > { %12400 = vmatprep.mubr.msk.bf16.mxu0 %vm1493_vm13, %v10895_v23  ;;  %v17606_v57 = vcombine.low %v17604_v63, %v17605_v17  ;;  %v5218_v23 = vsel %vm13933_vm1, %v10921_v12, %v5217_v46  ;;  %v13049_v12 = vld [vmem:[%s13500_s18 + $0x60] sm:$0xff]   ;;  %v410_v63 = vsel %vm15004_vm5, 0, %v409_v53  ;;  %v406_v17 = vld [vmem:[#allocation3 + $0x24] sm:$0x1]  ;;  %v468_v54 = vsel %vm15260_vm2, 0, %v467_v0  ;;  %v13081_v0 = vld [vmem:[#allocation4 + $0x98] sm:$0xff]  }
 0x292   : > { %v10938_v6 = vcombine.low %v5218_v23, %v5221_v28  ;;  %411 = vst [vmem:[#allocation3 + $0x30] sm:$0x1] %v410_v63  ;;  %v407_v23 = vsel %vm15004_vm5, 0, %v406_v17  ;;  %v464_v28 = vld [vmem:[#allocation3 + $0x38] sm:$0x1] }
 0x293   : > { %408 = vst [vmem:[#allocation3 + $0x24] sm:$0x1] %v407_v23  ;;  %v465_v47 = vsel %vm15260_vm2, 0, %v464_v28  ;;  %469 = vst [vmem:[#allocation3 + $0x44] sm:$0x1] %v468_v54  ;;  %v13083_v54 = vld [vmem:[%s13500_s18 + $0x38] sm:$0xff]  }
 0x294   : > { %466 = vst [vmem:[#allocation3 + $0x38] sm:$0x1] %v465_v47  ;;  %v473_v53 = vld [vmem:[#allocation3 + $0x5c] sm:$0x1]  ;;  %v427_v63 = vld [vmem:[#allocation3 + $0x78] sm:$0x1] }
 0x295   : > { %v428_v17 = vsel %vm15004_vm5, 0, %v427_v63  ;;  %v482_v28 = vld [vmem:[#allocation3 + $0x80] sm:$0x1]  ;;  %v433_v62 = vld [vmem:[#allocation3 + $0x90] sm:$0x1] }
 0x296   : > { %429 = vst [vmem:[#allocation3 + $0x78] sm:$0x1] %v428_v17  ;;  %v483_v47 = vsel %vm15260_vm2, 0, %v482_v28  ;;  %v13087_v28 = vld [vmem:[#allocation4 + $0xa0] sm:$0xff]  }
 0x297   : > { %484 = vst [vmem:[#allocation3 + $0x80] sm:$0x1] %v483_v47 }
 0x298   : > { %12401 = vmatmul.mubr.msk.bf16.gmra.mrb[28].mxu0 %vm1493_vm13, %v10896_v43  ;;  %v5247_v43 = vrot.slane %v5245_v50, 4  ;;  %v13055_v50 = vld [vmem:[%s13500_s18 + $0x70] sm:$0xff]  }
 0x299   : > { %12406 = vmatprep.mubr.msk.bf16.mxu0 %vm1493_vm13, %v10930_v56  ;;  %v17610_v56 = vld [vmem:[#allocation15_spill] sm:$0xff] }
 0x29a   : > { %v17612_v48 = vcombine.low %v17610_v56, %v17611_v27  ;;  %v5249_v44 = vsel %vm13933_vm1, %v5247_v43, %v5248_v18  ;;  %v6225_v43 = vshll.u32 %v6168_v22, 16  ;;  %v6229_v18 = vshrl.u32 %v6168_v22, 16  ;;  %v13056_v56 = vld [vmem:[%s13500_s18 + $0x78] sm:$0xff]   ;;  %v13057_v27 = vld [vmem:[#allocation4 + $0x70] sm:$0xff]  }
 0x29b   : > { %v10942_v52 = vcombine.low %v5246_v51, %v5249_v44  ;;  %v6199_v51 = vld [vmem:[#allocation3 + $0x8] sm:$0x1] }
 0x29c   : > { %v6227_v40 = vrot.slane %v6225_v43, 5  ;;  %v6231_v39 = vrot.slane %v6229_v18, 4  ;;  %v13070_v43 = vld [vmem:[%s13500_s18 + $0x10] sm:$0xff]   ;;  %v13071_v18 = vld [vmem:[%s13500_s18 + $0x18] sm:$0xff]  }
 0x2a0   : > { %12407 = vmatmul.mubr.msk.bf16.vlgmr.msra.gmra.mrb[0].mxu0 %vm1493_vm13, %v10931_v42  ;;  %v5263_v42 = vsel %vm13933_vm1, %v5261_v16, %v5262_v5  ;;  %v6235_v16 = vshll.u32 %v6199_v51, 16 }
 0x2a1   : > { %12410 = vmatprep.mubr.msk.bf16.mxu0 %vm1493_vm13, %v10932_v24  ;;  %12439 = vmatpush3.bf16.msra.mxu0 %v14997_v30  ;;  %v5204_v30 = vsel %vm13933_vm1, %v10919_v3, %v5203_v14  ;;  %v10944_v36 = vcombine.low %v5260_v38, %v5263_v42  ;;  %v17616_v24 = vld [vmem:[#allocation19_spill] sm:$0xff]  ;;  %v17622_v3 = vmov 0  ;;  %v470_v38 = vld [vmem:[#allocation3 + $0x50] sm:$0x1] }
 0x2a2   : > { %v10936_v9 = vcombine.low %v5204_v30, %v5207_v7  ;;  %v17618_v35 = vcombine.low %v17616_v24, %v17617_v13  ;;  %v13044_v14 = vld [vmem:[%s13500_s18 + $0x58] sm:$0xff]   ;;  %v17623_v3 = vsel %vm15260_vm2, 4294967295, %v17622_v3  ;;  %v401_v30 = vsel %vm15004_vm5, 0, %v400_v60  ;;  %v13059_v42 = vld [vmem:[#allocation4 + $0x78] sm:$0xff]  }
 0x2a3   : > { %12461 = vmatmul.mubr.msk.bf16.gmra.mrb[4].mxu1 %vm1493_vm13, %v13044_v14  ;;  %17624 = vst [vmem:[#allocation26_spill] sm:$0xff] %v17623_v3  ;;  %v458_v7 = vld [vmem:[#allocation3 + $0x20] sm:$0x1]  ;;  %402 = vst [vmem:[#allocation3 + $0xc] sm:$0x1] %v401_v30  ;;  %v6237_v24 = vrot.slane %v6235_v16, 5 }
 0x2a4   : > { %v459_v46 = vsel %vm15260_vm2, 0, %v458_v7  ;;  %12464 = vmatprep.mubr.msk.bf16.mxu1 %vm1493_vm13, %v13049_v12  ;;  %v471_v13 = vsel %vm15260_vm2, 0, %v470_v38  ;;  %v13063_v30 = vld [vmem:[%s13500_s18 + $0x8] sm:$0xff]   ;;  %v421_v7 = vld [vmem:[#allocation3 + $0x60] sm:$0x1] }
 0x2a5   : > { %460 = vst [vmem:[#allocation3 + $0x20] sm:$0x1] %v459_v46  ;;  %472 = vst [vmem:[#allocation3 + $0x50] sm:$0x1] %v471_v13  ;;  %v418_v46 = vld [vmem:[#allocation3 + $0x54] sm:$0x1] }
 0x2a6   : > { %v13076_v13 = vld [vmem:[%s13500_s18 + $0x20] sm:$0xff]  }
 0x2a8   : > { %12411 = vmatmul.mubr.msk.bf16.gmra.mrb[4].mxu0 %vm1493_vm13, %v17602_v55  ;;  %v13115_v55 = vld [vmem:[#allocation4 + $0x118] sm:$0xff]  }
 0x2a9   : > { %12414 = vmatprep.mubr.msk.bf16.mxu0 %vm1493_vm13, %v10934_v45  ;;  %v13046_v45 = vld [vmem:[#allocation4 + $0x10] sm:$0xff]  }
 0x2aa   : > { %11665 = vmatpush3.bf16.msra.mxu1 %v13046_v45 }
 0x2ab   : > { %11666 = vmatprep.subr.bf16.mxu1 %v13047_v15  ;;  %12465 = vmatmul.mubr.msk.bf16.gmra.mrb[8].mxu1 %vm1493_vm13, %v13050_v58  ;;  %v13062_v15 = vld [vmem:[%s13500_s18] sm:$0xff]   ;;  %v13064_v58 = vld [vmem:[#allocation4 + $0xc0] sm:$0xff]  }
 0x2ac   : > { %12468 = vmatprep.mubr.msk.bf16.mxu1 %vm1493_vm13, %v13055_v50  ;;  %v485_v50 = vld [vmem:[#allocation3 + $0x8c] sm:$0x1] }
 0x2ae   : > { %11667 = vmatpush3.bf16.msra.mxu1 %v13048_v29  ;;  %v422_v29 = vsel %vm15004_vm5, 0, %v421_v7 }
 0x2af   : > { %423 = vst [vmem:[#allocation3 + $0x60] sm:$0x1] %v422_v29 }
 0x2b0   : > { %12415 = vmatmul.mubr.msk.bf16.gmra.mrb[8].mxu0 %vm1493_vm13, %v17606_v57  ;;  %v398_v57 = vsel %vm15004_vm5, 0, %v397_v61  ;;  %v474_v61 = vsel %vm15260_vm2, 0, %v473_v53 }
 0x2b1   : > { %12418 = vmatprep.mubr.msk.bf16.mxu0 %vm1493_vm13, %v10936_v9  ;;  %v456_v9 = vsel %vm15260_vm2, 0, %v455_v25  ;;  %399 = vst [vmem:[#allocation3] sm:$0x1] %v398_v57  ;;  %v419_v25 = vsel %vm15004_vm5, 0, %v418_v46  ;;  %475 = vst [vmem:[#allocation3 + $0x5c] sm:$0x1] %v474_v61 }
 0x2b2   : > { %457 = vst [vmem:[#allocation3 + $0x14] sm:$0x1] %v456_v9  ;;  %v476_v9 = vld [vmem:[#allocation3 + $0x68] sm:$0x1]  ;;  %420 = vst [vmem:[#allocation3 + $0x54] sm:$0x1] %v419_v25 }
 0x2b3   : > { %12469 = vmatmul.mubr.msk.bf16.gmra.mrb[12].mxu1 %vm1493_vm13, %v13056_v56  ;;  %v477_v12 = vsel %vm15260_vm2, 0, %v476_v9  ;;  %v424_v57 = vld [vmem:[#allocation3 + $0x6c] sm:$0x1]  ;;  %v439_v56 = vld [vmem:[#allocation3 + $0xa8] sm:$0x1] }
 0x2b4   : > { %478 = vst [vmem:[#allocation3 + $0x68] sm:$0x1] %v477_v12  ;;  %v425_v23 = vsel %vm15004_vm5, 0, %v424_v57 }
 0x2b5   : > { %426 = vst [vmem:[#allocation3 + $0x6c] sm:$0x1] %v425_v23 }
 0x2b8   : > { %12419 = vmatmul.mubr.msk.bf16.gmra.mrb[12].mxu0 %vm1493_vm13, %v17609_v8  ;;  %v461_v8 = vld [vmem:[#allocation3 + $0x2c] sm:$0x1]  ;;  %v6167_v37 = vld [vmem:[#allocation3] sm:$0xf] }
 0x2b9   : > { %12422 = vmatprep.mubr.msk.bf16.mxu0 %vm1493_vm13, %v10938_v6  ;;  %v13051_v6 = vld [vmem:[#allocation4 + $0x60] sm:$0xff]   ;;  %v462_v20 = vsel %vm15260_vm2, 0, %v461_v8  ;;  %v6219_v31 = vshll.u32 %v6167_v37, 16  ;;  %v11043_v45 = vcombine.low %v6167_v37, %v6168_v22  ;;  %v13067_v22 = vld [vmem:[#allocation4 + $0xc8] sm:$0xff]  }
 0x2ba   : > { %11668 = vmatprep.subr.bf16.mxu1 %v13051_v6  ;;  %463 = vst [vmem:[#allocation3 + $0x2c] sm:$0x1] %v462_v20  ;;  %v13065_v6 = vld [vmem:[#allocation4 + $0x80] sm:$0xff]  }
 0x2bb   : > { %11669 = vmatpush3.bf16.msra.mxu1 %v13052_v4  ;;  %v6221_v26 = vrot.slane %v6219_v31, 5  ;;  %v479_v4 = vld [vmem:[#allocation3 + $0x74] sm:$0x1]  ;;  %v488_v8 = vld [vmem:[#allocation3 + $0x98] sm:$0x1]  ;;  %v486_v31 = vsel %vm15260_vm2, 0, %v485_v50 }
 0x2bc   : > { %11670 = vmatprep.subr.bf16.mxu1 %v13053_v19  ;;  %v480_v11 = vsel %vm15260_vm2, 0, %v479_v4  ;;  %v434_v19 = vsel %vm15004_vm5, 0, %v433_v62  ;;  %v489_v20 = vsel %vm15260_vm2, 0, %v488_v8  ;;  %487 = vst [vmem:[#allocation3 + $0x8c] sm:$0x1] %v486_v31 }
 0x2bd   : > { %481 = vst [vmem:[#allocation3 + $0x74] sm:$0x1] %v480_v11  ;;  %435 = vst [vmem:[#allocation3 + $0x90] sm:$0x1] %v434_v19  ;;  %v6062_v50 = vld [vmem:[#allocation3 + $0x18] sm:$0xf] }
 0x2be   : > { %490 = vst [vmem:[#allocation3 + $0x98] sm:$0x1] %v489_v20 }
 0x2bf   : > { %11671 = vmatpush3.bf16.msra.mxu1 %v13054_v21  ;;  %v430_v21 = vld [vmem:[#allocation3 + $0x84] sm:$0x1] }
 0x2c0   : > { %12423 = vmatmul.mubr.msk.bf16.gmra.mrb[16].mxu0 %vm1493_vm13, %v17612_v48  ;;  %v13058_v48 = vld [vmem:[#allocation4 + $0x30] sm:$0xff]   ;;  %11672 = vmatprep.subr.bf16.mxu1 %v13057_v27  ;;  %v440_v27 = vsel %vm15004_vm5, 0, %v439_v56 }
 0x2c1   : > { %12426 = vmatprep.mubr.msk.bf16.mxu0 %vm1493_vm13, %v10940_v49  ;;  %v6216_v49 = vshrl.u32 %v6167_v37, 16  ;;  %v431_v37 = vsel %vm15004_vm5, 0, %v430_v21  ;;  %441 = vst [vmem:[#allocation3 + $0xa8] sm:$0x1] %v440_v27 }
 0x2c2   : > { %432 = vst [vmem:[#allocation3 + $0x84] sm:$0x1] %v431_v37 }
 0x2c3   : > { %v6218_v44 = vrot.slane %v6216_v49, 4  ;;  %11673 = vmatpush3.bf16.msra.mxu1 %v13058_v48  ;;  %v13069_v49 = vld [vmem:[#allocation4 + $0x88] sm:$0xff]   ;;  %v436_v48 = vld [vmem:[#allocation3 + $0x9c] sm:$0x1] }
 0x2c4   : > { %11674 = vmatprep.subr.bf16.mxu1 %v13059_v42  ;;  %v437_v51 = vsel %vm15004_vm5, 0, %v436_v48  ;;  %v6055_v48 = vld [vmem:[#allocation3 + $0xc] sm:$0xf] }
 0x2c5   : > { %v6222_v10 = vor.u32 %v6221_v26, %v6218_v44  ;;  %v494_v44 = vld [vmem:[#allocation3 + $0xb0] sm:$0x1]  ;;  %v491_v26 = vld [vmem:[#allocation3 + $0xa4] sm:$0x1]  ;;  %438 = vst [vmem:[#allocation3 + $0x9c] sm:$0x1] %v437_v51 }
 0x2c7   : > { %v6223_v2 = vrot.slane %v6222_v10, 4  ;;  %v500_v10 = vld [vmem:[#allocation3 + $0xc8] sm:$0x1] }
 0x2c8   : > { %12427 = vmatmul.mubr.msk.bf16.gmra.mrb[20].mxu0 %vm1493_vm13, %v17615_v59  ;;  %v413_v59 = vsel %vm15004_vm5, 0, %v412_v34  ;;  %v501_v38 = vsel %vm15260_vm2, 0, %v500_v10 }
 0x2c9   : > { %12430 = vmatprep.mubr.msk.bf16.mxu0 %vm1493_vm13, %v10942_v52  ;;  %v415_v52 = vld [vmem:[#allocation3 + $0x48] sm:$0x1]  ;;  %414 = vst [vmem:[#allocation3 + $0x3c] sm:$0x1] %v413_v59  ;;  %v6228_v14 = vsel %vm13548_vm12, %v6223_v2, %v6227_v40  ;;  %v497_v59 = vld [vmem:[#allocation3 + $0xbc] sm:$0x1] }
 0x2ca   : > { %v416_v5 = vsel %vm15004_vm5, 0, %v415_v52  ;;  %v492_v52 = vsel %vm15260_vm2, 0, %v491_v26  ;;  %v498_v42 = vsel %vm15260_vm2, 0, %v497_v59  ;;  %502 = vst [vmem:[#allocation3 + $0xc8] sm:$0x1] %v501_v38  ;;  %v13079_v2 = vld [vmem:[#allocation4 + $0xd8] sm:$0xff]  }
 0x2cb   : > { %417 = vst [vmem:[#allocation3 + $0x48] sm:$0x1] %v416_v5  ;;  %493 = vst [vmem:[#allocation3 + $0xa4] sm:$0x1] %v492_v52  ;;  %v442_v5 = vld [vmem:[#allocation3 + $0xb4] sm:$0x1] }
 0x2cc   : > { %v443_v34 = vsel %vm15004_vm5, 0, %v442_v5  ;;  %499 = vst [vmem:[#allocation3 + $0xbc] sm:$0x1] %v498_v42  ;;  %v6059_v38 = vld [vmem:[#allocation3 + $0x14] sm:$0x1] }
 0x2cd   : > { %444 = vst [vmem:[#allocation3 + $0xb4] sm:$0x1] %v443_v34 }
 0x2d0   : > { %12431 = vmatmul.mubr.msk.bf16.gmra.mrb[24].mxu0 %vm1493_vm13, %v17618_v35  ;;  %v13060_v35 = vld [vmem:[#allocation4 + $0x38] sm:$0xff]  }
 0x2d1   : > { %12434 = vmatprep.mubr.msk.bf16.mxu0 %vm1493_vm13, %v10944_v36  ;;  %v6232_v36 = vor.u32 %v6231_v39, %v6227_v40  ;;  %11675 = vmatpush3.bf16.msra.mxu1 %v13060_v35  ;;  %v495_v40 = vsel %vm15260_vm2, 0, %v494_v44  ;;  %v445_v39 = vld [vmem:[#allocation3 + $0xc0] sm:$0x1]  ;;  %v13077_v35 = vld [vmem:[%s13500_s18 + $0x28] sm:$0xff]  }
 0x2d2   : > { %11772 = vmatprep.subr.bf16.mxu1 %v13064_v58  ;;  %496 = vst [vmem:[#allocation3 + $0xb0] sm:$0x1] %v495_v40  ;;  %v446_v16 = vsel %vm15004_vm5, 0, %v445_v39  ;;  %v6066_v39 = vld [vmem:[#allocation3 + $0x20] sm:$0x1] }
 0x2d3   : > { %447 = vst [vmem:[#allocation3 + $0xc0] sm:$0x1] %v446_v16 }
 0x2d8   : > { %12435 = vmatmul.mubr.msk.bf16.gmra.mrb[28].mxu0 %vm1493_vm13, %v17621_v33  ;;  %v6233_v33 = vrot.slane %v6232_v36, 4  ;;  %v13073_v36 = vld [vmem:[#allocation4 + $0xd0] sm:$0xff]  }
 0x2d9   : > { %12440 = vmatprep.mubr.msk.bf16.mxu0 %vm1493_vm13, %v13062_v15 }
 0x2da   : > { %v6238_v41 = vsel %vm13548_vm12, %v6233_v33, %v6237_v24  ;;  %v13075_v24 = vld [vmem:[#allocation4 + $0x90] sm:$0xff]   ;;  %v13082_v33 = vld [vmem:[%s13500_s18 + $0x30] sm:$0xff]  }
 0x2db   : > { %v11059_v60 = vcombine.low %v6228_v14, %v6238_v41  ;;  %v15361_v14 = vld [vmem:[%s17440_s2] ss:$0 sm:$0xff] }
 0x2dd   : > { %9517 = vmatprep.mubr.bf16.mxu1 %v11059_v60 }
 0x2de   : > { %9518 = vmatmul.mubr.bf16.vlgmr.msra.gmra.mrb[16].mxu1 %v11043_v45  ;;  %v13085_v45 = vld [vmem:[#allocation4 + $0xe0] sm:$0xff]  }
 0x2df   : > { %11773 = vmatpush3.bf16.msra.mxu1 %v13065_v6 }
 0x2e0   : > { %12441 = vmatmul.mubr.msk.bf16.vlgmr.msra.gmra.mrb[32].mxu0 %vm1493_vm13, %v13063_v30  ;;  %11774 = vmatprep.subr.bf16.mxu1 %v13067_v22 }
 0x2e1   : > { %12444 = vmatprep.mubr.msk.bf16.mxu0 %vm1493_vm13, %v13070_v43 }
 0x2e3   : > { %11775 = vmatpush3.bf16.msra.mxu1 %v13069_v49 }
 0x2e4   : > { %11776 = vmatprep.subr.bf16.mxu1 %v13073_v36 }
 0x2e7   : > { %11777 = vmatpush3.bf16.msra.mxu1 %v13075_v24 }
 0x2e8   : > { %12445 = vmatmul.mubr.msk.bf16.gmra.mrb[36].mxu0 %vm1493_vm13, %v13071_v18  ;;  %11778 = vmatprep.subr.bf16.mxu1 %v13079_v2 }
 0x2e9   : > { %12448 = vmatprep.mubr.msk.bf16.mxu0 %vm1493_vm13, %v13076_v13 }
 0x2eb   : > { %11779 = vmatpush3.bf16.msra.mxu1 %v13081_v0 }
 0x2ec   : > { %11780 = vmatprep.subr.bf16.mxu1 %v13085_v45 }
 0x2ef   : > { %11781 = vmatpush3.bf16.msra.mxu1 %v13087_v28 }
 0x2f0   : > { %12449 = vmatmul.mubr.msk.bf16.gmra.mrb[40].mxu0 %vm1493_vm13, %v13077_v35 }
 0x2f1   : > { %12452 = vmatprep.mubr.msk.bf16.mxu0 %vm1493_vm13, %v13082_v33 }
 0x2f8   : > { %12453 = vmatmul.mubr.msk.bf16.gmra.mrb[44].mxu0 %vm1493_vm13, %v13083_v54 }
 0x373   : > { %v12408_v41 = vpop.f32.mrb[0].mxu0 }
 0x374   : > { %v5574_v60 = vadd.f32 %v12408_v41, %v15361_v14  ;;  %v5406_v15 = vpop.f32.mrb[1].mxu0 }
 0x375   : > { %v5572_v30 = vadd.f32 %v15361_v14, %v5406_v15  ;;  %v12409_v7 = vpop.f32.mrb[2].mxu0 }
 0x376   : > { %v5606_v29 = vmax.f32 %v5574_v60, 0.0  ;;  %v5575_v46 = vadd.f32 %v12409_v7, %v15361_v14  ;;  %v5409_v25 = vpop.f32.mrb[3].mxu0  ;;  %v13089_v7 = vld [vmem:[#allocation4 + $0xe8] sm:$0xff]  }
 0x377   : > { %v5604_v9 = vmax.f32 %v5572_v30, 0.0  ;;  %v5573_v12 = vadd.f32 %v15361_v14, %v5409_v25  ;;  %11782 = vmatprep.subr.bf16.mxu1 %v13089_v7 }
 0x378   : > { %v11332_v53 = vpack.c.bf16 %v5606_v29, %v5606_v29  ;;  %v5607_v61 = vmax.f32 %v5575_v46, 0.0 }
 0x379   : > { %v11330_v63 = vpack.c.bf16 %v5604_v9, %v5604_v9  ;;  %v5605_v17 = vmax.f32 %v5573_v12, 0.0 }
 0x37a   : > { %v5750_v57 = vshrl.u32 %v11332_v53, 16  ;;  %v11333_v23 = vpack.c.bf16 %v5607_v61, %v5607_v61  ;;  %v5753_v47 = vshll.u32 %v11332_v53, 16  ;;  %v6076_v53 = vld [vmem:[#allocation3 + $0x30] sm:$0xf] }
 0x37b   : > { %v5733_v58 = vshrl.u32 %v11330_v63, 16  ;;  %v5736_v6 = vshll.u32 %v11330_v63, 16  ;;  %v11331_v4 = vpack.c.bf16 %v5605_v17, %v5605_v17  ;;  %v12412_v11 = vpop.f32.mrb[4].mxu0 }
 0x37c   : > { %v5752_v62 = vrot.slane %v5750_v57, 7  ;;  %v5758_v19 = vshrl.u32 %v11333_v23, 16  ;;  %v5761_v21 = vshll.u32 %v11333_v23, 16  ;;  %v5578_v8 = vadd.f32 %v12412_v11, %v15361_v14  ;;  %v5422_v37 = vpop.f32.mrb[5].mxu0 }
 0x37d   : > { %v5735_v22 = vrot.slane %v5733_v58, 7  ;;  %v5741_v49 = vshrl.u32 %v11331_v4, 16  ;;  %v5744_v31 = vshll.u32 %v11331_v4, 16  ;;  %v5576_v43 = vadd.f32 %v15361_v14, %v5422_v37  ;;  %v12413_v18 = vpop.f32.mrb[6].mxu0 }
 0x37e   : > { %v5755_v56 = vor.u32 %v5753_v47, %v5752_v62  ;;  %v5756_v27 = vrot.slane %v5752_v62, 4  ;;  %v5760_v51 = vrot.slane %v5758_v19, 7  ;;  %v5610_v44 = vmax.f32 %v5578_v8, 0.0  ;;  %v5425_v26 = vpop.f32.mrb[7].mxu0  ;;  %v6069_v47 = vld [vmem:[#allocation3 + $0x24] sm:$0xf] }
 0x37f   : > { %v5738_v40 = vor.u32 %v5736_v6, %v5735_v22  ;;  %v5739_v52 = vrot.slane %v5735_v22, 4  ;;  %v5743_v16 = vrot.slane %v5741_v49, 7  ;;  %v5608_v5 = vmax.f32 %v5576_v43, 0.0 }
 0x380   : > { %v6063_v34 = vsel %vm15370_vm6, %v5755_v56, %v6062_v50  ;;  %v5763_v10 = vor.u32 %v5761_v21, %v5760_v51  ;;  %v5765_v59 = vrot.slane %v5760_v51, 4  ;;  %v11336_v42 = vpack.c.bf16 %v5610_v44, %v5610_v44  ;;  %v6080_v44 = vld [vmem:[#allocation3 + $0x38] sm:$0x1] }
 0x381   : > { %6064 = vst [vmem:[#allocation3 + $0x18] sm:$0xf] %v6063_v34  ;;  %v6056_v36 = vsel %vm15370_vm6, %v5738_v40, %v6055_v48  ;;  %v5746_v24 = vor.u32 %v5744_v31, %v5743_v16  ;;  %v5748_v13 = vrot.slane %v5743_v16, 4  ;;  %v11334_v35 = vpack.c.bf16 %v5608_v5, %v5608_v5  ;;  %v13091_v34 = vld [vmem:[#allocation4 + $0xa8] sm:$0xff]  }
 0x382   : > { %6057 = vst [vmem:[#allocation3 + $0xc] sm:$0xf] %v6056_v36  ;;  %v5764_v0 = vsel %vm13533_vm11, %v5756_v27, %v5763_v10  ;;  %v6067_v33 = vsel %vm15004_vm5, %v5765_v59, %v6066_v39  ;;  %v5784_v54 = vshrl.u32 %v11336_v42, 16  ;;  %v5787_v60 = vshll.u32 %v11336_v42, 16  ;;  %11783 = vmatpush3.bf16.msra.mxu1 %v13091_v34 }
 0x383   : > { %6065 = vst [vmem:[#allocation3 + $0x1c] sm:$0xf] %v5764_v0  ;;  %6068 = vst [vmem:[#allocation3 + $0x20] sm:$0x1] %v6067_v33  ;;  %v5747_v41 = vsel %vm13533_vm11, %v5739_v52, %v5746_v24  ;;  %v6060_v45 = vsel %vm15004_vm5, %v5748_v13, %v6059_v38  ;;  %v5767_v15 = vshrl.u32 %v11334_v35, 16  ;;  %v12416_v30 = vpop.f32.mrb[8].mxu0  ;;  %v5579_v46 = vadd.f32 %v12413_v18, %v15361_v14 }
 0x384   : > { %6058 = vst [vmem:[#allocation3 + $0x10] sm:$0xf] %v5747_v41  ;;  %6061 = vst [vmem:[#allocation3 + $0x14] sm:$0x1] %v6060_v45  ;;  %v15387_v29 = vrot.slane %v5784_v54, 7  ;;  %v5577_v25 = vadd.f32 %v15361_v14, %v5425_v26  ;;  %v5582_v9 = vadd.f32 %v12416_v30, %v15361_v14  ;;  %v5438_v12 = vpop.f32.mrb[9].mxu0 }
 0x385   : > { %v15392_v61 = vrot.slane %v5767_v15, 7  ;;  %v5770_v63 = vshll.u32 %v11334_v35, 16  ;;  %v5580_v17 = vadd.f32 %v15361_v14, %v5438_v12  ;;  %v12417_v57 = vpop.f32.mrb[10].mxu0  ;;  %v5611_v58 = vmax.f32 %v5579_v46, 0.0  ;;  %v6073_v26 = vld [vmem:[#allocation3 + $0x2c] sm:$0x1] }
 0x386   : > { %v5789_v23 = vor.u32 %v5787_v60, %v15387_v29  ;;  %v5790_v28 = vrot.slane %v15387_v29, 4  ;;  %v5609_v6 = vmax.f32 %v5577_v25, 0.0  ;;  %v5441_v4 = vpop.f32.mrb[11].mxu0  ;;  %v5614_v19 = vmax.f32 %v5582_v9, 0.0  ;;  %v6090_v13 = vld [vmem:[#allocation3 + $0x48] sm:$0xf] }
 0x387   : > { %v5772_v11 = vor.u32 %v5770_v63, %v15392_v61  ;;  %v5773_v62 = vrot.slane %v15392_v61, 4  ;;  %v5612_v21 = vmax.f32 %v5580_v17, 0.0  ;;  %v11337_v37 = vpack.c.bf16 %v5611_v58, %v5611_v58  ;;  %v6083_v30 = vld [vmem:[#allocation3 + $0x3c] sm:$0xf] }
 0x388   : > { %v6077_v8 = vsel %vm15370_vm6, %v5789_v23, %v6076_v53  ;;  %v11335_v50 = vpack.c.bf16 %v5609_v6, %v5609_v6  ;;  %v5583_v22 = vadd.f32 %v12417_v57, %v15361_v14  ;;  %v11340_v31 = vpack.c.bf16 %v5614_v19, %v5614_v19 }
 0x389   : > { %6078 = vst [vmem:[#allocation3 + $0x30] sm:$0xf] %v6077_v8  ;;  %v6070_v49 = vsel %vm15370_vm6, %v5772_v11, %v6069_v47  ;;  %v11338_v43 = vpack.c.bf16 %v5612_v21, %v5612_v21  ;;  %v5581_v18 = vadd.f32 %v15361_v14, %v5441_v4  ;;  %v5792_v56 = vshrl.u32 %v11337_v37, 16 }
 0x38a   : > { %6071 = vst [vmem:[#allocation3 + $0x24] sm:$0xf] %v6070_v49  ;;  %v5795_v27 = vshll.u32 %v11337_v37, 16  ;;  %v5775_v48 = vshrl.u32 %v11335_v50, 16  ;;  %v5778_v51 = vshll.u32 %v11335_v50, 16  ;;  %v5818_v40 = vshrl.u32 %v11340_v31, 16 }
 0x38b   : > { %v5821_v52 = vshll.u32 %v11340_v31, 16  ;;  %v5801_v39 = vshrl.u32 %v11338_v43, 16  ;;  %v5804_v16 = vshll.u32 %v11338_v43, 16  ;;  %v12420_v5 = vpop.f32.mrb[12].mxu0  ;;  %v5794_v10 = vrot.slane %v5792_v56, 7  ;;  %v13093_v37 = vld [vmem:[#allocation4 + $0xf0] sm:$0xff]  }
 0x38c   : > { %v5777_v59 = vrot.slane %v5775_v48, 7  ;;  %v5615_v38 = vmax.f32 %v5583_v22, 0.0  ;;  %v5613_v42 = vmax.f32 %v5581_v18, 0.0  ;;  %v5454_v36 = vpop.f32.mrb[13].mxu0  ;;  %v15405_v24 = vrot.slane %v5818_v40, 7  ;;  %11784 = vmatprep.subr.bf16.mxu1 %v13093_v37 }
 0x38d   : > { %v15407_v35 = vrot.slane %v5801_v39, 7  ;;  %v5586_v0 = vadd.f32 %v12420_v5, %v15361_v14  ;;  %v5584_v33 = vadd.f32 %v15361_v14, %v5454_v36  ;;  %v12421_v54 = vpop.f32.mrb[14].mxu0  ;;  %v5797_v41 = vor.u32 %v5795_v27, %v5794_v10  ;;  %v6094_v50 = vld [vmem:[#allocation3 + $0x50] sm:$0x1]  ;;  %v6087_v48 = vld [vmem:[#allocation3 + $0x44] sm:$0x1] }
 0x38e   : > { %v5799_v45 = vrot.slane %v5794_v10, 4  ;;  %v5780_v60 = vor.u32 %v5778_v51, %v5777_v59  ;;  %v5782_v15 = vrot.slane %v5777_v59, 4  ;;  %v5457_v7 = vpop.f32.mrb[15].mxu0  ;;  %v5823_v29 = vor.u32 %v5821_v52, %v15405_v24  ;;  %v16008_v3 = vld [vmem:[#allocation3 + $0x20] sm:$0x1] }
 0x38f   : > { %v5824_v46 = vrot.slane %v15405_v24, 4  ;;  %v5806_v25 = vor.u32 %v5804_v16, %v15407_v35  ;;  %v5807_v9 = vrot.slane %v15407_v35, 4  ;;  %v5798_v12 = vsel %vm13533_vm11, %v5790_v28, %v5797_v41  ;;  %v6104_v41 = vld [vmem:[#allocation3 + $0x60] sm:$0xf] }
 0x390   : > { %v6081_v53 = vsel %vm15004_vm5, %v5799_v45, %v6080_v44  ;;  %v5781_v61 = vsel %vm13533_vm11, %v5773_v62, %v5780_v60  ;;  %v6074_v63 = vsel %vm15004_vm5, %v5782_v15, %v6073_v26  ;;  %6079 = vst [vmem:[#allocation3 + $0x34] sm:$0xf] %v5798_v12  ;;  %v6091_v17 = vsel %vm15370_vm6, %v5823_v29, %v6090_v13  ;;  %v6097_v45 = vld [vmem:[#allocation3 + $0x54] sm:$0xf]  ;;  %v15439_v29 = vld [vmem:[#allocation3 + $0xc] sm:$0xf] }
 0x391   : > { %6082 = vst [vmem:[#allocation3 + $0x38] sm:$0x1] %v6081_v53  ;;  %6072 = vst [vmem:[#allocation3 + $0x28] sm:$0xf] %v5781_v61  ;;  %v6084_v57 = vsel %vm15370_vm6, %v5806_v25, %v6083_v30  ;;  %v11341_v23 = vpack.c.bf16 %v5615_v38, %v5615_v38  ;;  %v11339_v28 = vpack.c.bf16 %v5613_v42, %v5613_v42  ;;  %v5618_v47 = vmax.f32 %v5586_v0, 0.0 }
 0x392   : > { %6075 = vst [vmem:[#allocation3 + $0x2c] sm:$0x1] %v6074_v63  ;;  %6092 = vst [vmem:[#allocation3 + $0x48] sm:$0xf] %v6091_v17  ;;  %v5616_v58 = vmax.f32 %v5584_v33, 0.0  ;;  %v5587_v6 = vadd.f32 %v12421_v54, %v15361_v14  ;;  %v5585_v4 = vadd.f32 %v15361_v14, %v5457_v7  ;;  %v6240_v37 = vshrl.u32 %v15439_v29, 16 }
 0x393   : > { %6085 = vst [vmem:[#allocation3 + $0x3c] sm:$0xf] %v6084_v57  ;;  %v5826_v11 = vshrl.u32 %v11341_v23, 16  ;;  %v5829_v62 = vshll.u32 %v11341_v23, 16  ;;  %v5809_v19 = vshrl.u32 %v11339_v28, 16  ;;  %v5812_v21 = vshll.u32 %v11339_v28, 16 }
 0x394   : > { %v12424_v8 = vpop.f32.mrb[16].mxu0  ;;  %v11344_v22 = vpack.c.bf16 %v5618_v47, %v5618_v47  ;;  %v11342_v49 = vpack.c.bf16 %v5616_v58, %v5616_v58  ;;  %v5619_v31 = vmax.f32 %v5587_v6, 0.0  ;;  %v5617_v43 = vmax.f32 %v5585_v4, 0.0  ;;  %v6108_v58 = vld [vmem:[#allocation3 + $0x68] sm:$0x1] }
 0x395   : > { %v5470_v18 = vpop.f32.mrb[17].mxu0  ;;  %v5828_v56 = vrot.slane %v5826_v11, 7  ;;  %v5811_v27 = vrot.slane %v5809_v19, 7  ;;  %v5590_v51 = vadd.f32 %v12424_v8, %v15361_v14  ;;  %v6101_v19 = vld [vmem:[#allocation3 + $0x5c] sm:$0x1] }
 0x396   : > { %v5588_v44 = vadd.f32 %v15361_v14, %v5470_v18  ;;  %v12425_v26 = vpop.f32.mrb[18].mxu0  ;;  %v5852_v40 = vshrl.u32 %v11344_v22, 16  ;;  %v5855_v52 = vshll.u32 %v11344_v22, 16  ;;  %v5835_v39 = vshrl.u32 %v11342_v49, 16 }
 0x397   : > { %v5838_v16 = vshll.u32 %v11342_v49, 16  ;;  %v5473_v5 = vpop.f32.mrb[19].mxu0  ;;  %v5831_v34 = vor.u32 %v5829_v62, %v5828_v56  ;;  %v5833_v10 = vrot.slane %v5828_v56, 4  ;;  %v5814_v59 = vor.u32 %v5812_v21, %v5811_v27 }
 0x398   : > { %v5816_v38 = vrot.slane %v5811_v27, 4  ;;  %v5854_v42 = vrot.slane %v5852_v40, 7  ;;  %v5837_v36 = vrot.slane %v5835_v39, 7  ;;  %v11345_v24 = vpack.c.bf16 %v5619_v31, %v5619_v31 }
 0x399   : > { %v11343_v13 = vpack.c.bf16 %v5617_v43, %v5617_v43  ;;  %v5832_v35 = vsel %vm13533_vm11, %v5824_v46, %v5831_v34  ;;  %v6095_v0 = vsel %vm15004_vm5, %v5833_v10, %v6094_v50  ;;  %v5815_v33 = vsel %vm13533_vm11, %v5807_v9, %v5814_v59  ;;  %v13095_v46 = vld [vmem:[#allocation4 + $0xb0] sm:$0xff]  }
 0x39a   : > { %v6088_v54 = vsel %vm15004_vm5, %v5816_v38, %v6087_v48  ;;  %6093 = vst [vmem:[#allocation3 + $0x4c] sm:$0xf] %v5832_v35  ;;  %6096 = vst [vmem:[#allocation3 + $0x50] sm:$0x1] %v6095_v0  ;;  %v5857_v60 = vor.u32 %v5855_v52, %v5854_v42  ;;  %v5858_v15 = vrot.slane %v5854_v42, 4  ;;  %v5840_v30 = vor.u32 %v5838_v16, %v5837_v36 }
 0x39b   : > { %6086 = vst [vmem:[#allocation3 + $0x40] sm:$0xf] %v5815_v33  ;;  %6089 = vst [vmem:[#allocation3 + $0x44] sm:$0x1] %v6088_v54  ;;  %v5841_v7 = vrot.slane %v5837_v36, 4  ;;  %v5860_v25 = vshrl.u32 %v11345_v24, 16  ;;  %11785 = vmatpush3.bf16.msra.mxu1 %v13095_v46  ;;  %v5591_v4 = vadd.f32 %v12425_v26, %v15361_v14  ;;  %v5589_v11 = vadd.f32 %v15361_v14, %v5473_v5 }
 0x39c   : > { %v5863_v12 = vshll.u32 %v11345_v24, 16  ;;  %v5843_v53 = vshrl.u32 %v11343_v13, 16  ;;  %v5846_v9 = vshll.u32 %v11343_v13, 16  ;;  %v15441_v61 = vpop.f32.mrb[20].mxu0  ;;  %v6105_v63 = vsel %vm15370_vm6, %v5857_v60, %v6104_v41  ;;  %v6118_v16 = vld [vmem:[#allocation3 + $0x78] sm:$0xf] }
 0x39d   : > { %v6098_v17 = vsel %vm15370_vm6, %v5840_v30, %v6097_v45  ;;  %v5622_v57 = vmax.f32 %v5590_v51, 0.0  ;;  %v5620_v23 = vmax.f32 %v5588_v44, 0.0  ;;  %v15447_v28 = vpop.f32.mrb[21].mxu0  ;;  %6106 = vst [vmem:[#allocation3 + $0x60] sm:$0xf] %v6105_v63  ;;  %v5862_v47 = vrot.slane %v5860_v25, 7 }
 0x39e   : > { %6099 = vst [vmem:[#allocation3 + $0x54] sm:$0xf] %v6098_v17  ;;  %v5845_v6 = vrot.slane %v5843_v53, 7  ;;  %v15451_v62 = vpop.f32.mrb[22].mxu0  ;;  %v6243_v50 = vshll.u32 %v15439_v29, 16  ;;  %v5623_v59 = vmax.f32 %v5591_v4, 0.0 }
 0x39f   : > { %v11348_v21 = vpack.c.bf16 %v5622_v57, %v5622_v57  ;;  %v11346_v8 = vpack.c.bf16 %v5620_v23, %v5620_v23  ;;  %v15455_v22 = vpop.f32.mrb[23].mxu0  ;;  %v5865_v49 = vor.u32 %v5863_v12, %v5862_v47  ;;  %v5867_v31 = vrot.slane %v5862_v47, 4  ;;  %v15457_v44 = vld [vmem:[#allocation3 + $0x10] sm:$0xf]  ;;  %v6111_v5 = vld [vmem:[#allocation3 + $0x6c] sm:$0xf] }
 0x3a0   : > { %v5848_v43 = vor.u32 %v5846_v9, %v5845_v6  ;;  %v5850_v18 = vrot.slane %v5845_v6, 4  ;;  %v5621_v38 = vmax.f32 %v5589_v11, 0.0  ;;  %v6200_v42 = vld [vmem:[#allocation3 + $0x14] sm:$0x1]  ;;  %v6242_v36 = vrot.slane %v6240_v37, 4 }
 0x3a1   : > { %v5886_v56 = vshrl.u32 %v11348_v21, 16  ;;  %v5889_v27 = vshll.u32 %v11348_v21, 16  ;;  %v5869_v48 = vshrl.u32 %v11346_v8, 16  ;;  %v5872_v51 = vshll.u32 %v11346_v8, 16  ;;  %v13097_v33 = vld [vmem:[#allocation4 + $0xf8] sm:$0xff]  }
 0x3a2   : > { %v5866_v26 = vsel %vm13533_vm11, %v5858_v15, %v5865_v49  ;;  %v6109_v40 = vsel %vm15004_vm5, %v5867_v31, %v6108_v58  ;;  %v5849_v52 = vsel %vm13533_vm11, %v5841_v7, %v5848_v43  ;;  %v6102_v39 = vsel %vm15004_vm5, %v5850_v18, %v6101_v19  ;;  %11786 = vmatprep.subr.bf16.mxu1 %v13097_v33  ;;  %v15487_v57 = vld [vmem:[#allocation3 + $0x18] sm:$0xf]  ;;  %v15491_v11 = vld [vmem:[#allocation3 + $0x1c] sm:$0xf]  ;;  %v6122_v49 = vld [vmem:[#allocation3 + $0x80] sm:$0x1] }
 0x3a3   : > { %6107 = vst [vmem:[#allocation3 + $0x64] sm:$0xf] %v5866_v26  ;;  %6110 = vst [vmem:[#allocation3 + $0x68] sm:$0x1] %v6109_v40  ;;  %v15467_v34 = vrot.slane %v5886_v56, 7  ;;  %v15469_v10 = vrot.slane %v5869_v48, 7  ;;  %v11349_v30 = vpack.c.bf16 %v5623_v59, %v5623_v59  ;;  %v11347_v7 = vpack.c.bf16 %v5621_v38, %v5621_v38 }
 0x3a4   : > { %6100 = vst [vmem:[#allocation3 + $0x58] sm:$0xf] %v5849_v52  ;;  %6103 = vst [vmem:[#allocation3 + $0x5c] sm:$0x1] %v6102_v39  ;;  %v6245_v24 = vrot.slane %v6243_v50, 5  ;;  %v6249_v13 = vshll.u32 %v15457_v44, 16  ;;  %v11044_v37 = vcombine.low %v15439_v29, %v15457_v44 }
 0x3a5   : > { %v6253_v35 = vshrl.u32 %v15457_v44, 16  ;;  %v15473_v0 = vpop.f32.mrb[24].mxu0  ;;  %v5891_v54 = vor.u32 %v5889_v27, %v15467_v34  ;;  %v5892_v41 = vrot.slane %v15467_v34, 4  ;;  %v5874_v45 = vor.u32 %v5872_v51, %v15469_v10  ;;  %v6115_v56 = vld [vmem:[#allocation3 + $0x74] sm:$0x1] }
 0x3a6   : > { %v5875_v60 = vrot.slane %v15469_v10, 4  ;;  %v15479_v15 = vpop.f32.mrb[25].mxu0  ;;  %v6246_v46 = vor.u32 %v6245_v24, %v6242_v36  ;;  %v6251_v25 = vrot.slane %v6249_v13, 5  ;;  %v6259_v17 = vshll.u32 %v6200_v42, 16  ;;  %v13099_v40 = vld [vmem:[#allocation4 + $0xb8] sm:$0xff]  }
 0x3a7   : > { %v15481_v12 = vpop.f32.mrb[26].mxu0  ;;  %v6119_v53 = vsel %vm15370_vm6, %v5891_v54, %v6118_v16  ;;  %v6112_v9 = vsel %vm15370_vm6, %v5874_v45, %v6111_v5  ;;  %v6255_v63 = vrot.slane %v6253_v35, 4  ;;  %v5894_v47 = vshrl.u32 %v11349_v30, 16  ;;  %v6201_v16 = vld [vmem:[#allocation3 + $0x20] sm:$0x1]  ;;  %11787 = vmatpush3.bf16.msra.mxu1 %v13099_v40 }
 0x3a8   : > { %v15489_v23 = vpop.f32.mrb[27].mxu0  ;;  %6120 = vst [vmem:[#allocation3 + $0x78] sm:$0xf] %v6119_v53  ;;  %6113 = vst [vmem:[#allocation3 + $0x6c] sm:$0xf] %v6112_v9  ;;  %v5897_v58 = vshll.u32 %v11349_v30, 16  ;;  %v5593_v53 = vadd.f32 %v15361_v14, %v15455_v22 }
 0x3a9   : > { %v5877_v6 = vshrl.u32 %v11347_v7, 16  ;;  %v5880_v4 = vshll.u32 %v11347_v7, 16  ;;  %v6247_v19 = vrot.slane %v6246_v46, 4  ;;  %v6256_v21 = vor.u32 %v6255_v63, %v6251_v25  ;;  %v15527_v9 = vld [vmem:[#allocation3 + $0x24] sm:$0xf] }
 0x3aa   : > { %v6261_v8 = vrot.slane %v6259_v17, 5  ;;  %v5896_v50 = vrot.slane %v5894_v47, 7  ;;  %v6264_v43 = vshrl.u32 %v15487_v57, 16  ;;  %v6267_v18 = vshll.u32 %v15487_v57, 16 }
 0x3ab   : > { %v5879_v31 = vrot.slane %v5877_v6, 7  ;;  %v6252_v27 = vsel %vm13548_vm12, %v6247_v19, %v6251_v25  ;;  %v6257_v48 = vrot.slane %v6256_v21, 4  ;;  %v6273_v51 = vshll.u32 %v15491_v11, 16  ;;  %v15501_v5 = vpop.f32.mrb[28].mxu0  ;;  %v15531_v19 = vld [vmem:[#allocation3 + $0x28] sm:$0xf] }
 0x3ac   : > { %v6277_v26 = vshrl.u32 %v15491_v11, 16  ;;  %v5899_v52 = vor.u32 %v5897_v58, %v5896_v50  ;;  %v5901_v39 = vrot.slane %v5896_v50, 4  ;;  %v6266_v10 = vrot.slane %v6264_v43, 4  ;;  %v15505_v42 = vpop.f32.mrb[29].mxu0 }
 0x3ad   : > { %v5882_v29 = vor.u32 %v5880_v4, %v5879_v31  ;;  %v5884_v44 = vrot.slane %v5879_v31, 4  ;;  %v6262_v34 = vsel %vm13548_vm12, %v6257_v48, %v6261_v8  ;;  %v6269_v59 = vrot.slane %v6267_v18, 5  ;;  %v15515_v33 = vpop.f32.mrb[30].mxu0 }
 0x3ae   : > { %v6275_v38 = vrot.slane %v6273_v51, 5  ;;  %v5900_v36 = vsel %vm13533_vm11, %v5892_v41, %v5899_v52  ;;  %v6123_v24 = vsel %vm15004_vm5, %v5901_v39, %v6122_v49  ;;  %v11060_v54 = vcombine.low %v6252_v27, %v6262_v34  ;;  %v15517_v41 = vpop.f32.mrb[31].mxu0 }
 0x3af   : > { %v5883_v13 = vsel %vm13533_vm11, %v5875_v60, %v5882_v29  ;;  %v6116_v35 = vsel %vm15004_vm5, %v5884_v44, %v6115_v56  ;;  %6121 = vst [vmem:[#allocation3 + $0x7c] sm:$0xf] %v5900_v36  ;;  %6124 = vst [vmem:[#allocation3 + $0x80] sm:$0x1] %v6123_v24  ;;  %v6270_v45 = vor.u32 %v6269_v59, %v6266_v10  ;;  %v6279_v30 = vrot.slane %v6277_v26, 4 }
 0x3b0   : > { %6114 = vst [vmem:[#allocation3 + $0x70] sm:$0xf] %v5883_v13  ;;  %6117 = vst [vmem:[#allocation3 + $0x74] sm:$0x1] %v6116_v35  ;;  %v6283_v7 = vshll.u32 %v6201_v16, 16  ;;  %v5594_v46 = vadd.f32 %v15441_v61, %v15361_v14  ;;  %v5592_v60 = vadd.f32 %v15361_v14, %v15447_v28  ;;  %v5595_v25 = vadd.f32 %v15451_v62, %v15361_v14 }
 0x3b1   : > { %9525 = vmatprep.mubr.bf16.mxu1 %v11060_v54  ;;  %v6271_v63 = vrot.slane %v6270_v45, 4  ;;  %v6280_v17 = vor.u32 %v6279_v30, %v6275_v38  ;;  %v11045_v58 = vcombine.low %v15487_v57, %v15491_v11  ;;  %v5625_v28 = vmax.f32 %v5593_v53, 0.0  ;;  %v13102_v57 = vld [vmem:[#allocation4 + $0x140] sm:$0xff]   ;;  %v6132_v16 = vld [vmem:[#allocation3 + $0x90] sm:$0xf] }
 0x3b2   : > { %v6285_v47 = vrot.slane %v6283_v7, 5  ;;  %9526 = vmatmul.mubr.bf16.gmra.mrb[20].mxu1 %v11044_v37  ;;  %v5626_v61 = vmax.f32 %v5594_v46, 0.0  ;;  %v5624_v6 = vmax.f32 %v5592_v60, 0.0  ;;  %v5627_v4 = vmax.f32 %v5595_v25, 0.0  ;;  %11884 = vmatprep.subr.bf16.mxu1 %v13102_v57  ;;  %v6136_v46 = vld [vmem:[#allocation3 + $0x98] sm:$0x1] }
 0x3b3   : > { %v6276_v62 = vsel %vm13548_vm12, %v6271_v63, %v6275_v38  ;;  %v6281_v22 = vrot.slane %v6280_v17, 4  ;;  %v6288_v21 = vshrl.u32 %v15527_v9, 16  ;;  %v6291_v8 = vshll.u32 %v15527_v9, 16  ;;  %v6125_v38 = vld [vmem:[#allocation3 + $0x84] sm:$0xf] }
 0x3b4   : > { %v11352_v50 = vpack.c.bf16 %v5626_v61, %v5626_v61  ;;  %v11350_v49 = vpack.c.bf16 %v5624_v6, %v5624_v6  ;;  %v11353_v31 = vpack.c.bf16 %v5627_v4, %v5627_v4  ;;  %v11351_v43 = vpack.c.bf16 %v5625_v28, %v5625_v28  ;;  %v6129_v60 = vld [vmem:[#allocation3 + $0x8c] sm:$0x1] }
 0x3b5   : > { %v6286_v11 = vsel %vm13548_vm12, %v6281_v22, %v6285_v47  ;;  %v6290_v37 = vrot.slane %v6288_v21, 4  ;;  %v6293_v18 = vrot.slane %v6291_v8, 5  ;;  %v6297_v56 = vshll.u32 %v15531_v19, 16  ;;  %v6202_v47 = vld [vmem:[#allocation3 + $0x2c] sm:$0x1] }
 0x3b6   : > { %v11061_v27 = vcombine.low %v6276_v62, %v6286_v11  ;;  %v5920_v48 = vshrl.u32 %v11352_v50, 16  ;;  %v5923_v51 = vshll.u32 %v11352_v50, 16  ;;  %v5903_v26 = vshrl.u32 %v11350_v49, 16  ;;  %v15553_v8 = vld [vmem:[#allocation3 + $0x30] sm:$0xf] }
 0x3b7   : > { %v5906_v40 = vshll.u32 %v11350_v49, 16  ;;  %v5928_v52 = vshrl.u32 %v11353_v31, 16  ;;  %v5931_v39 = vshll.u32 %v11353_v31, 16  ;;  %v5911_v29 = vshrl.u32 %v11351_v43, 16 }
 0x3b8   : > { %9533 = vmatprep.mubr.bf16.mxu1 %v11061_v27  ;;  %v5922_v44 = vrot.slane %v5920_v48, 7  ;;  %v5905_v34 = vrot.slane %v5903_v26, 7  ;;  %v5914_v10 = vshll.u32 %v11351_v43, 16  ;;  %v6294_v59 = vor.u32 %v6293_v18, %v6290_v37  ;;  %v15565_v18 = vld [vmem:[#allocation3 + $0x34] sm:$0xf] }
 0x3b9   : > { %v5930_v36 = vrot.slane %v5928_v52, 7  ;;  %v5913_v24 = vrot.slane %v5911_v29, 7  ;;  %v6299_v13 = vrot.slane %v6297_v56, 5  ;;  %v6301_v35 = vshrl.u32 %v15531_v19, 16 }
 0x3ba   : > { %v5925_v54 = vor.u32 %v5923_v51, %v5922_v44  ;;  %v5926_v45 = vrot.slane %v5922_v44, 4  ;;  %v5908_v30 = vor.u32 %v5906_v40, %v5905_v34  ;;  %v5909_v7 = vrot.slane %v5905_v34, 4  ;;  %9534 = vmatmul.mubr.bf16.gmra.mrb[24].mxu1 %v11045_v58 }
 0x3bb   : > { %v5933_v25 = vor.u32 %v5931_v39, %v5930_v36  ;;  %v5935_v53 = vrot.slane %v5930_v36, 4  ;;  %v5916_v63 = vor.u32 %v5914_v10, %v5913_v24  ;;  %v5918_v17 = vrot.slane %v5913_v24, 4 }
 0x3bc   : > { %v6133_v61 = vsel %vm15370_vm6, %v5925_v54, %v6132_v16  ;;  %v6126_v6 = vsel %vm15370_vm6, %v5908_v30, %v6125_v38  ;;  %v6295_v4 = vrot.slane %v6294_v59, 4  ;;  %v6303_v28 = vrot.slane %v6301_v35, 4  ;;  %v6203_v54 = vld [vmem:[#allocation3 + $0x38] sm:$0x1] }
 0x3bd   : > { %6134 = vst [vmem:[#allocation3 + $0x90] sm:$0xf] %v6133_v61  ;;  %6127 = vst [vmem:[#allocation3 + $0x84] sm:$0xf] %v6126_v6  ;;  %v5934_v62 = vsel %vm13533_vm11, %v5926_v45, %v5933_v25  ;;  %v6137_v58 = vsel %vm15004_vm5, %v5935_v53, %v6136_v46  ;;  %v5917_v22 = vsel %vm13533_vm11, %v5909_v7, %v5916_v63  ;;  %v6307_v49 = vshll.u32 %v6202_v47, 16 }
 0x3be   : > { %v6130_v21 = vsel %vm15004_vm5, %v5918_v17, %v6129_v60  ;;  %6135 = vst [vmem:[#allocation3 + $0x94] sm:$0xf] %v5934_v62  ;;  %6138 = vst [vmem:[#allocation3 + $0x98] sm:$0x1] %v6137_v58  ;;  %v6304_v50 = vor.u32 %v6303_v28, %v6299_v13  ;;  %v5598_v31 = vadd.f32 %v15473_v0, %v15361_v14  ;;  %v6312_v51 = vshrl.u32 %v15553_v8, 16 }
 0x3bf   : > { %6128 = vst [vmem:[#allocation3 + $0x88] sm:$0xf] %v5917_v22  ;;  %6131 = vst [vmem:[#allocation3 + $0x8c] sm:$0x1] %v6130_v21  ;;  %v6300_v43 = vsel %vm13548_vm12, %v6295_v4, %v6299_v13  ;;  %v5596_v57 = vadd.f32 %v15361_v14, %v15479_v15  ;;  %v5599_v11 = vadd.f32 %v15481_v12, %v15361_v14  ;;  %v6309_v27 = vrot.slane %v6307_v49, 5 }
 0x3c0   : > { %v5597_v37 = vadd.f32 %v15361_v14, %v15489_v23  ;;  %v6305_v56 = vrot.slane %v6304_v50, 4  ;;  %v5630_v48 = vmax.f32 %v5598_v31, 0.0  ;;  %v6315_v52 = vshll.u32 %v15553_v8, 16  ;;  %v6146_v7 = vld [vmem:[#allocation3 + $0xa8] sm:$0xf] }
 0x3c1   : > { %v5628_v0 = vmax.f32 %v5596_v57, 0.0  ;;  %v5631_v26 = vmax.f32 %v5599_v11, 0.0  ;;  %v6314_v12 = vrot.slane %v6312_v51, 4  ;;  %v6321_v29 = vshll.u32 %v15565_v18, 16  ;;  %v6139_v63 = vld [vmem:[#allocation3 + $0x9c] sm:$0xf] }
 0x3c2   : > { %v5629_v40 = vmax.f32 %v5597_v37, 0.0  ;;  %v6310_v15 = vsel %vm13548_vm12, %v6305_v56, %v6309_v27  ;;  %v11356_v39 = vpack.c.bf16 %v5630_v48, %v5630_v48  ;;  %v11046_v38 = vcombine.low %v15527_v9, %v15531_v19  ;;  %v6150_v61 = vld [vmem:[#allocation3 + $0xb0] sm:$0x1]  ;;  %v6143_v50 = vld [vmem:[#allocation3 + $0xa4] sm:$0x1] }
 0x3c3   : > { %v11062_v23 = vcombine.low %v6300_v43, %v6310_v15  ;;  %v11354_v44 = vpack.c.bf16 %v5628_v0, %v5628_v0  ;;  %v11357_v16 = vpack.c.bf16 %v5631_v26, %v5631_v26  ;;  %v6317_v36 = vrot.slane %v6315_v52, 5  ;;  %v15585_v48 = vld [vmem:[#allocation3 + $0x3c] sm:$0xf] }
 0x3c4   : > { %v11355_v34 = vpack.c.bf16 %v5629_v40, %v5629_v40  ;;  %v5954_v10 = vshrl.u32 %v11356_v39, 16  ;;  %v5957_v59 = vshll.u32 %v11356_v39, 16  ;;  %v15574_v45 = vrot.slane %v6321_v29, 5 }
 0x3c5   : > { %9541 = vmatprep.mubr.bf16.mxu1 %v11062_v23  ;;  %v5937_v24 = vshrl.u32 %v11354_v44, 16  ;;  %v5940_v13 = vshll.u32 %v11354_v44, 16  ;;  %v5962_v35 = vshrl.u32 %v11357_v16, 16  ;;  %v5965_v46 = vshll.u32 %v11357_v16, 16 }
 0x3c6   : > { %v5956_v30 = vrot.slane %v5954_v10, 7  ;;  %v5945_v60 = vshrl.u32 %v11355_v34, 16  ;;  %9542 = vmatmul.mubr.bf16.gmra.mrb[28].mxu1 %v11046_v38  ;;  %v6318_v25 = vor.u32 %v6317_v36, %v6314_v12  ;;  %v5948_v47 = vshll.u32 %v11355_v34, 16  ;;  %v15605_v38 = vld [vmem:[#allocation3 + $0x40] sm:$0xf] }
 0x3c7   : > { %v5939_v53 = vrot.slane %v5937_v24, 7  ;;  %v5964_v17 = vrot.slane %v5962_v35, 7  ;;  %v6325_v9 = vshrl.u32 %v15565_v18, 16  ;;  %v6331_v28 = vshll.u32 %v6203_v54, 16 }
 0x3c8   : > { %v5959_v19 = vor.u32 %v5957_v59, %v5956_v30  ;;  %v5947_v6 = vrot.slane %v5945_v60, 7  ;;  %v6319_v4 = vrot.slane %v6318_v25, 4  ;;  %v5960_v62 = vrot.slane %v5956_v30, 4  ;;  %v6160_v60 = vld [vmem:[#allocation3 + $0xc0] sm:$0xf] }
 0x3c9   : > { %v5942_v58 = vor.u32 %v5940_v13, %v5939_v53  ;;  %v5967_v22 = vor.u32 %v5965_v46, %v5964_v17  ;;  %v5969_v21 = vrot.slane %v5964_v17, 4  ;;  %v5943_v31 = vrot.slane %v5939_v53, 4 }
 0x3ca   : > { %v6147_v49 = vsel %vm15370_vm6, %v5959_v19, %v6146_v7  ;;  %v5950_v43 = vor.u32 %v5948_v47, %v5947_v6  ;;  %v5952_v57 = vrot.slane %v5947_v6, 4  ;;  %v6327_v27 = vrot.slane %v6325_v9, 4  ;;  %v6204_v9 = vld [vmem:[#allocation3 + $0x44] sm:$0x1] }
 0x3cb   : > { %6148 = vst [vmem:[#allocation3 + $0xa8] sm:$0xf] %v6147_v49  ;;  %v6140_v11 = vsel %vm15370_vm6, %v5942_v58, %v6139_v63  ;;  %v5968_v37 = vsel %vm13533_vm11, %v5960_v62, %v5967_v22  ;;  %v6151_v56 = vsel %vm15004_vm5, %v5969_v21, %v6150_v61  ;;  %v6324_v26 = vsel %vm13548_vm12, %v6319_v4, %v15574_v45  ;;  %v6153_v61 = vld [vmem:[#allocation3 + $0xb4] sm:$0xf]  ;;  %v6164_v22 = vld [vmem:[#allocation3 + $0xc8] sm:$0x1] }
 0x3cc   : > { %6141 = vst [vmem:[#allocation3 + $0x9c] sm:$0xf] %v6140_v11  ;;  %6149 = vst [vmem:[#allocation3 + $0xac] sm:$0xf] %v5968_v37  ;;  %v5951_v51 = vsel %vm13533_vm11, %v5943_v31, %v5950_v43  ;;  %v6144_v0 = vsel %vm15004_vm5, %v5952_v57, %v6143_v50  ;;  %v5602_v40 = vadd.f32 %v15501_v5, %v15361_v14  ;;  %v6333_v29 = vrot.slane %v6331_v28, 5 }
 0x3cd   : > { %6152 = vst [vmem:[#allocation3 + $0xb0] sm:$0x1] %v6151_v56  ;;  %6142 = vst [vmem:[#allocation3 + $0xa0] sm:$0xf] %v5951_v51  ;;  %v6328_v52 = vor.u32 %v6327_v27, %v15574_v45  ;;  %v5600_v15 = vadd.f32 %v15361_v14, %v15505_v42  ;;  %v5603_v39 = vadd.f32 %v15515_v33, %v15361_v14  ;;  %v6336_v44 = vshrl.u32 %v15585_v48, 16 }
 0x3ce   : > { %6145 = vst [vmem:[#allocation3 + $0xa4] sm:$0x1] %v6144_v0  ;;  %v5601_v12 = vadd.f32 %v15361_v14, %v15517_v41  ;;  %v5634_v23 = vmax.f32 %v5602_v40, 0.0  ;;  %v6339_v16 = vshll.u32 %v15585_v48, 16  ;;  %v11047_v42 = vcombine.low %v15553_v8, %v15565_v18  ;;  %v6157_v57 = vld [vmem:[#allocation3 + $0xbc] sm:$0x1] }
 0x3cf   : > { %v6329_v5 = vrot.slane %v6328_v52, 4  ;;  %v5632_v34 = vmax.f32 %v5600_v15, 0.0  ;;  %v5635_v10 = vmax.f32 %v5603_v39, 0.0  ;;  %v6338_v33 = vrot.slane %v6336_v44, 4  ;;  %v15615_v0 = vld [vmem:[#allocation3 + $0x48] sm:$0xf] }
 0x3d0   : > { %v5633_v59 = vmax.f32 %v5601_v12, 0.0  ;;  %v11360_v36 = vpack.c.bf16 %v5634_v23, %v5634_v23  ;;  %v6341_v24 = vrot.slane %v6339_v16, 5  ;;  %v6345_v7 = vshll.u32 %v15605_v38, 16  ;;  %v6205_v12 = vld [vmem:[#allocation3 + $0x50] sm:$0x1] }
 0x3d1   : > { %v6334_v14 = vsel %vm13548_vm12, %v6329_v5, %v6333_v29  ;;  %v11358_v41 = vpack.c.bf16 %v5632_v34, %v5632_v34  ;;  %v11361_v13 = vpack.c.bf16 %v5635_v10, %v5635_v10  ;;  %v6349_v28 = vshrl.u32 %v15605_v38, 16  ;;  %v15625_v29 = vld [vmem:[#allocation3 + $0x54] sm:$0xf] }
 0x3d2   : > { %v11359_v35 = vpack.c.bf16 %v5633_v59, %v5633_v59  ;;  %v11063_v54 = vcombine.low %v6324_v26, %v6334_v14  ;;  %v5988_v45 = vshrl.u32 %v11360_v36, 16  ;;  %v6342_v30 = vor.u32 %v6341_v24, %v6338_v33  ;;  %v15617_v26 = vld [vmem:[#allocation3 + $0x4c] sm:$0xf] }
 0x3d3   : > { %v5991_v46 = vshll.u32 %v11360_v36, 16  ;;  %v5971_v25 = vshrl.u32 %v11358_v41, 16  ;;  %v5974_v53 = vshll.u32 %v11358_v41, 16  ;;  %v5996_v63 = vshrl.u32 %v11361_v13, 16 }
 0x3d4   : > { %9549 = vmatprep.mubr.bf16.mxu1 %v11063_v54  ;;  %v5990_v8 = vrot.slane %v5988_v45, 7  ;;  %v5999_v18 = vshll.u32 %v11361_v13, 16  ;;  %v5979_v17 = vshrl.u32 %v11359_v35, 16  ;;  %v5982_v47 = vshll.u32 %v11359_v35, 16  ;;  %v6206_v35 = vld [vmem:[#allocation3 + $0x5c] sm:$0x1] }
 0x3d5   : > { %v5973_v19 = vrot.slane %v5971_v25, 7  ;;  %v5998_v6 = vrot.slane %v5996_v63, 7  ;;  %9550 = vmatmul.mubr.bf16.gmra.mrb[32].mxu1 %v11047_v42  ;;  %v6343_v4 = vrot.slane %v6342_v30, 4  ;;  %v6347_v50 = vrot.slane %v6345_v7, 5  ;;  %v15637_v42 = vld [vmem:[#allocation3 + $0x58] sm:$0xf] }
 0x3d6   : > { %v5993_v62 = vor.u32 %v5991_v46, %v5990_v8  ;;  %v5994_v58 = vrot.slane %v5990_v8, 4  ;;  %v5981_v21 = vrot.slane %v5979_v17, 7  ;;  %v6355_v11 = vshll.u32 %v6204_v9, 16  ;;  %v15647_v63 = vld [vmem:[#allocation3 + $0x60] sm:$0xf] }
 0x3d7   : > { %v5976_v49 = vor.u32 %v5974_v53, %v5973_v19  ;;  %v6001_v31 = vor.u32 %v5999_v18, %v5998_v6  ;;  %v6003_v43 = vrot.slane %v5998_v6, 4  ;;  %v5977_v56 = vrot.slane %v5973_v19, 4  ;;  %v15649_v9 = vld [vmem:[#allocation3 + $0x64] sm:$0xf] }
 0x3d8   : > { %v6161_v37 = vsel %vm15370_vm6, %v5993_v62, %v6160_v60  ;;  %v5984_v27 = vor.u32 %v5982_v47, %v5981_v21  ;;  %v5986_v51 = vrot.slane %v5981_v21, 4  ;;  %v6351_v39 = vrot.slane %v6349_v28, 4 }
 0x3d9   : > { %6162 = vst [vmem:[#allocation3 + $0xc0] sm:$0xf] %v6161_v37  ;;  %v6154_v40 = vsel %vm15370_vm6, %v5976_v49, %v6153_v61  ;;  %v6002_v52 = vsel %vm13533_vm11, %v5994_v58, %v6001_v31  ;;  %v6165_v15 = vsel %vm15004_vm5, %v6003_v43, %v6164_v22  ;;  %v6348_v44 = vsel %vm13548_vm12, %v6343_v4, %v6347_v50  ;;  %v6207_v43 = vld [vmem:[#allocation3 + $0x68] sm:$0x1] }
 0x3da   : > { %6155 = vst [vmem:[#allocation3 + $0xb4] sm:$0xf] %v6154_v40  ;;  %6163 = vst [vmem:[#allocation3 + $0xc4] sm:$0xf] %v6002_v52  ;;  %v5985_v23 = vsel %vm13533_vm11, %v5977_v56, %v5984_v27  ;;  %v6158_v20 = vsel %vm15004_vm5, %v5986_v51, %v6157_v57  ;;  %v6352_v16 = vor.u32 %v6351_v39, %v6347_v50  ;;  %v6360_v5 = vshrl.u32 %v15615_v0, 16 }
 0x3db   : > { %6166 = vst [vmem:[#allocation3 + $0xc8] sm:$0x1] %v6165_v15  ;;  %6156 = vst [vmem:[#allocation3 + $0xb8] sm:$0xf] %v5985_v23  ;;  %v6363_v34 = vshll.u32 %v15615_v0, 16  ;;  %v6369_v10 = vshll.u32 %v15617_v26, 16  ;;  %v11048_v54 = vcombine.low %v15585_v48, %v15605_v38  ;;  %v11049_v39 = vcombine.low %v15615_v0, %v15617_v26 }
 0x3dc   : > { %6159 = vst [vmem:[#allocation3 + $0xbc] sm:$0x1] %v6158_v20  ;;  %v6357_v59 = vrot.slane %v6355_v11, 5  ;;  %v6373_v36 = vshrl.u32 %v15617_v26, 16  ;;  %v6379_v2 = vshll.u32 %v6205_v12, 16  ;;  %v6384_v33 = vshrl.u32 %v15625_v29, 16 }
 0x3dd   : > { %v6353_v24 = vrot.slane %v6352_v16, 4  ;;  %v6362_v14 = vrot.slane %v6360_v5, 4  ;;  %v6365_v41 = vrot.slane %v6363_v34, 5  ;;  %v6371_v13 = vrot.slane %v6369_v10, 5  ;;  %v15659_v40 = vld [vmem:[#allocation3 + $0x70] sm:$0xf] }
 0x3de   : > { %v6375_v45 = vrot.slane %v6373_v36, 4  ;;  %v6386_v30 = vrot.slane %v6384_v33, 4  ;;  %v6387_v7 = vshll.u32 %v15625_v29, 16  ;;  %v6393_v25 = vshll.u32 %v15637_v42, 16  ;;  %v15661_v15 = vld [vmem:[#allocation3 + $0x6c] sm:$0xf] }
 0x3df   : > { %v6358_v46 = vsel %vm13548_vm12, %v6353_v24, %v6357_v59  ;;  %v6366_v60 = vor.u32 %v6365_v41, %v6362_v14  ;;  %v6397_v53 = vshrl.u32 %v15637_v42, 16  ;;  %v6403_v47 = vshll.u32 %v6206_v35, 16  ;;  %v15673_v33 = vld [vmem:[#allocation3 + $0x7c] sm:$0xf]  ;;  %v6208_v41 = vld [vmem:[#allocation3 + $0x74] sm:$0x1] }
 0x3e0   : > { %v11064_v8 = vcombine.low %v6348_v44, %v6358_v46  ;;  %v6376_v18 = vor.u32 %v6375_v45, %v6371_v13  ;;  %v6389_v17 = vrot.slane %v6387_v7, 5  ;;  %v6381_v38 = vrot.slane %v6379_v2, 5 }
 0x3e1   : > { %v6367_v48 = vrot.slane %v6366_v60, 4  ;;  %v6395_v19 = vrot.slane %v6393_v25, 5  ;;  %v6399_v61 = vrot.slane %v6397_v53, 4  ;;  %v6405_v28 = vrot.slane %v6403_v47, 5 }
 0x3e2   : > { %9557 = vmatprep.mubr.bf16.mxu1 %v11064_v8  ;;  %v6377_v6 = vrot.slane %v6376_v18, 4  ;;  %v6390_v4 = vor.u32 %v6389_v17, %v6386_v30  ;;  %v6408_v62 = vshrl.u32 %v15647_v63, 16  ;;  %v6411_v21 = vshll.u32 %v15647_v63, 16 }
 0x3e3   : > { %9558 = vmatmul.mubr.bf16.gmra.mrb[36].mxu1 %v11048_v54  ;;  %v6372_v58 = vsel %vm13548_vm12, %v6367_v48, %v6371_v13  ;;  %v6400_v22 = vor.u32 %v6399_v61, %v6395_v19  ;;  %v6417_v50 = vshll.u32 %v15649_v9, 16  ;;  %v6421_v11 = vshrl.u32 %v15649_v9, 16  ;;  %v15675_v54 = vld [vmem:[#allocation3 + $0x78] sm:$0xf]  ;;  %v15687_v61 = vld [vmem:[#allocation3 + $0x88] sm:$0xf] }
 0x3e4   : > { %v6382_v49 = vsel %vm13548_vm12, %v6377_v6, %v6381_v38  ;;  %v6391_v31 = vrot.slane %v6390_v4, 4  ;;  %v6410_v57 = vrot.slane %v6408_v62, 4  ;;  %v6413_v27 = vrot.slane %v6411_v21, 5  ;;  %v15691_v62 = vld [vmem:[#allocation3 + $0x80] sm:$0x1] }
 0x3e5   : > { %v11065_v37 = vcombine.low %v6372_v58, %v6382_v49  ;;  %v6401_v56 = vrot.slane %v6400_v22, 4  ;;  %v6419_v51 = vrot.slane %v6417_v50, 5  ;;  %v6423_v52 = vrot.slane %v6421_v11, 4 }
 0x3e6   : > { %v6396_v23 = vsel %vm13548_vm12, %v6391_v31, %v6395_v19  ;;  %v6427_v44 = vshll.u32 %v6207_v43, 16  ;;  %v6441_v16 = vshll.u32 %v15659_v40, 16  ;;  %v6414_v5 = vor.u32 %v6413_v27, %v6410_v57 }
 0x3e7   : > { %9565 = vmatprep.mubr.bf16.mxu1 %v11065_v37  ;;  %v6406_v12 = vsel %vm13548_vm12, %v6401_v56, %v6405_v28  ;;  %v6424_v20 = vor.u32 %v6423_v52, %v6419_v51  ;;  %v6432_v34 = vshrl.u32 %v15661_v15, 16  ;;  %v6435_v10 = vshll.u32 %v15661_v15, 16  ;;  %v15689_v28 = vld [vmem:[#allocation3 + $0x84] sm:$0xf] }
 0x3e8   : > { %v6445_v59 = vshrl.u32 %v15659_v40, 16  ;;  %v11066_v36 = vcombine.low %v6396_v23, %v6406_v12  ;;  %v6443_v26 = vrot.slane %v6441_v16, 5  ;;  %v6415_v24 = vrot.slane %v6414_v5, 4  ;;  %v15704_v23 = vld [vmem:[#allocation3 + $0x94] sm:$0xf] }
 0x3e9   : > { %v6425_v0 = vrot.slane %v6424_v20, 4  ;;  %v6429_v14 = vrot.slane %v6427_v44, 5  ;;  %v6434_v13 = vrot.slane %v6432_v34, 4  ;;  %v6437_v35 = vrot.slane %v6435_v10, 5  ;;  %v15706_v16 = vld [vmem:[#allocation3 + $0x8c] sm:$0x1] }
 0x3ea   : > { %v6447_v2 = vrot.slane %v6445_v59, 4  ;;  %v6465_v7 = vshll.u32 %v15673_v33, 16  ;;  %v6469_v46 = vshrl.u32 %v15673_v33, 16  ;;  %v11050_v60 = vcombine.low %v15625_v29, %v15637_v42 }
 0x3eb   : > { %9566 = vmatmul.mubr.bf16.gmra.mrb[40].mxu1 %v11049_v39  ;;  %v6430_v45 = vsel %vm13548_vm12, %v6425_v0, %v6429_v14  ;;  %v6451_v25 = vshll.u32 %v6208_v41, 16  ;;  %v6420_v53 = vsel %vm13548_vm12, %v6415_v24, %v6419_v51  ;;  %v6438_v8 = vor.u32 %v6437_v35, %v6434_v13 }
 0x3ec   : > { %9573 = vmatprep.mubr.bf16.mxu1 %v11066_v36  ;;  %v6448_v30 = vor.u32 %v6447_v2, %v6443_v26  ;;  %v6456_v18 = vshrl.u32 %v15675_v54, 16  ;;  %v6459_v17 = vshll.u32 %v15675_v54, 16  ;;  %v11067_v47 = vcombine.low %v6420_v53, %v6430_v45 }
 0x3ed   : > { %v6467_v38 = vrot.slane %v6465_v7, 5  ;;  %v6471_v19 = vrot.slane %v6469_v46, 4  ;;  %v6439_v6 = vrot.slane %v6438_v8, 4  ;;  %v6453_v4 = vrot.slane %v6451_v25, 5  ;;  %v15727_v25 = vld [vmem:[#allocation3 + $0x9c] sm:$0xf] }
 0x3ee   : > { %v6449_v48 = vrot.slane %v6448_v30, 4  ;;  %v6458_v29 = vrot.slane %v6456_v18, 4  ;;  %v6461_v42 = vrot.slane %v6459_v17, 5  ;;  %v6489_v21 = vshll.u32 %v15687_v61, 16  ;;  %v15721_v30 = vld [vmem:[#allocation3 + $0xa0] sm:$0xf] }
 0x3ef   : > { %v6472_v22 = vor.u32 %v6471_v19, %v6467_v38  ;;  %v6493_v50 = vshrl.u32 %v15687_v61, 16  ;;  %v6480_v49 = vshrl.u32 %v15689_v28, 16  ;;  %v6483_v31 = vshll.u32 %v15689_v28, 16 }
 0x3f0   : > { %v6454_v58 = vsel %vm13548_vm12, %v6449_v48, %v6453_v4  ;;  %v11051_v43 = vcombine.low %v15647_v63, %v15649_v9  ;;  %v6444_v57 = vsel %vm13548_vm12, %v6439_v6, %v6443_v26  ;;  %v6462_v11 = vor.u32 %v6461_v42, %v6458_v29  ;;  %v15708_v63 = vld [vmem:[#allocation3 + $0x90] sm:$0xf] }
 0x3f1   : > { %v6475_v37 = vshll.u32 %v15691_v62, 16  ;;  %v11068_v56 = vcombine.low %v6444_v57, %v6454_v58  ;;  %v6473_v27 = vrot.slane %v6472_v22, 4  ;;  %v6491_v51 = vrot.slane %v6489_v21, 5 }
 0x3f2   : > { %v6495_v52 = vrot.slane %v6493_v50, 4  ;;  %v6482_v39 = vrot.slane %v6480_v49, 4  ;;  %v6485_v12 = vrot.slane %v6483_v31, 5  ;;  %v6463_v20 = vrot.slane %v6462_v11, 4  ;;  %v15742_v50 = vld [vmem:[#allocation3 + $0xa4] sm:$0x1] }
 0x3f3   : > { %9574 = vmatmul.mubr.bf16.gmra.mrb[44].mxu1 %v11050_v60  ;;  %v6477_v44 = vrot.slane %v6475_v37, 5  ;;  %v6513_v34 = vshll.u32 %v15704_v23, 16  ;;  %v6517_v10 = vshrl.u32 %v15704_v23, 16  ;;  %v11052_v59 = vcombine.low %v15661_v15, %v15659_v40  ;;  %v15723_v40 = vpop.f32.mrb[16].mxu1  ;;  %v15725_v60 = vld [vmem:[#allocation3 + $0x98] sm:$0x1] }
 0x3f4   : > { %9581 = vmatprep.mubr.bf16.mxu1 %v11067_v47  ;;  %v6496_v5 = vor.u32 %v6495_v52, %v6491_v51  ;;  %v6486_v36 = vor.u32 %v6485_v12, %v6482_v39  ;;  %v6468_v0 = vsel %vm13548_vm12, %v6463_v20, %v6467_v38  ;;  %v6499_v26 = vshll.u32 %v15706_v16, 16  ;;  %v15740_v21 = vpop.f32.mrb[17].mxu1  ;;  %v15746_v49 = vpop.f32.mrb[32].mxu0 }
 0x3f5   : > { %v6478_v9 = vsel %vm13548_vm12, %v6473_v27, %v6477_v44  ;;  %v6504_v2 = vshrl.u32 %v15708_v63, 16  ;;  %v6507_v24 = vshll.u32 %v15708_v63, 16  ;;  %v6515_v13 = vrot.slane %v6513_v34, 5  ;;  %v15748_v31 = vpop.f32.mrb[18].mxu1 }
 0x3f6   : > { %v11069_v14 = vcombine.low %v6468_v0, %v6478_v9  ;;  %v6497_v41 = vrot.slane %v6496_v5, 4  ;;  %v6519_v35 = vrot.slane %v6517_v10, 4  ;;  %v6487_v45 = vrot.slane %v6486_v36, 4  ;;  %v15752_v27 = vpop.f32.mrb[19].mxu1 }
 0x3f7   : > { %v6501_v15 = vrot.slane %v6499_v26, 5  ;;  %v6506_v7 = vrot.slane %v6504_v2, 4  ;;  %v6509_v46 = vrot.slane %v6507_v24, 5  ;;  %v6537_v18 = vshll.u32 %v15721_v30, 16 }
 0x3f8   : > { %v6520_v8 = vor.u32 %v6519_v35, %v6515_v13  ;;  %v6541_v17 = vshrl.u32 %v15721_v30, 16  ;;  %v11053_v47 = vcombine.low %v15675_v54, %v15673_v33  ;;  %v6492_v48 = vsel %vm13548_vm12, %v6487_v45, %v6491_v51  ;;  %v15744_v54 = vld [vmem:[#allocation3 + $0xac] sm:$0xf]  ;;  %v15754_v51 = vld [vmem:[#allocation3 + $0xa8] sm:$0xf] }
 0x3f9   : > { %v6502_v53 = vsel %vm13548_vm12, %v6497_v41, %v6501_v15  ;;  %v6510_v38 = vor.u32 %v6509_v46, %v6506_v7  ;;  %v6523_v19 = vshll.u32 %v15725_v60, 16  ;;  %v6528_v6 = vshrl.u32 %v15727_v25, 16  ;;  %v15771_v41 = vld [vmem:[#allocation3 + $0xb8] sm:$0xf]  ;;  %v15773_v45 = vld [vmem:[#allocation3 + $0xb0] sm:$0x1] }
 0x3fa   : > { %v6531_v4 = vshll.u32 %v15727_v25, 16  ;;  %v11070_v29 = vcombine.low %v6492_v48, %v6502_v53  ;;  %v6521_v42 = vrot.slane %v6520_v8, 4  ;;  %v6539_v58 = vrot.slane %v6537_v18, 5 }
 0x3fb   : > { %9582 = vmatmul.mubr.bf16.gmra.mrb[48].mxu1 %v11051_v43  ;;  %v6543_v22 = vrot.slane %v6541_v17, 4  ;;  %v6511_v43 = vrot.slane %v6510_v38, 4  ;;  %v6525_v57 = vrot.slane %v6523_v19, 5  ;;  %v6530_v11 = vrot.slane %v6528_v6, 4 }
 0x3fc   : > { %9589 = vmatprep.mubr.bf16.mxu1 %v11068_v56  ;;  %v6533_v37 = vrot.slane %v6531_v4, 5  ;;  %v15750_v56 = vpop.f32.mrb[33].mxu0  ;;  %v6561_v20 = vshll.u32 %v15744_v54, 16  ;;  %v6565_v44 = vshrl.u32 %v15744_v54, 16  ;;  %v11054_v5 = vcombine.low %v15689_v28, %v15687_v61 }
 0x3fd   : > { %v15756_v52 = vpop.f32.mrb[34].mxu0  ;;  %v6526_v39 = vsel %vm13548_vm12, %v6521_v42, %v6525_v57  ;;  %v6544_v12 = vor.u32 %v6543_v22, %v6539_v58  ;;  %v6547_v34 = vshll.u32 %v15742_v50, 16  ;;  %v6516_v10 = vsel %vm13548_vm12, %v6511_v43, %v6515_v13  ;;  %v15775_v13 = vld [vmem:[#allocation3 + $0xb4] sm:$0xf]  ;;  %v15788_v43 = vld [vmem:[#allocation3 + $0xbc] sm:$0x1] }
 0x3fe   : > { %v15762_v9 = vpop.f32.mrb[35].mxu0  ;;  %v6552_v36 = vshrl.u32 %v15754_v51, 16  ;;  %v6555_v0 = vshll.u32 %v15754_v51, 16  ;;  %v11071_v26 = vcombine.low %v6516_v10, %v6526_v39  ;;  %v6563_v24 = vrot.slane %v6561_v20, 5 }
 0x3ff   : > { %v6545_v2 = vrot.slane %v6544_v12, 4  ;;  %v6549_v28 = vrot.slane %v6547_v34, 5  ;;  %v6585_v8 = vshll.u32 %v15771_v41, 16  ;;  %v6589_v18 = vshrl.u32 %v15771_v41, 16  ;;  %v15790_v57 = vpop.f32.mrb[36].mxu0 }
 0x400   : > { %v6554_v15 = vrot.slane %v6552_v36, 4  ;;  %v6557_v7 = vrot.slane %v6555_v0, 5  ;;  %v11055_v17 = vcombine.low %v15708_v63, %v15704_v23  ;;  %v6576_v19 = vshrl.u32 %v15775_v13, 16  ;;  %v15794_v12 = vld [vmem:[#allocation3 + $0xc] sm:$0xf] }
 0x401   : > { %v6550_v46 = vsel %vm13548_vm12, %v6545_v2, %v6549_v28  ;;  %v6579_v6 = vshll.u32 %v15775_v13, 16  ;;  %v6587_v42 = vrot.slane %v6585_v8, 5  ;;  %v6591_v22 = vrot.slane %v6589_v18, 4  ;;  %v15805_v36 = vld [vmem:[#allocation3 + $0x10] sm:$0xf] }
 0x402   : > { %v6558_v38 = vor.u32 %v6557_v7, %v6554_v15  ;;  %v11056_v10 = vcombine.low %v15727_v25, %v15721_v30  ;;  %v6824_v2 = vshrl.u32 %v15794_v12, 16  ;;  %v6833_v15 = vshll.u32 %v15805_v36, 16  ;;  %v6599_v18 = vld [vmem:[#allocation3] sm:$0xe] }
 0x403   : > { %9590 = vmatmul.mubr.bf16.gmra.mrb[52].mxu1 %v11052_v59  ;;  %v6534_v59 = vor.u32 %v6533_v37, %v6530_v11  ;;  %v6578_v37 = vrot.slane %v6576_v19, 4  ;;  %v6581_v39 = vrot.slane %v6579_v6, 5  ;;  %v6837_v7 = vshrl.u32 %v15805_v36, 16 }
 0x404   : > { %9597 = vmatprep.mubr.bf16.mxu1 %v11069_v14  ;;  %v6567_v14 = vrot.slane %v6565_v44, 4  ;;  %v6559_v63 = vrot.slane %v6558_v38, 4  ;;  %v11057_v38 = vcombine.low %v15754_v51, %v15744_v54  ;;  %v11058_v51 = vcombine.low %v15775_v13, %v15771_v41 }
 0x405   : > { %v6535_v35 = vrot.slane %v6534_v59, 4  ;;  %v6595_v59 = vshll.u32 %v15788_v43, 16  ;;  %v6738_v13 = vrot.slane %v15691_v62, 5 }
 0x406   : > { %v6568_v53 = vor.u32 %v6567_v14, %v6563_v24  ;;  %v6564_v0 = vsel %vm13548_vm12, %v6559_v63, %v6563_v24  ;;  %v6827_v14 = vshll.u32 %v15794_v12, 16 }
 0x407   : > { %v6540_v48 = vsel %vm13548_vm12, %v6535_v35, %v6539_v58  ;;  %v15792_v58 = vpop.f32.mrb[37].mxu0 }
 0x408   : > { %v11072_v4 = vcombine.low %v6540_v48, %v6550_v46  ;;  %v15796_v20 = vpop.f32.mrb[38].mxu0  ;;  %v6597_v46 = vrot.slane %v6595_v59, 5  ;;  %v6829_v8 = vrot.slane %v6827_v14, 5  ;;  %v15817_v48 = vld [vmem:[#allocation3 + $0x18] sm:$0xf]  ;;  %v6735_v59 = vrot.slane %v15673_v33, 5 }
 0x409   : > { %v15800_v34 = vpop.f32.mrb[39].mxu0  ;;  %v11678_v33 = vadd.f32 %v15740_v21, %v15723_v40  ;;  %v15862_v21 = vld [vmem:[#allocation3 + $0x24] sm:$0xf] }
 0x40b   : > { %9598 = vmatmul.mubr.bf16.gmra.mrb[56].mxu1 %v11053_v47  ;;  %v6571_v47 = vshll.u32 %v15773_v45, 16 }
 0x40c   : > { %9605 = vmatprep.mubr.bf16.mxu1 %v11070_v29  ;;  %v6569_v29 = vrot.slane %v6568_v53, 4  ;;  %v6826_v53 = vrot.slane %v6824_v2, 4 }
 0x40d   : > { %v6573_v11 = vrot.slane %v6571_v47, 5  ;;  %v6839_v47 = vrot.slane %v6837_v7, 4 }
 0x40e   : > { %v6830_v6 = vor.u32 %v6829_v8, %v6826_v53  ;;  %v6600_v8 = vld [vmem:[#allocation3 + $0xc] sm:$0xe] }
 0x40f   : > { %v6574_v44 = vsel %vm13548_vm12, %v6569_v29, %v6573_v11  ;;  %v15823_v11 = vld [vmem:[#allocation3 + $0x1c] sm:$0xf] }
 0x410   : > { %v11073_v35 = vcombine.low %v6564_v0, %v6574_v44  ;;  %v6609_v44 = vld [vmem:[#allocation3 + $0x78] sm:$0xe]  ;;  %v15831_v0 = vrot.slane %v6830_v6, 4  ;;  %v11092_v40 = vcombine.low %v15817_v48, %v15823_v11 }
 0x413   : > { %9606 = vmatmul.mubr.bf16.gmra.mrb[60].mxu1 %v11054_v5  ;;  %v6592_v5 = vor.u32 %v6591_v22, %v6587_v42  ;;  %v13198_v22 = vld [vmem:[#allocation3 + $0x4] sm:$0xf] }
 0x414   : > { %9613 = vmatprep.mubr.bf16.mxu1 %v11071_v26  ;;  %v6582_v26 = vor.u32 %v6581_v39, %v6578_v37  ;;  %v6665_v63 = vrot.slane %v13198_v22, 5  ;;  %v6848_v39 = vshrl.u32 %v15817_v48, 16 }
 0x415   : > { %v6593_v28 = vrot.slane %v6592_v5, 4  ;;  %v13199_v5 = vld [vmem:[#allocation3 + $0x8] sm:$0x1] }
 0x416   : > { %v6583_v25 = vrot.slane %v6582_v26, 4  ;;  %v11091_v26 = vcombine.low %v15794_v12, %v15805_v36  ;;  %v11681_v12 = vadd.f32 %v15752_v27, %v15748_v31  ;;  %v15867_v27 = vadd.f32 %v11678_v33, %v15750_v56  ;;  %v15895_v33 = vld [vmem:[#allocation3 + $0x30] sm:$0xf] }
 0x417   : > { %v6598_v24 = vsel %vm13548_vm12, %v6593_v28, %v6597_v46  ;;  %v11005_v28 = vrot.slane %v6609_v44, 9  ;;  %v6610_v46 = vld [vmem:[#allocation3 + $0x84] sm:$0xe]  ;;  %v15875_v44 = vld [vmem:[#allocation3 + $0x28] sm:$0xf]  ;;  %v6749_v56 = vrot.slane %v15704_v23, 5 }
 0x418   : > { %v6588_v19 = vsel %vm13548_vm12, %v6583_v25, %v6587_v42  ;;  %v6851_v42 = vshll.u32 %v15817_v48, 16  ;;  %v15843_v25 = vrot.slane %v6848_v39, 4  ;;  %17629 = vst [vmem:[#allocation10_spill] sm:$0xff] %v15867_v27  ;;  %v11006_v6 = vrot.slane %v6610_v46, 9  ;;  %v13103_v46 = vld [vmem:[#allocation4 + $0x100] sm:$0xff]  }
 0x419   : > { %v11074_v29 = vcombine.low %v6588_v19, %v6598_v24  ;;  %v6742_v24 = vrot.slane %v15687_v61, 5  ;;  %v6745_v61 = vrot.slane %v15706_v16, 5  ;;  %v6752_v23 = vrot.slane %v15725_v60, 5 }
 0x41a   : > { %v15849_v53 = vrot.slane %v6851_v42, 5  ;;  %v6896_v31 = vshrl.u32 %v15895_v33, 16  ;;  %v6770_v48 = vrot.slane %v15771_v41, 5 }
 0x41b   : > { %9614 = vmatmul.mubr.bf16.gmra.mrb[64].mxu1 %v11055_v17  ;;  %v15815_v17 = vrot.slane %v6833_v15, 5  ;;  %v6737_v15 = vrot.slane %v6735_v59, 4  ;;  %v15882_v16 = vsel %vm13933_vm1, %v11006_v6, %v6742_v24  ;;  %v15912_v6 = vpop.f32.mrb[40].mxu0 }
 0x41c   : > { %9621 = vmatprep.mubr.bf16.mxu1 %v11072_v4  ;;  %v10995_v4 = vrot.slane %v6599_v18, 9  ;;  %v15853_v18 = vsel %vm13933_vm1, %v11005_v28, %v6735_v59  ;;  %17632 = vst [vmem:[#allocation24_spill] sm:$0xff] %v15912_v6 }
 0x41d   : > { %v6840_v37 = vor.u32 %v6839_v47, %v15815_v17  ;;  %v15857_v62 = vsel %vm13933_vm1, %v6737_v15, %v6738_v13  ;;  %v15870_v47 = vadd.f32 %v11681_v12, %v15762_v9  ;;  %v6872_v9 = vshrl.u32 %v15862_v21, 16  ;;  %v6612_v12 = vld [vmem:[#allocation3 + $0x9c] sm:$0xe]  ;;  %v13111_v13 = vld [vmem:[#allocation4 + $0x110] sm:$0xff]  }
 0x41e   : > { %v15837_v2 = vsel %vm13933_vm1, %v10995_v4, %v6665_v63  ;;  %v6744_v4 = vrot.slane %v6742_v24, 4  ;;  %v15901_v24 = vld [vmem:[#allocation3 + $0x34] sm:$0xf] }
 0x41f   : > { %v15841_v7 = vrot.slane %v6840_v37, 4  ;;  %17630 = vst [vmem:[#allocation27_spill] sm:$0xff] %v15870_v47  ;;  %v13201_v37 = vld [vmem:[#allocation3 + $0x14] sm:$0x1]  ;;  %17631 = vst [vmem:[#allocation25_spill] sm:$0xff] %v15901_v24 }
 0x420   : > { %v6675_v39 = vrot.slane %v13201_v37, 5  ;;  %v13106_v37 = vld [vmem:[#allocation4 + $0x148] sm:$0xff]  }
 0x423   : > { %9622 = vmatmul.mubr.bf16.gmra.mrb[68].mxu1 %v11056_v10  ;;  %v6668_v10 = vrot.slane %v13199_v5, 5  ;;  %v6875_v5 = vshll.u32 %v15862_v21, 16 }
 0x424   : > { %9629 = vmatprep.mubr.bf16.mxu1 %v11073_v35  ;;  %v6667_v35 = vrot.slane %v6665_v63, 4  ;;  %v10996_v63 = vrot.slane %v6600_v8, 9 }
 0x426   : > { %v6669_v22 = vsel %vm13933_vm1, %v6667_v35, %v6668_v10  ;;  %v6601_v10 = vld [vmem:[#allocation3 + $0x18] sm:$0xe]  ;;  %v6751_v35 = vrot.slane %v6749_v56, 4 }
 0x42b   : > { %9630 = vmatmul.mubr.bf16.gmra.mrb[72].mxu1 %v11057_v38  ;;  %v13200_v38 = vld [vmem:[#allocation3 + $0x10] sm:$0xf] }
 0x42c   : > { %9637 = vmatprep.mubr.bf16.mxu1 %v11074_v29  ;;  %v6672_v19 = vrot.slane %v13200_v38, 5  ;;  %v6611_v29 = vld [vmem:[#allocation3 + $0x90] sm:$0xe]  ;;  %v6756_v38 = vrot.slane %v15721_v30, 5  ;;  %v6759_v30 = vrot.slane %v15742_v50, 5 }
 0x42d   : > { %v11007_v59 = vrot.slane %v6611_v29, 9  ;;  %v6763_v29 = vrot.slane %v15744_v54, 5  ;;  %v13107_v54 = vld [vmem:[#allocation4 + $0x108] sm:$0xff]  }
 0x42e   : > { %v6674_v28 = vrot.slane %v6672_v19, 4  ;;  %v15899_v8 = vsel %vm13933_vm1, %v10996_v63, %v6672_v19  ;;  %v10997_v19 = vrot.slane %v6601_v10, 9  ;;  %v15920_v63 = vpop.f32.mrb[41].mxu0 }
 0x42f   : > { %v15905_v60 = vsel %vm13933_vm1, %v11007_v59, %v6749_v56  ;;  %v13202_v56 = vld [vmem:[#allocation3 + $0x1c] sm:$0xf]  ;;  %v15923_v42 = vpop.f32.mrb[42].mxu0 }
 0x430   : > { %v6679_v59 = vrot.slane %v13202_v56, 5  ;;  %17633 = vst [vmem:[#allocation12_spill] sm:$0xff] %v15923_v42  ;;  %v15929_v15 = vpop.f32.mrb[43].mxu0  ;;  %v6899_v56 = vshll.u32 %v15895_v33, 16  ;;  %v13122_v42 = vld [vmem:[#allocation4 + $0x168] sm:$0xff]  }
 0x433   : > { %9638 = vmatmul.mubr.bf16.gmra.mrb[76].mxu1 %v11058_v51  ;;  %v15886_v51 = vsel %vm13933_vm1, %v6744_v4, %v6745_v61  ;;  %v15914_v4 = vrot.slane %v6872_v9, 4  ;;  %v15916_v61 = vrot.slane %v6875_v5, 5  ;;  %v6676_v9 = vsel %vm13933_vm1, %v6674_v28, %v6675_v39  ;;  %v13203_v5 = vld [vmem:[#allocation3 + $0x20] sm:$0x1]  ;;  %v15941_v28 = vld [vmem:[#allocation3 + $0x14] sm:$0x1] }
 0x434   : > { %9678 = vmatprep.mubr.bf16.mxu1 %v11091_v26  ;;  %v11075_v26 = vcombine.low %v15837_v2, %v6669_v22  ;;  %v15909_v2 = vsel %vm13933_vm1, %v6751_v35, %v6752_v23  ;;  %v6613_v22 = vld [vmem:[#allocation3 + $0xa8] sm:$0xe]  ;;  %v11008_v35 = vrot.slane %v6612_v12, 9  ;;  %v6758_v23 = vrot.slane %v6756_v38, 4 }
 0x435   : > { %v6682_v10 = vrot.slane %v13203_v5, 5  ;;  %v11009_v5 = vrot.slane %v6613_v22, 9  ;;  %v6765_v12 = vrot.slane %v6763_v29, 4  ;;  %v11076_v14 = vcombine.low %v15899_v8, %v6676_v9 }
 0x436   : > { %v15935_v50 = vsel %vm13933_vm1, %v11008_v35, %v6756_v38  ;;  %v15939_v39 = vsel %vm13933_vm1, %v6758_v23, %v6759_v30  ;;  %v6766_v38 = vrot.slane %v15773_v45, 5  ;;  %v6614_v35 = vld [vmem:[#allocation3 + $0xb4] sm:$0xe]  ;;  %v6681_v23 = vrot.slane %v6679_v59, 4  ;;  %v13110_v30 = vld [vmem:[#allocation4 + $0x150] sm:$0xff]  }
 0x437   : > { %v15959_v22 = vsel %vm13933_vm1, %v11009_v5, %v6763_v29  ;;  %v6843_v8 = vshll.u32 %v15941_v28, 16  ;;  %v11010_v41 = vrot.slane %v6614_v35, 9  ;;  %v6602_v29 = vld [vmem:[#allocation3 + $0x24] sm:$0xe]  ;;  %v13204_v5 = vld [vmem:[#allocation3 + $0x28] sm:$0xf] }
 0x438   : > { %v15963_v45 = vsel %vm13933_vm1, %v6765_v12, %v6766_v38  ;;  %v6836_v38 = vsel %vm13548_vm12, %v15831_v0, %v15815_v17  ;;  %v15979_v9 = vsel %vm13933_vm1, %v6681_v23, %v6682_v10  ;;  %v15981_v35 = vrot.slane %v6899_v56, 5 }
 0x439   : > { %v6845_v12 = vrot.slane %v6843_v8, 5  ;;  %v15991_v8 = vpop.f32.mrb[44].mxu0  ;;  %v6854_v23 = vor.u32 %v15849_v53, %v15843_v25  ;;  %v6857_v53 = vshll.u32 %v15823_v11, 16 }
 0x43a   : > { %17634 = vst [vmem:[#allocation13_spill] sm:$0xff] %v15991_v8  ;;  %v16001_v56 = vpop.f32.mrb[45].mxu0  ;;  %v13119_v8 = vld [vmem:[#allocation4 + $0x120] sm:$0xff]  }
 0x43b   : > { %9679 = vmatmul.mubr.bf16.vlgmr.msra.gmra.mrb[80].mxu1 %v11075_v26  ;;  %v6772_v26 = vrot.slane %v6770_v48, 4  ;;  %v6846_v10 = vsel %vm13548_vm12, %v15841_v7, %v6845_v12  ;;  %17635 = vst [vmem:[#allocation14_spill] sm:$0xff] %v16001_v56  ;;  %v16010_v0 = vpop.f32.mrb[46].mxu0  ;;  %v17638_v7 = vcombine.low %v15862_v21, %v15875_v44  ;;  %v6859_v27 = vrot.slane %v6857_v53, 5  ;;  %v16038_v21 = vld [vmem:[#allocation3 + $0x48] sm:$0xf] }
 0x43c   : > { %11885 = vmatpush3.bf16.msra.mxu1 %v13103_v46  ;;  %9686 = vmatprep.mubr.bf16.mxu1 %v11092_v40  ;;  %v15955_v40 = vsel %vm13933_vm1, %v10997_v19, %v6679_v59  ;;  %v6773_v19 = vrot.slane %v15788_v43, 5  ;;  %v15971_v59 = vrot.slane %v6896_v31, 4  ;;  %v6686_v46 = vrot.slane %v13204_v5, 5  ;;  %v13114_v43 = vld [vmem:[#allocation4 + $0x158] sm:$0xff]   ;;  %v15993_v5 = vld [vmem:[#allocation3 + $0x40] sm:$0xf] }
 0x43d   : > { %11886 = vmatprep.subr.bf16.mxu1 %v13106_v37  ;;  %v15966_v37 = vld [vmem:[#allocation3 + $0x3c] sm:$0xf]  ;;  %v15985_v31 = vsel %vm13933_vm1, %v11010_v41, %v6770_v48  ;;  %17637 = vst [vmem:[#allocation16_spill] sm:$0xff] %v16010_v0  ;;  %v16015_v25 = vpop.f32.mrb[47].mxu0  ;;  %v16032_v0 = vld [vmem:[#allocation3 + $0x2c] sm:$0x1] }
 0x43e   : > { %v6920_v17 = vshrl.u32 %v15966_v37, 16  ;;  %v6923_v41 = vshll.u32 %v15966_v37, 16  ;;  %v6688_v12 = vrot.slane %v6686_v46, 4  ;;  %17639 = vst [vmem:[#allocation17_spill] sm:$0xff] %v16015_v25  ;;  %17641 = vst [vmem:[#allocation18_spill] sm:$0xff] %v16032_v0  ;;  %v6891_v6 = vshll.u32 %v16032_v0, 16 }
 0x440   : > { %11887 = vmatpush3.bf16.msra.mxu1 %v13107_v54  ;;  %v15989_v54 = vsel %vm13933_vm1, %v6772_v26, %v6773_v19  ;;  %v10998_v26 = vrot.slane %v6602_v29, 9  ;;  %v16006_v19 = vcombine.low %v6836_v38, %v6846_v10  ;;  %v17640_v29 = vshrl.u32 %v15823_v11, 16 }
 0x441   : > { %11888 = vmatprep.subr.bf16.mxu1 %v13110_v30  ;;  %v13205_v30 = vld [vmem:[#allocation3 + $0x2c] sm:$0x1]  ;;  %v11077_v10 = vcombine.low %v15955_v40, %v15979_v9  ;;  %v16029_v47 = vrot.slane %v6920_v17, 4  ;;  %v6878_v40 = vor.u32 %v15916_v61, %v15914_v4  ;;  %v13206_v9 = vld [vmem:[#allocation3 + $0x34] sm:$0xf] }
 0x442   : > { %v6689_v48 = vrot.slane %v13205_v30, 5  ;;  %17636 = vst [vmem:[#allocation15_spill] sm:$0xff] %v16006_v19  ;;  %v6863_v38 = vrot.slane %v17640_v29, 4  ;;  %v16024_v30 = vsel %vm13933_vm1, %v10998_v26, %v6686_v46  ;;  %v6867_v29 = vshll.u32 %v16008_v3, 16 }
 0x443   : > { %9687 = vmatmul.mubr.bf16.gmra.mrb[84].mxu1 %v11076_v14  ;;  %v6855_v14 = vrot.slane %v6854_v23, 4  ;;  %v13118_v23 = vld [vmem:[#allocation4 + $0x160] sm:$0xff]   ;;  %v16036_v46 = vrot.slane %v6923_v41, 5  ;;  %v6693_v26 = vrot.slane %v13206_v9, 5  ;;  %v6879_v41 = vrot.slane %v6878_v40, 4 }
 0x444   : > { %9694 = vmatprep.mubr.bf16.mxu1 %v17638_v7  ;;  %11889 = vmatpush3.bf16.msra.mxu1 %v13111_v13  ;;  %v6603_v7 = vld [vmem:[#allocation3 + $0x30] sm:$0xe]  ;;  %v6881_v13 = vshll.u32 %v15875_v44, 16  ;;  %v16045_v53 = vsel %vm13933_vm1, %v6688_v12, %v6689_v48  ;;  %v6864_v61 = vor.u32 %v6863_v38, %v6859_v27  ;;  %v13207_v9 = vld [vmem:[#allocation3 + $0x38] sm:$0x1]  ;;  %v6947_v48 = vshll.u32 %v16038_v21, 16 }
 0x445   : > { %11890 = vmatprep.subr.bf16.mxu1 %v13114_v43  ;;  %v17642_v43 = vshrl.u32 %v15875_v44, 16  ;;  %v6860_v4 = vsel %vm13548_vm12, %v6855_v14, %v6859_v27  ;;  %v10999_v25 = vrot.slane %v6603_v7, 9  ;;  %v6696_v56 = vrot.slane %v13207_v9, 5  ;;  %v16060_v7 = vld [vmem:[#allocation3 + $0x38] sm:$0x1] }
 0x446   : > { %v6883_v19 = vrot.slane %v6881_v13, 5  ;;  %v6865_v12 = vrot.slane %v6864_v61, 4  ;;  %v11078_v14 = vcombine.low %v16024_v30, %v16045_v53  ;;  %17643 = vst [vmem:[#allocation19_spill] sm:$0xff] %v16060_v7  ;;  %v16065_v40 = vld [vmem:[#allocation3 + $0x54] sm:$0xf]  ;;  %v6695_v53 = vrot.slane %v6693_v26, 4 }
 0x447   : > { %v6887_v17 = vrot.slane %v17642_v43, 4  ;;  %v6944_v43 = vshrl.u32 %v16038_v21, 16  ;;  %v16056_v27 = vsel %vm13933_vm1, %v10999_v25, %v6693_v26  ;;  %v6902_v25 = vor.u32 %v15981_v35, %v15971_v59  ;;  %v13126_v61 = vld [vmem:[#allocation4 + $0x170] sm:$0xff]  }
 0x448   : > { %11891 = vmatpush3.bf16.msra.mxu1 %v13115_v55  ;;  %v6869_v55 = vrot.slane %v6867_v29, 5  ;;  %v6884_v38 = vsel %vm13548_vm12, %v6879_v41, %v6883_v19  ;;  %v6905_v29 = vshll.u32 %v15901_v24, 16  ;;  %v6893_v9 = vrot.slane %v6891_v6, 5  ;;  %v13127_v26 = vld [vmem:[#allocation4 + $0x130] sm:$0xff]  }
 0x449   : > { %11892 = vmatprep.subr.bf16.mxu1 %v13118_v23  ;;  %v6888_v13 = vor.u32 %v6887_v17, %v6883_v19  ;;  %v17644_v23 = vcombine.low %v15895_v33, %v15901_v24  ;;  %v17645_v19 = vshrl.u32 %v15901_v24, 16  ;;  %v6903_v0 = vrot.slane %v6902_v25, 4 }
 0x44a   : > { %v6870_v30 = vsel %vm13548_vm12, %v6865_v12, %v6869_v55  ;;  %v6907_v12 = vrot.slane %v6905_v29, 5  ;;  %v6915_v55 = vshll.u32 %v16060_v7, 16  ;;  %v6949_v59 = vrot.slane %v6947_v48, 5  ;;  %v16094_v29 = vld [vmem:[#allocation3 + $0x60] sm:$0xf] }
 0x44b   : > { %9695 = vmatmul.mubr.bf16.gmra.mrb[88].mxu1 %v11077_v10  ;;  %v13123_v10 = vld [vmem:[#allocation4 + $0x128] sm:$0xff]   ;;  %v6911_v17 = vrot.slane %v17645_v19, 4  ;;  %v16074_v33 = vcombine.low %v6860_v4, %v6870_v30  ;;  %v6889_v41 = vrot.slane %v6888_v13, 4  ;;  %v6968_v35 = vshrl.u32 %v16065_v40, 16 }
 0x44c   : > { %9702 = vmatprep.mubr.bf16.mxu1 %v17644_v23  ;;  %11893 = vmatpush3.bf16.msra.mxu1 %v13119_v8  ;;  %v16076_v8 = vld [vmem:[#allocation3 + $0x4c] sm:$0xf]  ;;  %v6946_v23 = vrot.slane %v6944_v43, 4  ;;  %v6971_v24 = vshll.u32 %v16065_v40, 16  ;;  %v6908_v6 = vsel %vm13548_vm12, %v6903_v0, %v6907_v12  ;;  %v16087_v13 = vld [vmem:[#allocation3 + $0x44] sm:$0x1]  ;;  %v6926_v48 = vor.u32 %v16036_v46, %v16029_v47 }
 0x44d   : > { %11894 = vmatprep.subr.bf16.mxu1 %v13122_v42  ;;  %17646 = vst [vmem:[#allocation20_spill] sm:$0xff] %v16074_v33  ;;  %17647 = vst [vmem:[#allocation21_spill] sm:$0xff] %v16076_v8  ;;  %v6894_v42 = vsel %vm13548_vm12, %v6889_v41, %v6893_v9  ;;  %v6912_v43 = vor.u32 %v6911_v17, %v6907_v12  ;;  %v6957_v30 = vshrl.u32 %v16076_v8, 16  ;;  %v17650_v19 = vshrl.u32 %v15993_v5, 16  ;;  %v6604_v46 = vld [vmem:[#allocation3 + $0x3c] sm:$0xe] }
 0x44e   : > { %v16083_v4 = vcombine.low %v6884_v38, %v6894_v42  ;;  %17649 = vst [vmem:[#allocation11_spill] sm:$0xff] %v16087_v13  ;;  %v11096_v25 = vcombine.low %v16038_v21, %v16076_v8  ;;  %v6929_v38 = vshll.u32 %v15993_v5, 16  ;;  %v6697_v17 = vsel %vm13933_vm1, %v6695_v53, %v6696_v56  ;;  %v13208_v12 = vld [vmem:[#allocation3 + $0x40] sm:$0xf]  ;;  %v16105_v33 = vld [vmem:[#allocation3 + $0x58] sm:$0xf] }
 0x44f   : > { %v6935_v0 = vrot.slane %v17650_v19, 4  ;;  %v6913_v41 = vrot.slane %v6912_v43, 4  ;;  %v6917_v9 = vrot.slane %v6915_v55, 5  ;;  %v6927_v47 = vrot.slane %v6926_v48, 4  ;;  %v13131_v53 = vld [vmem:[#allocation4 + $0x138] sm:$0xff]   ;;  %v13133_v43 = vld [vmem:[#allocation4 + $0x1c0] sm:$0xff]  }
 0x450   : > { %11895 = vmatpush3.bf16.msra.mxu1 %v13123_v10  ;;  %17648 = vst [vmem:[#allocation22_spill] sm:$0xff] %v16083_v4  ;;  %v13130_v10 = vld [vmem:[#allocation4 + $0x178] sm:$0xff]   ;;  %v6700_v42 = vrot.slane %v13208_v12, 5  ;;  %v6970_v21 = vrot.slane %v6968_v35, 4  ;;  %v6931_v4 = vrot.slane %v6929_v38, 5  ;;  %v17651_v7 = vcombine.low %v15966_v37, %v15993_v5 }
 0x451   : > { %11896 = vmatprep.subr.bf16.mxu1 %v13126_v61  ;;  %v6939_v61 = vshll.u32 %v16087_v13, 16  ;;  %v6973_v19 = vrot.slane %v6971_v24, 5  ;;  %v6992_v56 = vshrl.u32 %v16094_v29, 16  ;;  %v6950_v55 = vor.u32 %v6949_v59, %v6946_v23  ;;  %v16115_v38 = vld [vmem:[#allocation3 + $0x50] sm:$0x1] }
 0x452   : > { %v6995_v35 = vshll.u32 %v16094_v29, 16  ;;  %v6932_v37 = vsel %vm13548_vm12, %v6927_v47, %v6931_v4  ;;  %17653 = vst [vmem:[#allocation29_spill] sm:$0xff] %v16115_v38  ;;  %v11000_v24 = vrot.slane %v6604_v46, 9  ;;  %v16117_v12 = vld [vmem:[#allocation3 + $0x6c] sm:$0xf]  ;;  %v6953_v13 = vshll.u32 %v16076_v8, 16 }
 0x453   : > { %9703 = vmatmul.mubr.bf16.gmra.mrb[92].mxu1 %v11078_v14  ;;  %v6918_v14 = vsel %vm13548_vm12, %v6913_v41, %v6917_v9  ;;  %v6959_v41 = vrot.slane %v6957_v30, 4  ;;  %v11079_v23 = vcombine.low %v16056_v27, %v6697_v17  ;;  %v6981_v59 = vshrl.u32 %v16105_v33, 16  ;;  %v16123_v47 = vld [vmem:[#allocation3 + $0x64] sm:$0xf] }
 0x454   : > { %9710 = vmatprep.mubr.bf16.mxu1 %v17651_v7  ;;  %11897 = vmatpush3.bf16.msra.mxu1 %v13127_v26  ;;  %v16111_v48 = vcombine.low %v6908_v6, %v6918_v14  ;;  %v6936_v7 = vor.u32 %v6935_v0, %v6931_v4  ;;  %v6951_v26 = vrot.slane %v6950_v55, 4  ;;  %v6941_v6 = vrot.slane %v6939_v61, 5 }
 0x455   : > { %11898 = vmatprep.subr.bf16.mxu1 %v13130_v10  ;;  %v6702_v9 = vrot.slane %v6700_v42, 4  ;;  %v6955_v14 = vrot.slane %v6953_v13, 5  ;;  %v6963_v4 = vshll.u32 %v16115_v38, 16  ;;  %v6974_v0 = vor.u32 %v6973_v19, %v6970_v21  ;;  %v13209_v21 = vld [vmem:[#allocation3 + $0x44] sm:$0x1] }
 0x456   : > { %17652 = vst [vmem:[#allocation28_spill] sm:$0xff] %v16111_v48  ;;  %v6937_v10 = vrot.slane %v6936_v7, 4  ;;  %v6994_v46 = vrot.slane %v6992_v56, 4  ;;  %v6997_v48 = vrot.slane %v6995_v35, 5  ;;  %v7016_v55 = vshrl.u32 %v16117_v12, 16 }
 0x457   : > { %v7019_v30 = vshll.u32 %v16117_v12, 16  ;;  %v6956_v13 = vsel %vm13548_vm12, %v6951_v26, %v6955_v14  ;;  %v6960_v61 = vor.u32 %v6959_v41, %v6955_v14  ;;  %v6703_v19 = vrot.slane %v13209_v21, 5  ;;  %v13210_v41 = vld [vmem:[#allocation3 + $0x4c] sm:$0xf]  ;;  %v16144_v21 = vld [vmem:[#allocation3 + $0x70] sm:$0xf] }
 0x458   : > { %11899 = vmatpush3.bf16.msra.mxu1 %v13131_v53  ;;  %v6942_v27 = vsel %vm13548_vm12, %v6937_v10, %v6941_v6  ;;  %v16133_v53 = vld [vmem:[#allocation3 + $0x5c] sm:$0x1]  ;;  %v6975_v56 = vrot.slane %v6974_v0, 4  ;;  %v6977_v35 = vshll.u32 %v16105_v33, 16  ;;  %v6701_v7 = vsel %vm13933_vm1, %v11000_v24, %v6700_v42  ;;  %v16142_v0 = vld [vmem:[#allocation3 + $0x68] sm:$0x1] }
 0x459   : > { %11996 = vmatprep.subr.bf16.mxu1 %v13133_v43  ;;  %v16129_v17 = vcombine.low %v6932_v37, %v6942_v27  ;;  %17655 = vst [vmem:[#allocation31_spill] sm:$0xff] %v16133_v53  ;;  %v6983_v43 = vrot.slane %v6981_v59, 4  ;;  %v7005_v37 = vshrl.u32 %v16123_v47, 16  ;;  %v6961_v10 = vrot.slane %v6960_v61, 4 }
 0x45a   : > { %v6965_v6 = vrot.slane %v6963_v4, 5  ;;  %v6704_v26 = vsel %vm13933_vm1, %v6702_v9, %v6703_v19  ;;  %v6707_v14 = vrot.slane %v13210_v41, 5  ;;  %v6987_v27 = vshll.u32 %v16133_v53, 16 }
 0x45b   : > { %17654 = vst [vmem:[#allocation30_spill] sm:$0xff] %v16129_v17  ;;  %9711 = vmatmul.mubr.bf16.gmra.mrb[96].mxu1 %v11079_v23  ;;  %v6979_v23 = vrot.slane %v6977_v35, 5  ;;  %v7021_v59 = vrot.slane %v7019_v30, 5  ;;  %v6998_v24 = vor.u32 %v6997_v48, %v6994_v46  ;;  %v7001_v19 = vshll.u32 %v16123_v47, 16 }
 0x45c   : > { %9718 = vmatprep.mubr.bf16.mxu1 %v11096_v25  ;;  %v7018_v25 = vrot.slane %v7016_v55, 4  ;;  %v6966_v42 = vsel %vm13548_vm12, %v6961_v10, %v6965_v6  ;;  %v11080_v35 = vcombine.low %v6701_v7, %v6704_v26  ;;  %v7007_v17 = vrot.slane %v7005_v37, 4  ;;  %v13211_v26 = vld [vmem:[#allocation3 + $0x50] sm:$0x1] }
 0x45d   : > { %v16148_v61 = vcombine.low %v6956_v13, %v6966_v42  ;;  %v6980_v9 = vsel %vm13548_vm12, %v6975_v56, %v6979_v23  ;;  %v6984_v4 = vor.u32 %v6983_v43, %v6979_v23  ;;  %v6999_v41 = vrot.slane %v6998_v24, 4  ;;  %v16157_v13 = vld [vmem:[#allocation3 + $0x74] sm:$0x1]  ;;  %v6605_v43 = vld [vmem:[#allocation3 + $0x48] sm:$0xe] }
 0x45e   : > { %v7011_v53 = vshll.u32 %v16142_v0, 16  ;;  %v7029_v55 = vshrl.u32 %v16144_v21, 16  ;;  %v6989_v38 = vrot.slane %v6987_v27, 5  ;;  %v7003_v8 = vrot.slane %v7001_v19, 5 }
 0x45f   : > { %v6985_v30 = vrot.slane %v6984_v4, 4  ;;  %v11097_v48 = vcombine.low %v16065_v40, %v16105_v33  ;;  %v6709_v46 = vrot.slane %v6707_v14, 4  ;;  %v7022_v56 = vor.u32 %v7021_v59, %v7018_v25 }
 0x460   : > { %v7004_v37 = vsel %vm13548_vm12, %v6999_v41, %v7003_v8  ;;  %v7008_v10 = vor.u32 %v7007_v17, %v7003_v8  ;;  %v7025_v6 = vshll.u32 %v16144_v21, 16  ;;  %v6710_v23 = vrot.slane %v13211_v26, 5 }
 0x461   : > { %v6990_v7 = vsel %vm13548_vm12, %v6985_v30, %v6989_v38  ;;  %v7013_v40 = vrot.slane %v7011_v53, 5  ;;  %v7023_v42 = vrot.slane %v7022_v56, 4  ;;  %v7031_v59 = vrot.slane %v7029_v55, 4 }
 0x462   : > { %v16164_v27 = vcombine.low %v6980_v9, %v6990_v7  ;;  %v7009_v24 = vrot.slane %v7008_v10, 4  ;;  %v7027_v25 = vrot.slane %v7025_v6, 5  ;;  %v7035_v4 = vshll.u32 %v16157_v13, 16  ;;  %v6606_v7 = vld [vmem:[#allocation3 + $0x54] sm:$0xe] }
 0x463   : > { %9719 = vmatmul.mubr.bf16.gmra.mrb[100].mxu1 %v11080_v35  ;;  %v11001_v19 = vrot.slane %v6605_v43, 9  ;;  %v6711_v38 = vsel %vm13933_vm1, %v6709_v46, %v6710_v23  ;;  %v13212_v35 = vld [vmem:[#allocation3 + $0x58] sm:$0xf]  ;;  %v11098_v46 = vcombine.low %v16094_v29, %v16123_v47  ;;  %v13213_v6 = vld [vmem:[#allocation3 + $0x5c] sm:$0x1] }
 0x464   : > { %9726 = vmatprep.mubr.bf16.mxu1 %v11097_v48  ;;  %v6714_v8 = vrot.slane %v13212_v35, 5  ;;  %v7014_v17 = vsel %vm13548_vm12, %v7009_v24, %v7013_v40  ;;  %v7028_v9 = vsel %vm13548_vm12, %v7023_v42, %v7027_v25  ;;  %v7032_v41 = vor.u32 %v7031_v59, %v7027_v25  ;;  %v13214_v40 = vld [vmem:[#allocation3 + $0x64] sm:$0xf] }
 0x465   : > { %v6708_v53 = vsel %vm13933_vm1, %v11001_v19, %v6707_v14  ;;  %v16175_v30 = vcombine.low %v7004_v37, %v7014_v17  ;;  %v7037_v56 = vrot.slane %v7035_v4, 5  ;;  %v6717_v26 = vrot.slane %v13213_v6, 5  ;;  %v6607_v4 = vld [vmem:[#allocation3 + $0x60] sm:$0xe]  ;;  %v13215_v19 = vld [vmem:[#allocation3 + $0x68] sm:$0x1] }
 0x466   : > { %v11081_v55 = vcombine.low %v6708_v53, %v6711_v38  ;;  %v7033_v48 = vrot.slane %v7032_v41, 4  ;;  %v6716_v43 = vrot.slane %v6714_v8, 4  ;;  %v11002_v14 = vrot.slane %v6606_v7, 9  ;;  %v16191_v53 = vld [vmem:[#allocation3 + $0x7c] sm:$0xf] }
 0x467   : > { %v6721_v42 = vrot.slane %v13214_v40, 5  ;;  %v11099_v25 = vcombine.low %v16117_v12, %v16144_v21  ;;  %v6724_v38 = vrot.slane %v13215_v19, 5  ;;  %v11003_v35 = vrot.slane %v6607_v4, 9  ;;  %v16205_v40 = vld [vmem:[#allocation3 + $0x84] sm:$0xf] }
 0x468   : > { %v7038_v10 = vsel %vm13548_vm12, %v7033_v48, %v7037_v56  ;;  %v6718_v37 = vsel %vm13933_vm1, %v6716_v43, %v6717_v26  ;;  %v6715_v29 = vsel %vm13933_vm1, %v11002_v14, %v6714_v8  ;;  %v16195_v48 = vld [vmem:[#allocation3 + $0x78] sm:$0xf]  ;;  %v13217_v43 = vld [vmem:[#allocation3 + $0x74] sm:$0x1]  ;;  %v16201_v26 = vld [vmem:[#allocation3 + $0x88] sm:$0xf] }
 0x469   : > { %v16181_v23 = vcombine.low %v7028_v9, %v7038_v10  ;;  %v11082_v24 = vcombine.low %v6715_v29, %v6718_v37  ;;  %v6723_v59 = vrot.slane %v6721_v42, 4  ;;  %v13216_v9 = vld [vmem:[#allocation3 + $0x70] sm:$0xf]  ;;  %v6722_v8 = vsel %vm13933_vm1, %v11003_v35, %v6721_v42 }
 0x46a   : > { %v6728_v41 = vrot.slane %v13216_v9, 5  ;;  %v11100_v12 = vcombine.low %v16195_v48, %v16191_v53  ;;  %v6731_v7 = vrot.slane %v13217_v43, 5  ;;  %v11101_v42 = vcombine.low %v16205_v40, %v16201_v26 }
 0x46b   : > { %9727 = vmatmul.mubr.bf16.gmra.mrb[104].mxu1 %v11081_v55  ;;  %v6725_v17 = vsel %vm13933_vm1, %v6723_v59, %v6724_v38  ;;  %v16211_v38 = vld [vmem:[#allocation3 + $0x90] sm:$0xf]  ;;  %v17656_v9 = vcombine.low %v15853_v18, %v15857_v62 }
 0x46c   : > { %9734 = vmatprep.mubr.bf16.mxu1 %v11098_v46  ;;  %v11083_v55 = vcombine.low %v6722_v8, %v6725_v17  ;;  %v6730_v56 = vrot.slane %v6728_v41, 4  ;;  %v6608_v46 = vld [vmem:[#allocation3 + $0x6c] sm:$0xe] }
 0x46d   : > { %v11004_v10 = vrot.slane %v6608_v46, 9  ;;  %v7387_v46 = vld [vmem:[#allocation3 + $0x28] sm:$0xf] }
 0x46e   : > { %v6732_v6 = vsel %vm13933_vm1, %v6730_v56, %v6731_v7  ;;  %v16220_v7 = vld [vmem:[#allocation3 + $0x9c] sm:$0xf]  ;;  %v7889_v62 = vrot.slane %v7387_v46, 5 }
 0x46f   : > { %v6729_v14 = vsel %vm13933_vm1, %v11004_v10, %v6728_v41 }
 0x470   : > { %v11084_v37 = vcombine.low %v6729_v14, %v6732_v6  ;;  %v7417_v14 = vld [vmem:[#allocation3 + $0x2c] sm:$0x1] }
 0x473   : > { %9735 = vmatmul.mubr.bf16.gmra.mrb[108].mxu1 %v11082_v24 }
 0x474   : > { %9742 = vmatprep.mubr.bf16.mxu1 %v11099_v25  ;;  %v16209_v25 = vld [vmem:[#allocation3 + $0x94] sm:$0xf] }
 0x475   : > { %v11102_v17 = vcombine.low %v16211_v38, %v16209_v25 }
 0x47b   : > { %9743 = vmatmul.mubr.bf16.gmra.mrb[112].mxu1 %v11083_v55  ;;  %v16218_v55 = vld [vmem:[#allocation3 + $0xa0] sm:$0xf] }
 0x47c   : > { %9750 = vmatprep.mubr.bf16.mxu1 %v11100_v12  ;;  %v11103_v18 = vcombine.low %v16220_v7, %v16218_v55 }
 0x483   : > { %9751 = vmatmul.mubr.bf16.gmra.mrb[116].mxu1 %v11084_v37  ;;  %v7817_v37 = vld [vmem:[#allocation3 + $0x24] sm:$0xe] }
 0x484   : > { %9758 = vmatprep.mubr.bf16.mxu1 %v11101_v42  ;;  %v17657_v42 = vcombine.low %v15882_v16, %v15886_v51  ;;  %v16244_v16 = vld [vmem:[#allocation3 + $0xac] sm:$0xf]  ;;  %v16248_v51 = vld [vmem:[#allocation3 + $0xa8] sm:$0xf] }
 0x485   : > { %v11682_v29 = vpop.f32.mrb[20].mxu1 }
 0x486   : > { %v11683_v24 = vpop.f32.mrb[21].mxu1 }
 0x487   : > { %v11684_v59 = vadd.f32 %v11683_v24, %v11682_v29  ;;  %v11685_v4 = vpop.f32.mrb[22].mxu1  ;;  %v11028_v24 = vrot.slane %v7817_v37, 9  ;;  %v7419_v37 = vld [vmem:[#allocation3 + $0x44] sm:$0x1] }
 0x488   : > { %v11686_v19 = vpop.f32.mrb[23].mxu1 }
 0x489   : > { %v11687_v35 = vadd.f32 %v11686_v19, %v11685_v4  ;;  %v7891_v4 = vrot.slane %v7889_v62, 4  ;;  %v7892_v19 = vrot.slane %v7417_v14, 5 }
 0x48b   : > { %9759 = vmatmul.mubr.bf16.gmra.mrb[120].mxu1 %v17656_v9  ;;  %v16242_v9 = vsel %vm13933_vm1, %v7891_v4, %v7892_v19  ;;  %v7906_v19 = vrot.slane %v7419_v37, 5  ;;  %v7421_v37 = vld [vmem:[#allocation3 + $0x5c] sm:$0x1] }
 0x48c   : > { %9766 = vmatprep.mubr.bf16.mxu1 %v11102_v17  ;;  %v16238_v17 = vsel %vm13933_vm1, %v11028_v24, %v7889_v62  ;;  %17659 = vst [vmem:[#allocation33_spill] sm:$0xff] %v16242_v9  ;;  %v17695_v9 = vld [vmem:[#allocation30_spill] sm:$0xff] }
 0x48d   : > { %v11688_v41 = vpop.f32.mrb[24].mxu1  ;;  %17658 = vst [vmem:[#allocation32_spill] sm:$0xff] %v16238_v17 }
 0x48e   : > { %v11689_v8 = vpop.f32.mrb[25].mxu1 }
 0x48f   : > { %v11691_v12 = vpop.f32.mrb[26].mxu1  ;;  %v11690_v56 = vadd.f32 %v11689_v8, %v11688_v41  ;;  %v16253_v8 = vadd.f32 %v15756_v52, %v11687_v35  ;;  %v16260_v52 = vld [vmem:[#allocation3 + $0xb4] sm:$0xf] }
 0x490   : > { %v11692_v43 = vpop.f32.mrb[27].mxu1 }
 0x491   : > { %v16223_v10 = vadd.f32 %v11690_v56, %v15792_v58  ;;  %v11693_v6 = vadd.f32 %v11692_v43, %v11691_v12  ;;  %v16234_v58 = vadd.f32 %v15746_v49, %v11684_v59  ;;  %v11104_v49 = vcombine.low %v16248_v51, %v16244_v16  ;;  %v7391_v43 = vld [vmem:[#allocation3 + $0x40] sm:$0xf] }
 0x492   : > { %v17660_v12 = vcombine.low %v15905_v60, %v15909_v2  ;;  %v7903_v62 = vrot.slane %v7391_v43, 5  ;;  %v7273_v43 = vrot.slane %v15805_v36, 5 }
 0x493   : > { %9767 = vmatmul.mubr.bf16.gmra.mrb[124].mxu1 %v17657_v42  ;;  %v16231_v29 = vadd.f32 %v11693_v6, %v15800_v34  ;;  %v16258_v42 = vld [vmem:[#allocation3 + $0xb8] sm:$0xf] }
 0x494   : > { %9774 = vmatprep.mubr.bf16.mxu1 %v11103_v18  ;;  %v7819_v18 = vld [vmem:[#allocation3 + $0x3c] sm:$0xe]  ;;  %v7905_v4 = vrot.slane %v7903_v62, 4  ;;  %v11105_v60 = vcombine.low %v16260_v52, %v16258_v42 }
 0x495   : > { %v11030_v24 = vrot.slane %v7819_v18, 9  ;;  %v7821_v18 = vld [vmem:[#allocation3 + $0x54] sm:$0xe] }
 0x496   : > { %v16270_v35 = vsel %vm13933_vm1, %v7905_v4, %v7906_v19 }
 0x497   : > { %v16266_v2 = vsel %vm13933_vm1, %v11030_v24, %v7903_v62  ;;  %17662 = vst [vmem:[#allocation35_spill] sm:$0xff] %v16270_v35  ;;  %v16283_v24 = vld [vmem:[#allocation3 + $0xc0] sm:$0xf] }
 0x498   : > { %17661 = vst [vmem:[#allocation34_spill] sm:$0xff] %v16266_v2  ;;  %v7207_v2 = vld [vmem:[#allocation3 + $0xc] sm:$0xe] }
 0x499   : > { %v11694_v41 = vpop.f32.mrb[28].mxu1 }
 0x49a   : > { %v11695_v59 = vpop.f32.mrb[29].mxu1 }
 0x49b   : > { %9775 = vmatmul.mubr.bf16.gmra.mrb[128].mxu1 %v17660_v12  ;;  %v11696_v56 = vadd.f32 %v11695_v59, %v11694_v41  ;;  %v11697_v46 = vpop.f32.mrb[30].mxu1  ;;  %v17663_v41 = vcombine.low %v15935_v50, %v15939_v39  ;;  %v7395_v59 = vld [vmem:[#allocation3 + $0x58] sm:$0xf] }
 0x49c   : > { %9782 = vmatprep.mubr.bf16.mxu1 %v11104_v49  ;;  %v11698_v6 = vpop.f32.mrb[31].mxu1  ;;  %v7917_v62 = vrot.slane %v7395_v59, 5  ;;  %v7920_v59 = vrot.slane %v7421_v37, 5 }
 0x49d   : > { %v11699_v14 = vadd.f32 %v11698_v6, %v11697_v46  ;;  %v16278_v12 = vadd.f32 %v15790_v57, %v11696_v56  ;;  %v16280_v46 = vld [vmem:[#allocation3 + $0xc4] sm:$0xf]  ;;  %v17664_v57 = vcombine.low %v15959_v22, %v15963_v45  ;;  %v7275_v56 = vrot.slane %v7273_v43, 4 }
 0x49e   : > { %v11106_v39 = vcombine.low %v16283_v24, %v16280_v46  ;;  %v7919_v49 = vrot.slane %v7917_v62, 4 }
 0x4a0   : > { %v16303_v22 = vsel %vm13933_vm1, %v7919_v49, %v7920_v59  ;;  %v17667_v49 = vcombine.low %v15985_v31, %v15989_v54  ;;  %v7287_v31 = vrot.slane %v15875_v44, 5 }
 0x4a1   : > { %17666 = vst [vmem:[#allocation37_spill] sm:$0xff] %v16303_v22 }
 0x4a3   : > { %9783 = vmatmul.mubr.bf16.gmra.mrb[132].mxu1 %v17663_v41  ;;  %v11032_v41 = vrot.slane %v7821_v18, 9 }
 0x4a4   : > { %9790 = vmatprep.mubr.bf16.mxu1 %v11105_v60  ;;  %v16288_v60 = vadd.f32 %v15796_v20, %v11699_v14  ;;  %v17677_v14 = vld [vmem:[#allocation20_spill] sm:$0xff] }
 0x4a5   : > { %v16299_v20 = vsel %vm13933_vm1, %v11032_v41, %v7917_v62  ;;  %v7399_v62 = vld [vmem:[#allocation3 + $0x70] sm:$0xf] }
 0x4a6   : > { %17665 = vst [vmem:[#allocation36_spill] sm:$0xff] %v16299_v20  ;;  %v7422_v20 = vld [vmem:[#allocation3 + $0x68] sm:$0x1] }
 0x4a8   : > { %v11700_v6 = vpop.f32.mrb[32].mxu1 }
 0x4a9   : > { %v11701_v50 = vpop.f32.mrb[33].mxu1 }
 0x4aa   : > { %v11703_v4 = vpop.f32.mrb[34].mxu1  ;;  %v11702_v19 = vadd.f32 %v11701_v50, %v11700_v6  ;;  %v7276_v6 = vrot.slane %v15941_v28, 5  ;;  %v7280_v28 = vrot.slane %v15823_v11, 5 }
 0x4ab   : > { %9791 = vmatmul.mubr.bf16.gmra.mrb[136].mxu1 %v17664_v57  ;;  %v11704_v36 = vpop.f32.mrb[35].mxu1 }
 0x4ac   : > { %9798 = vmatprep.mubr.bf16.mxu1 %v11106_v39  ;;  %v16294_v34 = vadd.f32 %v11702_v19, %v15920_v63  ;;  %v11705_v35 = vadd.f32 %v11704_v36, %v11703_v4  ;;  %v11011_v63 = vrot.slane %v7207_v2, 9  ;;  %v7277_v37 = vsel %vm13933_vm1, %v7275_v56, %v7276_v6  ;;  %v7823_v39 = vld [vmem:[#allocation3 + $0x6c] sm:$0xe]  ;;  %v7208_v4 = vld [vmem:[#allocation3 + $0x18] sm:$0xe] }
 0x4ad   : > { %v7931_v2 = vrot.slane %v7399_v62, 5  ;;  %v7283_v19 = vrot.slane %v16008_v3, 5  ;;  %v11034_v36 = vrot.slane %v7823_v39, 9 }
 0x4ae   : > { %v16306_v45 = vadd.f32 %v11705_v35, %v15929_v15  ;;  %v7274_v18 = vsel %vm13933_vm1, %v11011_v63, %v7273_v43  ;;  %v7282_v15 = vrot.slane %v7280_v28, 4  ;;  %v7423_v35 = vld [vmem:[#allocation3 + $0x74] sm:$0x1]  ;;  %v11012_v43 = vrot.slane %v7208_v4, 9  ;;  %v13134_v63 = vld [vmem:[#allocation4 + $0x180] sm:$0xff]   ;;  %v17671_v4 = vld [vmem:[#allocation15_spill] sm:$0xff] }
 0x4af   : > { %v11123_v50 = vcombine.low %v7274_v18, %v7277_v37  ;;  %v7933_v11 = vrot.slane %v7931_v2, 4  ;;  %v7934_v56 = vrot.slane %v7423_v35, 5  ;;  %v16324_v37 = vsel %vm13933_vm1, %v11034_v36, %v7931_v2  ;;  %v17670_v35 = vld [vmem:[#allocation24_spill] sm:$0xff] }
 0x4b0   : > { %v7284_v59 = vsel %vm13933_vm1, %v7282_v15, %v7283_v19  ;;  %17668 = vst [vmem:[#allocation38_spill] sm:$0xff] %v16324_v37  ;;  %v7281_v62 = vsel %vm13933_vm1, %v11012_v43, %v7280_v28  ;;  %v7289_v2 = vrot.slane %v7287_v31, 4  ;;  %v7209_v19 = vld [vmem:[#allocation3 + $0x24] sm:$0xe]  ;;  %v17672_v36 = vld [vmem:[#allocation12_spill] sm:$0xff]  ;;  %v17673_v28 = vld [vmem:[#allocation18_spill] sm:$0xff] }
 0x4b1   : > { %v16328_v3 = vsel %vm13933_vm1, %v7933_v11, %v7934_v56  ;;  %v11124_v15 = vcombine.low %v7281_v62, %v7284_v59  ;;  %v7290_v56 = vrot.slane %v17673_v28, 5  ;;  %v11013_v59 = vrot.slane %v7209_v19, 9 }
 0x4b2   : > { %17669 = vst [vmem:[#allocation39_spill] sm:$0xff] %v16328_v3 }
 0x4b3   : > { %9799 = vmatmul.mubr.bf16.gmra.mrb[140].mxu1 %v17667_v49 }
 0x4b4   : > { %9839 = vmatprep.mubr.bf16.mxu1 %v11123_v50  ;;  %v13135_v50 = vld [vmem:[#allocation4 + $0x1c8] sm:$0xff]  }
 0x4b6   : > { %v11706_v57 = vpop.f32.mrb[36].mxu1 }
 0x4b7   : > { %v11707_v41 = vpop.f32.mrb[37].mxu1 }
 0x4b8   : > { %v11708_v54 = vadd.f32 %v11707_v41, %v11706_v57  ;;  %v11709_v6 = vpop.f32.mrb[38].mxu1  ;;  %v13136_v57 = vld [vmem:[#allocation4 + $0x188] sm:$0xff]   ;;  %v13137_v41 = vld [vmem:[#allocation4 + $0x1d0] sm:$0xff]  }
 0x4b9   : > { %v11710_v18 = vpop.f32.mrb[39].mxu1 }
 0x4ba   : > { %v11711_v44 = vadd.f32 %v11710_v18, %v11709_v6  ;;  %v16335_v39 = vadd.f32 %v17670_v35, %v11708_v54  ;;  %v7291_v54 = vsel %vm13933_vm1, %v7289_v2, %v7290_v56  ;;  %v17674_v18 = vld [vmem:[#allocation25_spill] sm:$0xff] }
 0x4bb   : > { %9840 = vmatmul.mubr.bf16.vlgmr.msra.gmra.mrb[144].mxu1 %v17671_v4  ;;  %v7294_v62 = vrot.slane %v17674_v18, 5  ;;  %v17678_v56 = vld [vmem:[#allocation17_spill] sm:$0xff] }
 0x4bc   : > { %11997 = vmatpush3.bf16.msra.mxu1 %v13134_v63  ;;  %9847 = vmatprep.mubr.bf16.mxu1 %v11124_v15  ;;  %v16339_v11 = vadd.f32 %v17672_v36, %v11711_v44  ;;  %v13138_v15 = vld [vmem:[#allocation4 + $0x190] sm:$0xff]   ;;  %v7288_v44 = vsel %vm13933_vm1, %v11013_v59, %v7287_v31  ;;  %v13139_v36 = vld [vmem:[#allocation4 + $0x1d8] sm:$0xff]   ;;  %v13141_v31 = vld [vmem:[#allocation4 + $0x1e0] sm:$0xff]  }
 0x4bd   : > { %11998 = vmatprep.subr.bf16.mxu1 %v13135_v50  ;;  %v17675_v50 = vld [vmem:[#allocation14_spill] sm:$0xff]  ;;  %v11125_v19 = vcombine.low %v7288_v44, %v7291_v54  ;;  %v7296_v2 = vrot.slane %v7294_v62, 4 }
 0x4be   : > { %v11712_v43 = vpop.f32.mrb[40].mxu1 }
 0x4bf   : > { %v11713_v6 = vpop.f32.mrb[41].mxu1 }
 0x4c0   : > { %v11715_v35 = vpop.f32.mrb[42].mxu1  ;;  %v11714_v63 = vadd.f32 %v11713_v6, %v11712_v43  ;;  %11999 = vmatpush3.bf16.msra.mxu1 %v13136_v57  ;;  %v7210_v57 = vld [vmem:[#allocation3 + $0x30] sm:$0xe]  ;;  %v17680_v6 = vld [vmem:[#allocation19_spill] sm:$0xff] }
 0x4c1   : > { %v11716_v4 = vpop.f32.mrb[43].mxu1  ;;  %12000 = vmatprep.subr.bf16.mxu1 %v13137_v41  ;;  %v13140_v43 = vld [vmem:[#allocation4 + $0x198] sm:$0xff]   ;;  %v7297_v3 = vrot.slane %v17680_v6, 5 }
 0x4c2   : > { %v16348_v28 = vadd.f32 %v11714_v63, %v17675_v50  ;;  %v11717_v49 = vadd.f32 %v11716_v4, %v11715_v35  ;;  %v11014_v63 = vrot.slane %v7210_v57, 9  ;;  %v13143_v50 = vld [vmem:[#allocation4 + $0x1e8] sm:$0xff]   ;;  %v17683_v57 = vld [vmem:[#allocation22_spill] sm:$0xff] }
 0x4c3   : > { %9848 = vmatmul.mubr.bf16.gmra.mrb[148].mxu1 %v17677_v14  ;;  %v7298_v54 = vsel %vm13933_vm1, %v7296_v2, %v7297_v3  ;;  %v7301_v14 = vrot.slane %v15993_v5, 5  ;;  %v7211_v5 = vld [vmem:[#allocation3 + $0x3c] sm:$0xe]  ;;  %v13144_v2 = vld [vmem:[#allocation4 + $0x1a8] sm:$0xff]  }
 0x4c4   : > { %17676 = vst [vmem:[#allocation24_spill] sm:$0xff] %v16348_v28  ;;  %v16352_v18 = vadd.f32 %v11717_v49, %v17678_v56  ;;  %9855 = vmatprep.mubr.bf16.mxu1 %v11125_v19  ;;  %12001 = vmatpush3.bf16.msra.mxu1 %v13138_v15  ;;  %v13142_v49 = vld [vmem:[#allocation4 + $0x1a0] sm:$0xff]   ;;  %v7295_v15 = vsel %vm13933_vm1, %v11014_v63, %v7294_v62  ;;  %v17681_v56 = vld [vmem:[#allocation13_spill] sm:$0xff]  ;;  %v13145_v62 = vld [vmem:[#allocation4 + $0x1f0] sm:$0xff]  }
 0x4c5   : > { %12002 = vmatprep.subr.bf16.mxu1 %v13139_v36  ;;  %v11126_v19 = vcombine.low %v7295_v15, %v7298_v54  ;;  %v7303_v3 = vrot.slane %v7301_v14, 4  ;;  %v11015_v54 = vrot.slane %v7211_v5, 9  ;;  %v17690_v5 = vld [vmem:[#allocation28_spill] sm:$0xff]  ;;  %v7429_v28 = vld [vmem:[#allocation3 + $0xbc] sm:$0x1] }
 0x4c6   : > { %17679 = vst [vmem:[#allocation15_spill] sm:$0xff] %v16352_v18  ;;  %v11718_v41 = vpop.f32.mrb[44].mxu1 }
 0x4c7   : > { %v11719_v59 = vpop.f32.mrb[45].mxu1 }
 0x4c8   : > { %v11720_v35 = vadd.f32 %v11719_v59, %v11718_v41  ;;  %v11721_v4 = vpop.f32.mrb[46].mxu1  ;;  %12003 = vmatpush3.bf16.msra.mxu1 %v13140_v43  ;;  %v17684_v43 = vld [vmem:[#allocation16_spill] sm:$0xff]  ;;  %v17686_v59 = vld [vmem:[#allocation11_spill] sm:$0xff] }
 0x4c9   : > { %v11722_v44 = vpop.f32.mrb[47].mxu1  ;;  %12004 = vmatprep.subr.bf16.mxu1 %v13141_v31  ;;  %v7304_v37 = vrot.slane %v17686_v59, 5 }
 0x4ca   : > { %v11723_v36 = vadd.f32 %v11722_v44, %v11721_v4  ;;  %v16361_v6 = vadd.f32 %v17681_v56, %v11720_v35  ;;  %v17687_v4 = vld [vmem:[#allocation21_spill] sm:$0xff] }
 0x4cb   : > { %9856 = vmatmul.mubr.bf16.gmra.mrb[152].mxu1 %v17683_v57  ;;  %v7305_v35 = vsel %vm13933_vm1, %v7303_v3, %v7304_v37  ;;  %v7308_v44 = vrot.slane %v17687_v4, 5  ;;  %v7212_v37 = vld [vmem:[#allocation3 + $0x48] sm:$0xe]  ;;  %v7315_v3 = vrot.slane %v16105_v33, 5 }
 0x4cc   : > { %17682 = vst [vmem:[#allocation12_spill] sm:$0xff] %v16361_v6  ;;  %9863 = vmatprep.mubr.bf16.mxu1 %v11126_v19  ;;  %12005 = vmatpush3.bf16.msra.mxu1 %v13142_v49  ;;  %v16365_v41 = vadd.f32 %v17684_v43, %v11723_v36  ;;  %v13146_v49 = vld [vmem:[#allocation4 + $0x1b0] sm:$0xff]   ;;  %v7302_v36 = vsel %vm13933_vm1, %v11015_v54, %v7301_v14  ;;  %v16381_v14 = vld [vmem:[#allocation4 + $0x200] sm:$0xff]  }
 0x4cd   : > { %12006 = vmatprep.subr.bf16.mxu1 %v13143_v50  ;;  %v13147_v50 = vld [vmem:[#allocation4 + $0x1f8] sm:$0xff]   ;;  %v11127_v43 = vcombine.low %v7302_v36, %v7305_v35  ;;  %v7310_v59 = vrot.slane %v7308_v44, 4  ;;  %v7317_v33 = vrot.slane %v7315_v3, 4 }
 0x4ce   : > { %17685 = vst [vmem:[#allocation18_spill] sm:$0xff] %v16365_v41  ;;  %v11724_v31 = vpop.f32.mrb[48].mxu1 }
 0x4cf   : > { %v11725_v63 = vpop.f32.mrb[49].mxu1 }
 0x4d0   : > { %v16371_v15 = vadd.f32 %v11725_v63, %v11724_v31  ;;  %v11727_v19 = vpop.f32.mrb[50].mxu1  ;;  %12007 = vmatpush3.bf16.msra.mxu1 %v13144_v2  ;;  %v7322_v31 = vrot.slane %v16123_v47, 5  ;;  %v13148_v2 = vld [vmem:[#allocation4 + $0x1b8] sm:$0xff]   ;;  %v7329_v47 = vrot.slane %v16144_v21, 5 }
 0x4d1   : > { %v11728_v56 = vpop.f32.mrb[51].mxu1  ;;  %12008 = vmatprep.subr.bf16.mxu1 %v13145_v62  ;;  %v17691_v63 = vld [vmem:[#allocation29_spill] sm:$0xff] }
 0x4d2   : > { %17688 = vst [vmem:[#allocation25_spill] sm:$0xff] %v16371_v15  ;;  %v16375_v57 = vadd.f32 %v11728_v56, %v11727_v19  ;;  %v7311_v4 = vrot.slane %v17691_v63, 5  ;;  %v11016_v19 = vrot.slane %v7212_v37, 9  ;;  %v7214_v63 = vld [vmem:[#allocation3 + $0x60] sm:$0xe] }
 0x4d3   : > { %9864 = vmatmul.mubr.bf16.gmra.mrb[156].mxu1 %v17690_v5  ;;  %v7324_v5 = vrot.slane %v7322_v31, 4 }
 0x4d4   : > { %17689 = vst [vmem:[#allocation14_spill] sm:$0xff] %v16375_v57  ;;  %9871 = vmatprep.mubr.bf16.mxu1 %v11127_v43  ;;  %12009 = vmatpush3.bf16.msra.mxu1 %v13146_v49  ;;  %v7312_v35 = vsel %vm13933_vm1, %v7310_v59, %v7311_v4  ;;  %v7213_v43 = vld [vmem:[#allocation3 + $0x54] sm:$0xe]  ;;  %v17694_v59 = vld [vmem:[#allocation31_spill] sm:$0xff] }
 0x4d5   : > { %12010 = vmatprep.subr.bf16.mxu1 %v13147_v50  ;;  %v7309_v50 = vsel %vm13933_vm1, %v11016_v19, %v7308_v44  ;;  %v7318_v4 = vrot.slane %v17694_v59, 5  ;;  %v11017_v21 = vrot.slane %v7213_v43, 9  ;;  %v11018_v19 = vrot.slane %v7214_v63, 9  ;;  %v7820_v43 = vld [vmem:[#allocation3 + $0x48] sm:$0xe] }
 0x4d6   : > { %v11730_v62 = vpop.f32.mrb[52].mxu1  ;;  %v11128_v22 = vcombine.low %v7309_v50, %v7312_v35  ;;  %v11031_v57 = vrot.slane %v7820_v43, 9 }
 0x4d7   : > { %v11731_v54 = vpop.f32.mrb[53].mxu1  ;;  %v7319_v44 = vsel %vm13933_vm1, %v7317_v33, %v7318_v4  ;;  %v16410_v33 = vsel %vm13933_vm1, %v11018_v19, %v7322_v31  ;;  %v7822_v4 = vld [vmem:[#allocation3 + $0x60] sm:$0xe] }
 0x4d8   : > { %v16385_v56 = vadd.f32 %v11731_v54, %v11730_v62  ;;  %v11733_v36 = vpop.f32.mrb[54].mxu1  ;;  %12011 = vmatpush3.bf16.msra.mxu1 %v13148_v2  ;;  %v7325_v62 = vrot.slane %v16142_v0, 5  ;;  %v7215_v54 = vld [vmem:[#allocation3 + $0x6c] sm:$0xe]  ;;  %v7397_v0 = vld [vmem:[#allocation3 + $0x64] sm:$0xf] }
 0x4d9   : > { %v11734_v49 = vpop.f32.mrb[55].mxu1  ;;  %12472 = vmatprep.subr.bf16.mxu1 %v16381_v14  ;;  %v16397_v2 = vld [vmem:[#allocation3 + $0x4c] sm:$0xf]  ;;  %v11019_v59 = vrot.slane %v7215_v54, 9  ;;  %v11033_v41 = vrot.slane %v7822_v4, 9  ;;  %v7924_v6 = vrot.slane %v7397_v0, 5 }
 0x4da   : > { %17692 = vst [vmem:[#allocation20_spill] sm:$0xff] %v16385_v56  ;;  %v16391_v37 = vadd.f32 %v11734_v49, %v11733_v36  ;;  %v16403_v35 = vsel %vm13933_vm1, %v7324_v5, %v7325_v62  ;;  %v7331_v36 = vrot.slane %v7329_v47, 4  ;;  %v7420_v49 = vld [vmem:[#allocation3 + $0x50] sm:$0x1]  ;;  %v7332_v5 = vrot.slane %v16157_v13, 5 }
 0x4db   : > { %9872 = vmatmul.mubr.bf16.gmra.mrb[160].mxu1 %v17695_v9  ;;  %v7401_v9 = vld [vmem:[#allocation3 + $0x7c] sm:$0xf]  ;;  %v7910_v63 = vrot.slane %v16397_v2, 5  ;;  %v16419_v56 = vsel %vm13933_vm1, %v11019_v59, %v7329_v47  ;;  %v7405_v59 = vld [vmem:[#allocation3 + $0x94] sm:$0xf] }
 0x4dc   : > { %17693 = vst [vmem:[#allocation17_spill] sm:$0xff] %v16391_v37  ;;  %9879 = vmatprep.mubr.bf16.mxu1 %v11128_v22  ;;  %v7316_v22 = vsel %vm13933_vm1, %v11017_v21, %v7315_v3  ;;  %v7424_v3 = vld [vmem:[#allocation3 + $0x80] sm:$0x1]  ;;  %v7403_v21 = vld [vmem:[#allocation3 + $0x88] sm:$0xf]  ;;  %v16425_v13 = vsel %vm13933_vm1, %v7331_v36, %v7332_v5  ;;  %v7913_v37 = vrot.slane %v7420_v49, 5 }
 0x4dd   : > { %v11129_v54 = vcombine.low %v7316_v22, %v7319_v44  ;;  %v7824_v44 = vld [vmem:[#allocation3 + $0x78] sm:$0xe]  ;;  %v7912_v15 = vrot.slane %v7910_v63, 4  ;;  %v7825_v36 = vld [vmem:[#allocation3 + $0x84] sm:$0xe]  ;;  %v7926_v49 = vrot.slane %v7924_v6, 4 }
 0x4de   : > { %v11736_v17 = vpop.f32.mrb[56].mxu1  ;;  %v7425_v5 = vld [vmem:[#allocation3 + $0x8c] sm:$0x1]  ;;  %v11035_v4 = vrot.slane %v7824_v44, 9  ;;  %v7941_v0 = vrot.slane %v7424_v3, 5  ;;  %v7952_v3 = vrot.slane %v7405_v59, 5 }
 0x4df   : > { %v11737_v50 = vpop.f32.mrb[57].mxu1  ;;  %v16437_v43 = vsel %vm13933_vm1, %v7912_v15, %v7913_v37  ;;  %v7948_v62 = vrot.slane %v7425_v5, 5 }
 0x4e0   : > { %v16421_v31 = vadd.f32 %v11737_v50, %v11736_v17  ;;  %v11739_v19 = vpop.f32.mrb[58].mxu1  ;;  %v16432_v17 = vsel %vm13933_vm1, %v11031_v57, %v7910_v63  ;;  %v7927_v50 = vrot.slane %v7422_v20, 5  ;;  %17699 = vst [vmem:[#allocation16_spill] sm:$0xff] %v16437_v43  ;;  %v16443_v20 = vsel %vm13933_vm1, %v11033_v41, %v7924_v6  ;;  %v7407_v63 = vld [vmem:[#allocation3 + $0xa0] sm:$0xf] }
 0x4e1   : > { %v11740_v22 = vpop.f32.mrb[59].mxu1  ;;  %17698 = vst [vmem:[#allocation22_spill] sm:$0xff] %v16432_v17  ;;  %17700 = vst [vmem:[#allocation11_spill] sm:$0xff] %v16443_v20  ;;  %v7827_v43 = vld [vmem:[#allocation3 + $0x9c] sm:$0xe]  ;;  %v7954_v59 = vrot.slane %v7952_v3, 4 }
 0x4e2   : > { %17696 = vst [vmem:[#allocation19_spill] sm:$0xff] %v16421_v31  ;;  %v16428_v47 = vadd.f32 %v11740_v22, %v11739_v19  ;;  %v7938_v31 = vrot.slane %v7401_v9, 5  ;;  %v7426_v19 = vld [vmem:[#allocation3 + $0x98] sm:$0x1]  ;;  %v7945_v9 = vrot.slane %v7403_v21, 5  ;;  %v16447_v15 = vsel %vm13933_vm1, %v7926_v49, %v7927_v50 }
 0x4e3   : > { %9880 = vmatmul.mubr.bf16.gmra.mrb[164].mxu1 %v16148_v61  ;;  %v7826_v61 = vld [vmem:[#allocation3 + $0x90] sm:$0xe]  ;;  %17701 = vst [vmem:[#allocation21_spill] sm:$0xff] %v16447_v15  ;;  %v7409_v22 = vld [vmem:[#allocation3 + $0xac] sm:$0xf] }
 0x4e4   : > { %17697 = vst [vmem:[#allocation13_spill] sm:$0xff] %v16428_v47  ;;  %9887 = vmatprep.mubr.bf16.mxu1 %v11129_v54  ;;  %v7940_v57 = vrot.slane %v7938_v31, 4  ;;  %v16451_v37 = vsel %vm13933_vm1, %v11035_v4, %v7938_v31  ;;  %v11036_v54 = vrot.slane %v7825_v36, 9  ;;  %v7947_v21 = vrot.slane %v7945_v9, 4  ;;  %v7427_v49 = vld [vmem:[#allocation3 + $0xa4] sm:$0x1] }
 0x4e5   : > { %17702 = vst [vmem:[#allocation28_spill] sm:$0xff] %v16451_v37  ;;  %v7428_v17 = vld [vmem:[#allocation3 + $0xb0] sm:$0x1]  ;;  %v11037_v36 = vrot.slane %v7826_v61, 9  ;;  %v7955_v4 = vrot.slane %v7426_v19, 5  ;;  %v7049_v19 = vshll.u32 %v16191_v53, 16 }
 0x4e6   : > { %v11742_v44 = vpop.f32.mrb[60].mxu1  ;;  %v16457_v41 = vsel %vm13933_vm1, %v7940_v57, %v7941_v0  ;;  %v7411_v6 = vld [vmem:[#allocation3 + $0xb8] sm:$0xf]  ;;  %v16465_v0 = vsel %vm13933_vm1, %v11036_v54, %v7945_v9  ;;  %v16469_v5 = vsel %vm13933_vm1, %v7947_v21, %v7948_v62  ;;  %v7959_v57 = vrot.slane %v7407_v63, 5  ;;  %v7828_v15 = vld [vmem:[#allocation3 + $0xa8] sm:$0xe] }
 0x4e7   : > { %17703 = vst [vmem:[#allocation29_spill] sm:$0xff] %v16457_v41  ;;  %v11743_v50 = vpop.f32.mrb[61].mxu1  ;;  %17704 = vst [vmem:[#allocation31_spill] sm:$0xff] %v16465_v0  ;;  %v7413_v31 = vld [vmem:[#allocation3 + $0xc4] sm:$0xf]  ;;  %v16475_v61 = vsel %vm13933_vm1, %v11037_v36, %v7952_v3  ;;  %v16479_v9 = vsel %vm13933_vm1, %v7954_v59, %v7955_v4  ;;  %v11038_v54 = vrot.slane %v7827_v43, 9  ;;  %v17708_v43 = vcombine.low %v16410_v33, %v16403_v35 }
 0x4e8   : > { %v16461_v47 = vadd.f32 %v11743_v50, %v11742_v44  ;;  %v11745_v18 = vpop.f32.mrb[62].mxu1  ;;  %17705 = vst [vmem:[#allocation30_spill] sm:$0xff] %v16469_v5  ;;  %17706 = vst [vmem:[#allocation40_spill] sm:$0xff] %v16475_v61  ;;  %v7961_v63 = vrot.slane %v7959_v57, 4  ;;  %v7962_v21 = vrot.slane %v7427_v49, 5  ;;  %v11039_v36 = vrot.slane %v7828_v15, 9 }
 0x4e9   : > { %v11746_v20 = vpop.f32.mrb[63].mxu1  ;;  %17707 = vst [vmem:[#allocation41_spill] sm:$0xff] %v16479_v9  ;;  %v7829_v50 = vld [vmem:[#allocation3 + $0xb4] sm:$0xe]  ;;  %v7830_v41 = vld [vmem:[#allocation3 + $0xc0] sm:$0xe] }
 0x4ea   : > { %v16481_v44 = vadd.f32 %v11746_v20, %v11745_v18  ;;  %v7430_v3 = vld [vmem:[#allocation3 + $0xc8] sm:$0x1]  ;;  %v7966_v5 = vrot.slane %v7409_v22, 5  ;;  %v7973_v0 = vrot.slane %v7411_v6, 5  ;;  %v16492_v18 = vsel %vm13933_vm1, %v11038_v54, %v7959_v57 }
 0x4eb   : > { %9888 = vmatmul.mubr.bf16.gmra.mrb[168].mxu1 %v16164_v27  ;;  %17709 = vst [vmem:[#allocation42_spill] sm:$0xff] %v16492_v18  ;;  %v16496_v20 = vsel %vm13933_vm1, %v7961_v63, %v7962_v21  ;;  %v7969_v49 = vrot.slane %v7428_v17, 5  ;;  %v7980_v27 = vrot.slane %v7413_v31, 5  ;;  %v11040_v22 = vrot.slane %v7829_v50, 9 }
 0x4ec   : > { %9895 = vmatprep.mubr.bf16.mxu1 %v17708_v43  ;;  %17710 = vst [vmem:[#allocation43_spill] sm:$0xff] %v16496_v20  ;;  %v7968_v15 = vrot.slane %v7966_v5, 4  ;;  %v11041_v6 = vrot.slane %v7830_v41, 9  ;;  %v7975_v62 = vrot.slane %v7973_v0, 4  ;;  %v7976_v35 = vrot.slane %v7429_v28, 5 }
 0x4ed   : > { %v7982_v33 = vrot.slane %v7980_v27, 4  ;;  %v7983_v43 = vrot.slane %v7430_v3, 5  ;;  %v16502_v57 = vsel %vm13933_vm1, %v11039_v36, %v7966_v5  ;;  %v16510_v31 = vsel %vm13933_vm1, %v11040_v22, %v7973_v0  ;;  %v6816_v3 = vld [vmem:[#allocation3 + $0x80] sm:$0x1] }
 0x4ee   : > { %v11748_v4 = vpop.f32.mrb[64].mxu1  ;;  %17711 = vst [vmem:[#allocation44_spill] sm:$0xff] %v16502_v57  ;;  %v16506_v17 = vsel %vm13933_vm1, %v7968_v15, %v7969_v49  ;;  %17713 = vst [vmem:[#allocation46_spill] sm:$0xff] %v16510_v31  ;;  %v16514_v41 = vsel %vm13933_vm1, %v11041_v6, %v7980_v27  ;;  %v16522_v5 = vsel %vm13933_vm1, %v7975_v62, %v7976_v35  ;;  %v17717_v62 = vrot.slane %v16191_v53, 5  ;;  %v7217_v31 = vld [vmem:[#allocation3 + $0x84] sm:$0xe] }
 0x4ef   : > { %v11749_v9 = vpop.f32.mrb[65].mxu1  ;;  %17712 = vst [vmem:[#allocation45_spill] sm:$0xff] %v16506_v17  ;;  %17714 = vst [vmem:[#allocation47_spill] sm:$0xff] %v16514_v41  ;;  %v16526_v21 = vsel %vm13933_vm1, %v7982_v33, %v7983_v43  ;;  %v11131_v50 = vcombine.low %v16419_v56, %v16425_v13  ;;  %v7051_v15 = vrot.slane %v7049_v19, 5  ;;  %v17718_v22 = vshrl.u32 %v16191_v53, 16 }
 0x4f0   : > { %v16516_v28 = vadd.f32 %v11749_v9, %v11748_v4  ;;  %v11751_v54 = vpop.f32.mrb[66].mxu1  ;;  %17715 = vst [vmem:[#allocation48_spill] sm:$0xff] %v16522_v5  ;;  %17716 = vst [vmem:[#allocation49_spill] sm:$0xff] %v16526_v21  ;;  %v7338_v27 = vrot.slane %v17717_v62, 4  ;;  %v7216_v4 = vld [vmem:[#allocation3 + $0x78] sm:$0xe] }
 0x4f1   : > { %v11752_v0 = vpop.f32.mrb[67].mxu1  ;;  %v7055_v6 = vrot.slane %v17718_v22, 4  ;;  %v17719_v56 = vshrl.u32 %v16195_v48, 16  ;;  %v17720_v35 = vshll.u32 %v16195_v48, 16  ;;  %v7339_v43 = vrot.slane %v6816_v3, 5 }
 0x4f2   : > { %v16534_v49 = vadd.f32 %v11752_v0, %v11751_v54  ;;  %v7077_v54 = vshrl.u32 %v16201_v26, 16  ;;  %v7343_v0 = vrot.slane %v16201_v26, 5  ;;  %v11020_v19 = vrot.slane %v7216_v4, 9 }
 0x4f3   : > { %9896 = vmatmul.mubr.bf16.gmra.mrb[172].mxu1 %v16175_v30  ;;  %v7042_v13 = vrot.slane %v17719_v56, 4  ;;  %v7045_v33 = vrot.slane %v17720_v35, 5  ;;  %v7340_v22 = vsel %vm13933_vm1, %v7338_v27, %v7339_v43  ;;  %v7056_v36 = vor.u32 %v7055_v6, %v7051_v15  ;;  %v6817_v6 = vld [vmem:[#allocation3 + $0x8c] sm:$0x1] }
 0x4f4   : > { %9903 = vmatprep.mubr.bf16.mxu1 %v11131_v50  ;;  %v7073_v30 = vshll.u32 %v16201_v26, 16  ;;  %v7064_v9 = vshrl.u32 %v16205_v40, 16  ;;  %v7067_v56 = vshll.u32 %v16205_v40, 16  ;;  %v17721_v63 = vrot.slane %v16191_v53, 5 }
 0x4f5   : > { %v7046_v4 = vor.u32 %v7045_v33, %v7042_v13  ;;  %v7059_v21 = vshll.u32 %v6816_v3, 16  ;;  %v7345_v43 = vrot.slane %v7343_v0, 4  ;;  %v7057_v5 = vrot.slane %v7056_v36, 4 }
 0x4f6   : > { %v11754_v62 = vpop.f32.mrb[68].mxu1  ;;  %v7337_v59 = vsel %vm13933_vm1, %v11020_v19, %v17721_v63  ;;  %v7075_v40 = vrot.slane %v7073_v30, 5  ;;  %v7079_v17 = vrot.slane %v7077_v54, 4  ;;  %v7346_v63 = vrot.slane %v6817_v6, 5 }
 0x4f7   : > { %v11755_v48 = vpop.f32.mrb[69].mxu1  ;;  %v11132_v27 = vcombine.low %v7337_v59, %v7340_v22  ;;  %v7047_v53 = vrot.slane %v7046_v4, 4  ;;  %v7061_v57 = vrot.slane %v7059_v21, 5  ;;  %v7101_v3 = vshrl.u32 %v16209_v25, 16 }
 0x4f8   : > { %v16552_v35 = vadd.f32 %v11755_v48, %v11754_v62  ;;  %v11757_v50 = vpop.f32.mrb[70].mxu1  ;;  %v7066_v62 = vrot.slane %v7064_v9, 4  ;;  %v7069_v48 = vrot.slane %v7067_v56, 5  ;;  %v11021_v13 = vrot.slane %v7217_v31, 9 }
 0x4f9   : > { %v11758_v41 = vpop.f32.mrb[71].mxu1  ;;  %v7350_v59 = vrot.slane %v16209_v25, 5  ;;  %v7347_v36 = vsel %vm13933_vm1, %v7345_v43, %v7346_v63  ;;  %v7080_v9 = vor.u32 %v7079_v17, %v7075_v40  ;;  %v7088_v54 = vshrl.u32 %v16211_v38, 16  ;;  %v7218_v63 = vld [vmem:[#allocation3 + $0x90] sm:$0xe] }
 0x4fa   : > { %v16558_v26 = vadd.f32 %v11758_v41, %v11757_v50  ;;  %v7062_v41 = vsel %vm13548_vm12, %v7057_v5, %v7061_v57  ;;  %v7091_v21 = vshll.u32 %v16211_v38, 16  ;;  %v7344_v31 = vsel %vm13933_vm1, %v11021_v13, %v7343_v0 }
 0x4fb   : > { %9904 = vmatmul.mubr.bf16.gmra.mrb[176].mxu1 %v16181_v23  ;;  %v7097_v23 = vshll.u32 %v16209_v25, 16  ;;  %v7052_v57 = vsel %vm13548_vm12, %v7047_v53, %v7051_v15  ;;  %v7070_v5 = vor.u32 %v7069_v48, %v7066_v62  ;;  %v7083_v56 = vshll.u32 %v6817_v6, 16  ;;  %v6818_v25 = vld [vmem:[#allocation3 + $0x98] sm:$0x1] }
 0x4fc   : > { %9911 = vmatprep.mubr.bf16.mxu1 %v11132_v27  ;;  %v11116_v17 = vcombine.low %v7052_v57, %v7062_v41  ;;  %v11133_v4 = vcombine.low %v7344_v31, %v7347_v36  ;;  %v7352_v27 = vrot.slane %v7350_v59, 4  ;;  %v7081_v38 = vrot.slane %v7080_v9, 4 }
 0x4fd   : > { %v16578_v20 = vrot.slane %v7097_v23, 5  ;;  %v7103_v0 = vrot.slane %v7101_v3, 4  ;;  %v7090_v13 = vrot.slane %v7088_v54, 4  ;;  %v7085_v15 = vrot.slane %v7083_v56, 5 }
 0x4fe   : > { %v11760_v33 = vpop.f32.mrb[72].mxu1  ;;  %v7353_v62 = vrot.slane %v6818_v25, 5  ;;  %v7125_v6 = vshrl.u32 %v16218_v55, 16  ;;  %v11022_v48 = vrot.slane %v7218_v63, 9  ;;  %v7357_v53 = vrot.slane %v16218_v55, 5 }
 0x4ff   : > { %v11761_v19 = vpop.f32.mrb[73].mxu1  ;;  %v7086_v36 = vsel %vm13548_vm12, %v7081_v38, %v7085_v15  ;;  %v7104_v3 = vor.u32 %v7103_v0, %v16578_v20  ;;  %v7121_v23 = vshll.u32 %v16218_v55, 16  ;;  %v7112_v54 = vshrl.u32 %v16220_v7, 16  ;;  %v6819_v55 = vld [vmem:[#allocation3 + $0xa4] sm:$0x1] }
 0x500   : > { %v16572_v22 = vadd.f32 %v11761_v19, %v11760_v33  ;;  %v11763_v30 = vpop.f32.mrb[74].mxu1  ;;  %v7093_v33 = vrot.slane %v7091_v21, 5  ;;  %v7071_v19 = vrot.slane %v7070_v5, 4  ;;  %v7354_v9 = vsel %vm13933_vm1, %v7352_v27, %v7353_v62  ;;  %v7219_v15 = vld [vmem:[#allocation3 + $0x9c] sm:$0xe] }
 0x501   : > { %v11764_v50 = vpop.f32.mrb[75].mxu1  ;;  %v7115_v21 = vshll.u32 %v16220_v7, 16  ;;  %v7359_v63 = vrot.slane %v7357_v53, 4  ;;  %v7105_v7 = vrot.slane %v7104_v3, 4  ;;  %v16598_v62 = vrot.slane %v7121_v23, 5 }
 0x502   : > { %v16576_v43 = vadd.f32 %v11764_v50, %v11763_v30  ;;  %v7351_v30 = vsel %vm13933_vm1, %v11022_v48, %v7350_v59  ;;  %v7076_v56 = vsel %vm13548_vm12, %v7071_v19, %v7075_v40  ;;  %v7094_v50 = vor.u32 %v7093_v33, %v7090_v13 }
 0x503   : > { %9912 = vmatmul.mubr.bf16.gmra.mrb[180].mxu1 %v11116_v17  ;;  %v7107_v17 = vshll.u32 %v6818_v25, 16  ;;  %v11117_v27 = vcombine.low %v7076_v56, %v7086_v36  ;;  %v11134_v38 = vcombine.low %v7351_v30, %v7354_v9  ;;  %v7127_v59 = vrot.slane %v7125_v6, 4 }
 0x504   : > { %9919 = vmatprep.mubr.bf16.mxu1 %v11133_v4  ;;  %v7114_v48 = vrot.slane %v7112_v54, 4  ;;  %v7139_v40 = vshll.u32 %v16248_v51, 16  ;;  %v7095_v25 = vrot.slane %v7094_v50, 4  ;;  %v7360_v33 = vrot.slane %v6819_v55, 5 }
 0x505   : > { %v7109_v13 = vrot.slane %v7107_v17, 5  ;;  %v7149_v19 = vshrl.u32 %v16244_v16, 16  ;;  %v11023_v36 = vrot.slane %v7219_v15, 9  ;;  %v7145_v9 = vshll.u32 %v16244_v16, 16 }
 0x506   : > { %v11766_v41 = vpop.f32.mrb[76].mxu1  ;;  %v7361_v23 = vsel %vm13933_vm1, %v7359_v63, %v7360_v33  ;;  %v7128_v54 = vor.u32 %v7127_v59, %v16598_v62  ;;  %v7141_v30 = vrot.slane %v7139_v40, 5  ;;  %v6820_v59 = vld [vmem:[#allocation3 + $0xb0] sm:$0x1] }
 0x507   : > { %v11767_v31 = vpop.f32.mrb[77].mxu1  ;;  %v7110_v6 = vsel %vm13548_vm12, %v7105_v7, %v7109_v13  ;;  %v16615_v13 = vrot.slane %v7145_v9, 5  ;;  %v7173_v9 = vshrl.u32 %v16258_v42, 16 }
 0x508   : > { %v16592_v57 = vadd.f32 %v11767_v31, %v11766_v41  ;;  %v11769_v5 = vpop.f32.mrb[78].mxu1  ;;  %v7117_v41 = vrot.slane %v7115_v21, 5  ;;  %v7136_v31 = vshrl.u32 %v16248_v51, 16  ;;  %v7364_v51 = vrot.slane %v16244_v16, 5 }
 0x509   : > { %v11770_v4 = vpop.f32.mrb[79].mxu1  ;;  %v7151_v16 = vrot.slane %v7149_v19, 4 }
 0x50a   : > { %v16596_v0 = vadd.f32 %v11770_v4, %v11769_v5  ;;  %v7138_v21 = vrot.slane %v7136_v31, 4  ;;  %v7118_v56 = vor.u32 %v7117_v41, %v7114_v48  ;;  %v7100_v4 = vsel %vm13548_vm12, %v7095_v25, %v16578_v20  ;;  %v17722_v31 = vld [vmem:[#allocation10_spill] sm:$0xff]  ;;  %v17723_v20 = vld [vmem:[#allocation27_spill] sm:$0xff] }
 0x50b   : > { %9920 = vmatmul.mubr.bf16.gmra.mrb[184].mxu1 %v11117_v27  ;;  %v7358_v27 = vsel %vm13933_vm1, %v11023_v36, %v7357_v53  ;;  %v11118_v63 = vcombine.low %v7100_v4, %v7110_v6  ;;  %v7129_v41 = vrot.slane %v7128_v54, 4  ;;  %v7366_v33 = vrot.slane %v7364_v51, 4 }
 0x50c   : > { %9927 = vmatprep.mubr.bf16.mxu1 %v11134_v38  ;;  %v7131_v38 = vshll.u32 %v6819_v55, 16  ;;  %v11135_v15 = vcombine.low %v7358_v27, %v7361_v23  ;;  %v7119_v53 = vrot.slane %v7118_v56, 4  ;;  %v7367_v36 = vrot.slane %v6820_v59, 5 }
 0x50d   : > { %v7160_v6 = vshrl.u32 %v16260_v52, 16  ;;  %v7142_v19 = vor.u32 %v7141_v30, %v7138_v21  ;;  %v7152_v23 = vor.u32 %v7151_v16, %v16615_v13  ;;  %v7169_v4 = vshll.u32 %v16258_v42, 16 }
 0x50e   : > { %v11788_v3 = vpop.f32.mrb[80].mxu1  ;;  %v7133_v55 = vrot.slane %v7131_v38, 5  ;;  %v7163_v56 = vshll.u32 %v16260_v52, 16  ;;  %v7184_v27 = vshrl.u32 %v16283_v24, 16  ;;  %v7371_v21 = vrot.slane %v16258_v42, 5 }
 0x50f   : > { %v11789_v5 = vpop.f32.mrb[81].mxu1  ;;  %v7187_v30 = vshll.u32 %v16283_v24, 16  ;;  %v7124_v16 = vsel %vm13548_vm12, %v7119_v53, %v16598_v62  ;;  %v6821_v24 = vld [vmem:[#allocation3 + $0xbc] sm:$0x1] }
 0x510   : > { %v11790_v50 = vadd.f32 %v11789_v5, %v11788_v3  ;;  %v11791_v17 = vpop.f32.mrb[82].mxu1  ;;  %v7220_v3 = vld [vmem:[#allocation3 + $0xa8] sm:$0xe]  ;;  %v7134_v54 = vsel %vm13548_vm12, %v7129_v41, %v7133_v55  ;;  %v16643_v55 = vrot.slane %v7169_v4, 5  ;;  %v7373_v53 = vrot.slane %v7371_v21, 4 }
 0x511   : > { %v11792_v7 = vpop.f32.mrb[83].mxu1  ;;  %v11119_v41 = vcombine.low %v7124_v16, %v7134_v54  ;;  %v16657_v4 = vrot.slane %v7187_v30, 5 }
 0x512   : > { %v16618_v40 = vadd.f32 %v11790_v50, %v17722_v31  ;;  %v11793_v48 = vadd.f32 %v11792_v7, %v11791_v17  ;;  %v11024_v50 = vrot.slane %v7220_v3, 9  ;;  %v7368_v17 = vsel %vm13933_vm1, %v7366_v33, %v7367_v36 }
 0x513   : > { %9928 = vmatmul.mubr.bf16.gmra.mrb[188].mxu1 %v11118_v63  ;;  %v7155_v7 = vshll.u32 %v6820_v59, 16  ;;  %v7143_v33 = vrot.slane %v7142_v19, 4  ;;  %v7153_v3 = vrot.slane %v7152_v23, 4  ;;  %v7175_v36 = vrot.slane %v7173_v9, 4  ;;  %v16650_v23 = vld [vmem:[#allocation3 + $0x1c] sm:$0xf] }
 0x514   : > { %v16621_v25 = vadd.f32 %v11793_v48, %v17723_v20  ;;  %9935 = vmatprep.mubr.bf16.mxu1 %v11135_v15  ;;  %v7365_v31 = vsel %vm13933_vm1, %v11024_v50, %v7364_v51  ;;  %v7221_v20 = vld [vmem:[#allocation3 + $0xb4] sm:$0xe]  ;;  %v7197_v51 = vshrl.u32 %v16280_v46, 16  ;;  %v16652_v50 = vrot.slane %v7184_v27, 4  ;;  %v16665_v27 = vld [vmem:[#allocation3 + $0x18] sm:$0xf] }
 0x515   : > { %v11136_v52 = vcombine.low %v7365_v31, %v7368_v17  ;;  %v7157_v62 = vrot.slane %v7155_v7, 5  ;;  %v11025_v19 = vrot.slane %v7221_v20, 9  ;;  %v7374_v9 = vrot.slane %v6821_v24, 5 }
 0x516   : > { %v11794_v5 = vpop.f32.mrb[84].mxu1  ;;  %v7193_v17 = vshll.u32 %v16280_v46, 16  ;;  %v7442_v30 = vshll.u32 %v16650_v23, 16 }
 0x517   : > { %v11795_v38 = vpop.f32.mrb[85].mxu1  ;;  %v7372_v7 = vsel %vm13933_vm1, %v11025_v19, %v7371_v21  ;;  %v7375_v16 = vsel %vm13933_vm1, %v7373_v53, %v7374_v9  ;;  %v7436_v53 = vshll.u32 %v16665_v27, 16 }
 0x518   : > { %v11796_v63 = vadd.f32 %v11795_v38, %v11794_v5  ;;  %v11797_v15 = vpop.f32.mrb[86].mxu1  ;;  %v7162_v5 = vrot.slane %v7160_v6, 4  ;;  %v7165_v38 = vrot.slane %v7163_v56, 5  ;;  %v7158_v6 = vsel %vm13548_vm12, %v7153_v3, %v7157_v62  ;;  %v6822_v3 = vld [vmem:[#allocation3 + $0xc8] sm:$0x1] }
 0x519   : > { %v11798_v48 = vpop.f32.mrb[87].mxu1  ;;  %v7433_v62 = vshrl.u32 %v16665_v27, 16  ;;  %v11137_v19 = vcombine.low %v7372_v7, %v7375_v16  ;;  %v7438_v7 = vrot.slane %v7436_v53, 5 }
 0x51a   : > { %v16641_v59 = vadd.f32 %v11796_v63, %v16234_v58  ;;  %v11799_v42 = vadd.f32 %v11798_v48, %v11797_v15  ;;  %v7378_v58 = vrot.slane %v16280_v46, 5  ;;  %v7176_v63 = vor.u32 %v7175_v36, %v16643_v55  ;;  %v7222_v46 = vld [vmem:[#allocation3 + $0xc0] sm:$0xe] }
 0x51b   : > { %9936 = vmatmul.mubr.bf16.gmra.mrb[192].mxu1 %v11119_v41  ;;  %v7166_v31 = vor.u32 %v7165_v38, %v7162_v5  ;;  %v7446_v48 = vshrl.u32 %v16650_v23, 16  ;;  %v7199_v36 = vrot.slane %v7197_v51, 4 }
 0x51c   : > { %v16647_v54 = vadd.f32 %v11799_v42, %v16253_v8  ;;  %9943 = vmatprep.mubr.bf16.mxu1 %v11136_v52  ;;  %v7148_v8 = vsel %vm13548_vm12, %v7143_v33, %v16615_v13  ;;  %v7179_v33 = vshll.u32 %v6821_v24, 16  ;;  %v7380_v21 = vrot.slane %v7378_v58, 4 }
 0x51d   : > { %v11120_v13 = vcombine.low %v7148_v8, %v7158_v6  ;;  %v16671_v42 = vrot.slane %v7193_v17, 5  ;;  %v7177_v9 = vrot.slane %v7176_v63, 4  ;;  %v7381_v6 = vrot.slane %v6822_v3, 5  ;;  %v16686_v63 = vld [vmem:[#allocation3 + $0x24] sm:$0xf] }
 0x51e   : > { %v11800_v56 = vpop.f32.mrb[88].mxu1  ;;  %v16678_v24 = vrot.slane %v7442_v30, 5  ;;  %v7448_v8 = vrot.slane %v7446_v48, 4  ;;  %v7181_v51 = vrot.slane %v7179_v33, 5  ;;  %v7416_v30 = vld [vmem:[#allocation3 + $0x20] sm:$0x1] }
 0x51f   : > { %v11801_v15 = vpop.f32.mrb[89].mxu1  ;;  %v7382_v18 = vsel %vm13933_vm1, %v7380_v21, %v7381_v6  ;;  %v16692_v48 = vld [vmem:[#allocation3 + $0x28] sm:$0xf]  ;;  %v7190_v21 = vor.u32 %v16657_v4, %v16652_v50  ;;  %v7452_v61 = vshll.u32 %v7416_v30, 16 }
 0x520   : > { %v11802_v41 = vadd.f32 %v11801_v15, %v11800_v56  ;;  %v11803_v52 = vpop.f32.mrb[90].mxu1  ;;  %v7167_v56 = vrot.slane %v7166_v31, 4  ;;  %v11026_v15 = vrot.slane %v7222_v46, 9  ;;  %v7182_v31 = vsel %vm13548_vm12, %v7177_v9, %v7181_v51 }
 0x521   : > { %v11804_v20 = vpop.f32.mrb[91].mxu1  ;;  %v7466_v46 = vshll.u32 %v16692_v48, 16 }
 0x522   : > { %v16676_v5 = vadd.f32 %v11802_v41, %v16223_v10  ;;  %v11805_v38 = vadd.f32 %v11804_v20, %v11803_v52  ;;  %v7200_v10 = vor.u32 %v7199_v36, %v16671_v42  ;;  %v7435_v41 = vrot.slane %v7433_v62, 4 }
 0x523   : > { %9944 = vmatmul.mubr.bf16.gmra.mrb[196].mxu1 %v11120_v13  ;;  %v7470_v52 = vshrl.u32 %v16692_v48, 16  ;;  %v7172_v33 = vsel %vm13548_vm12, %v7167_v56, %v16643_v55  ;;  %v7203_v20 = vshll.u32 %v6822_v3, 16  ;;  %v7449_v36 = vor.u32 %v7448_v8, %v16678_v24 }
 0x524   : > { %v16681_v17 = vadd.f32 %v11805_v38, %v16231_v29  ;;  %9951 = vmatprep.mubr.bf16.mxu1 %v11137_v19  ;;  %v7379_v29 = vsel %vm13933_vm1, %v11026_v15, %v7378_v58  ;;  %v7457_v38 = vshrl.u32 %v16686_v63, 16  ;;  %v7460_v19 = vshll.u32 %v16686_v63, 16 }
 0x525   : > { %v11138_v53 = vcombine.low %v7379_v29, %v7382_v18  ;;  %v11121_v6 = vcombine.low %v7172_v33, %v7182_v31  ;;  %v7201_v51 = vrot.slane %v7200_v10, 4  ;;  %v7439_v15 = vor.u32 %v7438_v7, %v7435_v41  ;;  %v16712_v10 = vld [vmem:[#allocation3 + $0x34] sm:$0xf] }
 0x526   : > { %v11806_v16 = vpop.f32.mrb[92].mxu1  ;;  %v16707_v50 = vrot.slane %v7466_v46, 5  ;;  %v7472_v4 = vrot.slane %v7470_v52, 4  ;;  %v7191_v3 = vrot.slane %v7190_v21, 4  ;;  %v7450_v8 = vrot.slane %v7449_v36, 4 }
 0x527   : > { %v11807_v13 = vpop.f32.mrb[93].mxu1  ;;  %v7459_v29 = vrot.slane %v7457_v38, 4  ;;  %v7462_v31 = vrot.slane %v7460_v19, 5  ;;  %v7440_v41 = vrot.slane %v7439_v15, 4  ;;  %v7454_v7 = vrot.slane %v7452_v61, 5 }
 0x528   : > { %v11808_v62 = vadd.f32 %v11807_v13, %v11806_v16  ;;  %v11809_v58 = vpop.f32.mrb[94].mxu1  ;;  %v7205_v16 = vrot.slane %v7203_v20, 5  ;;  %v7473_v46 = vor.u32 %v7472_v4, %v16707_v50  ;;  %v16717_v52 = vld [vmem:[#allocation3 + $0x30] sm:$0xf]  ;;  %v7490_v33 = vshll.u32 %v16712_v10, 16 }
 0x529   : > { %v11810_v9 = vpop.f32.mrb[95].mxu1  ;;  %v7494_v21 = vshrl.u32 %v16712_v10, 16  ;;  %v7196_v61 = vsel %vm13548_vm12, %v7191_v3, %v16671_v42 }
 0x52a   : > { %v16705_v55 = vadd.f32 %v11808_v62, %v16278_v12  ;;  %v11811_v56 = vadd.f32 %v11810_v9, %v11809_v58  ;;  %v7206_v30 = vsel %vm13548_vm12, %v7201_v51, %v7205_v16  ;;  %v7463_v62 = vor.u32 %v7462_v31, %v7459_v29  ;;  %v13219_v58 = vld [vmem:[#allocation3 + $0x2c] sm:$0x1] }
 0x52b   : > { %9952 = vmatmul.mubr.bf16.gmra.mrb[200].mxu1 %v11121_v6  ;;  %v11122_v19 = vcombine.low %v7196_v61, %v7206_v30  ;;  %v7445_v9 = vsel %vm13548_vm12, %v7440_v41, %v16678_v24  ;;  %v7481_v6 = vshrl.u32 %v16717_v52, 16  ;;  %v7484_v51 = vshll.u32 %v16717_v52, 16  ;;  %v448_v31 = vld [vmem:[#allocation3 + $0xcc] sm:$0x1]  ;;  %v503_v41 = vld [vmem:[#allocation3 + $0xd4] sm:$0x1] }
 0x52c   : > { %v16710_v18 = vadd.f32 %v11811_v56, %v16288_v60  ;;  %9959 = vmatprep.mubr.bf16.mxu1 %v11138_v53  ;;  %v7455_v60 = vsel %vm13548_vm12, %v7450_v8, %v7454_v7  ;;  %v7476_v53 = vshll.u32 %v13219_v58, 16  ;;  %v7474_v8 = vrot.slane %v7473_v46, 4  ;;  %v16739_v30 = vld [vmem:[#allocation3 + $0x3c] sm:$0xf]  ;;  %v13155_v46 = vld [vmem:[#allocation4 + $0x210] sm:$0xff]  }
 0x52d   : > { %v11155_v4 = vcombine.low %v7445_v9, %v7455_v60  ;;  %v16734_v42 = vrot.slane %v7490_v33, 5  ;;  %v7496_v3 = vrot.slane %v7494_v21, 4  ;;  %v7464_v29 = vrot.slane %v7463_v62, 4  ;;  %v16747_v21 = vld [vmem:[#allocation3 + $0x38] sm:$0x1] }
 0x52e   : > { %v11812_v12 = vpop.f32.mrb[96].mxu1  ;;  %v7478_v24 = vrot.slane %v7476_v53, 5  ;;  %v7483_v7 = vrot.slane %v7481_v6, 4  ;;  %v504_v60 = vsel %vm15260_vm2, 0, %v503_v41  ;;  %v7505_v9 = vshrl.u32 %v16739_v30, 16 }
 0x52f   : > { %v11813_v13 = vpop.f32.mrb[97].mxu1  ;;  %505 = vst [vmem:[#allocation3 + $0xd4] sm:$0x1] %v504_v60  ;;  %v7497_v58 = vor.u32 %v7496_v3, %v16734_v42  ;;  %v7508_v6 = vshll.u32 %v16739_v30, 16 }
 0x530   : > { %v11814_v20 = vadd.f32 %v11813_v13, %v11812_v12  ;;  %v11815_v36 = vpop.f32.mrb[98].mxu1  ;;  %v7486_v12 = vrot.slane %v7484_v51, 5  ;;  %v449_v13 = vsel %vm15004_vm5, 0, %v448_v31  ;;  %v13152_v31 = vld [vmem:[#allocation4 + $0x208] sm:$0xff]  }
 0x531   : > { %v11816_v38 = vpop.f32.mrb[99].mxu1  ;;  %450 = vst [vmem:[#allocation3 + $0xcc] sm:$0x1] %v449_v13 }
 0x532   : > { %v16732_v15 = vadd.f32 %v11814_v20, %v16294_v34  ;;  %v11817_v56 = vadd.f32 %v11816_v38, %v11815_v36  ;;  %v16749_v20 = vld [vmem:[#allocation3 + $0x40] sm:$0xf] }
 0x533   : > { %9960 = vmatmul.mubr.bf16.gmra.mrb[204].mxu1 %v11122_v19  ;;  %v7514_v36 = vshll.u32 %v16749_v20, 16  ;;  %v7518_v61 = vshrl.u32 %v16749_v20, 16  ;;  %v7469_v19 = vsel %vm13548_vm12, %v7464_v29, %v16707_v50  ;;  %v7498_v29 = vrot.slane %v7497_v58, 4 }
 0x534   : > { %v16737_v16 = vadd.f32 %v11817_v56, %v16306_v45  ;;  %10000 = vmatprep.mubr.bf16.mxu1 %v11155_v4  ;;  %v7479_v45 = vsel %vm13548_vm12, %v7474_v8, %v7478_v24  ;;  %v11139_v56 = vcombine.low %v16665_v27, %v16650_v23  ;;  %v7487_v8 = vor.u32 %v7486_v12, %v7483_v7 }
 0x535   : > { %v11156_v4 = vcombine.low %v7469_v19, %v7479_v45  ;;  %v7500_v24 = vshll.u32 %v16747_v21, 16  ;;  %v16765_v34 = vrot.slane %v7514_v36, 5  ;;  %v7520_v50 = vrot.slane %v7518_v61, 4 }
 0x536   : > { %v11818_v33 = vpop.f32.mrb[100].mxu1  ;;  %v7507_v23 = vrot.slane %v7505_v9, 4  ;;  %v7510_v27 = vrot.slane %v7508_v6, 5  ;;  %v7488_v7 = vrot.slane %v7487_v8, 4  ;;  %v11140_v9 = vcombine.low %v16686_v63, %v16692_v48  ;;  %v17727_v48 = vld [vmem:[#allocation15_spill] sm:$0xff] }
 0x537   : > { %v11819_v62 = vpop.f32.mrb[101].mxu1  ;;  %v7502_v12 = vrot.slane %v7500_v24, 5  ;;  %v7521_v60 = vor.u32 %v7520_v50, %v16765_v34 }
 0x538   : > { %v11820_v53 = vadd.f32 %v11819_v62, %v11818_v33  ;;  %v11821_v38 = vpop.f32.mrb[102].mxu1  ;;  %v16772_v33 = vld [vmem:[#allocation3 + $0x48] sm:$0xf]  ;;  %v7511_v58 = vor.u32 %v7510_v27, %v7507_v23  ;;  %v7493_v6 = vsel %vm13548_vm12, %v7488_v7, %v16734_v42 }
 0x539   : > { %v11822_v51 = vpop.f32.mrb[103].mxu1  ;;  %v7503_v36 = vsel %vm13548_vm12, %v7498_v29, %v7502_v12  ;;  %v16793_v12 = vld [vmem:[#allocation3 + $0x54] sm:$0xf] }
 0x53a   : > { %v16763_v3 = vadd.f32 %v11820_v53, %v16335_v39  ;;  %v11823_v41 = vadd.f32 %v11822_v51, %v11821_v38  ;;  %v13221_v53 = vld [vmem:[#allocation3 + $0x44] sm:$0x1]  ;;  %v7529_v51 = vshrl.u32 %v16772_v33, 16  ;;  %v7512_v42 = vrot.slane %v7511_v58, 4 }
 0x53b   : > { %10001 = vmatmul.mubr.bf16.vlgmr.msra.gmra.mrb[208].mxu1 %v11139_v56  ;;  %v7524_v38 = vshll.u32 %v13221_v53, 16  ;;  %v7532_v56 = vshll.u32 %v16772_v33, 16 }
 0x53c   : > { %v16768_v13 = vadd.f32 %v11823_v41, %v16339_v11  ;;  %12473 = vmatpush3.bf16.msra.mxu1 %v16381_v14  ;;  %10008 = vmatprep.mubr.bf16.mxu1 %v11156_v4  ;;  %v7538_v11 = vshll.u32 %v16397_v2, 16  ;;  %v7542_v14 = vshrl.u32 %v16397_v2, 16  ;;  %v13158_v2 = vld [vmem:[#allocation4 + $0x218] sm:$0xff]   ;;  %v17726_v4 = vld [vmem:[#allocation24_spill] sm:$0xff]  ;;  %v7522_v41 = vrot.slane %v7521_v60, 4 }
 0x53d   : > { %12474 = vmatprep.subr.bf16.mxu1 %v13152_v31  ;;  %v7526_v23 = vrot.slane %v7524_v38, 5  ;;  %v7531_v27 = vrot.slane %v7529_v51, 4  ;;  %v7534_v7 = vrot.slane %v7532_v56, 5  ;;  %v7517_v53 = vsel %vm13548_vm12, %v7512_v42, %v16765_v34 }
 0x53e   : > { %v11824_v39 = vpop.f32.mrb[104].mxu1  ;;  %v16788_v50 = vrot.slane %v7538_v11, 5  ;;  %v7544_v63 = vrot.slane %v7542_v14, 4  ;;  %v7553_v38 = vshrl.u32 %v16793_v12, 16 }
 0x53f   : > { %v11825_v45 = vpop.f32.mrb[105].mxu1  ;;  %v7527_v60 = vsel %vm13548_vm12, %v7522_v41, %v7526_v23  ;;  %v7535_v56 = vor.u32 %v7534_v7, %v7531_v27  ;;  %v17729_v41 = vld [vmem:[#allocation12_spill] sm:$0xff] }
 0x540   : > { %v11826_v61 = vadd.f32 %v11825_v45, %v11824_v39  ;;  %v11827_v62 = vpop.f32.mrb[106].mxu1  ;;  %12475 = vmatpush3.bf16.msra.mxu1 %v13152_v31  ;;  %v11157_v31 = vcombine.low %v7493_v6, %v7503_v36  ;;  %v13161_v39 = vld [vmem:[#allocation4 + $0x220] sm:$0xff]   ;;  %v11141_v6 = vcombine.low %v16717_v52, %v16712_v10  ;;  %v11158_v51 = vcombine.low %v7517_v53, %v7527_v60 }
 0x541   : > { %v11828_v19 = vpop.f32.mrb[107].mxu1  ;;  %12476 = vmatprep.subr.bf16.mxu1 %v13155_v46  ;;  %v16797_v36 = vld [vmem:[#allocation3 + $0x58] sm:$0xf]  ;;  %v7555_v52 = vrot.slane %v7553_v38, 4  ;;  %v7536_v27 = vrot.slane %v7535_v56, 4 }
 0x542   : > { %v16786_v8 = vadd.f32 %v11826_v61, %v17726_v4  ;;  %v11829_v24 = vadd.f32 %v11828_v19, %v11827_v62  ;;  %v7562_v11 = vshll.u32 %v16797_v36, 16  ;;  %v7566_v14 = vshrl.u32 %v16797_v36, 16  ;;  %v13223_v4 = vld [vmem:[#allocation3 + $0x50] sm:$0x1] }
 0x543   : > { %10009 = vmatmul.mubr.bf16.gmra.mrb[212].mxu1 %v11140_v9  ;;  %v7545_v62 = vor.u32 %v7544_v63, %v16788_v50  ;;  %v7556_v19 = vshll.u32 %v16793_v12, 16 }
 0x544   : > { %v16791_v29 = vadd.f32 %v11829_v24, %v17727_v48  ;;  %10016 = vmatprep.mubr.bf16.mxu1 %v11157_v31  ;;  %12477 = vmatpush3.bf16.msra.mxu1 %v13155_v46  ;;  %v7548_v24 = vshll.u32 %v13223_v4, 16  ;;  %v13164_v31 = vld [vmem:[#allocation4 + $0x228] sm:$0xff]   ;;  %v16812_v34 = vrot.slane %v7562_v11, 5  ;;  %v7568_v42 = vrot.slane %v7566_v14, 4 }
 0x545   : > { %12478 = vmatprep.subr.bf16.mxu1 %v13158_v2  ;;  %v7546_v23 = vrot.slane %v7545_v62, 4  ;;  %v7558_v60 = vrot.slane %v7556_v19, 5  ;;  %v16822_v62 = vld [vmem:[#allocation3 + $0x64] sm:$0xf] }
 0x546   : > { %17728 = vst [vmem:[#allocation10_spill] sm:$0xff] %v16791_v29  ;;  %v11830_v45 = vpop.f32.mrb[108].mxu1  ;;  %v7550_v7 = vrot.slane %v7548_v24, 5  ;;  %v7590_v38 = vshrl.u32 %v16822_v62, 16  ;;  %v11142_v24 = vcombine.low %v16739_v30, %v16749_v20  ;;  %v17735_v20 = vld [vmem:[#allocation14_spill] sm:$0xff] }
 0x547   : > { %v11831_v61 = vpop.f32.mrb[109].mxu1 }
 0x548   : > { %v11832_v46 = vadd.f32 %v11831_v61, %v11830_v45  ;;  %v11833_v58 = vpop.f32.mrb[110].mxu1  ;;  %12479 = vmatpush3.bf16.msra.mxu1 %v13158_v2  ;;  %v17731_v2 = vld [vmem:[#allocation18_spill] sm:$0xff]  ;;  %v13168_v61 = vld [vmem:[#allocation4 + $0x230] sm:$0xff]   ;;  %v7551_v14 = vsel %vm13548_vm12, %v7546_v23, %v7550_v7  ;;  %v13171_v23 = vld [vmem:[#allocation4 + $0x238] sm:$0xff]   ;;  %v7592_v30 = vrot.slane %v7590_v38, 4 }
 0x549   : > { %v11834_v9 = vpop.f32.mrb[111].mxu1  ;;  %12480 = vmatprep.subr.bf16.mxu1 %v13161_v39 }
 0x54a   : > { %v16810_v63 = vadd.f32 %v11832_v46, %v17729_v41  ;;  %v11835_v48 = vadd.f32 %v11834_v9, %v11833_v58  ;;  %v7569_v46 = vor.u32 %v7568_v42, %v16812_v34  ;;  %v16818_v58 = vld [vmem:[#allocation3 + $0x60] sm:$0xf]  ;;  %v7586_v9 = vshll.u32 %v16822_v62, 16 }
 0x54b   : > { %10017 = vmatmul.mubr.bf16.gmra.mrb[216].mxu1 %v11141_v6  ;;  %v7559_v6 = vor.u32 %v7558_v60, %v7555_v52  ;;  %v7541_v41 = vsel %vm13548_vm12, %v7536_v27, %v16788_v50  ;;  %v7580_v42 = vshll.u32 %v16818_v58, 16 }
 0x54c   : > { %17730 = vst [vmem:[#allocation27_spill] sm:$0xff] %v16810_v63  ;;  %v16815_v45 = vadd.f32 %v11835_v48, %v17731_v2  ;;  %10024 = vmatprep.mubr.bf16.mxu1 %v11158_v51  ;;  %12481 = vmatpush3.bf16.msra.mxu1 %v13161_v39  ;;  %v13225_v51 = vld [vmem:[#allocation3 + $0x5c] sm:$0x1]  ;;  %v7577_v48 = vshrl.u32 %v16818_v58, 16  ;;  %v17733_v2 = vld [vmem:[#allocation25_spill] sm:$0xff]  ;;  %v11159_v60 = vcombine.low %v7541_v41, %v7551_v14 }
 0x54d   : > { %12482 = vmatprep.subr.bf16.mxu1 %v13164_v31  ;;  %v7572_v56 = vshll.u32 %v13225_v51, 16  ;;  %v7560_v50 = vrot.slane %v7559_v6, 4  ;;  %v7582_v37 = vrot.slane %v7580_v42, 5  ;;  %v16845_v14 = vld [vmem:[#allocation3 + $0x70] sm:$0xf] }
 0x54e   : > { %17732 = vst [vmem:[#allocation23_spill] sm:$0xff] %v16815_v45  ;;  %v11836_v53 = vpop.f32.mrb[112].mxu1  ;;  %v7579_v51 = vrot.slane %v7577_v48, 4  ;;  %v16841_v45 = vld [vmem:[#allocation3 + $0x6c] sm:$0xf]  ;;  %v7614_v38 = vshrl.u32 %v16845_v14, 16 }
 0x54f   : > { %v11837_v11 = vpop.f32.mrb[113].mxu1  ;;  %v7574_v27 = vrot.slane %v7572_v56, 5  ;;  %v7604_v41 = vshll.u32 %v16841_v45, 16  ;;  %v13227_v42 = vld [vmem:[#allocation3 + $0x4c] sm:$0xf] }
 0x550   : > { %v11838_v39 = vadd.f32 %v11837_v11, %v11836_v53  ;;  %v11839_v19 = vpop.f32.mrb[114].mxu1  ;;  %12483 = vmatpush3.bf16.msra.mxu1 %v13164_v31  ;;  %v7570_v31 = vrot.slane %v7569_v46, 4  ;;  %v16836_v53 = vrot.slane %v7586_v9, 5  ;;  %v7610_v9 = vshll.u32 %v16845_v14, 16 }
 0x551   : > { %v11840_v4 = vpop.f32.mrb[115].mxu1  ;;  %12484 = vmatprep.subr.bf16.mxu1 %v13168_v61  ;;  %v7606_v63 = vrot.slane %v7604_v41, 5 }
 0x552   : > { %v16834_v7 = vadd.f32 %v11838_v39, %v17733_v2  ;;  %v11841_v52 = vadd.f32 %v11840_v4, %v11839_v19  ;;  %v7575_v46 = vsel %vm13548_vm12, %v7570_v31, %v7574_v27  ;;  %v7593_v6 = vor.u32 %v7592_v30, %v16836_v53  ;;  %v13228_v31 = vld [vmem:[#allocation3 + $0x68] sm:$0x1] }
 0x553   : > { %10025 = vmatmul.mubr.bf16.gmra.mrb[220].mxu1 %v11142_v24  ;;  %v7565_v4 = vsel %vm13548_vm12, %v7560_v50, %v16812_v34  ;;  %v7601_v24 = vshrl.u32 %v16841_v45, 16  ;;  %v11143_v2 = vcombine.low %v16772_v33, %v13227_v42  ;;  %v17737_v30 = vld [vmem:[#allocation20_spill] sm:$0xff]  ;;  %v17738_v50 = vld [vmem:[#allocation17_spill] sm:$0xff] }
 0x554   : > { %17734 = vst [vmem:[#allocation26_spill] sm:$0xff] %v16834_v7  ;;  %v16839_v11 = vadd.f32 %v11841_v52, %v17735_v20  ;;  %10032 = vmatprep.mubr.bf16.mxu1 %v11159_v60  ;;  %12485 = vmatpush3.bf16.msra.mxu1 %v13168_v61  ;;  %v11160_v52 = vcombine.low %v7565_v4, %v7575_v46  ;;  %v7596_v20 = vshll.u32 %v13228_v31, 16  ;;  %v7594_v34 = vrot.slane %v7593_v6, 4  ;;  %v16862_v46 = vld [vmem:[#allocation3 + $0x78] sm:$0xf] }
 0x555   : > { %12486 = vmatprep.subr.bf16.mxu1 %v13171_v23  ;;  %v7583_v60 = vor.u32 %v7582_v37, %v7579_v51 }
 0x556   : > { %17736 = vst [vmem:[#allocation24_spill] sm:$0xff] %v16839_v11  ;;  %v11842_v39 = vpop.f32.mrb[116].mxu1  ;;  %v7616_v11 = vrot.slane %v7614_v38, 4  ;;  %v7598_v33 = vrot.slane %v7596_v20, 5  ;;  %v17740_v20 = vld [vmem:[#allocation19_spill] sm:$0xff] }
 0x557   : > { %v11843_v19 = vpop.f32.mrb[117].mxu1  ;;  %v7584_v29 = vrot.slane %v7583_v60, 4  ;;  %v11144_v60 = vcombine.low %v16793_v12, %v16797_v36 }
 0x558   : > { %v11844_v56 = vadd.f32 %v11843_v19, %v11842_v39  ;;  %v11845_v61 = vpop.f32.mrb[118].mxu1  ;;  %12487 = vmatpush3.bf16.msra.mxu1 %v13171_v23  ;;  %v7612_v19 = vrot.slane %v7610_v9, 5  ;;  %v7603_v23 = vrot.slane %v7601_v24, 4  ;;  %v13229_v9 = vld [vmem:[#allocation3 + $0x74] sm:$0x1] }
 0x559   : > { %v11846_v48 = vpop.f32.mrb[119].mxu1  ;;  %v7620_v38 = vshll.u32 %v13229_v9, 16  ;;  %v7589_v31 = vsel %vm13548_vm12, %v7584_v29, %v16836_v53 }
 0x55a   : > { %v16857_v27 = vadd.f32 %v11844_v56, %v17737_v30  ;;  %v11847_v39 = vadd.f32 %v11846_v48, %v11845_v61  ;;  %v7617_v51 = vor.u32 %v7616_v11, %v7612_v19  ;;  %v7599_v56 = vsel %vm13548_vm12, %v7594_v34, %v7598_v33  ;;  %v16866_v61 = vld [vmem:[#allocation3 + $0x7c] sm:$0xf]  ;;  %v16880_v33 = vld [vmem:[#allocation3 + $0x84] sm:$0xf] }
 0x55b   : > { %10033 = vmatmul.mubr.bf16.gmra.mrb[224].mxu1 %v11143_v2  ;;  %v7634_v6 = vshll.u32 %v16866_v61, 16  ;;  %v7638_v48 = vshrl.u32 %v16866_v61, 16  ;;  %v7607_v42 = vor.u32 %v7606_v63, %v7603_v23  ;;  %v7625_v2 = vshrl.u32 %v16862_v46, 16 }
 0x55c   : > { %v16860_v7 = vadd.f32 %v11847_v39, %v17738_v50  ;;  %10040 = vmatprep.mubr.bf16.mxu1 %v11160_v52  ;;  %v7628_v52 = vshll.u32 %v16862_v46, 16  ;;  %v11161_v34 = vcombine.low %v7589_v31, %v7599_v56  ;;  %v7618_v50 = vrot.slane %v7617_v51, 4  ;;  %v16889_v56 = vld [vmem:[#allocation3 + $0x88] sm:$0xf] }
 0x55d   : > { %v7622_v63 = vrot.slane %v7620_v38, 5  ;;  %v7636_v23 = vrot.slane %v7634_v6, 5  ;;  %v7608_v12 = vrot.slane %v7607_v42, 4  ;;  %v7627_v36 = vrot.slane %v7625_v2, 4 }
 0x55e   : > { %17739 = vst [vmem:[#allocation15_spill] sm:$0xff] %v16860_v7  ;;  %v11848_v37 = vpop.f32.mrb[120].mxu1  ;;  %v7630_v7 = vrot.slane %v7628_v52, 5  ;;  %v7649_v29 = vshrl.u32 %v16880_v33, 16  ;;  %v7652_v53 = vshll.u32 %v16880_v33, 16  ;;  %v7658_v38 = vshll.u32 %v16889_v56, 16 }
 0x55f   : > { %v11849_v4 = vpop.f32.mrb[121].mxu1  ;;  %v7623_v51 = vsel %vm13548_vm12, %v7618_v50, %v7622_v63  ;;  %v7662_v6 = vshrl.u32 %v16889_v56, 16  ;;  %v11145_v2 = vcombine.low %v16818_v58, %v16822_v62  ;;  %v7613_v52 = vsel %vm13548_vm12, %v7608_v12, %v7612_v19 }
 0x560   : > { %v11850_v24 = vadd.f32 %v11849_v4, %v11848_v37  ;;  %v11851_v41 = vpop.f32.mrb[122].mxu1  ;;  %v7640_v37 = vrot.slane %v7638_v48, 4  ;;  %v17741_v4 = vld [vmem:[#allocation13_spill] sm:$0xff]  ;;  %v7651_v50 = vrot.slane %v7649_v29, 4  ;;  %v7654_v63 = vrot.slane %v7652_v53, 5 }
 0x561   : > { %v11852_v11 = vpop.f32.mrb[123].mxu1 }
 0x562   : > { %v16878_v30 = vadd.f32 %v11850_v24, %v17740_v20  ;;  %v11853_v39 = vadd.f32 %v11852_v11, %v11851_v41  ;;  %v7641_v41 = vor.u32 %v7640_v37, %v7636_v23  ;;  %v11162_v20 = vcombine.low %v7613_v52, %v7623_v51 }
 0x563   : > { %10041 = vmatmul.mubr.bf16.gmra.mrb[228].mxu1 %v11144_v60  ;;  %v7631_v60 = vor.u32 %v7630_v7, %v7627_v36  ;;  %v16900_v37 = vrot.slane %v7658_v38, 5  ;;  %v7655_v12 = vor.u32 %v7654_v63, %v7651_v50  ;;  %v13233_v36 = vld [vmem:[#allocation3 + $0x8c] sm:$0x1] }
 0x564   : > { %v16883_v9 = vadd.f32 %v11853_v39, %v17741_v4  ;;  %10048 = vmatprep.mubr.bf16.mxu1 %v11161_v34  ;;  %v13232_v39 = vld [vmem:[#allocation3 + $0x80] sm:$0x1]  ;;  %v7642_v58 = vrot.slane %v7641_v41, 4  ;;  %v7668_v29 = vshll.u32 %v13233_v36, 16 }
 0x565   : > { %v7644_v34 = vshll.u32 %v13232_v39, 16  ;;  %v7632_v7 = vrot.slane %v7631_v60, 4 }
 0x566   : > { %17742 = vst [vmem:[#allocation12_spill] sm:$0xff] %v16883_v9  ;;  %v11854_v24 = vpop.f32.mrb[124].mxu1  ;;  %v7670_v39 = vrot.slane %v7668_v29, 5 }
 0x567   : > { %v11855_v48 = vpop.f32.mrb[125].mxu1  ;;  %v7646_v19 = vrot.slane %v7644_v34, 5 }
 0x568   : > { %v11856_v11 = vadd.f32 %v11855_v48, %v11854_v24  ;;  %v11857_v42 = vpop.f32.mrb[126].mxu1  ;;  %v7664_v24 = vrot.slane %v7662_v6, 4  ;;  %v16902_v48 = vld [vmem:[#allocation3 + $0x90] sm:$0xf] }
 0x569   : > { %v11858_v31 = vpop.f32.mrb[127].mxu1  ;;  %v7647_v6 = vsel %vm13548_vm12, %v7642_v58, %v7646_v19  ;;  %v7676_v52 = vshll.u32 %v16902_v48, 16 }
 0x56a   : > { %v16898_v4 = vadd.f32 %v11856_v11, %v16461_v47  ;;  %v11859_v9 = vadd.f32 %v11858_v31, %v11857_v42  ;;  %v7673_v47 = vshrl.u32 %v16902_v48, 16  ;;  %v7665_v51 = vor.u32 %v7664_v24, %v16900_v37  ;;  %v16911_v11 = vld [vmem:[#allocation3 + $0x94] sm:$0xf] }
 0x56b   : > { %10049 = vmatmul.mubr.bf16.gmra.mrb[232].mxu1 %v11145_v2  ;;  %v11146_v2 = vcombine.low %v16841_v45, %v16845_v14  ;;  %v7637_v31 = vsel %vm13548_vm12, %v7632_v7, %v7636_v23  ;;  %v16925_v45 = vld [vmem:[#allocation3 + $0xd0] sm:$0xf]  ;;  %v16927_v14 = vld [vmem:[#allocation3 + $0xd4] sm:$0x1]  ;;  %v7678_v23 = vrot.slane %v7676_v52, 5 }
 0x56c   : > { %v16905_v62 = vadd.f32 %v11859_v9, %v16481_v44  ;;  %10056 = vmatprep.mubr.bf16.mxu1 %v11162_v20  ;;  %v7682_v44 = vshll.u32 %v16911_v11, 16  ;;  %v7686_v9 = vshrl.u32 %v16911_v11, 16  ;;  %v7656_v20 = vrot.slane %v7655_v12, 4  ;;  %v7831_v7 = vld [vmem:[#allocation3 + $0xcc] sm:$0xe] }
 0x56d   : > { %v7675_v34 = vrot.slane %v7673_v47, 4  ;;  %v11163_v24 = vcombine.low %v7637_v31, %v7647_v6  ;;  %v7666_v58 = vrot.slane %v7665_v51, 4  ;;  %v7990_v12 = vrot.slane %v16927_v14, 5  ;;  %v16938_v6 = vld [vmem:[#allocation3 + $0x9c] sm:$0xf] }
 0x56e   : > { %17743 = vst [vmem:[#allocation18_spill] sm:$0xff] %v16905_v62  ;;  %v11860_v53 = vpop.f32.mrb[128].mxu1  ;;  %v16923_v19 = vrot.slane %v7682_v44, 5  ;;  %v7688_v36 = vrot.slane %v7686_v9, 4  ;;  %v11042_v29 = vrot.slane %v7831_v7, 9  ;;  %v11147_v51 = vcombine.low %v16862_v46, %v16866_v61 }
 0x56f   : > { %v11861_v38 = vpop.f32.mrb[129].mxu1  ;;  %v7679_v31 = vor.u32 %v7678_v23, %v7675_v34  ;;  %v7700_v7 = vshll.u32 %v16938_v6, 16  ;;  %v16966_v62 = vld [vmem:[#allocation3 + $0xa8] sm:$0xf] }
 0x570   : > { %v11862_v41 = vadd.f32 %v11861_v38, %v11860_v53  ;;  %v11863_v42 = vpop.f32.mrb[130].mxu1  ;;  %v7671_v38 = vsel %vm13548_vm12, %v7666_v58, %v7670_v39  ;;  %v7689_v9 = vor.u32 %v7688_v36, %v16923_v19  ;;  %v7697_v36 = vshrl.u32 %v16938_v6, 16 }
 0x571   : > { %v11864_v60 = vpop.f32.mrb[131].mxu1 }
 0x572   : > { %v16921_v50 = vadd.f32 %v11862_v41, %v16516_v28  ;;  %v11865_v63 = vadd.f32 %v11864_v60, %v11863_v42  ;;  %v7987_v28 = vrot.slane %v16925_v45, 5  ;;  %v16941_v41 = vld [vmem:[#allocation3 + $0xa0] sm:$0xf]  ;;  %v7661_v60 = vsel %vm13548_vm12, %v7656_v20, %v16900_v37 }
 0x573   : > { %10057 = vmatmul.mubr.bf16.gmra.mrb[236].mxu1 %v11146_v2  ;;  %v7706_v42 = vshll.u32 %v16941_v41, 16  ;;  %v7710_v2 = vshrl.u32 %v16941_v41, 16  ;;  %v11164_v37 = vcombine.low %v7661_v60, %v7671_v38  ;;  %v7690_v20 = vrot.slane %v7689_v9, 4 }
 0x574   : > { %17744 = vst [vmem:[#allocation25_spill] sm:$0xff] %v16921_v50  ;;  %v16930_v53 = vadd.f32 %v11865_v63, %v16534_v49  ;;  %10064 = vmatprep.mubr.bf16.mxu1 %v11163_v24  ;;  %v7989_v44 = vrot.slane %v7987_v28, 4  ;;  %v16947_v52 = vsel %vm13933_vm1, %v11042_v29, %v7987_v28  ;;  %v13236_v24 = vld [vmem:[#allocation3 + $0x98] sm:$0x1] }
 0x575   : > { %v7692_v58 = vshll.u32 %v13236_v24, 16  ;;  %v7708_v34 = vrot.slane %v7706_v42, 5  ;;  %v7712_v23 = vrot.slane %v7710_v2, 4  ;;  %v7699_v24 = vrot.slane %v7697_v36, 4 }
 0x576   : > { %17745 = vst [vmem:[#allocation14_spill] sm:$0xff] %v16930_v53  ;;  %v11866_v47 = vpop.f32.mrb[132].mxu1  ;;  %v16954_v39 = vsel %vm13933_vm1, %v7989_v44, %v7990_v12  ;;  %v7680_v44 = vrot.slane %v7679_v31, 4  ;;  %v7702_v53 = vrot.slane %v7700_v7, 5  ;;  %v7721_v36 = vshrl.u32 %v16966_v62, 16 }
 0x577   : > { %v11867_v49 = vpop.f32.mrb[133].mxu1  ;;  %v7713_v38 = vor.u32 %v7712_v23, %v7708_v34  ;;  %v7724_v7 = vshll.u32 %v16966_v62, 16 }
 0x578   : > { %v11868_v46 = vadd.f32 %v11867_v49, %v11866_v47  ;;  %v11869_v61 = vpop.f32.mrb[134].mxu1  ;;  %v7694_v49 = vrot.slane %v7692_v58, 5  ;;  %v7703_v31 = vor.u32 %v7702_v53, %v7699_v24  ;;  %v7723_v23 = vrot.slane %v7721_v36, 4  ;;  %v13240_v36 = vld [vmem:[#allocation3 + $0xb0] sm:$0x1] }
 0x579   : > { %v11870_v63 = vpop.f32.mrb[135].mxu1 }
 0x57a   : > { %v16961_v29 = vadd.f32 %v11868_v46, %v16552_v35  ;;  %v11871_v47 = vadd.f32 %v11870_v63, %v11869_v61  ;;  %v7695_v35 = vsel %vm13548_vm12, %v7690_v20, %v7694_v49  ;;  %v11148_v46 = vcombine.low %v16880_v33, %v16889_v56  ;;  %v13238_v63 = vld [vmem:[#allocation3 + $0xa4] sm:$0x1]  ;;  %v16987_v49 = vld [vmem:[#allocation3 + $0xb4] sm:$0xf] }
 0x57b   : > { %10065 = vmatmul.mubr.bf16.gmra.mrb[240].mxu1 %v11147_v51  ;;  %v16970_v51 = vld [vmem:[#allocation3 + $0xac] sm:$0xf]  ;;  %v7685_v61 = vsel %vm13548_vm12, %v7680_v44, %v16923_v19  ;;  %v7716_v58 = vshll.u32 %v13238_v63, 16  ;;  %v7704_v19 = vrot.slane %v7703_v31, 4  ;;  %v7726_v44 = vrot.slane %v7724_v7, 5 }
 0x57c   : > { %v16964_v12 = vadd.f32 %v11871_v47, %v16558_v26  ;;  %10072 = vmatprep.mubr.bf16.mxu1 %v11164_v37  ;;  %v7730_v9 = vshll.u32 %v16970_v51, 16  ;;  %v7734_v26 = vshrl.u32 %v16970_v51, 16  ;;  %v7714_v37 = vrot.slane %v7713_v38, 4 }
 0x57d   : > { %v7718_v53 = vrot.slane %v7716_v58, 5  ;;  %v7709_v31 = vsel %vm13548_vm12, %v7704_v19, %v7708_v34  ;;  %v7727_v58 = vor.u32 %v7726_v44, %v7723_v23  ;;  %v7740_v7 = vshll.u32 %v13240_v36, 16  ;;  %v17009_v23 = vld [vmem:[#allocation3 + $0xc0] sm:$0xf] }
 0x57e   : > { %v11872_v50 = vpop.f32.mrb[136].mxu1  ;;  %v7732_v33 = vrot.slane %v7730_v9, 5  ;;  %v7736_v56 = vrot.slane %v7734_v26, 4  ;;  %v11150_v36 = vcombine.low %v16938_v6, %v16941_v41 }
 0x57f   : > { %v11873_v28 = vpop.f32.mrb[137].mxu1  ;;  %v7728_v34 = vrot.slane %v7727_v58, 4  ;;  %v7742_v19 = vrot.slane %v7740_v7, 5 }
 0x580   : > { %v11874_v42 = vadd.f32 %v11873_v28, %v11872_v50  ;;  %v11875_v2 = vpop.f32.mrb[138].mxu1  ;;  %v11165_v28 = vcombine.low %v7685_v61, %v7695_v35  ;;  %v7737_v35 = vor.u32 %v7736_v56, %v7732_v33 }
 0x581   : > { %v11876_v60 = vpop.f32.mrb[139].mxu1  ;;  %v7733_v7 = vsel %vm13548_vm12, %v7728_v34, %v7732_v33  ;;  %v7802_v34 = vshll.u32 %v16925_v45, 16 }
 0x582   : > { %v16982_v47 = vadd.f32 %v11874_v42, %v16572_v22  ;;  %v11877_v50 = vadd.f32 %v11876_v60, %v11875_v2  ;;  %v7719_v22 = vsel %vm13548_vm12, %v7714_v37, %v7718_v53  ;;  %v16991_v42 = vld [vmem:[#allocation3 + $0xb8] sm:$0xf]  ;;  %v7745_v2 = vshrl.u32 %v16987_v49, 16 }
 0x583   : > { %10073 = vmatmul.mubr.bf16.gmra.mrb[244].mxu1 %v11148_v46  ;;  %v7754_v38 = vshll.u32 %v16991_v42, 16  ;;  %v7748_v46 = vshll.u32 %v16987_v49, 16  ;;  %v11149_v60 = vcombine.low %v16902_v48, %v16911_v11  ;;  %v11166_v37 = vcombine.low %v7709_v31, %v7719_v22 }
 0x584   : > { %v16985_v20 = vadd.f32 %v11877_v50, %v16576_v43  ;;  %10080 = vmatprep.mubr.bf16.mxu1 %v11165_v28  ;;  %v7758_v43 = vshrl.u32 %v16991_v42, 16  ;;  %v7738_v56 = vrot.slane %v7737_v35, 4  ;;  %v7747_v48 = vrot.slane %v7745_v2, 4 }
 0x585   : > { %v17004_v53 = vrot.slane %v7754_v38, 5  ;;  %v7750_v11 = vrot.slane %v7748_v46, 5  ;;  %v17014_v38 = vld [vmem:[#allocation3 + $0xc4] sm:$0xf]  ;;  %v7772_v31 = vshll.u32 %v17009_v23, 16 }
 0x586   : > { %v11878_v24 = vpop.f32.mrb[140].mxu1  ;;  %v7743_v22 = vsel %vm13548_vm12, %v7738_v56, %v7742_v19 }
 0x587   : > { %v11879_v63 = vpop.f32.mrb[141].mxu1  ;;  %v11167_v56 = vcombine.low %v7733_v7, %v7743_v22  ;;  %v7806_v22 = vshrl.u32 %v16925_v45, 16 }
 0x588   : > { %v11880_v9 = vadd.f32 %v11879_v63, %v11878_v24  ;;  %v11881_v26 = vpop.f32.mrb[142].mxu1  ;;  %v7760_v24 = vrot.slane %v7758_v43, 4  ;;  %v7782_v43 = vshrl.u32 %v17014_v38, 16 }
 0x589   : > { %v11882_v61 = vpop.f32.mrb[143].mxu1 }
 0x58a   : > { %v17002_v50 = vadd.f32 %v11880_v9, %v16592_v57  ;;  %v11883_v28 = vadd.f32 %v11882_v61, %v11881_v26  ;;  %v13241_v57 = vld [vmem:[#allocation3 + $0xbc] sm:$0x1]  ;;  %v7761_v35 = vor.u32 %v7760_v24, %v17004_v53  ;;  %v7751_v61 = vor.u32 %v7750_v11, %v7747_v48  ;;  %v17027_v24 = vld [vmem:[#allocation3 + $0xcc] sm:$0xf] }
 0x58b   : > { %10081 = vmatmul.mubr.bf16.gmra.mrb[248].mxu1 %v11149_v60  ;;  %v7764_v9 = vshll.u32 %v13241_v57, 16  ;;  %v7769_v60 = vshrl.u32 %v17009_v23, 16  ;;  %v7793_v33 = vshrl.u32 %v17027_v24, 16 }
 0x58c   : > { %v17007_v63 = vadd.f32 %v11883_v28, %v16596_v0  ;;  %10088 = vmatprep.mubr.bf16.mxu1 %v11166_v37  ;;  %v7778_v0 = vshll.u32 %v17014_v38, 16  ;;  %v7762_v48 = vrot.slane %v7761_v35, 4  ;;  %v7752_v6 = vrot.slane %v7751_v61, 4 }
 0x58d   : > { %v7766_v11 = vrot.slane %v7764_v9, 5  ;;  %v7771_v41 = vrot.slane %v7769_v60, 4  ;;  %v11151_v9 = vcombine.low %v16966_v62, %v16970_v51  ;;  %v7795_v7 = vrot.slane %v7793_v33, 4 }
 0x58e   : > { %v11900_v44 = vpop.f32.mrb[144].mxu1  ;;  %v7780_v19 = vrot.slane %v7778_v0, 5  ;;  %v7757_v61 = vsel %vm13548_vm12, %v7752_v6, %v17004_v53  ;;  %v7812_v33 = vshll.u32 %v16927_v14, 16 }
 0x58f   : > { %v11901_v26 = vpop.f32.mrb[145].mxu1 }
 0x590   : > { %v11902_v2 = vadd.f32 %v11901_v26, %v11900_v44  ;;  %v11903_v46 = vpop.f32.mrb[146].mxu1  ;;  %v7784_v44 = vrot.slane %v7782_v43, 4  ;;  %v7774_v26 = vrot.slane %v7772_v31, 5  ;;  %v13243_v31 = vld [vmem:[#allocation3 + $0xc8] sm:$0x1] }
 0x591   : > { %v11904_v58 = vpop.f32.mrb[147].mxu1 }
 0x592   : > { %v17025_v28 = vadd.f32 %v11902_v2, %v16618_v40  ;;  %v11905_v37 = vadd.f32 %v11904_v58, %v11903_v46  ;;  %v7796_v40 = vshll.u32 %v17027_v24, 16  ;;  %v7785_v0 = vor.u32 %v7784_v44, %v7780_v19 }
 0x593   : > { %10089 = vmatmul.mubr.bf16.gmra.mrb[252].mxu1 %v11150_v36  ;;  %v7775_v60 = vor.u32 %v7774_v26, %v7771_v41  ;;  %v7788_v58 = vshll.u32 %v13243_v31, 16  ;;  %v13244_v31 = vld [vmem:[#allocation3 + $0x1c] sm:$0xf] }
 0x594   : > { %v17030_v57 = vadd.f32 %v11905_v37, %v16621_v25  ;;  %10096 = vmatprep.mubr.bf16.mxu1 %v11167_v56  ;;  %v7767_v25 = vsel %vm13548_vm12, %v7762_v48, %v7766_v11  ;;  %v7798_v37 = vrot.slane %v7796_v40, 5  ;;  %v7804_v56 = vrot.slane %v7802_v34, 5 }
 0x595   : > { %v11168_v48 = vcombine.low %v7757_v61, %v7767_v25  ;;  %v7786_v11 = vrot.slane %v7785_v0, 4  ;;  %v7790_v53 = vrot.slane %v7788_v58, 5  ;;  %v7776_v6 = vrot.slane %v7775_v60, 4 }
 0x596   : > { %17746 = vst [vmem:[#allocation20_spill] sm:$0xff] %v17030_v57  ;;  %v11906_v2 = vpop.f32.mrb[148].mxu1  ;;  %v7808_v57 = vrot.slane %v7806_v22, 4  ;;  %v7799_v41 = vor.u32 %v7798_v37, %v7795_v7  ;;  %v11152_v22 = vcombine.low %v16987_v49, %v16991_v42  ;;  %v7882_v58 = vrot.slane %v13244_v31, 5  ;;  %v17748_v31 = vld [vmem:[#allocation33_spill] sm:$0xff] }
 0x597   : > { %v11907_v35 = vpop.f32.mrb[149].mxu1  ;;  %v11153_v37 = vcombine.low %v17009_v23, %v17014_v38  ;;  %v7896_v38 = vrot.slane %v16712_v10, 5  ;;  %v7899_v10 = vrot.slane %v16747_v21, 5 }
 0x598   : > { %v11908_v43 = vadd.f32 %v11907_v35, %v11906_v2  ;;  %v11909_v46 = vpop.f32.mrb[150].mxu1  ;;  %v7809_v26 = vor.u32 %v7808_v57, %v7804_v56  ;;  %v7800_v25 = vrot.slane %v7799_v41, 4 }
 0x599   : > { %v11910_v36 = vpop.f32.mrb[151].mxu1 }
 0x59a   : > { %v17044_v62 = vadd.f32 %v11908_v43, %v16641_v59  ;;  %v11911_v51 = vadd.f32 %v11910_v36, %v11909_v46  ;;  %v7791_v59 = vsel %vm13548_vm12, %v7786_v11, %v7790_v53  ;;  %v7810_v0 = vrot.slane %v7809_v26, 4  ;;  %v7816_v11 = vld [vmem:[#allocation3 + $0x18] sm:$0xe]  ;;  %v13245_v53 = vld [vmem:[#allocation3 + $0x20] sm:$0x1] }
 0x59b   : > { %10097 = vmatmul.mubr.bf16.gmra.mrb[16].mxu1 %v11151_v9  ;;  %v7814_v43 = vrot.slane %v7812_v33, 5  ;;  %v7805_v49 = vsel %vm13548_vm12, %v7800_v25, %v7804_v56  ;;  %v7884_v56 = vrot.slane %v7882_v58, 4  ;;  %v11154_v33 = vcombine.low %v17027_v24, %v16925_v45  ;;  %v7818_v24 = vld [vmem:[#allocation3 + $0x30] sm:$0xe] }
 0x59c   : > { %v17047_v44 = vadd.f32 %v11911_v51, %v16647_v54  ;;  %10104 = vmatprep.mubr.bf16.mxu1 %v11168_v48  ;;  %v7781_v54 = vsel %vm13548_vm12, %v7776_v6, %v7780_v19  ;;  %v7885_v6 = vrot.slane %v13245_v53, 5  ;;  %v11027_v23 = vrot.slane %v7816_v11, 9  ;;  %v17753_v53 = vld [vmem:[#allocation10_spill] sm:$0xff] }
 0x59d   : > { %v11169_v46 = vcombine.low %v7781_v54, %v7791_v59  ;;  %v7815_v42 = vsel %vm13548_vm12, %v7810_v0, %v7814_v43  ;;  %v11029_v0 = vrot.slane %v7818_v24, 9 }
 0x59e   : > { %v11912_v40 = vpop.f32.mrb[152].mxu1  ;;  %v11170_v7 = vcombine.low %v7805_v49, %v7815_v42 }
 0x59f   : > { %v11913_v34 = vpop.f32.mrb[153].mxu1  ;;  %v7897_v49 = vsel %vm13933_vm1, %v11029_v0, %v7896_v38 }
 0x5a0   : > { %v11914_v2 = vadd.f32 %v11913_v34, %v11912_v40  ;;  %v11915_v9 = vpop.f32.mrb[154].mxu1 }
 0x5a1   : > { %v11916_v35 = vpop.f32.mrb[155].mxu1 }
 0x5a2   : > { %v17057_v57 = vadd.f32 %v11914_v2, %v16676_v5  ;;  %v11917_v14 = vadd.f32 %v11916_v35, %v11915_v9  ;;  %v7898_v35 = vrot.slane %v7896_v38, 4 }
 0x5a3   : > { %10105 = vmatmul.mubr.bf16.gmra.mrb[20].mxu1 %v11152_v22 }
 0x5a4   : > { %v17060_v61 = vadd.f32 %v11917_v14, %v16681_v17  ;;  %10112 = vmatprep.mubr.bf16.mxu1 %v11169_v46  ;;  %v7900_v43 = vsel %vm13933_vm1, %v7898_v35, %v7899_v10  ;;  %v17761_v35 = vld [vmem:[#allocation23_spill] sm:$0xff] }
 0x5a5   : > { %v17762_v10 = vld [vmem:[#allocation11_spill] sm:$0xff] }
 0x5a6   : > { %v11918_v19 = vpop.f32.mrb[156].mxu1 }
 0x5a7   : > { %v11919_v60 = vpop.f32.mrb[157].mxu1 }
 0x5a8   : > { %v11920_v36 = vadd.f32 %v11919_v60, %v11918_v19  ;;  %v11921_v5 = vpop.f32.mrb[158].mxu1  ;;  %v11173_v19 = vcombine.low %v7897_v49, %v7900_v43  ;;  %v17747_v60 = vld [vmem:[#allocation32_spill] sm:$0xff]  ;;  %v17765_v49 = vld [vmem:[#allocation26_spill] sm:$0xff] }
 0x5a9   : > { %v11922_v51 = vpop.f32.mrb[159].mxu1  ;;  %v17749_v21 = vcombine.low %v17747_v60, %v17748_v31  ;;  %v17766_v60 = vld [vmem:[#allocation38_spill] sm:$0xff]  ;;  %v17767_v31 = vld [vmem:[#allocation39_spill] sm:$0xff] }
 0x5aa   : > { %v17069_v17 = vadd.f32 %v11920_v36, %v16705_v55  ;;  %v11923_v48 = vadd.f32 %v11922_v51, %v11921_v5  ;;  %v7886_v55 = vsel %vm13933_vm1, %v7884_v56, %v7885_v6  ;;  %v17751_v56 = vld [vmem:[#allocation35_spill] sm:$0xff] }
 0x5ab   : > { %10113 = vmatmul.mubr.bf16.gmra.mrb[24].mxu1 %v11153_v37 }
 0x5ac   : > { %v17072_v1 = vadd.f32 %v11923_v48, %v16710_v18  ;;  %10120 = vmatprep.mubr.bf16.mxu1 %v11170_v7  ;;  %v7883_v18 = vsel %vm13933_vm1, %v11027_v23, %v7882_v58  ;;  %v17750_v48 = vld [vmem:[#allocation34_spill] sm:$0xff] }
 0x5ad   : > { %v11171_v9 = vcombine.low %v7883_v18, %v7886_v55  ;;  %v17752_v11 = vcombine.low %v17750_v48, %v17751_v56  ;;  %v17758_v18 = vld [vmem:[#allocation36_spill] sm:$0xff] }
 0x5ae   : > { %v11924_v41 = vpop.f32.mrb[160].mxu1 }
 0x5af   : > { %v11925_v26 = vpop.f32.mrb[161].mxu1 }
 0x5b0   : > { %v11926_v40 = vadd.f32 %v11925_v26, %v11924_v41  ;;  %v11927_v34 = vpop.f32.mrb[162].mxu1  ;;  %v17754_v41 = vld [vmem:[#allocation22_spill] sm:$0xff] }
 0x5b1   : > { %v11928_v59 = vpop.f32.mrb[163].mxu1 }
 0x5b2   : > { %v17082_v22 = vadd.f32 %v11926_v40, %v16732_v15  ;;  %v11929_v2 = vadd.f32 %v11928_v59, %v11927_v34  ;;  %v17757_v34 = vld [vmem:[#allocation27_spill] sm:$0xff] }
 0x5b3   : > { %10121 = vmatmul.mubr.bf16.gmra.mrb[28].mxu1 %v11154_v33 }
 0x5b4   : > { %v17085_v45 = vadd.f32 %v11929_v2, %v16737_v16  ;;  %12488 = vmatprep.mubr.bf16.mxu1 %v11171_v9  ;;  %v17759_v2 = vld [vmem:[#allocation37_spill] sm:$0xff] }
 0x5b5   : > { %v17760_v9 = vcombine.low %v17758_v18, %v17759_v2 }
 0x5b6   : > { %v11930_v54 = vpop.f32.mrb[164].mxu1 }
 0x5b7   : > { %v11931_v25 = vpop.f32.mrb[165].mxu1 }
 0x5b8   : > { %v11932_v14 = vadd.f32 %v11931_v25, %v11930_v54  ;;  %v11933_v15 = vpop.f32.mrb[166].mxu1  ;;  %v17763_v54 = vld [vmem:[#allocation21_spill] sm:$0xff] }
 0x5b9   : > { %v11934_v46 = vpop.f32.mrb[167].mxu1  ;;  %v17764_v25 = vcombine.low %v17762_v10, %v17763_v54 }
 0x5ba   : > { %v17093_v42 = vadd.f32 %v11932_v14, %v16763_v3  ;;  %v11935_v16 = vadd.f32 %v11934_v46, %v11933_v15 }
 0x5bb   : > { %12489 = vmatmul.mubr.bf16.vlgmr.msra.gmra.mrb[32].mxu1 %v17749_v21  ;;  %v17768_v21 = vcombine.low %v17766_v60, %v17767_v31 }
 0x5bc   : > { %v17099_v58 = vadd.f32 %v11935_v16, %v16768_v13  ;;  %12492 = vmatprep.mubr.bf16.mxu1 %v11173_v19  ;;  %v17755_v13 = vld [vmem:[#allocation16_spill] sm:$0xff] }
 0x5bd   : > { %v17756_v26 = vcombine.low %v17754_v41, %v17755_v13 }
 0x5be   : > { %v11936_v36 = vpop.f32.mrb[168].mxu1 }
 0x5bf   : > { %v11937_v5 = vpop.f32.mrb[169].mxu1 }
 0x5c0   : > { %v11938_v7 = vadd.f32 %v11937_v5, %v11936_v36  ;;  %v11939_v37 = vpop.f32.mrb[170].mxu1  ;;  %v17769_v36 = vld [vmem:[#allocation24_spill] sm:$0xff] }
 0x5c1   : > { %v11940_v51 = vpop.f32.mrb[171].mxu1 }
 0x5c2   : > { %v17102_v32 = vadd.f32 %v11938_v7, %v16786_v8  ;;  %v11941_v3 = vadd.f32 %v11940_v51, %v11939_v37  ;;  %v17770_v7 = vld [vmem:[#allocation28_spill] sm:$0xff]  ;;  %v17771_v37 = vld [vmem:[#allocation29_spill] sm:$0xff] }
 0x5c3   : > { %12493 = vmatmul.mubr.bf16.gmra.mrb[36].mxu1 %v17752_v11  ;;  %v17772_v51 = vcombine.low %v17770_v7, %v17771_v37 }
 0x5c4   : > { %v17108_v6 = vadd.f32 %v11941_v3, %v17753_v53  ;;  %12496 = vmatprep.mubr.bf16.mxu1 %v17756_v26  ;;  %v17773_v26 = vld [vmem:[#allocation31_spill] sm:$0xff] }
 0x5c6   : > { %v11942_v33 = vpop.f32.mrb[172].mxu1 }
 0x5c7   : > { %v11943_v23 = vpop.f32.mrb[173].mxu1 }
 0x5c8   : > { %v11944_v55 = vadd.f32 %v11943_v23, %v11942_v33  ;;  %v11945_v38 = vpop.f32.mrb[174].mxu1  ;;  %v17774_v33 = vld [vmem:[#allocation30_spill] sm:$0xff] }
 0x5c9   : > { %v11946_v40 = vpop.f32.mrb[175].mxu1  ;;  %v17775_v23 = vcombine.low %v17773_v26, %v17774_v33 }
 0x5ca   : > { %v17114_v8 = vadd.f32 %v11944_v55, %v17757_v34  ;;  %v11947_v59 = vadd.f32 %v11946_v40, %v11945_v38  ;;  %v17776_v55 = vld [vmem:[#allocation15_spill] sm:$0xff]  ;;  %v17777_v40 = vld [vmem:[#allocation40_spill] sm:$0xff]  ;;  %v17778_v34 = vld [vmem:[#allocation41_spill] sm:$0xff] }
 0x5cb   : > { %12497 = vmatmul.mubr.bf16.gmra.mrb[40].mxu1 %v17760_v9 }
 0x5cc   : > { %v17120_v24 = vadd.f32 %v11947_v59, %v17761_v35  ;;  %12500 = vmatprep.mubr.bf16.mxu1 %v17764_v25  ;;  %v17779_v59 = vcombine.low %v17777_v40, %v17778_v34  ;;  %v17780_v25 = vld [vmem:[#allocation42_spill] sm:$0xff] }
 0x5ce   : > { %v11948_v0 = vpop.f32.mrb[176].mxu1 }
 0x5cf   : > { %v11949_v43 = vpop.f32.mrb[177].mxu1 }
 0x5d0   : > { %v11950_v14 = vadd.f32 %v11949_v43, %v11948_v0  ;;  %v11951_v15 = vpop.f32.mrb[178].mxu1  ;;  %v17781_v0 = vld [vmem:[#allocation43_spill] sm:$0xff] }
 0x5d1   : > { %v11952_v46 = vpop.f32.mrb[179].mxu1  ;;  %v17782_v43 = vcombine.low %v17780_v25, %v17781_v0 }
 0x5d2   : > { %v17126_v16 = vadd.f32 %v17765_v49, %v11950_v14  ;;  %v11953_v19 = vadd.f32 %v11952_v46, %v11951_v15  ;;  %v17783_v14 = vld [vmem:[#allocation12_spill] sm:$0xff]  ;;  %v17785_v49 = vld [vmem:[#allocation45_spill] sm:$0xff] }
 0x5d3   : > { %12501 = vmatmul.mubr.bf16.gmra.mrb[44].mxu1 %v17768_v21  ;;  %v17784_v46 = vld [vmem:[#allocation44_spill] sm:$0xff] }
 0x5d4   : > { %v17132_v5 = vadd.f32 %v17769_v36, %v11953_v19  ;;  %12504 = vmatprep.mubr.bf16.mxu1 %v17772_v51  ;;  %v17786_v19 = vcombine.low %v17784_v46, %v17785_v49  ;;  %v17787_v51 = vld [vmem:[#allocation46_spill] sm:$0xff] }
 0x5d6   : > { %v11954_v3 = vpop.f32.mrb[180].mxu1 }
 0x5d7   : > { %v11955_v48 = vpop.f32.mrb[181].mxu1 }
 0x5d8   : > { %v11956_v56 = vadd.f32 %v11955_v48, %v11954_v3  ;;  %v11957_v11 = vpop.f32.mrb[182].mxu1  ;;  %v17788_v3 = vld [vmem:[#allocation48_spill] sm:$0xff] }
 0x5d9   : > { %v11958_v53 = vpop.f32.mrb[183].mxu1  ;;  %v17789_v48 = vcombine.low %v17787_v51, %v17788_v3 }
 0x5da   : > { %v17138_v41 = vadd.f32 %v16857_v27, %v11956_v56  ;;  %v11959_v13 = vadd.f32 %v11958_v53, %v11957_v11  ;;  %v17790_v56 = vld [vmem:[#allocation18_spill] sm:$0xff]  ;;  %v17791_v53 = vld [vmem:[#allocation47_spill] sm:$0xff] }
 0x5db   : > { %12505 = vmatmul.mubr.bf16.gmra.mrb[0].mxu1 %v17775_v23 }
 0x5dc   : > { %v17144_v38 = vadd.f32 %v17776_v55, %v11959_v13  ;;  %12508 = vmatprep.mubr.bf16.mxu1 %v17779_v59  ;;  %v17792_v13 = vld [vmem:[#allocation49_spill] sm:$0xff] }
 0x5dd   : > { %v17793_v26 = vcombine.low %v17791_v53, %v17792_v13  ;;  %v17794_v59 = vld [vmem:[#allocation25_spill] sm:$0xff] }
 0x5de   : > { %v11960_v18 = vpop.f32.mrb[184].mxu1 }
 0x5df   : > { %v11961_v2 = vpop.f32.mrb[185].mxu1 }
 0x5e0   : > { %v11962_v9 = vadd.f32 %v11961_v2, %v11960_v18  ;;  %v11963_v35 = vpop.f32.mrb[186].mxu1  ;;  %v17795_v2 = vcombine.low %v16947_v52, %v16954_v39 }
 0x5e1   : > { %v11964_v10 = vpop.f32.mrb[187].mxu1 }
 0x5e2   : > { %v17150_v27 = vadd.f32 %v16878_v30, %v11962_v9  ;;  %v11965_v54 = vadd.f32 %v11964_v10, %v11963_v35  ;;  %v17796_v9 = vld [vmem:[#allocation14_spill] sm:$0xff] }
 0x5e3   : > { %12509 = vmatmul.mubr.bf16.gmra.mrb[4].mxu1 %v17782_v43 }
 0x5e4   : > { %v17156_v15 = vadd.f32 %v17783_v14, %v11965_v54  ;;  %12512 = vmatprep.mubr.bf16.mxu1 %v17786_v19 }
 0x5e6   : > { %v11966_v60 = vpop.f32.mrb[188].mxu1 }
 0x5e7   : > { %v11967_v31 = vpop.f32.mrb[189].mxu1 }
 0x5e8   : > { %v11968_v21 = vadd.f32 %v11967_v31, %v11966_v60  ;;  %v11969_v36 = vpop.f32.mrb[190].mxu1 }
 0x5e9   : > { %v11970_v7 = vpop.f32.mrb[191].mxu1 }
 0x5ea   : > { %v17162_v30 = vadd.f32 %v16898_v4, %v11968_v21  ;;  %v11971_v37 = vadd.f32 %v11970_v7, %v11969_v36 }
 0x5eb   : > { %12513 = vmatmul.mubr.bf16.gmra.mrb[8].mxu1 %v17789_v48 }
 0x5ec   : > { %v17168_v11 = vadd.f32 %v17790_v56, %v11971_v37  ;;  %12516 = vmatprep.mubr.bf16.mxu1 %v17793_v26 }
 0x5ee   : > { %v11972_v33 = vpop.f32.mrb[192].mxu1 }
 0x5ef   : > { %v11973_v23 = vpop.f32.mrb[193].mxu1 }
 0x5f0   : > { %v11974_v55 = vadd.f32 %v11973_v23, %v11972_v33  ;;  %v11975_v40 = vpop.f32.mrb[194].mxu1 }
 0x5f1   : > { %v11976_v34 = vpop.f32.mrb[195].mxu1 }
 0x5f2   : > { %v17174_v4 = vadd.f32 %v17794_v59, %v11974_v55  ;;  %v11977_v18 = vadd.f32 %v11976_v34, %v11975_v40 }
 0x5f3   : > { %12517 = vmatmul.mubr.bf16.gmra.mrb[12].mxu1 %v17795_v2 }
 0x5f4   : > { %v17180_v35 = vadd.f32 %v17796_v9, %v11977_v18 }
 0x5f6   : > { %v11978_v10 = vpop.f32.mrb[196].mxu1 }
 0x5f7   : > { %v11979_v54 = vpop.f32.mrb[197].mxu1 }
 0x5f8   : > { %v11980_v25 = vadd.f32 %v11979_v54, %v11978_v10  ;;  %v11981_v0 = vpop.f32.mrb[198].mxu1 }
 0x5f9   : > { %v11982_v43 = vpop.f32.mrb[199].mxu1 }
 0x5fa   : > { %v17183_v14 = vadd.f32 %v16961_v29, %v11980_v25  ;;  %v11983_v46 = vadd.f32 %v11982_v43, %v11981_v0 }
 0x5fc   : > { %v17186_v49 = vadd.f32 %v16964_v12, %v11983_v46 }
 0x5fe   : > { %v11984_v19 = vpop.f32.mrb[200].mxu1 }
 0x5ff   : > { %v11985_v60 = vpop.f32.mrb[201].mxu1 }
 0x600   : > { %v11986_v31 = vadd.f32 %v11985_v60, %v11984_v19  ;;  %v11987_v52 = vpop.f32.mrb[202].mxu1 }
 0x601   : > { %v11988_v39 = vpop.f32.mrb[203].mxu1 }
 0x602   : > { %v17189_v21 = vadd.f32 %v16982_v47, %v11986_v31  ;;  %v11989_v36 = vadd.f32 %v11988_v39, %v11987_v52 }
 0x604   : > { %v17192_v7 = vadd.f32 %v16985_v20, %v11989_v36 }
 0x606   : > { %v11990_v37 = vpop.f32.mrb[204].mxu1 }
 0x607   : > { %v11991_v51 = vpop.f32.mrb[205].mxu1 }
 0x608   : > { %v11992_v29 = vadd.f32 %v11991_v51, %v11990_v37  ;;  %v11993_v3 = vpop.f32.mrb[206].mxu1 }
 0x609   : > { %v11994_v48 = vpop.f32.mrb[207].mxu1 }
 0x60a   : > { %v17195_v12 = vadd.f32 %v17002_v50, %v11992_v29  ;;  %v11995_v56 = vadd.f32 %v11994_v48, %v11993_v3  ;;  %v17797_v50 = vld [vmem:[#allocation20_spill] sm:$0xff] }
 0x60c   : > { %v17198_v53 = vadd.f32 %v17007_v63, %v11995_v56 }
 0x60e   : > { %v12012_v13 = vpop.f32.mrb[208].mxu1 }
 0x60f   : > { %v12013_v26 = vpop.f32.mrb[209].mxu1 }
 0x610   : > { %v12014_v47 = vadd.f32 %v12013_v26, %v12012_v13  ;;  %v12015_v33 = vpop.f32.mrb[210].mxu1 }
 0x611   : > { %v12016_v23 = vpop.f32.mrb[211].mxu1 }
 0x612   : > { %v12017_v55 = vadd.f32 %v12016_v23, %v12015_v33  ;;  %v17201_v20 = vadd.f32 %v12014_v47, %v17025_v28 }
 0x614   : > { %v17204_v9 = vadd.f32 %v12017_v55, %v17797_v50 }
 0x616   : > { %v12018_v40 = vpop.f32.mrb[212].mxu1 }
 0x617   : > { %v12019_v34 = vpop.f32.mrb[213].mxu1 }
 0x618   : > { %v12020_v59 = vadd.f32 %v12019_v34, %v12018_v40  ;;  %v12021_v18 = vpop.f32.mrb[214].mxu1 }
 0x619   : > { %v12022_v2 = vpop.f32.mrb[215].mxu1 }
 0x61a   : > { %v12023_v10 = vadd.f32 %v12022_v2, %v12021_v18  ;;  %v17207_v63 = vadd.f32 %v12020_v59, %v17044_v62 }
 0x61c   : > { %v17210_v54 = vadd.f32 %v12023_v10, %v17047_v44 }
 0x61e   : > { %v12024_v25 = vpop.f32.mrb[216].mxu1 }
 0x61f   : > { %v12025_v0 = vpop.f32.mrb[217].mxu1 }
 0x620   : > { %v12026_v43 = vadd.f32 %v12025_v0, %v12024_v25  ;;  %v12027_v28 = vpop.f32.mrb[218].mxu1 }
 0x621   : > { %v12028_v46 = vpop.f32.mrb[219].mxu1 }
 0x622   : > { %v12029_v19 = vadd.f32 %v12028_v46, %v12027_v28  ;;  %v17213_v60 = vadd.f32 %v12026_v43, %v17057_v57 }
 0x624   : > { %v17216_v31 = vadd.f32 %v12029_v19, %v17060_v61 }
 0x626   : > { %v12030_v52 = vpop.f32.mrb[220].mxu1 }
 0x627   : > { %v12031_v39 = vpop.f32.mrb[221].mxu1 }
 0x628   : > { %v12032_v36 = vadd.f32 %v12031_v39, %v12030_v52  ;;  %v12033_v62 = vpop.f32.mrb[222].mxu1 }
 0x629   : > { %v12034_v37 = vpop.f32.mrb[223].mxu1 }
 0x62a   : > { %v12035_v51 = vadd.f32 %v12034_v37, %v12033_v62  ;;  %v17219_v44 = vadd.f32 %v12032_v36, %v17069_v17 }
 0x62c   : > { %v17222_v29 = vadd.f32 %v12035_v51, %v17072_v1 }
 0x62e   : > { %v12036_v3 = vpop.f32.mrb[224].mxu1 }
 0x62f   : > { %v12037_v48 = vpop.f32.mrb[225].mxu1 }
 0x630   : > { %v12038_v56 = vadd.f32 %v12037_v48, %v12036_v3  ;;  %v12039_v57 = vpop.f32.mrb[226].mxu1 }
 0x631   : > { %v12040_v13 = vpop.f32.mrb[227].mxu1 }
 0x632   : > { %v12041_v26 = vadd.f32 %v12040_v13, %v12039_v57  ;;  %v17225_v61 = vadd.f32 %v12038_v56, %v17082_v22 }
 0x634   : > { %v17228_v47 = vadd.f32 %v12041_v26, %v17085_v45 }
 0x636   : > { %v12042_v33 = vpop.f32.mrb[228].mxu1 }
 0x637   : > { %v12043_v23 = vpop.f32.mrb[229].mxu1 }
 0x638   : > { %v12044_v55 = vadd.f32 %v12043_v23, %v12042_v33  ;;  %v12045_v17 = vpop.f32.mrb[230].mxu1 }
 0x639   : > { %v12046_v40 = vpop.f32.mrb[231].mxu1 }
 0x63a   : > { %v12047_v34 = vadd.f32 %v12046_v40, %v12045_v17  ;;  %v17231_v1 = vadd.f32 %v12044_v55, %v17093_v42 }
 0x63c   : > { %v17234_v59 = vadd.f32 %v12047_v34, %v17099_v58 }
 0x63e   : > { %v12048_v18 = vpop.f32.mrb[232].mxu1 }
 0x63f   : > { %v12049_v2 = vpop.f32.mrb[233].mxu1 }
 0x640   : > { %v12050_v50 = vadd.f32 %v12049_v2, %v12048_v18  ;;  %v12051_v22 = vpop.f32.mrb[234].mxu1 }
 0x641   : > { %v12052_v10 = vpop.f32.mrb[235].mxu1 }
 0x642   : > { %v12053_v25 = vadd.f32 %v12052_v10, %v12051_v22  ;;  %v17237_v45 = vadd.f32 %v12050_v50, %v17102_v32 }
 0x644   : > { %v17240_v0 = vadd.f32 %v12053_v25, %v17108_v6 }
 0x646   : > { %v12054_v43 = vpop.f32.mrb[236].mxu1 }
 0x647   : > { %v12055_v28 = vpop.f32.mrb[237].mxu1 }
 0x648   : > { %v12056_v46 = vadd.f32 %v12055_v28, %v12054_v43  ;;  %v12057_v42 = vpop.f32.mrb[238].mxu1 }
 0x649   : > { %v12058_v19 = vpop.f32.mrb[239].mxu1 }
 0x64a   : > { %v12059_v52 = vadd.f32 %v12058_v19, %v12057_v42  ;;  %v17243_v58 = vadd.f32 %v12056_v46, %v17114_v8 }
 0x64c   : > { %v17246_v39 = vadd.f32 %v12059_v52, %v17120_v24 }
 0x64e   : > { %v12060_v36 = vpop.f32.mrb[240].mxu1 }
 0x64f   : > { %v12061_v62 = vpop.f32.mrb[241].mxu1 }
 0x650   : > { %v12062_v37 = vadd.f32 %v12061_v62, %v12060_v36  ;;  %v12063_v32 = vpop.f32.mrb[242].mxu1 }
 0x651   : > { %v12064_v51 = vpop.f32.mrb[243].mxu1 }
 0x652   : > { %v12065_v3 = vadd.f32 %v12064_v51, %v12063_v32  ;;  %v17249_v6 = vadd.f32 %v17126_v16, %v12062_v37 }
 0x654   : > { %v17252_v48 = vadd.f32 %v17132_v5, %v12065_v3 }
 0x656   : > { %v12066_v56 = vpop.f32.mrb[244].mxu1 }
 0x657   : > { %v12067_v57 = vpop.f32.mrb[245].mxu1 }
 0x658   : > { %v12068_v13 = vadd.f32 %v12067_v57, %v12066_v56  ;;  %v12069_v8 = vpop.f32.mrb[246].mxu1 }
 0x659   : > { %v12070_v26 = vpop.f32.mrb[247].mxu1 }
 0x65a   : > { %v12071_v33 = vadd.f32 %v12070_v26, %v12069_v8  ;;  %v17255_v24 = vadd.f32 %v17138_v41, %v12068_v13 }
 0x65c   : > { %v17258_v23 = vadd.f32 %v17144_v38, %v12071_v33 }
 0x65e   : > { %v12072_v55 = vpop.f32.mrb[248].mxu1 }
 0x65f   : > { %v12073_v17 = vpop.f32.mrb[249].mxu1 }
 0x660   : > { %v12074_v40 = vadd.f32 %v12073_v17, %v12072_v55  ;;  %v12075_v16 = vpop.f32.mrb[250].mxu1 }
 0x661   : > { %v12076_v34 = vpop.f32.mrb[251].mxu1 }
 0x662   : > { %v12077_v18 = vadd.f32 %v12076_v34, %v12075_v16  ;;  %v17261_v5 = vadd.f32 %v17150_v27, %v12074_v40 }
 0x664   : > { %v17264_v2 = vadd.f32 %v17156_v15, %v12077_v18 }
 0x666   : > { %v12078_v50 = vpop.f32.mrb[252].mxu1 }
 0x667   : > { %v12079_v22 = vpop.f32.mrb[253].mxu1 }
 0x668   : > { %v12080_v10 = vadd.f32 %v12079_v22, %v12078_v50  ;;  %v12081_v41 = vpop.f32.mrb[254].mxu1 }
 0x669   : > { %v12082_v25 = vpop.f32.mrb[255].mxu1 }
 0x66a   : > { %v12083_v43 = vadd.f32 %v12082_v25, %v12081_v41  ;;  %v17267_v38 = vadd.f32 %v17162_v30, %v12080_v10 }
 0x66c   : > { %v17270_v28 = vadd.f32 %v17168_v11, %v12083_v43 }
 0x66e   : > { %v12084_v46 = vpop.f32.mrb[16].mxu1 }
 0x66f   : > { %v12085_v42 = vpop.f32.mrb[17].mxu1 }
 0x670   : > { %v12086_v19 = vadd.f32 %v12085_v42, %v12084_v46  ;;  %v12087_v27 = vpop.f32.mrb[18].mxu1 }
 0x671   : > { %v12088_v52 = vpop.f32.mrb[19].mxu1 }
 0x672   : > { %v12089_v36 = vadd.f32 %v12088_v52, %v12087_v27  ;;  %v17273_v15 = vadd.f32 %v17174_v4, %v12086_v19 }
 0x674   : > { %v17276_v62 = vadd.f32 %v17180_v35, %v12089_v36 }
 0x676   : > { %v12090_v37 = vpop.f32.mrb[20].mxu1 }
 0x677   : > { %v12091_v32 = vpop.f32.mrb[21].mxu1 }
 0x678   : > { %v12092_v51 = vadd.f32 %v12091_v32, %v12090_v37  ;;  %v12093_v30 = vpop.f32.mrb[22].mxu1 }
 0x679   : > { %v12094_v3 = vpop.f32.mrb[23].mxu1 }
 0x67a   : > { %v12095_v56 = vadd.f32 %v12094_v3, %v12093_v30  ;;  %v17279_v11 = vadd.f32 %v17183_v14, %v12092_v51 }
 0x67c   : > { %v17282_v57 = vadd.f32 %v17186_v49, %v12095_v56 }
 0x67e   : > { %v12096_v13 = vpop.f32.mrb[24].mxu1 }
 0x67f   : > { %v12097_v8 = vpop.f32.mrb[25].mxu1 }
 0x680   : > { %v12098_v26 = vadd.f32 %v12097_v8, %v12096_v13  ;;  %v12099_v4 = vpop.f32.mrb[26].mxu1 }
 0x681   : > { %v12100_v33 = vpop.f32.mrb[27].mxu1 }
 0x682   : > { %v12101_v55 = vadd.f32 %v12100_v33, %v12099_v4  ;;  %v17285_v35 = vadd.f32 %v17189_v21, %v12098_v26  ;;  %v17299_v21 = vld [vmem:[%s17443_s5] ss:$0 sm:$0xff] }
 0x684   : > { %v17288_v17 = vadd.f32 %v17192_v7, %v12101_v55 }
 0x686   : > { %v12102_v40 = vpop.f32.mrb[28].mxu1 }
 0x687   : > { %v12103_v16 = vpop.f32.mrb[29].mxu1 }
 0x688   : > { %v12104_v14 = vadd.f32 %v12103_v16, %v12102_v40  ;;  %v12105_v34 = vpop.f32.mrb[30].mxu1 }
 0x689   : > { %v12106_v18 = vpop.f32.mrb[31].mxu1 }
 0x68a   : > { %v12107_v49 = vadd.f32 %v12106_v18, %v12105_v34  ;;  %v17291_v50 = vadd.f32 %v17195_v12, %v12104_v14 }
 0x68c   : > { %v17294_v22 = vadd.f32 %v17198_v53, %v12107_v49 }
 0x68e   : > { %v12490_v10 = vpop.f32.mrb[32].mxu1 }
 0x68f   : > { %v10172_v7 = vadd.f32 %v12490_v10, %v17207_v63  ;;  %v10163_v41 = vpop.f32.mrb[33].mxu1 }
 0x690   : > { %v10164_v25 = vadd.f32 %v10163_v41, %v17201_v20  ;;  %v12491_v43 = vpop.f32.mrb[34].mxu1 }
 0x691   : > { %v10299_v46 = vadd.f32 %v17299_v21, %v10172_v7  ;;  %v10175_v12 = vadd.f32 %v12491_v43, %v17210_v54  ;;  %v10166_v42 = vpop.f32.mrb[35].mxu1 }
 0x692   : > { %v10297_v53 = vadd.f32 %v17299_v21, %v10164_v25  ;;  %v10167_v19 = vadd.f32 %v10166_v42, %v17204_v9 }
 0x693   : > { %v10300_v27 = vadd.f32 %v17299_v21, %v10175_v12  ;;  %v10331_v52 = vmax.f32 %v10299_v46, 0.0 }
 0x694   : > { %v10298_v63 = vadd.f32 %v17299_v21, %v10167_v19  ;;  %v10329_v20 = vmax.f32 %v10297_v53, 0.0 }
 0x695   : > { %v10332_v36 = vmax.f32 %v10300_v27, 0.0 }
 0x696   : > { %v10330_v37 = vmax.f32 %v10298_v63, 0.0  ;;  %v12494_v32 = vpop.f32.mrb[36].mxu1 }
 0x697   : > { %v11403_v51 = vpack.c.bf16 %v10332_v36, %v10331_v52  ;;  %v10188_v30 = vadd.f32 %v12494_v32, %v17219_v44  ;;  %v10179_v54 = vpop.f32.mrb[37].mxu1 }
 0x698   : > { %v11398_v3 = vpack.c.bf16 %v10330_v37, %v10329_v20  ;;  %v10180_v56 = vadd.f32 %v10179_v54, %v17213_v60  ;;  %v12495_v13 = vpop.f32.mrb[38].mxu1 }
 0x699   : > { %11475 = vst [vmem:[%s17314_s11 + $0x8] sm:$0xff] %v11403_v51   ;;  %v10303_v9 = vadd.f32 %v17299_v21, %v10188_v30  ;;  %v10191_v8 = vadd.f32 %v12495_v13, %v17222_v29  ;;  %v10182_v26 = vpop.f32.mrb[39].mxu1 }
 0x69a   : > { %11399 = vst [vmem:[%s17314_s11] sm:$0xff] %v11398_v3   ;;  %v10301_v4 = vadd.f32 %v17299_v21, %v10180_v56  ;;  %v10183_v44 = vadd.f32 %v10182_v26, %v17216_v31 }
 0x69b   : > { %v10304_v33 = vadd.f32 %v17299_v21, %v10191_v8  ;;  %v10335_v55 = vmax.f32 %v10303_v9, 0.0 }
 0x69c   : > { %v10302_v60 = vadd.f32 %v17299_v21, %v10183_v44  ;;  %v10333_v16 = vmax.f32 %v10301_v4, 0.0 }
 0x69d   : > { %v10336_v40 = vmax.f32 %v10304_v33, 0.0 }
 0x69e   : > { %v10334_v14 = vmax.f32 %v10302_v60, 0.0  ;;  %v12498_v34 = vpop.f32.mrb[40].mxu1 }
 0x69f   : > { %v11413_v18 = vpack.c.bf16 %v10336_v40, %v10335_v55  ;;  %v10204_v29 = vadd.f32 %v12498_v34, %v17231_v1  ;;  %v10195_v49 = vpop.f32.mrb[41].mxu1 }
 0x6a0   : > { %v11408_v10 = vpack.c.bf16 %v10334_v14, %v10333_v16  ;;  %v10196_v7 = vadd.f32 %v10195_v49, %v17225_v61  ;;  %v12499_v41 = vpop.f32.mrb[42].mxu1 }
 0x6a1   : > { %11477 = vst [vmem:[%s17314_s11 + $0x18] sm:$0xff] %v11413_v18   ;;  %v10307_v31 = vadd.f32 %v17299_v21, %v10204_v29  ;;  %v10207_v25 = vadd.f32 %v12499_v41, %v17234_v59  ;;  %v10198_v43 = vpop.f32.mrb[43].mxu1 }
 0x6a2   : > { %11476 = vst [vmem:[%s17314_s11 + $0x10] sm:$0xff] %v11408_v10   ;;  %v10305_v46 = vadd.f32 %v17299_v21, %v10196_v7  ;;  %v10199_v12 = vadd.f32 %v10198_v43, %v17228_v47 }
 0x6a3   : > { %v10308_v42 = vadd.f32 %v17299_v21, %v10207_v25  ;;  %v10339_v53 = vmax.f32 %v10307_v31, 0.0 }
 0x6a4   : > { %v10306_v1 = vadd.f32 %v17299_v21, %v10199_v12  ;;  %v10337_v19 = vmax.f32 %v10305_v46, 0.0 }
 0x6a5   : > { %v10340_v61 = vmax.f32 %v10308_v42, 0.0 }
 0x6a6   : > { %v10338_v27 = vmax.f32 %v10306_v1, 0.0  ;;  %v12502_v63 = vpop.f32.mrb[44].mxu1 }
 0x6a7   : > { %v11423_v52 = vpack.c.bf16 %v10340_v61, %v10339_v53  ;;  %v10220_v59 = vadd.f32 %v12502_v63, %v17243_v58  ;;  %v10211_v36 = vpop.f32.mrb[45].mxu1 }
 0x6a8   : > { %v11418_v20 = vpack.c.bf16 %v10338_v27, %v10337_v19  ;;  %v10212_v37 = vadd.f32 %v10211_v36, %v17237_v45  ;;  %v12503_v32 = vpop.f32.mrb[46].mxu1 }
 0x6a9   : > { %11479 = vst [vmem:[%s17314_s11 + $0x28] sm:$0xff] %v11423_v52   ;;  %v10311_v47 = vadd.f32 %v17299_v21, %v10220_v59  ;;  %v10223_v51 = vadd.f32 %v12503_v32, %v17246_v39  ;;  %v10214_v30 = vpop.f32.mrb[47].mxu1 }
 0x6aa   : > { %11478 = vst [vmem:[%s17314_s11 + $0x20] sm:$0xff] %v11418_v20   ;;  %v10309_v54 = vadd.f32 %v17299_v21, %v10212_v37  ;;  %v10215_v3 = vadd.f32 %v10214_v30, %v17240_v0 }
 0x6ab   : > { %v10312_v56 = vadd.f32 %v17299_v21, %v10223_v51  ;;  %v10343_v13 = vmax.f32 %v10311_v47, 0.0 }
 0x6ac   : > { %v10310_v58 = vadd.f32 %v17299_v21, %v10215_v3  ;;  %v10341_v9 = vmax.f32 %v10309_v54, 0.0 }
 0x6ad   : > { %v10344_v45 = vmax.f32 %v10312_v56, 0.0 }
 0x6ae   : > { %v10342_v8 = vmax.f32 %v10310_v58, 0.0  ;;  %v12506_v26 = vpop.f32.mrb[0].mxu1 }
 0x6af   : > { %v11433_v4 = vpack.c.bf16 %v10344_v45, %v10343_v13  ;;  %v12605_v39 = vadd.f32 %v17255_v24, %v12506_v26  ;;  %v10227_v44 = vpop.f32.mrb[1].mxu1 }
 0x6b0   : > { %v11428_v33 = vpack.c.bf16 %v10342_v8, %v10341_v9  ;;  %v12609_v60 = vadd.f32 %v17249_v6, %v10227_v44  ;;  %v12507_v55 = vpop.f32.mrb[2].mxu1 }
 0x6b1   : > { %11481 = vst [vmem:[%s17314_s11 + $0x38] sm:$0xff] %v11433_v4   ;;  %v10315_v0 = vadd.f32 %v12605_v39, %v17299_v21  ;;  %v12613_v40 = vadd.f32 %v17258_v23, %v12507_v55  ;;  %v10230_v16 = vpop.f32.mrb[3].mxu1 }
 0x6b2   : > { %11480 = vst [vmem:[%s17314_s11 + $0x30] sm:$0xff] %v11428_v33   ;;  %v10313_v14 = vadd.f32 %v12609_v60, %v17299_v21  ;;  %v12617_v34 = vadd.f32 %v17252_v48, %v10230_v16 }
 0x6b3   : > { %v10316_v18 = vadd.f32 %v12613_v40, %v17299_v21  ;;  %v10347_v29 = vmax.f32 %v10315_v0, 0.0 }
 0x6b4   : > { %v10314_v24 = vadd.f32 %v12617_v34, %v17299_v21  ;;  %v10345_v49 = vmax.f32 %v10313_v14, 0.0 }
 0x6b5   : > { %v10348_v6 = vmax.f32 %v10316_v18, 0.0 }
 0x6b6   : > { %v10346_v10 = vmax.f32 %v10314_v24, 0.0  ;;  %v12510_v7 = vpop.f32.mrb[4].mxu1 }
 0x6b7   : > { %v11443_v41 = vpack.c.bf16 %v10348_v6, %v10347_v29  ;;  %v12621_v23 = vadd.f32 %v17267_v38, %v12510_v7  ;;  %v10243_v31 = vpop.f32.mrb[5].mxu1 }
 0x6b8   : > { %v11438_v25 = vpack.c.bf16 %v10346_v10, %v10345_v49  ;;  %v12625_v43 = vadd.f32 %v17261_v5, %v10243_v31  ;;  %v12511_v46 = vpop.f32.mrb[6].mxu1 }
 0x6b9   : > { %11483 = vst [vmem:[%s17314_s11 + $0x48] sm:$0xff] %v11443_v41   ;;  %v10319_v48 = vadd.f32 %v12621_v23, %v17299_v21  ;;  %v12629_v12 = vadd.f32 %v17270_v28, %v12511_v46  ;;  %v10246_v42 = vpop.f32.mrb[7].mxu1 }
 0x6ba   : > { %11482 = vst [vmem:[%s17314_s11 + $0x40] sm:$0xff] %v11438_v25   ;;  %v10317_v1 = vadd.f32 %v12625_v43, %v17299_v21  ;;  %v12633_v53 = vadd.f32 %v17264_v2, %v10246_v42 }
 0x6bb   : > { %v10320_v61 = vadd.f32 %v12629_v12, %v17299_v21  ;;  %v10351_v19 = vmax.f32 %v10319_v48, 0.0 }
 0x6bc   : > { %v10318_v38 = vadd.f32 %v12633_v53, %v17299_v21  ;;  %v10349_v27 = vmax.f32 %v10317_v1, 0.0 }
 0x6bd   : > { %v10352_v5 = vmax.f32 %v10320_v61, 0.0 }
 0x6be   : > { %v10350_v63 = vmax.f32 %v10318_v38, 0.0  ;;  %v12514_v52 = vpop.f32.mrb[8].mxu1 }
 0x6bf   : > { %v11453_v59 = vpack.c.bf16 %v10352_v5, %v10351_v19  ;;  %v12637_v28 = vadd.f32 %v17279_v11, %v12514_v52  ;;  %v10259_v36 = vpop.f32.mrb[9].mxu1 }
 0x6c0   : > { %v11448_v20 = vpack.c.bf16 %v10350_v63, %v10349_v27  ;;  %v12641_v37 = vadd.f32 %v17273_v15, %v10259_v36  ;;  %v12515_v32 = vpop.f32.mrb[10].mxu1 }
 0x6c1   : > { %11485 = vst [vmem:[%s17314_s11 + $0x58] sm:$0xff] %v11453_v59   ;;  %v10323_v2 = vadd.f32 %v12637_v28, %v17299_v21  ;;  %v12645_v47 = vadd.f32 %v17282_v57, %v12515_v32  ;;  %v10262_v51 = vpop.f32.mrb[11].mxu1 }
 0x6c2   : > { %11484 = vst [vmem:[%s17314_s11 + $0x50] sm:$0xff] %v11448_v20   ;;  %v10321_v30 = vadd.f32 %v12641_v37, %v17299_v21  ;;  %v12649_v54 = vadd.f32 %v17276_v62, %v10262_v51 }
 0x6c3   : > { %v10324_v3 = vadd.f32 %v12645_v47, %v17299_v21  ;;  %v10355_v56 = vmax.f32 %v10323_v2, 0.0 }
 0x6c4   : > { %v10322_v11 = vadd.f32 %v12649_v54, %v17299_v21  ;;  %v10353_v58 = vmax.f32 %v10321_v30, 0.0 }
 0x6c5   : > { %v10356_v15 = vmax.f32 %v10324_v3, 0.0 }
 0x6c6   : > { %v10354_v13 = vmax.f32 %v10322_v11, 0.0  ;;  %v12518_v45 = vpop.f32.mrb[12].mxu1 }
 0x6c7   : > { %v11463_v9 = vpack.c.bf16 %v10356_v15, %v10355_v56  ;;  %v12653_v57 = vadd.f32 %v17291_v50, %v12518_v45  ;;  %v10275_v8 = vpop.f32.mrb[13].mxu1 }
 0x6c8   : > { %v11458_v26 = vpack.c.bf16 %v10354_v13, %v10353_v58  ;;  %v12657_v4 = vadd.f32 %v17285_v35, %v10275_v8  ;;  %v12519_v62 = vpop.f32.mrb[14].mxu1 }
 0x6c9   : > { %11487 = vst [vmem:[%s17314_s11 + $0x68] sm:$0xff] %v11463_v9   ;;  %v10327_v39 = vadd.f32 %v12653_v57, %v17299_v21  ;;  %v12661_v44 = vadd.f32 %v17294_v22, %v12519_v62  ;;  %v10278_v33 = vpop.f32.mrb[15].mxu1 }
 0x6ca   : > { %11486 = vst [vmem:[%s17314_s11 + $0x60] sm:$0xff] %v11458_v26   ;;  %v10325_v60 = vadd.f32 %v12657_v4, %v17299_v21  ;;  %v12665_v55 = vadd.f32 %v17288_v17, %v10278_v33 }
 0x6cb   : > { %v10328_v50 = vadd.f32 %v12661_v44, %v17299_v21  ;;  %v10359_v35 = vmax.f32 %v10327_v39, 0.0 }
 0x6cc   : > { %v10326_v0 = vadd.f32 %v12665_v55, %v17299_v21  ;;  %v10357_v16 = vmax.f32 %v10325_v60, 0.0 }
 0x6cd   : > { %v10360_v40 = vmax.f32 %v10328_v50, 0.0 }
 0x6ce   : > { %v10358_v22 = vmax.f32 %v10326_v0, 0.0 }
 0x6cf   : > { %v11473_v14 = vpack.c.bf16 %v10360_v40, %v10359_v35 }
 0x6d0   : > { %v11468_v17 = vpack.c.bf16 %v10358_v22, %v10357_v16 }
 0x6d1   : > { %11489 = vst [vmem:[%s17314_s11 + $0x78] sm:$0xff] %v11473_v14  }
 0x6d2   : > { %11488 = vst [vmem:[%s17314_s11 + $0x70] sm:$0xff] %v11468_v17  }
 0x6d3   : > { %13287 = shalt.err (!%p13284_p7)
}
 0x6d4   : > { %s13288_s28 = scalar_lea.hbm %s17389_s16, 2048  ;;  %s13292_s10 = scalar_lea.hbm %s17444_s6, 4096 }
 0x6d5   : > { %p13289_p8 = scmp.ne.s32.totalorder %s17389_s16, %s13288_s28  ;;  %p13293_p1 = scmp.lt.u32.totalorder %s17389_s16, %s17444_s6 }
 0x6d6   : > { %p13294_p0 = scmp.lt.u32.totalorder %s13292_s10, %s13288_s28  ;;  %p13296_p6 = scmp.lt.u32.totalorder %s13288_s28, %s17389_s16 }
 0x6d7   : > { %p13290_p11 = pnand %p13289_p8, %p17798_p9 }
 0x6d8   : > { %p13295_p5 = por %p13294_p0, %p13293_p1 }
 0x6d9   : > { %p13291_p13 = pneg %p13290_p11 }
 0x6da   : > { %p13297_p10 = por %p13296_p6, %p13295_p5 }
 0x6dc   : > { %p13298_p12 = pnand %p13297_p10, %p13291_p13 }
 0x6de   : > { %13301 = shalt.err (!%p13298_p12)
}
 0x6df   : > { %s13347_s12 = smov 64   ;;  %s13348_s14 = smov 4  }
 0x6e0   : > { %12953 = dma.vmem_to_hbm [thread:$0]  (%p17798_p9), %s17391_s13, 2048, %s17389_s16, %s17397_s25, %s13347_s12, %s13347_s12, %s13348_s14  }
 0x6e1 PF: > { %p12965_p2 = scmp.ge.s32.totalorder %s13340_s24, 2  ;;  %s10550_s15 = sand.u32 1, %s13328_s21  }
 0x6e2   : > { %p17799_p3 = scmp.ne.s32.totalorder %s17518_s8, 0  ;;  %s10551_s17 = scalar_lea.sflag [#allocation6], %s10550_s15 }
 0x6e4   : > { %p12960_p4 = pnand %p12965_p2, %p17799_p3 }
 0x6e6   : > { %13323 = dma.done.wait (!%p12960_p4), %s10551_s17, 2048  }
 0x6e7   : > { %13325 = vsyncadd (!%p12960_p4), %s10551_s17, 4294965248  ;;  %p17_p7 = scmp.ge.s32.totalorder %s13409_s27, 4   ;;  %s17800_s21 = smov %s13332_s22 }
 0x6e8   : > { %s17801_s22 = smov %s13336_s23  ;;  %s17802_s23 = smov %s13420_s30 }
 0x6e9   : > { %s17803_s24 = smov %s13409_s27  ;;  %19 = sbr.rel (!%p17_p7) target bundleno = 4 (0x4), region = 98 }
 0x6f0   :  { %10556 = vsyncpa [#allocation5], 1 }
 0x6f1   :  { %10558 = vsyncpa [#allocation5 + $0x1], 1 }
 0x6f2   :  { %10559 = vsyncpa [#allocation6], 1 }
 0x6f3   :  { %10561 = vsyncpa [#allocation6 + $0x1], 1 }

</bundles_post_ra>
